<compile_context>
chip_gen: v5e
topology: v5e:2x2
jax: 0.10.0
libtpu: 0.0.40
codegen_flags: <defaults>
</compile_context>

<pallas_src>
import math
from functools import partial

import jax
import jax.numpy as jnp
from jax.experimental import pallas as pl
from jax.experimental.pallas import tpu as pltpu

ACT_DTYPE = jnp.bfloat16  # HBM dtype for activations / weights / residual


# ---------------------------------------------------------------------------
# Pallas kernels
# ---------------------------------------------------------------------------
def _make_conv_kernel(taps, l_out, has_res):
    """Fused 3x3 conv (shifted-matmul) + folded-BN bias + optional residual + ReLU.

    taps: static tuple of 9 flat row offsets into the padded, flattened
    activation block.  The kernel accumulates nine (L, Cin) @ (Cin, Cout)
    MXU matmuls in f32, then applies bias (+ residual) + ReLU in f32 and
    stores the result in the output dtype.
    """

    def kernel(xp_ref, w_ref, bias_ref, *rest):
        if has_res:
            res_ref, o_ref = rest
        else:
            (o_ref,) = rest
        cout = o_ref.shape[-1]
        acc = jnp.zeros((l_out, cout), jnp.float32)
        for k, off in enumerate(taps):          # static, unrolled
            win = xp_ref[0, pl.ds(off, l_out), :]         # (L, Cin) bf16
            acc = acc + jnp.dot(win, w_ref[k],            # (Cin, Cout) bf16
                                preferred_element_type=jnp.float32)
        out = acc + bias_ref[...]                          # f32 epilogue
        if has_res:
            out = out + res_ref[0].astype(jnp.float32)
        o_ref[0] = jnp.maximum(out, 0.0).astype(o_ref.dtype)

    return kernel


def head_kernel(x_ref, w_ref, b_ref, o_ref):
    # global average pool over the spatial axis (f32), then Linear
    pooled = jnp.mean(x_ref[...].astype(jnp.float32), axis=1)   # (N, C)
    o_ref[...] = (
        jnp.dot(pooled, w_ref[...], preferred_element_type=jnp.float32)
        + b_ref[...]
    )


# ---------------------------------------------------------------------------
# Conv wrapper (fused conv + BN + residual + ReLU)
# ---------------------------------------------------------------------------
def conv3x3_bn_relu(x, w, bn, *, stride, residual=None, eps=1e-5):
    """Fused 3x3 conv (padding=1) + folded BN + optional residual + ReLU.

    x: (N, H, W, Cin) NHWC; w: (3, 3, Cin, Cout); bn: per-channel dict;
    residual: (N, Ho, Wo, Cout) or None.  Returns (N, Ho, Wo, Cout) bf16.
    """
    N, H, W, Cin = x.shape
    Cout = w.shape[-1]

    # Fold eval-mode BN scale into the weights; only the bias enters the kernel.
    scale = bn["gamma"] * jax.lax.rsqrt(bn["var"] + eps)            # (Cout,)
    bias = (bn["beta"] - bn["mean"] * scale).reshape(1, Cout).astype(jnp.float32)
    w_folded = (w * scale).reshape(9, Cin, Cout).astype(ACT_DTYPE)

    if stride == 1:
        Ho, Wo = H, W
        Wwide = W + 2
        # pad 1 top / 2 bottom / 1 left / 1 right; the extra bottom row only
        # feeds the (discarded) junk columns of the bottom-most taps.
        xp = jnp.pad(x, ((0, 0), (1, 2), (1, 1), (0, 0)))
        xp_flat = xp.reshape(N, (H + 3) * Wwide, Cin)
        taps = tuple(ki * Wwide + kj for ki in range(3) for kj in range(3))
    else:
        assert stride == 2 and H % 2 == 0 and W % 2 == 0
        Ho, Wo = H // 2, W // 2
        Wwide = Wo + 1
        Hph = Ho + 2
        xpad = jnp.pad(x, ((0, 0), (1, 1), (1, 1), (0, 0)))
        phases = []
        for a in range(2):
            for b in range(2):
                ph = xpad[:, a::2, b::2, :][:, :Hph, :Wwide, :]
                ph = jnp.pad(ph, ((0, 0), (0, Hph - ph.shape[1]),
                                  (0, Wwide - ph.shape[2]), (0, 0)))
                phases.append(ph.reshape(N, Hph * Wwide, Cin))
        xp_flat = jnp.concatenate(phases, axis=1)        # (N, 4*Hph*Wwide, Cin)
        lp = Hph * Wwide
        taps = tuple(((ki % 2) * 2 + (kj % 2)) * lp
                     + (ki // 2) * Wwide + (kj // 2)
                     for ki in range(3) for kj in range(3))

    L = Ho * Wwide
    xp_flat = xp_flat.astype(ACT_DTYPE)
    Lp = xp_flat.shape[1]

    inputs = [xp_flat, w_folded, bias]
    in_specs = [
        pl.BlockSpec((1, Lp, Cin), lambda n: (n, 0, 0)),
        pl.BlockSpec((9, Cin, Cout), lambda n: (0, 0, 0)),
        pl.BlockSpec((1, Cout), lambda n: (0, 0)),
    ]

    has_res = residual is not None
    if has_res:
        # Present the residual in the same "wide" (Ho, Wwide) layout; junk
        # columns are zero-padded and dropped after the kernel.
        res = jnp.pad(residual, ((0, 0), (0, 0), (0, Wwide - Wo), (0, 0)))
        inputs.append(res.reshape(N, L, Cout).astype(ACT_DTYPE))
        in_specs.append(pl.BlockSpec((1, L, Cout), lambda n: (n, 0, 0)))

    kernel = _make_conv_kernel(taps, L, has_res)
    out_wide = pl.pallas_call(
        kernel,
        out_shape=jax.ShapeDtypeStruct((N, L, Cout), ACT_DTYPE),
        grid=(N,),
        in_specs=in_specs,
        out_specs=pl.BlockSpec((1, L, Cout), lambda n: (n, 0, 0)),
        compiler_params=pltpu.CompilerParams(
            dimension_semantics=("parallel",),
            vmem_limit_bytes=32 * 1024 * 1024,
        ),
    )(*inputs)

    # Drop the junk columns of the wide layout (wrapper-side slice).
    return out_wide.reshape(N, Ho, Wwide, Cout)[:, :, :Wo, :]


def avgpool_linear(x, w, b):
    # x: (N, H*W, C) bf16; w: (C, num_classes) f32; b: (1, num_classes) f32
    N = x.shape[0]
    nc = w.shape[1]
    return pl.pallas_call(
        head_kernel,
        out_shape=jax.ShapeDtypeStruct((N, nc), jnp.float32),
        in_specs=[pl.BlockSpec(memory_space=pltpu.MemorySpace.VMEM)] * 3,
        out_specs=pl.BlockSpec(memory_space=pltpu.MemorySpace.VMEM),
    )(x, w, b)


# ---------------------------------------------------------------------------
# Network (plain-JAX glue around the fused kernels)
# ---------------------------------------------------------------------------
def basic_block(x, blk, stride):
    """BasicBlock (expansion=1, option 'A' zero-pad shortcut), NHWC."""
    N, H, W, Cin = x.shape
    planes = blk["conv1"].shape[-1]

    out = conv3x3_bn_relu(x, blk["conv1"], blk["bn1"], stride=stride)

    # option-A shortcut: spatial subsample + zero-pad channels
    if stride != 1 or Cin != planes:
        sc = x[:, ::stride, ::stride, :]
        lo = (planes - Cin) // 2
        sc = jnp.pad(sc, ((0, 0), (0, 0), (0, 0), (lo, planes - Cin - lo)))
    else:
        sc = x

    out = conv3x3_bn_relu(out, blk["conv2"], blk["bn2"], stride=1, residual=sc)
    return out


@partial(jax.jit, static_argnames=("strides",))
def resnet_forward(x_nchw, params, strides):
    x = jnp.transpose(x_nchw, (0, 2, 3, 1)).astype(ACT_DTYPE)   # NCHW -> NHWC

    # stem: relu(bn1(conv1(x)))
    out = conv3x3_bn_relu(x, params["conv1"], params["bn1"], stride=1)

    for li, layer_strides in enumerate(strides, start=1):
        for bi, s in enumerate(layer_strides):
            out = basic_block(out, params[f"layer{li}"][bi], s)

    N, H, W, C = out.shape
    return avgpool_linear(
        out.reshape(N, H * W, C),
        params["linear_w"].astype(jnp.float32),
        params["linear_b"].astype(jnp.float32),
    )


# ---------------------------------------------------------------------------
# Deterministic parameter initialization (kaiming_normal for conv/linear)
# ---------------------------------------------------------------------------
def init_conv(key, cin, cout):
    fan_in = cin * 9
    return jax.random.normal(key, (3, 3, cin, cout), jnp.float32) * math.sqrt(
        2.0 / fan_in
    )


def init_bn(c):
    return dict(
        gamma=jnp.ones((c,), jnp.float32),
        beta=jnp.zeros((c,), jnp.float32),
        mean=jnp.zeros((c,), jnp.float32),
        var=jnp.ones((c,), jnp.float32),
    )


def init_resnet_params(key, num_blocks=(1, 1, 1), num_classes=10):
    keys = iter(jax.random.split(key, 64))
    params = {"conv1": init_conv(next(keys), 3, 16), "bn1": init_bn(16)}
    strides = []
    in_planes = 16
    for li, (planes, first_stride) in enumerate(
        zip((16, 32, 64), (1, 2, 2)), start=1
    ):
        layer_strides = tuple([first_stride] + [1] * (num_blocks[li - 1] - 1))
        blocks = []
        for _ in layer_strides:
            blocks.append(
                dict(
                    conv1=init_conv(next(keys), in_planes, planes),
                    bn1=init_bn(planes),
                    conv2=init_conv(next(keys), planes, planes),
                    bn2=init_bn(planes),
                )
            )
            in_planes = planes
        params[f"layer{li}"] = blocks
        strides.append(layer_strides)

    fan_in = 64
    params["linear_w"] = jax.random.normal(
        next(keys), (64, num_classes), jnp.float32
    ) * math.sqrt(2.0 / fan_in)
    bound = 1.0 / math.sqrt(fan_in)
    params["linear_b"] = jax.random.uniform(
        next(keys), (1, num_classes), jnp.float32, -bound, bound
    )
    return params, tuple(strides)


if __name__ == "__main__":
    key = jax.random.PRNGKey(0)
    k_param, k_input = jax.random.split(key)
    params, strides = init_resnet_params(
        k_param, num_blocks=(1, 1, 1), num_classes=10
    )

    # small CIFAR-like input: batch=2, channels=3, spatial=16x16 (NCHW)
    x = jax.random.normal(k_input, (2, 3, 16, 16), jnp.float32)

    logits = resnet_forward(x, params, strides)
    logits = jax.block_until_ready(logits)
    assert logits.shape == (2, 10)
    print("KERNEL_OK")
</pallas_src>

<mosaic_0001>
module attributes {stable_mosaic.version = 11 : i64} {
  func.func @kernel(%arg0: i32, %arg1: memref<1x342x3xbf16, #tpu.memory_space<vmem>>, %arg2: memref<9x3x16xbf16, #tpu.memory_space<vmem>>, %arg3: memref<1x16xf32, #tpu.memory_space<vmem>>, %arg4: memref<1x288x16xbf16, #tpu.memory_space<vmem>>) attributes {dimension_semantics = [#tpu.dimension_semantics<parallel>], iteration_bounds = array<i64: 2>, scalar_prefetch = 0 : i64, scratch_operands = 0 : i64, tpu.core_type = #tpu.core_type<tc>, window_params = [{transform_indices = @transform_0, window_bounds = array<i64: 1, 342, 3>}, {pipeline_mode = #tpu.pipeline_mode<synchronous>, transform_indices = @transform_1, window_bounds = array<i64: 9, 3, 16>}, {pipeline_mode = #tpu.pipeline_mode<synchronous>, transform_indices = @transform_2, window_bounds = array<i64: 1, 16>}, {transform_indices = @transform_3, window_bounds = array<i64: 1, 288, 16>}]} {
    %cst = arith.constant 0.000000e+00 : f32
    %0 = vector.broadcast %cst : f32 to vector<288x16xf32>
    %c0 = arith.constant 0 : index
    %c0_0 = arith.constant 0 : index
    %c0_1 = arith.constant 0 : index
    %1 = vector.load %arg1[%c0, %c0_0, %c0_1] : memref<1x342x3xbf16, #tpu.memory_space<vmem>>, vector<1x288x3xbf16>
    %2 = vector.shape_cast %1 : vector<1x288x3xbf16> to vector<288x3xbf16>
    %c0_2 = arith.constant 0 : index
    %c0_3 = arith.constant 0 : index
    %c0_4 = arith.constant 0 : index
    %3 = vector.load %arg2[%c0_2, %c0_3, %c0_4] : memref<9x3x16xbf16, #tpu.memory_space<vmem>>, vector<1x3x16xbf16>
    %4 = vector.shape_cast %3 : vector<1x3x16xbf16> to vector<3x16xbf16>
    %cst_5 = arith.constant dense<0.000000e+00> : vector<288x16xf32>
    %5 = tpu.matmul %2, %4, %cst_5 {dimension_numbers = #tpu.dot_dimension_numbers<[1], [0], [0], [1], [0, 0, 1, 1], [], []>} : vector<288x3xbf16>, vector<3x16xbf16>, vector<288x16xf32> -> vector<288x16xf32>
    %6 = arith.addf %0, %5 : vector<288x16xf32>
    %c0_6 = arith.constant 0 : index
    %c1 = arith.constant 1 : index
    %c0_7 = arith.constant 0 : index
    %7 = vector.load %arg1[%c0_6, %c1, %c0_7] : memref<1x342x3xbf16, #tpu.memory_space<vmem>>, vector<1x288x3xbf16>
    %8 = vector.shape_cast %7 : vector<1x288x3xbf16> to vector<288x3xbf16>
    %c1_8 = arith.constant 1 : index
    %c0_9 = arith.constant 0 : index
    %c0_10 = arith.constant 0 : index
    %9 = vector.load %arg2[%c1_8, %c0_9, %c0_10] : memref<9x3x16xbf16, #tpu.memory_space<vmem>>, vector<1x3x16xbf16>
    %10 = vector.shape_cast %9 : vector<1x3x16xbf16> to vector<3x16xbf16>
    %cst_11 = arith.constant dense<0.000000e+00> : vector<288x16xf32>
    %11 = tpu.matmul %8, %10, %cst_11 {dimension_numbers = #tpu.dot_dimension_numbers<[1], [0], [0], [1], [0, 0, 1, 1], [], []>} : vector<288x3xbf16>, vector<3x16xbf16>, vector<288x16xf32> -> vector<288x16xf32>
    %12 = arith.addf %6, %11 : vector<288x16xf32>
    %c0_12 = arith.constant 0 : index
    %c2 = arith.constant 2 : index
    %c0_13 = arith.constant 0 : index
    %13 = vector.load %arg1[%c0_12, %c2, %c0_13] : memref<1x342x3xbf16, #tpu.memory_space<vmem>>, vector<1x288x3xbf16>
    %14 = vector.shape_cast %13 : vector<1x288x3xbf16> to vector<288x3xbf16>
    %c2_14 = arith.constant 2 : index
    %c0_15 = arith.constant 0 : index
    %c0_16 = arith.constant 0 : index
    %15 = vector.load %arg2[%c2_14, %c0_15, %c0_16] : memref<9x3x16xbf16, #tpu.memory_space<vmem>>, vector<1x3x16xbf16>
    %16 = vector.shape_cast %15 : vector<1x3x16xbf16> to vector<3x16xbf16>
    %cst_17 = arith.constant dense<0.000000e+00> : vector<288x16xf32>
    %17 = tpu.matmul %14, %16, %cst_17 {dimension_numbers = #tpu.dot_dimension_numbers<[1], [0], [0], [1], [0, 0, 1, 1], [], []>} : vector<288x3xbf16>, vector<3x16xbf16>, vector<288x16xf32> -> vector<288x16xf32>
    %18 = arith.addf %12, %17 : vector<288x16xf32>
    %c0_18 = arith.constant 0 : index
    %c18 = arith.constant 18 : index
    %c0_19 = arith.constant 0 : index
    %19 = vector.load %arg1[%c0_18, %c18, %c0_19] : memref<1x342x3xbf16, #tpu.memory_space<vmem>>, vector<1x288x3xbf16>
    %20 = vector.shape_cast %19 : vector<1x288x3xbf16> to vector<288x3xbf16>
    %c3 = arith.constant 3 : index
    %c0_20 = arith.constant 0 : index
    %c0_21 = arith.constant 0 : index
    %21 = vector.load %arg2[%c3, %c0_20, %c0_21] : memref<9x3x16xbf16, #tpu.memory_space<vmem>>, vector<1x3x16xbf16>
    %22 = vector.shape_cast %21 : vector<1x3x16xbf16> to vector<3x16xbf16>
    %cst_22 = arith.constant dense<0.000000e+00> : vector<288x16xf32>
    %23 = tpu.matmul %20, %22, %cst_22 {dimension_numbers = #tpu.dot_dimension_numbers<[1], [0], [0], [1], [0, 0, 1, 1], [], []>} : vector<288x3xbf16>, vector<3x16xbf16>, vector<288x16xf32> -> vector<288x16xf32>
    %24 = arith.addf %18, %23 : vector<288x16xf32>
    %c0_23 = arith.constant 0 : index
    %c19 = arith.constant 19 : index
    %c0_24 = arith.constant 0 : index
    %25 = vector.load %arg1[%c0_23, %c19, %c0_24] : memref<1x342x3xbf16, #tpu.memory_space<vmem>>, vector<1x288x3xbf16>
    %26 = vector.shape_cast %25 : vector<1x288x3xbf16> to vector<288x3xbf16>
    %c4 = arith.constant 4 : index
    %c0_25 = arith.constant 0 : index
    %c0_26 = arith.constant 0 : index
    %27 = vector.load %arg2[%c4, %c0_25, %c0_26] : memref<9x3x16xbf16, #tpu.memory_space<vmem>>, vector<1x3x16xbf16>
    %28 = vector.shape_cast %27 : vector<1x3x16xbf16> to vector<3x16xbf16>
    %cst_27 = arith.constant dense<0.000000e+00> : vector<288x16xf32>
    %29 = tpu.matmul %26, %28, %cst_27 {dimension_numbers = #tpu.dot_dimension_numbers<[1], [0], [0], [1], [0, 0, 1, 1], [], []>} : vector<288x3xbf16>, vector<3x16xbf16>, vector<288x16xf32> -> vector<288x16xf32>
    %30 = arith.addf %24, %29 : vector<288x16xf32>
    %c0_28 = arith.constant 0 : index
    %c20 = arith.constant 20 : index
    %c0_29 = arith.constant 0 : index
    %31 = vector.load %arg1[%c0_28, %c20, %c0_29] : memref<1x342x3xbf16, #tpu.memory_space<vmem>>, vector<1x288x3xbf16>
    %32 = vector.shape_cast %31 : vector<1x288x3xbf16> to vector<288x3xbf16>
    %c5 = arith.constant 5 : index
    %c0_30 = arith.constant 0 : index
    %c0_31 = arith.constant 0 : index
    %33 = vector.load %arg2[%c5, %c0_30, %c0_31] : memref<9x3x16xbf16, #tpu.memory_space<vmem>>, vector<1x3x16xbf16>
    %34 = vector.shape_cast %33 : vector<1x3x16xbf16> to vector<3x16xbf16>
    %cst_32 = arith.constant dense<0.000000e+00> : vector<288x16xf32>
    %35 = tpu.matmul %32, %34, %cst_32 {dimension_numbers = #tpu.dot_dimension_numbers<[1], [0], [0], [1], [0, 0, 1, 1], [], []>} : vector<288x3xbf16>, vector<3x16xbf16>, vector<288x16xf32> -> vector<288x16xf32>
    %36 = arith.addf %30, %35 : vector<288x16xf32>
    %c0_33 = arith.constant 0 : index
    %c36 = arith.constant 36 : index
    %c0_34 = arith.constant 0 : index
    %37 = vector.load %arg1[%c0_33, %c36, %c0_34] : memref<1x342x3xbf16, #tpu.memory_space<vmem>>, vector<1x288x3xbf16>
    %38 = vector.shape_cast %37 : vector<1x288x3xbf16> to vector<288x3xbf16>
    %c6 = arith.constant 6 : index
    %c0_35 = arith.constant 0 : index
    %c0_36 = arith.constant 0 : index
    %39 = vector.load %arg2[%c6, %c0_35, %c0_36] : memref<9x3x16xbf16, #tpu.memory_space<vmem>>, vector<1x3x16xbf16>
    %40 = vector.shape_cast %39 : vector<1x3x16xbf16> to vector<3x16xbf16>
    %cst_37 = arith.constant dense<0.000000e+00> : vector<288x16xf32>
    %41 = tpu.matmul %38, %40, %cst_37 {dimension_numbers = #tpu.dot_dimension_numbers<[1], [0], [0], [1], [0, 0, 1, 1], [], []>} : vector<288x3xbf16>, vector<3x16xbf16>, vector<288x16xf32> -> vector<288x16xf32>
    %42 = arith.addf %36, %41 : vector<288x16xf32>
    %c0_38 = arith.constant 0 : index
    %c37 = arith.constant 37 : index
    %c0_39 = arith.constant 0 : index
    %43 = vector.load %arg1[%c0_38, %c37, %c0_39] : memref<1x342x3xbf16, #tpu.memory_space<vmem>>, vector<1x288x3xbf16>
    %44 = vector.shape_cast %43 : vector<1x288x3xbf16> to vector<288x3xbf16>
    %c7 = arith.constant 7 : index
    %c0_40 = arith.constant 0 : index
    %c0_41 = arith.constant 0 : index
    %45 = vector.load %arg2[%c7, %c0_40, %c0_41] : memref<9x3x16xbf16, #tpu.memory_space<vmem>>, vector<1x3x16xbf16>
    %46 = vector.shape_cast %45 : vector<1x3x16xbf16> to vector<3x16xbf16>
    %cst_42 = arith.constant dense<0.000000e+00> : vector<288x16xf32>
    %47 = tpu.matmul %44, %46, %cst_42 {dimension_numbers = #tpu.dot_dimension_numbers<[1], [0], [0], [1], [0, 0, 1, 1], [], []>} : vector<288x3xbf16>, vector<3x16xbf16>, vector<288x16xf32> -> vector<288x16xf32>
    %48 = arith.addf %42, %47 : vector<288x16xf32>
    %c0_43 = arith.constant 0 : index
    %c38 = arith.constant 38 : index
    %c0_44 = arith.constant 0 : index
    %49 = vector.load %arg1[%c0_43, %c38, %c0_44] : memref<1x342x3xbf16, #tpu.memory_space<vmem>>, vector<1x288x3xbf16>
    %50 = vector.shape_cast %49 : vector<1x288x3xbf16> to vector<288x3xbf16>
    %c8 = arith.constant 8 : index
    %c0_45 = arith.constant 0 : index
    %c0_46 = arith.constant 0 : index
    %51 = vector.load %arg2[%c8, %c0_45, %c0_46] : memref<9x3x16xbf16, #tpu.memory_space<vmem>>, vector<1x3x16xbf16>
    %52 = vector.shape_cast %51 : vector<1x3x16xbf16> to vector<3x16xbf16>
    %cst_47 = arith.constant dense<0.000000e+00> : vector<288x16xf32>
    %53 = tpu.matmul %50, %52, %cst_47 {dimension_numbers = #tpu.dot_dimension_numbers<[1], [0], [0], [1], [0, 0, 1, 1], [], []>} : vector<288x3xbf16>, vector<3x16xbf16>, vector<288x16xf32> -> vector<288x16xf32>
    %54 = arith.addf %48, %53 : vector<288x16xf32>
    %c0_48 = arith.constant 0 : index
    %c0_49 = arith.constant 0 : index
    %55 = vector.load %arg3[%c0_48, %c0_49] : memref<1x16xf32, #tpu.memory_space<vmem>>, vector<1x16xf32>
    %56 = vector.broadcast %55 : vector<1x16xf32> to vector<288x16xf32>
    %57 = arith.addf %54, %56 : vector<288x16xf32>
    %cst_50 = arith.constant 0.000000e+00 : f32
    %58 = vector.broadcast %cst_50 : f32 to vector<288x16xf32>
    %59 = arith.maximumf %57, %58 : vector<288x16xf32>
    %60 = arith.truncf %59 : vector<288x16xf32> to vector<288x16xbf16>
    %c0_51 = arith.constant 0 : index
    %c0_52 = arith.constant 0 : index
    %c0_53 = arith.constant 0 : index
    %61 = vector.load %arg4[%c0_51, %c0_52, %c0_53] : memref<1x288x16xbf16, #tpu.memory_space<vmem>>, vector<1x288x16xbf16>
    %62 = vector.shape_cast %61 : vector<1x288x16xbf16> to vector<288x16xbf16>
    %63 = vector.shape_cast %60 : vector<288x16xbf16> to vector<1x288x16xbf16>
    tpu.vector_store %arg4[%c0_51, %c0_52, %c0_53], %63 {strides = array<i32>} : memref<1x288x16xbf16, #tpu.memory_space<vmem>>, vector<1x288x16xbf16>,
    return
  }
  func.func @transform_0(%arg0: i32) -> (i32, i32, i32) {
    %c0_i32 = arith.constant 0 : i32
    %c0_i32_0 = arith.constant 0 : i32
    %c0_i32_1 = arith.constant 0 : i32
    return %arg0, %c0_i32, %c0_i32_0 : i32, i32, i32
  }
  func.func @transform_1(%arg0: i32) -> (i32, i32, i32) {
    %c0_i32 = arith.constant 0 : i32
    %c0_i32_0 = arith.constant 0 : i32
    %c0_i32_1 = arith.constant 0 : i32
    %c0_i32_2 = arith.constant 0 : i32
    return %c0_i32, %c0_i32_0, %c0_i32_1 : i32, i32, i32
  }
  func.func @transform_2(%arg0: i32) -> (i32, i32) {
    %c0_i32 = arith.constant 0 : i32
    %c0_i32_0 = arith.constant 0 : i32
    %c0_i32_1 = arith.constant 0 : i32
    return %c0_i32, %c0_i32_0 : i32, i32
  }
  func.func @transform_3(%arg0: i32) -> (i32, i32, i32) {
    %c0_i32 = arith.constant 0 : i32
    %c0_i32_0 = arith.constant 0 : i32
    %c0_i32_1 = arith.constant 0 : i32
    return %arg0, %c0_i32, %c0_i32_0 : i32, i32, i32
  }
}

module attributes {stable_mosaic.version = 11 : i64} {
  func.func @kernel(%arg0: i32, %arg1: memref<1x342x16xbf16, #tpu.memory_space<vmem>>, %arg2: memref<9x16x16xbf16, #tpu.memory_space<vmem>>, %arg3: memref<1x16xf32, #tpu.memory_space<vmem>>, %arg4: memref<1x288x16xbf16, #tpu.memory_space<vmem>>) attributes {dimension_semantics = [#tpu.dimension_semantics<parallel>], iteration_bounds = array<i64: 2>, scalar_prefetch = 0 : i64, scratch_operands = 0 : i64, tpu.core_type = #tpu.core_type<tc>, window_params = [{transform_indices = @transform_0, window_bounds = array<i64: 1, 342, 16>}, {pipeline_mode = #tpu.pipeline_mode<synchronous>, transform_indices = @transform_1, window_bounds = array<i64: 9, 16, 16>}, {pipeline_mode = #tpu.pipeline_mode<synchronous>, transform_indices = @transform_2, window_bounds = array<i64: 1, 16>}, {transform_indices = @transform_3, window_bounds = array<i64: 1, 288, 16>}]} {
    %cst = arith.constant 0.000000e+00 : f32
    %0 = vector.broadcast %cst : f32 to vector<288x16xf32>
    %c0 = arith.constant 0 : index
    %c0_0 = arith.constant 0 : index
    %c0_1 = arith.constant 0 : index
    %1 = vector.load %arg1[%c0, %c0_0, %c0_1] : memref<1x342x16xbf16, #tpu.memory_space<vmem>>, vector<1x288x16xbf16>
    %2 = vector.shape_cast %1 : vector<1x288x16xbf16> to vector<288x16xbf16>
    %c0_2 = arith.constant 0 : index
    %c0_3 = arith.constant 0 : index
    %c0_4 = arith.constant 0 : index
    %3 = vector.load %arg2[%c0_2, %c0_3, %c0_4] : memref<9x16x16xbf16, #tpu.memory_space<vmem>>, vector<1x16x16xbf16>
    %4 = vector.shape_cast %3 : vector<1x16x16xbf16> to vector<16x16xbf16>
    %cst_5 = arith.constant dense<0.000000e+00> : vector<288x16xf32>
    %5 = tpu.matmul %2, %4, %cst_5 {dimension_numbers = #tpu.dot_dimension_numbers<[1], [0], [0], [1], [0, 0, 1, 1], [], []>} : vector<288x16xbf16>, vector<16x16xbf16>, vector<288x16xf32> -> vector<288x16xf32>
    %6 = arith.addf %0, %5 : vector<288x16xf32>
    %c0_6 = arith.constant 0 : index
    %c1 = arith.constant 1 : index
    %c0_7 = arith.constant 0 : index
    %7 = vector.load %arg1[%c0_6, %c1, %c0_7] : memref<1x342x16xbf16, #tpu.memory_space<vmem>>, vector<1x288x16xbf16>
    %8 = vector.shape_cast %7 : vector<1x288x16xbf16> to vector<288x16xbf16>
    %c1_8 = arith.constant 1 : index
    %c0_9 = arith.constant 0 : index
    %c0_10 = arith.constant 0 : index
    %9 = vector.load %arg2[%c1_8, %c0_9, %c0_10] : memref<9x16x16xbf16, #tpu.memory_space<vmem>>, vector<1x16x16xbf16>
    %10 = vector.shape_cast %9 : vector<1x16x16xbf16> to vector<16x16xbf16>
    %cst_11 = arith.constant dense<0.000000e+00> : vector<288x16xf32>
    %11 = tpu.matmul %8, %10, %cst_11 {dimension_numbers = #tpu.dot_dimension_numbers<[1], [0], [0], [1], [0, 0, 1, 1], [], []>} : vector<288x16xbf16>, vector<16x16xbf16>, vector<288x16xf32> -> vector<288x16xf32>
    %12 = arith.addf %6, %11 : vector<288x16xf32>
    %c0_12 = arith.constant 0 : index
    %c2 = arith.constant 2 : index
    %c0_13 = arith.constant 0 : index
    %13 = vector.load %arg1[%c0_12, %c2, %c0_13] : memref<1x342x16xbf16, #tpu.memory_space<vmem>>, vector<1x288x16xbf16>
    %14 = vector.shape_cast %13 : vector<1x288x16xbf16> to vector<288x16xbf16>
    %c2_14 = arith.constant 2 : index
    %c0_15 = arith.constant 0 : index
    %c0_16 = arith.constant 0 : index
    %15 = vector.load %arg2[%c2_14, %c0_15, %c0_16] : memref<9x16x16xbf16, #tpu.memory_space<vmem>>, vector<1x16x16xbf16>
    %16 = vector.shape_cast %15 : vector<1x16x16xbf16> to vector<16x16xbf16>
    %cst_17 = arith.constant dense<0.000000e+00> : vector<288x16xf32>
    %17 = tpu.matmul %14, %16, %cst_17 {dimension_numbers = #tpu.dot_dimension_numbers<[1], [0], [0], [1], [0, 0, 1, 1], [], []>} : vector<288x16xbf16>, vector<16x16xbf16>, vector<288x16xf32> -> vector<288x16xf32>
    %18 = arith.addf %12, %17 : vector<288x16xf32>
    %c0_18 = arith.constant 0 : index
    %c18 = arith.constant 18 : index
    %c0_19 = arith.constant 0 : index
    %19 = vector.load %arg1[%c0_18, %c18, %c0_19] : memref<1x342x16xbf16, #tpu.memory_space<vmem>>, vector<1x288x16xbf16>
    %20 = vector.shape_cast %19 : vector<1x288x16xbf16> to vector<288x16xbf16>
    %c3 = arith.constant 3 : index
    %c0_20 = arith.constant 0 : index
    %c0_21 = arith.constant 0 : index
    %21 = vector.load %arg2[%c3, %c0_20, %c0_21] : memref<9x16x16xbf16, #tpu.memory_space<vmem>>, vector<1x16x16xbf16>
    %22 = vector.shape_cast %21 : vector<1x16x16xbf16> to vector<16x16xbf16>
    %cst_22 = arith.constant dense<0.000000e+00> : vector<288x16xf32>
    %23 = tpu.matmul %20, %22, %cst_22 {dimension_numbers = #tpu.dot_dimension_numbers<[1], [0], [0], [1], [0, 0, 1, 1], [], []>} : vector<288x16xbf16>, vector<16x16xbf16>, vector<288x16xf32> -> vector<288x16xf32>
    %24 = arith.addf %18, %23 : vector<288x16xf32>
    %c0_23 = arith.constant 0 : index
    %c19 = arith.constant 19 : index
    %c0_24 = arith.constant 0 : index
    %25 = vector.load %arg1[%c0_23, %c19, %c0_24] : memref<1x342x16xbf16, #tpu.memory_space<vmem>>, vector<1x288x16xbf16>
    %26 = vector.shape_cast %25 : vector<1x288x16xbf16> to vector<288x16xbf16>
    %c4 = arith.constant 4 : index
    %c0_25 = arith.constant 0 : index
    %c0_26 = arith.constant 0 : index
    %27 = vector.load %arg2[%c4, %c0_25, %c0_26] : memref<9x16x16xbf16, #tpu.memory_space<vmem>>, vector<1x16x16xbf16>
    %28 = vector.shape_cast %27 : vector<1x16x16xbf16> to vector<16x16xbf16>
    %cst_27 = arith.constant dense<0.000000e+00> : vector<288x16xf32>
    %29 = tpu.matmul %26, %28, %cst_27 {dimension_numbers = #tpu.dot_dimension_numbers<[1], [0], [0], [1], [0, 0, 1, 1], [], []>} : vector<288x16xbf16>, vector<16x16xbf16>, vector<288x16xf32> -> vector<288x16xf32>
    %30 = arith.addf %24, %29 : vector<288x16xf32>
    %c0_28 = arith.constant 0 : index
    %c20 = arith.constant 20 : index
    %c0_29 = arith.constant 0 : index
    %31 = vector.load %arg1[%c0_28, %c20, %c0_29] : memref<1x342x16xbf16, #tpu.memory_space<vmem>>, vector<1x288x16xbf16>
    %32 = vector.shape_cast %31 : vector<1x288x16xbf16> to vector<288x16xbf16>
    %c5 = arith.constant 5 : index
    %c0_30 = arith.constant 0 : index
    %c0_31 = arith.constant 0 : index
    %33 = vector.load %arg2[%c5, %c0_30, %c0_31] : memref<9x16x16xbf16, #tpu.memory_space<vmem>>, vector<1x16x16xbf16>
    %34 = vector.shape_cast %33 : vector<1x16x16xbf16> to vector<16x16xbf16>
    %cst_32 = arith.constant dense<0.000000e+00> : vector<288x16xf32>
    %35 = tpu.matmul %32, %34, %cst_32 {dimension_numbers = #tpu.dot_dimension_numbers<[1], [0], [0], [1], [0, 0, 1, 1], [], []>} : vector<288x16xbf16>, vector<16x16xbf16>, vector<288x16xf32> -> vector<288x16xf32>
    %36 = arith.addf %30, %35 : vector<288x16xf32>
    %c0_33 = arith.constant 0 : index
    %c36 = arith.constant 36 : index
    %c0_34 = arith.constant 0 : index
    %37 = vector.load %arg1[%c0_33, %c36, %c0_34] : memref<1x342x16xbf16, #tpu.memory_space<vmem>>, vector<1x288x16xbf16>
    %38 = vector.shape_cast %37 : vector<1x288x16xbf16> to vector<288x16xbf16>
    %c6 = arith.constant 6 : index
    %c0_35 = arith.constant 0 : index
    %c0_36 = arith.constant 0 : index
    %39 = vector.load %arg2[%c6, %c0_35, %c0_36] : memref<9x16x16xbf16, #tpu.memory_space<vmem>>, vector<1x16x16xbf16>
    %40 = vector.shape_cast %39 : vector<1x16x16xbf16> to vector<16x16xbf16>
    %cst_37 = arith.constant dense<0.000000e+00> : vector<288x16xf32>
    %41 = tpu.matmul %38, %40, %cst_37 {dimension_numbers = #tpu.dot_dimension_numbers<[1], [0], [0], [1], [0, 0, 1, 1], [], []>} : vector<288x16xbf16>, vector<16x16xbf16>, vector<288x16xf32> -> vector<288x16xf32>
    %42 = arith.addf %36, %41 : vector<288x16xf32>
    %c0_38 = arith.constant 0 : index
    %c37 = arith.constant 37 : index
    %c0_39 = arith.constant 0 : index
    %43 = vector.load %arg1[%c0_38, %c37, %c0_39] : memref<1x342x16xbf16, #tpu.memory_space<vmem>>, vector<1x288x16xbf16>
    %44 = vector.shape_cast %43 : vector<1x288x16xbf16> to vector<288x16xbf16>
    %c7 = arith.constant 7 : index
    %c0_40 = arith.constant 0 : index
    %c0_41 = arith.constant 0 : index
    %45 = vector.load %arg2[%c7, %c0_40, %c0_41] : memref<9x16x16xbf16, #tpu.memory_space<vmem>>, vector<1x16x16xbf16>
    %46 = vector.shape_cast %45 : vector<1x16x16xbf16> to vector<16x16xbf16>
    %cst_42 = arith.constant dense<0.000000e+00> : vector<288x16xf32>
    %47 = tpu.matmul %44, %46, %cst_42 {dimension_numbers = #tpu.dot_dimension_numbers<[1], [0], [0], [1], [0, 0, 1, 1], [], []>} : vector<288x16xbf16>, vector<16x16xbf16>, vector<288x16xf32> -> vector<288x16xf32>
    %48 = arith.addf %42, %47 : vector<288x16xf32>
    %c0_43 = arith.constant 0 : index
    %c38 = arith.constant 38 : index
    %c0_44 = arith.constant 0 : index
    %49 = vector.load %arg1[%c0_43, %c38, %c0_44] : memref<1x342x16xbf16, #tpu.memory_space<vmem>>, vector<1x288x16xbf16>
    %50 = vector.shape_cast %49 : vector<1x288x16xbf16> to vector<288x16xbf16>
    %c8 = arith.constant 8 : index
    %c0_45 = arith.constant 0 : index
    %c0_46 = arith.constant 0 : index
    %51 = vector.load %arg2[%c8, %c0_45, %c0_46] : memref<9x16x16xbf16, #tpu.memory_space<vmem>>, vector<1x16x16xbf16>
    %52 = vector.shape_cast %51 : vector<1x16x16xbf16> to vector<16x16xbf16>
    %cst_47 = arith.constant dense<0.000000e+00> : vector<288x16xf32>
    %53 = tpu.matmul %50, %52, %cst_47 {dimension_numbers = #tpu.dot_dimension_numbers<[1], [0], [0], [1], [0, 0, 1, 1], [], []>} : vector<288x16xbf16>, vector<16x16xbf16>, vector<288x16xf32> -> vector<288x16xf32>
    %54 = arith.addf %48, %53 : vector<288x16xf32>
    %c0_48 = arith.constant 0 : index
    %c0_49 = arith.constant 0 : index
    %55 = vector.load %arg3[%c0_48, %c0_49] : memref<1x16xf32, #tpu.memory_space<vmem>>, vector<1x16xf32>
    %56 = vector.broadcast %55 : vector<1x16xf32> to vector<288x16xf32>
    %57 = arith.addf %54, %56 : vector<288x16xf32>
    %cst_50 = arith.constant 0.000000e+00 : f32
    %58 = vector.broadcast %cst_50 : f32 to vector<288x16xf32>
    %59 = arith.maximumf %57, %58 : vector<288x16xf32>
    %60 = arith.truncf %59 : vector<288x16xf32> to vector<288x16xbf16>
    %c0_51 = arith.constant 0 : index
    %c0_52 = arith.constant 0 : index
    %c0_53 = arith.constant 0 : index
    %61 = vector.load %arg4[%c0_51, %c0_52, %c0_53] : memref<1x288x16xbf16, #tpu.memory_space<vmem>>, vector<1x288x16xbf16>
    %62 = vector.shape_cast %61 : vector<1x288x16xbf16> to vector<288x16xbf16>
    %63 = vector.shape_cast %60 : vector<288x16xbf16> to vector<1x288x16xbf16>
    tpu.vector_store %arg4[%c0_51, %c0_52, %c0_53], %63 {strides = array<i32>} : memref<1x288x16xbf16, #tpu.memory_space<vmem>>, vector<1x288x16xbf16>,
    return
  }
  func.func @transform_0(%arg0: i32) -> (i32, i32, i32) {
    %c0_i32 = arith.constant 0 : i32
    %c0_i32_0 = arith.constant 0 : i32
    %c0_i32_1 = arith.constant 0 : i32
    return %arg0, %c0_i32, %c0_i32_0 : i32, i32, i32
  }
  func.func @transform_1(%arg0: i32) -> (i32, i32, i32) {
    %c0_i32 = arith.constant 0 : i32
    %c0_i32_0 = arith.constant 0 : i32
    %c0_i32_1 = arith.constant 0 : i32
    %c0_i32_2 = arith.constant 0 : i32
    return %c0_i32, %c0_i32_0, %c0_i32_1 : i32, i32, i32
  }
  func.func @transform_2(%arg0: i32) -> (i32, i32) {
    %c0_i32 = arith.constant 0 : i32
    %c0_i32_0 = arith.constant 0 : i32
    %c0_i32_1 = arith.constant 0 : i32
    return %c0_i32, %c0_i32_0 : i32, i32
  }
  func.func @transform_3(%arg0: i32) -> (i32, i32, i32) {
    %c0_i32 = arith.constant 0 : i32
    %c0_i32_0 = arith.constant 0 : i32
    %c0_i32_1 = arith.constant 0 : i32
    return %arg0, %c0_i32, %c0_i32_0 : i32, i32, i32
  }
}

module attributes {stable_mosaic.version = 11 : i64} {
  func.func @kernel(%arg0: i32, %arg1: memref<1x342x16xbf16, #tpu.memory_space<vmem>>, %arg2: memref<9x16x16xbf16, #tpu.memory_space<vmem>>, %arg3: memref<1x16xf32, #tpu.memory_space<vmem>>, %arg4: memref<1x288x16xbf16, #tpu.memory_space<vmem>>, %arg5: memref<1x288x16xbf16, #tpu.memory_space<vmem>>) attributes {dimension_semantics = [#tpu.dimension_semantics<parallel>], iteration_bounds = array<i64: 2>, scalar_prefetch = 0 : i64, scratch_operands = 0 : i64, tpu.core_type = #tpu.core_type<tc>, window_params = [{transform_indices = @transform_0, window_bounds = array<i64: 1, 342, 16>}, {pipeline_mode = #tpu.pipeline_mode<synchronous>, transform_indices = @transform_1, window_bounds = array<i64: 9, 16, 16>}, {pipeline_mode = #tpu.pipeline_mode<synchronous>, transform_indices = @transform_2, window_bounds = array<i64: 1, 16>}, {transform_indices = @transform_3, window_bounds = array<i64: 1, 288, 16>}, {transform_indices = @transform_4, window_bounds = array<i64: 1, 288, 16>}]} {
    %cst = arith.constant 0.000000e+00 : f32
    %0 = vector.broadcast %cst : f32 to vector<288x16xf32>
    %c0 = arith.constant 0 : index
    %c0_0 = arith.constant 0 : index
    %c0_1 = arith.constant 0 : index
    %1 = vector.load %arg1[%c0, %c0_0, %c0_1] : memref<1x342x16xbf16, #tpu.memory_space<vmem>>, vector<1x288x16xbf16>
    %2 = vector.shape_cast %1 : vector<1x288x16xbf16> to vector<288x16xbf16>
    %c0_2 = arith.constant 0 : index
    %c0_3 = arith.constant 0 : index
    %c0_4 = arith.constant 0 : index
    %3 = vector.load %arg2[%c0_2, %c0_3, %c0_4] : memref<9x16x16xbf16, #tpu.memory_space<vmem>>, vector<1x16x16xbf16>
    %4 = vector.shape_cast %3 : vector<1x16x16xbf16> to vector<16x16xbf16>
    %cst_5 = arith.constant dense<0.000000e+00> : vector<288x16xf32>
    %5 = tpu.matmul %2, %4, %cst_5 {dimension_numbers = #tpu.dot_dimension_numbers<[1], [0], [0], [1], [0, 0, 1, 1], [], []>} : vector<288x16xbf16>, vector<16x16xbf16>, vector<288x16xf32> -> vector<288x16xf32>
    %6 = arith.addf %0, %5 : vector<288x16xf32>
    %c0_6 = arith.constant 0 : index
    %c1 = arith.constant 1 : index
    %c0_7 = arith.constant 0 : index
    %7 = vector.load %arg1[%c0_6, %c1, %c0_7] : memref<1x342x16xbf16, #tpu.memory_space<vmem>>, vector<1x288x16xbf16>
    %8 = vector.shape_cast %7 : vector<1x288x16xbf16> to vector<288x16xbf16>
    %c1_8 = arith.constant 1 : index
    %c0_9 = arith.constant 0 : index
    %c0_10 = arith.constant 0 : index
    %9 = vector.load %arg2[%c1_8, %c0_9, %c0_10] : memref<9x16x16xbf16, #tpu.memory_space<vmem>>, vector<1x16x16xbf16>
    %10 = vector.shape_cast %9 : vector<1x16x16xbf16> to vector<16x16xbf16>
    %cst_11 = arith.constant dense<0.000000e+00> : vector<288x16xf32>
    %11 = tpu.matmul %8, %10, %cst_11 {dimension_numbers = #tpu.dot_dimension_numbers<[1], [0], [0], [1], [0, 0, 1, 1], [], []>} : vector<288x16xbf16>, vector<16x16xbf16>, vector<288x16xf32> -> vector<288x16xf32>
    %12 = arith.addf %6, %11 : vector<288x16xf32>
    %c0_12 = arith.constant 0 : index
    %c2 = arith.constant 2 : index
    %c0_13 = arith.constant 0 : index
    %13 = vector.load %arg1[%c0_12, %c2, %c0_13] : memref<1x342x16xbf16, #tpu.memory_space<vmem>>, vector<1x288x16xbf16>
    %14 = vector.shape_cast %13 : vector<1x288x16xbf16> to vector<288x16xbf16>
    %c2_14 = arith.constant 2 : index
    %c0_15 = arith.constant 0 : index
    %c0_16 = arith.constant 0 : index
    %15 = vector.load %arg2[%c2_14, %c0_15, %c0_16] : memref<9x16x16xbf16, #tpu.memory_space<vmem>>, vector<1x16x16xbf16>
    %16 = vector.shape_cast %15 : vector<1x16x16xbf16> to vector<16x16xbf16>
    %cst_17 = arith.constant dense<0.000000e+00> : vector<288x16xf32>
    %17 = tpu.matmul %14, %16, %cst_17 {dimension_numbers = #tpu.dot_dimension_numbers<[1], [0], [0], [1], [0, 0, 1, 1], [], []>} : vector<288x16xbf16>, vector<16x16xbf16>, vector<288x16xf32> -> vector<288x16xf32>
    %18 = arith.addf %12, %17 : vector<288x16xf32>
    %c0_18 = arith.constant 0 : index
    %c18 = arith.constant 18 : index
    %c0_19 = arith.constant 0 : index
    %19 = vector.load %arg1[%c0_18, %c18, %c0_19] : memref<1x342x16xbf16, #tpu.memory_space<vmem>>, vector<1x288x16xbf16>
    %20 = vector.shape_cast %19 : vector<1x288x16xbf16> to vector<288x16xbf16>
    %c3 = arith.constant 3 : index
    %c0_20 = arith.constant 0 : index
    %c0_21 = arith.constant 0 : index
    %21 = vector.load %arg2[%c3, %c0_20, %c0_21] : memref<9x16x16xbf16, #tpu.memory_space<vmem>>, vector<1x16x16xbf16>
    %22 = vector.shape_cast %21 : vector<1x16x16xbf16> to vector<16x16xbf16>
    %cst_22 = arith.constant dense<0.000000e+00> : vector<288x16xf32>
    %23 = tpu.matmul %20, %22, %cst_22 {dimension_numbers = #tpu.dot_dimension_numbers<[1], [0], [0], [1], [0, 0, 1, 1], [], []>} : vector<288x16xbf16>, vector<16x16xbf16>, vector<288x16xf32> -> vector<288x16xf32>
    %24 = arith.addf %18, %23 : vector<288x16xf32>
    %c0_23 = arith.constant 0 : index
    %c19 = arith.constant 19 : index
    %c0_24 = arith.constant 0 : index
    %25 = vector.load %arg1[%c0_23, %c19, %c0_24] : memref<1x342x16xbf16, #tpu.memory_space<vmem>>, vector<1x288x16xbf16>
    %26 = vector.shape_cast %25 : vector<1x288x16xbf16> to vector<288x16xbf16>
    %c4 = arith.constant 4 : index
    %c0_25 = arith.constant 0 : index
    %c0_26 = arith.constant 0 : index
    %27 = vector.load %arg2[%c4, %c0_25, %c0_26] : memref<9x16x16xbf16, #tpu.memory_space<vmem>>, vector<1x16x16xbf16>
    %28 = vector.shape_cast %27 : vector<1x16x16xbf16> to vector<16x16xbf16>
    %cst_27 = arith.constant dense<0.000000e+00> : vector<288x16xf32>
    %29 = tpu.matmul %26, %28, %cst_27 {dimension_numbers = #tpu.dot_dimension_numbers<[1], [0], [0], [1], [0, 0, 1, 1], [], []>} : vector<288x16xbf16>, vector<16x16xbf16>, vector<288x16xf32> -> vector<288x16xf32>
    %30 = arith.addf %24, %29 : vector<288x16xf32>
    %c0_28 = arith.constant 0 : index
    %c20 = arith.constant 20 : index
    %c0_29 = arith.constant 0 : index
    %31 = vector.load %arg1[%c0_28, %c20, %c0_29] : memref<1x342x16xbf16, #tpu.memory_space<vmem>>, vector<1x288x16xbf16>
    %32 = vector.shape_cast %31 : vector<1x288x16xbf16> to vector<288x16xbf16>
    %c5 = arith.constant 5 : index
    %c0_30 = arith.constant 0 : index
    %c0_31 = arith.constant 0 : index
    %33 = vector.load %arg2[%c5, %c0_30, %c0_31] : memref<9x16x16xbf16, #tpu.memory_space<vmem>>, vector<1x16x16xbf16>
    %34 = vector.shape_cast %33 : vector<1x16x16xbf16> to vector<16x16xbf16>
    %cst_32 = arith.constant dense<0.000000e+00> : vector<288x16xf32>
    %35 = tpu.matmul %32, %34, %cst_32 {dimension_numbers = #tpu.dot_dimension_numbers<[1], [0], [0], [1], [0, 0, 1, 1], [], []>} : vector<288x16xbf16>, vector<16x16xbf16>, vector<288x16xf32> -> vector<288x16xf32>
    %36 = arith.addf %30, %35 : vector<288x16xf32>
    %c0_33 = arith.constant 0 : index
    %c36 = arith.constant 36 : index
    %c0_34 = arith.constant 0 : index
    %37 = vector.load %arg1[%c0_33, %c36, %c0_34] : memref<1x342x16xbf16, #tpu.memory_space<vmem>>, vector<1x288x16xbf16>
    %38 = vector.shape_cast %37 : vector<1x288x16xbf16> to vector<288x16xbf16>
    %c6 = arith.constant 6 : index
    %c0_35 = arith.constant 0 : index
    %c0_36 = arith.constant 0 : index
    %39 = vector.load %arg2[%c6, %c0_35, %c0_36] : memref<9x16x16xbf16, #tpu.memory_space<vmem>>, vector<1x16x16xbf16>
    %40 = vector.shape_cast %39 : vector<1x16x16xbf16> to vector<16x16xbf16>
    %cst_37 = arith.constant dense<0.000000e+00> : vector<288x16xf32>
    %41 = tpu.matmul %38, %40, %cst_37 {dimension_numbers = #tpu.dot_dimension_numbers<[1], [0], [0], [1], [0, 0, 1, 1], [], []>} : vector<288x16xbf16>, vector<16x16xbf16>, vector<288x16xf32> -> vector<288x16xf32>
    %42 = arith.addf %36, %41 : vector<288x16xf32>
    %c0_38 = arith.constant 0 : index
    %c37 = arith.constant 37 : index
    %c0_39 = arith.constant 0 : index
    %43 = vector.load %arg1[%c0_38, %c37, %c0_39] : memref<1x342x16xbf16, #tpu.memory_space<vmem>>, vector<1x288x16xbf16>
    %44 = vector.shape_cast %43 : vector<1x288x16xbf16> to vector<288x16xbf16>
    %c7 = arith.constant 7 : index
    %c0_40 = arith.constant 0 : index
    %c0_41 = arith.constant 0 : index
    %45 = vector.load %arg2[%c7, %c0_40, %c0_41] : memref<9x16x16xbf16, #tpu.memory_space<vmem>>, vector<1x16x16xbf16>
    %46 = vector.shape_cast %45 : vector<1x16x16xbf16> to vector<16x16xbf16>
    %cst_42 = arith.constant dense<0.000000e+00> : vector<288x16xf32>
    %47 = tpu.matmul %44, %46, %cst_42 {dimension_numbers = #tpu.dot_dimension_numbers<[1], [0], [0], [1], [0, 0, 1, 1], [], []>} : vector<288x16xbf16>, vector<16x16xbf16>, vector<288x16xf32> -> vector<288x16xf32>
    %48 = arith.addf %42, %47 : vector<288x16xf32>
    %c0_43 = arith.constant 0 : index
    %c38 = arith.constant 38 : index
    %c0_44 = arith.constant 0 : index
    %49 = vector.load %arg1[%c0_43, %c38, %c0_44] : memref<1x342x16xbf16, #tpu.memory_space<vmem>>, vector<1x288x16xbf16>
    %50 = vector.shape_cast %49 : vector<1x288x16xbf16> to vector<288x16xbf16>
    %c8 = arith.constant 8 : index
    %c0_45 = arith.constant 0 : index
    %c0_46 = arith.constant 0 : index
    %51 = vector.load %arg2[%c8, %c0_45, %c0_46] : memref<9x16x16xbf16, #tpu.memory_space<vmem>>, vector<1x16x16xbf16>
    %52 = vector.shape_cast %51 : vector<1x16x16xbf16> to vector<16x16xbf16>
    %cst_47 = arith.constant dense<0.000000e+00> : vector<288x16xf32>
    %53 = tpu.matmul %50, %52, %cst_47 {dimension_numbers = #tpu.dot_dimension_numbers<[1], [0], [0], [1], [0, 0, 1, 1], [], []>} : vector<288x16xbf16>, vector<16x16xbf16>, vector<288x16xf32> -> vector<288x16xf32>
    %54 = arith.addf %48, %53 : vector<288x16xf32>
    %c0_48 = arith.constant 0 : index
    %c0_49 = arith.constant 0 : index
    %55 = vector.load %arg3[%c0_48, %c0_49] : memref<1x16xf32, #tpu.memory_space<vmem>>, vector<1x16xf32>
    %56 = vector.broadcast %55 : vector<1x16xf32> to vector<288x16xf32>
    %57 = arith.addf %54, %56 : vector<288x16xf32>
    %c0_50 = arith.constant 0 : index
    %c0_51 = arith.constant 0 : index
    %c0_52 = arith.constant 0 : index
    %58 = vector.load %arg4[%c0_50, %c0_51, %c0_52] : memref<1x288x16xbf16, #tpu.memory_space<vmem>>, vector<1x288x16xbf16>
    %59 = vector.shape_cast %58 : vector<1x288x16xbf16> to vector<288x16xbf16>
    %60 = arith.extf %59 : vector<288x16xbf16> to vector<288x16xf32>
    %61 = arith.addf %57, %60 : vector<288x16xf32>
    %cst_53 = arith.constant 0.000000e+00 : f32
    %62 = vector.broadcast %cst_53 : f32 to vector<288x16xf32>
    %63 = arith.maximumf %61, %62 : vector<288x16xf32>
    %64 = arith.truncf %63 : vector<288x16xf32> to vector<288x16xbf16>
    %c0_54 = arith.constant 0 : index
    %c0_55 = arith.constant 0 : index
    %c0_56 = arith.constant 0 : index
    %65 = vector.load %arg5[%c0_54, %c0_55, %c0_56] : memref<1x288x16xbf16, #tpu.memory_space<vmem>>, vector<1x288x16xbf16>
    %66 = vector.shape_cast %65 : vector<1x288x16xbf16> to vector<288x16xbf16>
    %67 = vector.shape_cast %64 : vector<288x16xbf16> to vector<1x288x16xbf16>
    tpu.vector_store %arg5[%c0_54, %c0_55, %c0_56], %67 {strides = array<i32>} : memref<1x288x16xbf16, #tpu.memory_space<vmem>>, vector<1x288x16xbf16>,
    return
  }
  func.func @transform_0(%arg0: i32) -> (i32, i32, i32) {
    %c0_i32 = arith.constant 0 : i32
    %c0_i32_0 = arith.constant 0 : i32
    %c0_i32_1 = arith.constant 0 : i32
    return %arg0, %c0_i32, %c0_i32_0 : i32, i32, i32
  }
  func.func @transform_1(%arg0: i32) -> (i32, i32, i32) {
    %c0_i32 = arith.constant 0 : i32
    %c0_i32_0 = arith.constant 0 : i32
    %c0_i32_1 = arith.constant 0 : i32
    %c0_i32_2 = arith.constant 0 : i32
    return %c0_i32, %c0_i32_0, %c0_i32_1 : i32, i32, i32
  }
  func.func @transform_2(%arg0: i32) -> (i32, i32) {
    %c0_i32 = arith.constant 0 : i32
    %c0_i32_0 = arith.constant 0 : i32
    %c0_i32_1 = arith.constant 0 : i32
    return %c0_i32, %c0_i32_0 : i32, i32
  }
  func.func @transform_3(%arg0: i32) -> (i32, i32, i32) {
    %c0_i32 = arith.constant 0 : i32
    %c0_i32_0 = arith.constant 0 : i32
    %c0_i32_1 = arith.constant 0 : i32
    return %arg0, %c0_i32, %c0_i32_0 : i32, i32, i32
  }
  func.func @transform_4(%arg0: i32) -> (i32, i32, i32) {
    %c0_i32 = arith.constant 0 : i32
    %c0_i32_0 = arith.constant 0 : i32
    %c0_i32_1 = arith.constant 0 : i32
    return %arg0, %c0_i32, %c0_i32_0 : i32, i32, i32
  }
}

module attributes {stable_mosaic.version = 11 : i64} {
  func.func @kernel(%arg0: i32, %arg1: memref<1x360x16xbf16, #tpu.memory_space<vmem>>, %arg2: memref<9x16x32xbf16, #tpu.memory_space<vmem>>, %arg3: memref<1x32xf32, #tpu.memory_space<vmem>>, %arg4: memref<1x72x32xbf16, #tpu.memory_space<vmem>>) attributes {dimension_semantics = [#tpu.dimension_semantics<parallel>], iteration_bounds = array<i64: 2>, scalar_prefetch = 0 : i64, scratch_operands = 0 : i64, tpu.core_type = #tpu.core_type<tc>, window_params = [{transform_indices = @transform_0, window_bounds = array<i64: 1, 360, 16>}, {pipeline_mode = #tpu.pipeline_mode<synchronous>, transform_indices = @transform_1, window_bounds = array<i64: 9, 16, 32>}, {pipeline_mode = #tpu.pipeline_mode<synchronous>, transform_indices = @transform_2, window_bounds = array<i64: 1, 32>}, {transform_indices = @transform_3, window_bounds = array<i64: 1, 72, 32>}]} {
    %cst = arith.constant 0.000000e+00 : f32
    %0 = vector.broadcast %cst : f32 to vector<72x32xf32>
    %c0 = arith.constant 0 : index
    %c0_0 = arith.constant 0 : index
    %c0_1 = arith.constant 0 : index
    %1 = vector.load %arg1[%c0, %c0_0, %c0_1] : memref<1x360x16xbf16, #tpu.memory_space<vmem>>, vector<1x72x16xbf16>
    %2 = vector.shape_cast %1 : vector<1x72x16xbf16> to vector<72x16xbf16>
    %c0_2 = arith.constant 0 : index
    %c0_3 = arith.constant 0 : index
    %c0_4 = arith.constant 0 : index
    %3 = vector.load %arg2[%c0_2, %c0_3, %c0_4] : memref<9x16x32xbf16, #tpu.memory_space<vmem>>, vector<1x16x32xbf16>
    %4 = vector.shape_cast %3 : vector<1x16x32xbf16> to vector<16x32xbf16>
    %cst_5 = arith.constant dense<0.000000e+00> : vector<72x32xf32>
    %5 = tpu.matmul %2, %4, %cst_5 {dimension_numbers = #tpu.dot_dimension_numbers<[1], [0], [0], [1], [0, 0, 1, 1], [], []>} : vector<72x16xbf16>, vector<16x32xbf16>, vector<72x32xf32> -> vector<72x32xf32>
    %6 = arith.addf %0, %5 : vector<72x32xf32>
    %c0_6 = arith.constant 0 : index
    %c90 = arith.constant 90 : index
    %c0_7 = arith.constant 0 : index
    %7 = vector.load %arg1[%c0_6, %c90, %c0_7] : memref<1x360x16xbf16, #tpu.memory_space<vmem>>, vector<1x72x16xbf16>
    %8 = vector.shape_cast %7 : vector<1x72x16xbf16> to vector<72x16xbf16>
    %c1 = arith.constant 1 : index
    %c0_8 = arith.constant 0 : index
    %c0_9 = arith.constant 0 : index
    %9 = vector.load %arg2[%c1, %c0_8, %c0_9] : memref<9x16x32xbf16, #tpu.memory_space<vmem>>, vector<1x16x32xbf16>
    %10 = vector.shape_cast %9 : vector<1x16x32xbf16> to vector<16x32xbf16>
    %cst_10 = arith.constant dense<0.000000e+00> : vector<72x32xf32>
    %11 = tpu.matmul %8, %10, %cst_10 {dimension_numbers = #tpu.dot_dimension_numbers<[1], [0], [0], [1], [0, 0, 1, 1], [], []>} : vector<72x16xbf16>, vector<16x32xbf16>, vector<72x32xf32> -> vector<72x32xf32>
    %12 = arith.addf %6, %11 : vector<72x32xf32>
    %c0_11 = arith.constant 0 : index
    %c1_12 = arith.constant 1 : index
    %c0_13 = arith.constant 0 : index
    %13 = vector.load %arg1[%c0_11, %c1_12, %c0_13] : memref<1x360x16xbf16, #tpu.memory_space<vmem>>, vector<1x72x16xbf16>
    %14 = vector.shape_cast %13 : vector<1x72x16xbf16> to vector<72x16xbf16>
    %c2 = arith.constant 2 : index
    %c0_14 = arith.constant 0 : index
    %c0_15 = arith.constant 0 : index
    %15 = vector.load %arg2[%c2, %c0_14, %c0_15] : memref<9x16x32xbf16, #tpu.memory_space<vmem>>, vector<1x16x32xbf16>
    %16 = vector.shape_cast %15 : vector<1x16x32xbf16> to vector<16x32xbf16>
    %cst_16 = arith.constant dense<0.000000e+00> : vector<72x32xf32>
    %17 = tpu.matmul %14, %16, %cst_16 {dimension_numbers = #tpu.dot_dimension_numbers<[1], [0], [0], [1], [0, 0, 1, 1], [], []>} : vector<72x16xbf16>, vector<16x32xbf16>, vector<72x32xf32> -> vector<72x32xf32>
    %18 = arith.addf %12, %17 : vector<72x32xf32>
    %c0_17 = arith.constant 0 : index
    %c180 = arith.constant 180 : index
    %c0_18 = arith.constant 0 : index
    %19 = vector.load %arg1[%c0_17, %c180, %c0_18] : memref<1x360x16xbf16, #tpu.memory_space<vmem>>, vector<1x72x16xbf16>
    %20 = vector.shape_cast %19 : vector<1x72x16xbf16> to vector<72x16xbf16>
    %c3 = arith.constant 3 : index
    %c0_19 = arith.constant 0 : index
    %c0_20 = arith.constant 0 : index
    %21 = vector.load %arg2[%c3, %c0_19, %c0_20] : memref<9x16x32xbf16, #tpu.memory_space<vmem>>, vector<1x16x32xbf16>
    %22 = vector.shape_cast %21 : vector<1x16x32xbf16> to vector<16x32xbf16>
    %cst_21 = arith.constant dense<0.000000e+00> : vector<72x32xf32>
    %23 = tpu.matmul %20, %22, %cst_21 {dimension_numbers = #tpu.dot_dimension_numbers<[1], [0], [0], [1], [0, 0, 1, 1], [], []>} : vector<72x16xbf16>, vector<16x32xbf16>, vector<72x32xf32> -> vector<72x32xf32>
    %24 = arith.addf %18, %23 : vector<72x32xf32>
    %c0_22 = arith.constant 0 : index
    %c270 = arith.constant 270 : index
    %c0_23 = arith.constant 0 : index
    %25 = vector.load %arg1[%c0_22, %c270, %c0_23] : memref<1x360x16xbf16, #tpu.memory_space<vmem>>, vector<1x72x16xbf16>
    %26 = vector.shape_cast %25 : vector<1x72x16xbf16> to vector<72x16xbf16>
    %c4 = arith.constant 4 : index
    %c0_24 = arith.constant 0 : index
    %c0_25 = arith.constant 0 : index
    %27 = vector.load %arg2[%c4, %c0_24, %c0_25] : memref<9x16x32xbf16, #tpu.memory_space<vmem>>, vector<1x16x32xbf16>
    %28 = vector.shape_cast %27 : vector<1x16x32xbf16> to vector<16x32xbf16>
    %cst_26 = arith.constant dense<0.000000e+00> : vector<72x32xf32>
    %29 = tpu.matmul %26, %28, %cst_26 {dimension_numbers = #tpu.dot_dimension_numbers<[1], [0], [0], [1], [0, 0, 1, 1], [], []>} : vector<72x16xbf16>, vector<16x32xbf16>, vector<72x32xf32> -> vector<72x32xf32>
    %30 = arith.addf %24, %29 : vector<72x32xf32>
    %c0_27 = arith.constant 0 : index
    %c181 = arith.constant 181 : index
    %c0_28 = arith.constant 0 : index
    %31 = vector.load %arg1[%c0_27, %c181, %c0_28] : memref<1x360x16xbf16, #tpu.memory_space<vmem>>, vector<1x72x16xbf16>
    %32 = vector.shape_cast %31 : vector<1x72x16xbf16> to vector<72x16xbf16>
    %c5 = arith.constant 5 : index
    %c0_29 = arith.constant 0 : index
    %c0_30 = arith.constant 0 : index
    %33 = vector.load %arg2[%c5, %c0_29, %c0_30] : memref<9x16x32xbf16, #tpu.memory_space<vmem>>, vector<1x16x32xbf16>
    %34 = vector.shape_cast %33 : vector<1x16x32xbf16> to vector<16x32xbf16>
    %cst_31 = arith.constant dense<0.000000e+00> : vector<72x32xf32>
    %35 = tpu.matmul %32, %34, %cst_31 {dimension_numbers = #tpu.dot_dimension_numbers<[1], [0], [0], [1], [0, 0, 1, 1], [], []>} : vector<72x16xbf16>, vector<16x32xbf16>, vector<72x32xf32> -> vector<72x32xf32>
    %36 = arith.addf %30, %35 : vector<72x32xf32>
    %c0_32 = arith.constant 0 : index
    %c9 = arith.constant 9 : index
    %c0_33 = arith.constant 0 : index
    %37 = vector.load %arg1[%c0_32, %c9, %c0_33] : memref<1x360x16xbf16, #tpu.memory_space<vmem>>, vector<1x72x16xbf16>
    %38 = vector.shape_cast %37 : vector<1x72x16xbf16> to vector<72x16xbf16>
    %c6 = arith.constant 6 : index
    %c0_34 = arith.constant 0 : index
    %c0_35 = arith.constant 0 : index
    %39 = vector.load %arg2[%c6, %c0_34, %c0_35] : memref<9x16x32xbf16, #tpu.memory_space<vmem>>, vector<1x16x32xbf16>
    %40 = vector.shape_cast %39 : vector<1x16x32xbf16> to vector<16x32xbf16>
    %cst_36 = arith.constant dense<0.000000e+00> : vector<72x32xf32>
    %41 = tpu.matmul %38, %40, %cst_36 {dimension_numbers = #tpu.dot_dimension_numbers<[1], [0], [0], [1], [0, 0, 1, 1], [], []>} : vector<72x16xbf16>, vector<16x32xbf16>, vector<72x32xf32> -> vector<72x32xf32>
    %42 = arith.addf %36, %41 : vector<72x32xf32>
    %c0_37 = arith.constant 0 : index
    %c99 = arith.constant 99 : index
    %c0_38 = arith.constant 0 : index
    %43 = vector.load %arg1[%c0_37, %c99, %c0_38] : memref<1x360x16xbf16, #tpu.memory_space<vmem>>, vector<1x72x16xbf16>
    %44 = vector.shape_cast %43 : vector<1x72x16xbf16> to vector<72x16xbf16>
    %c7 = arith.constant 7 : index
    %c0_39 = arith.constant 0 : index
    %c0_40 = arith.constant 0 : index
    %45 = vector.load %arg2[%c7, %c0_39, %c0_40] : memref<9x16x32xbf16, #tpu.memory_space<vmem>>, vector<1x16x32xbf16>
    %46 = vector.shape_cast %45 : vector<1x16x32xbf16> to vector<16x32xbf16>
    %cst_41 = arith.constant dense<0.000000e+00> : vector<72x32xf32>
    %47 = tpu.matmul %44, %46, %cst_41 {dimension_numbers = #tpu.dot_dimension_numbers<[1], [0], [0], [1], [0, 0, 1, 1], [], []>} : vector<72x16xbf16>, vector<16x32xbf16>, vector<72x32xf32> -> vector<72x32xf32>
    %48 = arith.addf %42, %47 : vector<72x32xf32>
    %c0_42 = arith.constant 0 : index
    %c10 = arith.constant 10 : index
    %c0_43 = arith.constant 0 : index
    %49 = vector.load %arg1[%c0_42, %c10, %c0_43] : memref<1x360x16xbf16, #tpu.memory_space<vmem>>, vector<1x72x16xbf16>
    %50 = vector.shape_cast %49 : vector<1x72x16xbf16> to vector<72x16xbf16>
    %c8 = arith.constant 8 : index
    %c0_44 = arith.constant 0 : index
    %c0_45 = arith.constant 0 : index
    %51 = vector.load %arg2[%c8, %c0_44, %c0_45] : memref<9x16x32xbf16, #tpu.memory_space<vmem>>, vector<1x16x32xbf16>
    %52 = vector.shape_cast %51 : vector<1x16x32xbf16> to vector<16x32xbf16>
    %cst_46 = arith.constant dense<0.000000e+00> : vector<72x32xf32>
    %53 = tpu.matmul %50, %52, %cst_46 {dimension_numbers = #tpu.dot_dimension_numbers<[1], [0], [0], [1], [0, 0, 1, 1], [], []>} : vector<72x16xbf16>, vector<16x32xbf16>, vector<72x32xf32> -> vector<72x32xf32>
    %54 = arith.addf %48, %53 : vector<72x32xf32>
    %c0_47 = arith.constant 0 : index
    %c0_48 = arith.constant 0 : index
    %55 = vector.load %arg3[%c0_47, %c0_48] : memref<1x32xf32, #tpu.memory_space<vmem>>, vector<1x32xf32>
    %56 = vector.broadcast %55 : vector<1x32xf32> to vector<72x32xf32>
    %57 = arith.addf %54, %56 : vector<72x32xf32>
    %cst_49 = arith.constant 0.000000e+00 : f32
    %58 = vector.broadcast %cst_49 : f32 to vector<72x32xf32>
    %59 = arith.maximumf %57, %58 : vector<72x32xf32>
    %60 = arith.truncf %59 : vector<72x32xf32> to vector<72x32xbf16>
    %c0_50 = arith.constant 0 : index
    %c0_51 = arith.constant 0 : index
    %c0_52 = arith.constant 0 : index
    %61 = vector.load %arg4[%c0_50, %c0_51, %c0_52] : memref<1x72x32xbf16, #tpu.memory_space<vmem>>, vector<1x72x32xbf16>
    %62 = vector.shape_cast %61 : vector<1x72x32xbf16> to vector<72x32xbf16>
    %63 = vector.shape_cast %60 : vector<72x32xbf16> to vector<1x72x32xbf16>
    tpu.vector_store %arg4[%c0_50, %c0_51, %c0_52], %63 {strides = array<i32>} : memref<1x72x32xbf16, #tpu.memory_space<vmem>>, vector<1x72x32xbf16>,
    return
  }
  func.func @transform_0(%arg0: i32) -> (i32, i32, i32) {
    %c0_i32 = arith.constant 0 : i32
    %c0_i32_0 = arith.constant 0 : i32
    %c0_i32_1 = arith.constant 0 : i32
    return %arg0, %c0_i32, %c0_i32_0 : i32, i32, i32
  }
  func.func @transform_1(%arg0: i32) -> (i32, i32, i32) {
    %c0_i32 = arith.constant 0 : i32
    %c0_i32_0 = arith.constant 0 : i32
    %c0_i32_1 = arith.constant 0 : i32
    %c0_i32_2 = arith.constant 0 : i32
    return %c0_i32, %c0_i32_0, %c0_i32_1 : i32, i32, i32
  }
  func.func @transform_2(%arg0: i32) -> (i32, i32) {
    %c0_i32 = arith.constant 0 : i32
    %c0_i32_0 = arith.constant 0 : i32
    %c0_i32_1 = arith.constant 0 : i32
    return %c0_i32, %c0_i32_0 : i32, i32
  }
  func.func @transform_3(%arg0: i32) -> (i32, i32, i32) {
    %c0_i32 = arith.constant 0 : i32
    %c0_i32_0 = arith.constant 0 : i32
    %c0_i32_1 = arith.constant 0 : i32
    return %arg0, %c0_i32, %c0_i32_0 : i32, i32, i32
  }
}

module attributes {stable_mosaic.version = 11 : i64} {
  func.func @kernel(%arg0: i32, %arg1: memref<1x110x32xbf16, #tpu.memory_space<vmem>>, %arg2: memref<9x32x32xbf16, #tpu.memory_space<vmem>>, %arg3: memref<1x32xf32, #tpu.memory_space<vmem>>, %arg4: memref<1x80x32xbf16, #tpu.memory_space<vmem>>, %arg5: memref<1x80x32xbf16, #tpu.memory_space<vmem>>) attributes {dimension_semantics = [#tpu.dimension_semantics<parallel>], iteration_bounds = array<i64: 2>, scalar_prefetch = 0 : i64, scratch_operands = 0 : i64, tpu.core_type = #tpu.core_type<tc>, window_params = [{transform_indices = @transform_0, window_bounds = array<i64: 1, 110, 32>}, {pipeline_mode = #tpu.pipeline_mode<synchronous>, transform_indices = @transform_1, window_bounds = array<i64: 9, 32, 32>}, {pipeline_mode = #tpu.pipeline_mode<synchronous>, transform_indices = @transform_2, window_bounds = array<i64: 1, 32>}, {transform_indices = @transform_3, window_bounds = array<i64: 1, 80, 32>}, {transform_indices = @transform_4, window_bounds = array<i64: 1, 80, 32>}]} {
    %cst = arith.constant 0.000000e+00 : f32
    %0 = vector.broadcast %cst : f32 to vector<80x32xf32>
    %c0 = arith.constant 0 : index
    %c0_0 = arith.constant 0 : index
    %c0_1 = arith.constant 0 : index
    %1 = vector.load %arg1[%c0, %c0_0, %c0_1] : memref<1x110x32xbf16, #tpu.memory_space<vmem>>, vector<1x80x32xbf16>
    %2 = vector.shape_cast %1 : vector<1x80x32xbf16> to vector<80x32xbf16>
    %c0_2 = arith.constant 0 : index
    %c0_3 = arith.constant 0 : index
    %c0_4 = arith.constant 0 : index
    %3 = vector.load %arg2[%c0_2, %c0_3, %c0_4] : memref<9x32x32xbf16, #tpu.memory_space<vmem>>, vector<1x32x32xbf16>
    %4 = vector.shape_cast %3 : vector<1x32x32xbf16> to vector<32x32xbf16>
    %cst_5 = arith.constant dense<0.000000e+00> : vector<80x32xf32>
    %5 = tpu.matmul %2, %4, %cst_5 {dimension_numbers = #tpu.dot_dimension_numbers<[1], [0], [0], [1], [0, 0, 1, 1], [], []>} : vector<80x32xbf16>, vector<32x32xbf16>, vector<80x32xf32> -> vector<80x32xf32>
    %6 = arith.addf %0, %5 : vector<80x32xf32>
    %c0_6 = arith.constant 0 : index
    %c1 = arith.constant 1 : index
    %c0_7 = arith.constant 0 : index
    %7 = vector.load %arg1[%c0_6, %c1, %c0_7] : memref<1x110x32xbf16, #tpu.memory_space<vmem>>, vector<1x80x32xbf16>
    %8 = vector.shape_cast %7 : vector<1x80x32xbf16> to vector<80x32xbf16>
    %c1_8 = arith.constant 1 : index
    %c0_9 = arith.constant 0 : index
    %c0_10 = arith.constant 0 : index
    %9 = vector.load %arg2[%c1_8, %c0_9, %c0_10] : memref<9x32x32xbf16, #tpu.memory_space<vmem>>, vector<1x32x32xbf16>
    %10 = vector.shape_cast %9 : vector<1x32x32xbf16> to vector<32x32xbf16>
    %cst_11 = arith.constant dense<0.000000e+00> : vector<80x32xf32>
    %11 = tpu.matmul %8, %10, %cst_11 {dimension_numbers = #tpu.dot_dimension_numbers<[1], [0], [0], [1], [0, 0, 1, 1], [], []>} : vector<80x32xbf16>, vector<32x32xbf16>, vector<80x32xf32> -> vector<80x32xf32>
    %12 = arith.addf %6, %11 : vector<80x32xf32>
    %c0_12 = arith.constant 0 : index
    %c2 = arith.constant 2 : index
    %c0_13 = arith.constant 0 : index
    %13 = vector.load %arg1[%c0_12, %c2, %c0_13] : memref<1x110x32xbf16, #tpu.memory_space<vmem>>, vector<1x80x32xbf16>
    %14 = vector.shape_cast %13 : vector<1x80x32xbf16> to vector<80x32xbf16>
    %c2_14 = arith.constant 2 : index
    %c0_15 = arith.constant 0 : index
    %c0_16 = arith.constant 0 : index
    %15 = vector.load %arg2[%c2_14, %c0_15, %c0_16] : memref<9x32x32xbf16, #tpu.memory_space<vmem>>, vector<1x32x32xbf16>
    %16 = vector.shape_cast %15 : vector<1x32x32xbf16> to vector<32x32xbf16>
    %cst_17 = arith.constant dense<0.000000e+00> : vector<80x32xf32>
    %17 = tpu.matmul %14, %16, %cst_17 {dimension_numbers = #tpu.dot_dimension_numbers<[1], [0], [0], [1], [0, 0, 1, 1], [], []>} : vector<80x32xbf16>, vector<32x32xbf16>, vector<80x32xf32> -> vector<80x32xf32>
    %18 = arith.addf %12, %17 : vector<80x32xf32>
    %c0_18 = arith.constant 0 : index
    %c10 = arith.constant 10 : index
    %c0_19 = arith.constant 0 : index
    %19 = vector.load %arg1[%c0_18, %c10, %c0_19] : memref<1x110x32xbf16, #tpu.memory_space<vmem>>, vector<1x80x32xbf16>
    %20 = vector.shape_cast %19 : vector<1x80x32xbf16> to vector<80x32xbf16>
    %c3 = arith.constant 3 : index
    %c0_20 = arith.constant 0 : index
    %c0_21 = arith.constant 0 : index
    %21 = vector.load %arg2[%c3, %c0_20, %c0_21] : memref<9x32x32xbf16, #tpu.memory_space<vmem>>, vector<1x32x32xbf16>
    %22 = vector.shape_cast %21 : vector<1x32x32xbf16> to vector<32x32xbf16>
    %cst_22 = arith.constant dense<0.000000e+00> : vector<80x32xf32>
    %23 = tpu.matmul %20, %22, %cst_22 {dimension_numbers = #tpu.dot_dimension_numbers<[1], [0], [0], [1], [0, 0, 1, 1], [], []>} : vector<80x32xbf16>, vector<32x32xbf16>, vector<80x32xf32> -> vector<80x32xf32>
    %24 = arith.addf %18, %23 : vector<80x32xf32>
    %c0_23 = arith.constant 0 : index
    %c11 = arith.constant 11 : index
    %c0_24 = arith.constant 0 : index
    %25 = vector.load %arg1[%c0_23, %c11, %c0_24] : memref<1x110x32xbf16, #tpu.memory_space<vmem>>, vector<1x80x32xbf16>
    %26 = vector.shape_cast %25 : vector<1x80x32xbf16> to vector<80x32xbf16>
    %c4 = arith.constant 4 : index
    %c0_25 = arith.constant 0 : index
    %c0_26 = arith.constant 0 : index
    %27 = vector.load %arg2[%c4, %c0_25, %c0_26] : memref<9x32x32xbf16, #tpu.memory_space<vmem>>, vector<1x32x32xbf16>
    %28 = vector.shape_cast %27 : vector<1x32x32xbf16> to vector<32x32xbf16>
    %cst_27 = arith.constant dense<0.000000e+00> : vector<80x32xf32>
    %29 = tpu.matmul %26, %28, %cst_27 {dimension_numbers = #tpu.dot_dimension_numbers<[1], [0], [0], [1], [0, 0, 1, 1], [], []>} : vector<80x32xbf16>, vector<32x32xbf16>, vector<80x32xf32> -> vector<80x32xf32>
    %30 = arith.addf %24, %29 : vector<80x32xf32>
    %c0_28 = arith.constant 0 : index
    %c12 = arith.constant 12 : index
    %c0_29 = arith.constant 0 : index
    %31 = vector.load %arg1[%c0_28, %c12, %c0_29] : memref<1x110x32xbf16, #tpu.memory_space<vmem>>, vector<1x80x32xbf16>
    %32 = vector.shape_cast %31 : vector<1x80x32xbf16> to vector<80x32xbf16>
    %c5 = arith.constant 5 : index
    %c0_30 = arith.constant 0 : index
    %c0_31 = arith.constant 0 : index
    %33 = vector.load %arg2[%c5, %c0_30, %c0_31] : memref<9x32x32xbf16, #tpu.memory_space<vmem>>, vector<1x32x32xbf16>
    %34 = vector.shape_cast %33 : vector<1x32x32xbf16> to vector<32x32xbf16>
    %cst_32 = arith.constant dense<0.000000e+00> : vector<80x32xf32>
    %35 = tpu.matmul %32, %34, %cst_32 {dimension_numbers = #tpu.dot_dimension_numbers<[1], [0], [0], [1], [0, 0, 1, 1], [], []>} : vector<80x32xbf16>, vector<32x32xbf16>, vector<80x32xf32> -> vector<80x32xf32>
    %36 = arith.addf %30, %35 : vector<80x32xf32>
    %c0_33 = arith.constant 0 : index
    %c20 = arith.constant 20 : index
    %c0_34 = arith.constant 0 : index
    %37 = vector.load %arg1[%c0_33, %c20, %c0_34] : memref<1x110x32xbf16, #tpu.memory_space<vmem>>, vector<1x80x32xbf16>
    %38 = vector.shape_cast %37 : vector<1x80x32xbf16> to vector<80x32xbf16>
    %c6 = arith.constant 6 : index
    %c0_35 = arith.constant 0 : index
    %c0_36 = arith.constant 0 : index
    %39 = vector.load %arg2[%c6, %c0_35, %c0_36] : memref<9x32x32xbf16, #tpu.memory_space<vmem>>, vector<1x32x32xbf16>
    %40 = vector.shape_cast %39 : vector<1x32x32xbf16> to vector<32x32xbf16>
    %cst_37 = arith.constant dense<0.000000e+00> : vector<80x32xf32>
    %41 = tpu.matmul %38, %40, %cst_37 {dimension_numbers = #tpu.dot_dimension_numbers<[1], [0], [0], [1], [0, 0, 1, 1], [], []>} : vector<80x32xbf16>, vector<32x32xbf16>, vector<80x32xf32> -> vector<80x32xf32>
    %42 = arith.addf %36, %41 : vector<80x32xf32>
    %c0_38 = arith.constant 0 : index
    %c21 = arith.constant 21 : index
    %c0_39 = arith.constant 0 : index
    %43 = vector.load %arg1[%c0_38, %c21, %c0_39] : memref<1x110x32xbf16, #tpu.memory_space<vmem>>, vector<1x80x32xbf16>
    %44 = vector.shape_cast %43 : vector<1x80x32xbf16> to vector<80x32xbf16>
    %c7 = arith.constant 7 : index
    %c0_40 = arith.constant 0 : index
    %c0_41 = arith.constant 0 : index
    %45 = vector.load %arg2[%c7, %c0_40, %c0_41] : memref<9x32x32xbf16, #tpu.memory_space<vmem>>, vector<1x32x32xbf16>
    %46 = vector.shape_cast %45 : vector<1x32x32xbf16> to vector<32x32xbf16>
    %cst_42 = arith.constant dense<0.000000e+00> : vector<80x32xf32>
    %47 = tpu.matmul %44, %46, %cst_42 {dimension_numbers = #tpu.dot_dimension_numbers<[1], [0], [0], [1], [0, 0, 1, 1], [], []>} : vector<80x32xbf16>, vector<32x32xbf16>, vector<80x32xf32> -> vector<80x32xf32>
    %48 = arith.addf %42, %47 : vector<80x32xf32>
    %c0_43 = arith.constant 0 : index
    %c22 = arith.constant 22 : index
    %c0_44 = arith.constant 0 : index
    %49 = vector.load %arg1[%c0_43, %c22, %c0_44] : memref<1x110x32xbf16, #tpu.memory_space<vmem>>, vector<1x80x32xbf16>
    %50 = vector.shape_cast %49 : vector<1x80x32xbf16> to vector<80x32xbf16>
    %c8 = arith.constant 8 : index
    %c0_45 = arith.constant 0 : index
    %c0_46 = arith.constant 0 : index
    %51 = vector.load %arg2[%c8, %c0_45, %c0_46] : memref<9x32x32xbf16, #tpu.memory_space<vmem>>, vector<1x32x32xbf16>
    %52 = vector.shape_cast %51 : vector<1x32x32xbf16> to vector<32x32xbf16>
    %cst_47 = arith.constant dense<0.000000e+00> : vector<80x32xf32>
    %53 = tpu.matmul %50, %52, %cst_47 {dimension_numbers = #tpu.dot_dimension_numbers<[1], [0], [0], [1], [0, 0, 1, 1], [], []>} : vector<80x32xbf16>, vector<32x32xbf16>, vector<80x32xf32> -> vector<80x32xf32>
    %54 = arith.addf %48, %53 : vector<80x32xf32>
    %c0_48 = arith.constant 0 : index
    %c0_49 = arith.constant 0 : index
    %55 = vector.load %arg3[%c0_48, %c0_49] : memref<1x32xf32, #tpu.memory_space<vmem>>, vector<1x32xf32>
    %56 = vector.broadcast %55 : vector<1x32xf32> to vector<80x32xf32>
    %57 = arith.addf %54, %56 : vector<80x32xf32>
    %c0_50 = arith.constant 0 : index
    %c0_51 = arith.constant 0 : index
    %c0_52 = arith.constant 0 : index
    %58 = vector.load %arg4[%c0_50, %c0_51, %c0_52] : memref<1x80x32xbf16, #tpu.memory_space<vmem>>, vector<1x80x32xbf16>
    %59 = vector.shape_cast %58 : vector<1x80x32xbf16> to vector<80x32xbf16>
    %60 = arith.extf %59 : vector<80x32xbf16> to vector<80x32xf32>
    %61 = arith.addf %57, %60 : vector<80x32xf32>
    %cst_53 = arith.constant 0.000000e+00 : f32
    %62 = vector.broadcast %cst_53 : f32 to vector<80x32xf32>
    %63 = arith.maximumf %61, %62 : vector<80x32xf32>
    %64 = arith.truncf %63 : vector<80x32xf32> to vector<80x32xbf16>
    %c0_54 = arith.constant 0 : index
    %c0_55 = arith.constant 0 : index
    %c0_56 = arith.constant 0 : index
    %65 = vector.load %arg5[%c0_54, %c0_55, %c0_56] : memref<1x80x32xbf16, #tpu.memory_space<vmem>>, vector<1x80x32xbf16>
    %66 = vector.shape_cast %65 : vector<1x80x32xbf16> to vector<80x32xbf16>
    %67 = vector.shape_cast %64 : vector<80x32xbf16> to vector<1x80x32xbf16>
    tpu.vector_store %arg5[%c0_54, %c0_55, %c0_56], %67 {strides = array<i32>} : memref<1x80x32xbf16, #tpu.memory_space<vmem>>, vector<1x80x32xbf16>,
    return
  }
  func.func @transform_0(%arg0: i32) -> (i32, i32, i32) {
    %c0_i32 = arith.constant 0 : i32
    %c0_i32_0 = arith.constant 0 : i32
    %c0_i32_1 = arith.constant 0 : i32
    return %arg0, %c0_i32, %c0_i32_0 : i32, i32, i32
  }
  func.func @transform_1(%arg0: i32) -> (i32, i32, i32) {
    %c0_i32 = arith.constant 0 : i32
    %c0_i32_0 = arith.constant 0 : i32
    %c0_i32_1 = arith.constant 0 : i32
    %c0_i32_2 = arith.constant 0 : i32
    return %c0_i32, %c0_i32_0, %c0_i32_1 : i32, i32, i32
  }
  func.func @transform_2(%arg0: i32) -> (i32, i32) {
    %c0_i32 = arith.constant 0 : i32
    %c0_i32_0 = arith.constant 0 : i32
    %c0_i32_1 = arith.constant 0 : i32
    return %c0_i32, %c0_i32_0 : i32, i32
  }
  func.func @transform_3(%arg0: i32) -> (i32, i32, i32) {
    %c0_i32 = arith.constant 0 : i32
    %c0_i32_0 = arith.constant 0 : i32
    %c0_i32_1 = arith.constant 0 : i32
    return %arg0, %c0_i32, %c0_i32_0 : i32, i32, i32
  }
  func.func @transform_4(%arg0: i32) -> (i32, i32, i32) {
    %c0_i32 = arith.constant 0 : i32
    %c0_i32_0 = arith.constant 0 : i32
    %c0_i32_1 = arith.constant 0 : i32
    return %arg0, %c0_i32, %c0_i32_0 : i32, i32, i32
  }
}

module attributes {stable_mosaic.version = 11 : i64} {
  func.func @kernel(%arg0: i32, %arg1: memref<1x120x32xbf16, #tpu.memory_space<vmem>>, %arg2: memref<9x32x64xbf16, #tpu.memory_space<vmem>>, %arg3: memref<1x64xf32, #tpu.memory_space<vmem>>, %arg4: memref<1x20x64xbf16, #tpu.memory_space<vmem>>) attributes {dimension_semantics = [#tpu.dimension_semantics<parallel>], iteration_bounds = array<i64: 2>, scalar_prefetch = 0 : i64, scratch_operands = 0 : i64, tpu.core_type = #tpu.core_type<tc>, window_params = [{transform_indices = @transform_0, window_bounds = array<i64: 1, 120, 32>}, {pipeline_mode = #tpu.pipeline_mode<synchronous>, transform_indices = @transform_1, window_bounds = array<i64: 9, 32, 64>}, {pipeline_mode = #tpu.pipeline_mode<synchronous>, transform_indices = @transform_2, window_bounds = array<i64: 1, 64>}, {transform_indices = @transform_3, window_bounds = array<i64: 1, 20, 64>}]} {
    %cst = arith.constant 0.000000e+00 : f32
    %0 = vector.broadcast %cst : f32 to vector<20x64xf32>
    %c0 = arith.constant 0 : index
    %c0_0 = arith.constant 0 : index
    %c0_1 = arith.constant 0 : index
    %1 = vector.load %arg1[%c0, %c0_0, %c0_1] : memref<1x120x32xbf16, #tpu.memory_space<vmem>>, vector<1x20x32xbf16>
    %2 = vector.shape_cast %1 : vector<1x20x32xbf16> to vector<20x32xbf16>
    %c0_2 = arith.constant 0 : index
    %c0_3 = arith.constant 0 : index
    %c0_4 = arith.constant 0 : index
    %3 = vector.load %arg2[%c0_2, %c0_3, %c0_4] : memref<9x32x64xbf16, #tpu.memory_space<vmem>>, vector<1x32x64xbf16>
    %4 = vector.shape_cast %3 : vector<1x32x64xbf16> to vector<32x64xbf16>
    %cst_5 = arith.constant dense<0.000000e+00> : vector<20x64xf32>
    %5 = tpu.matmul %2, %4, %cst_5 {dimension_numbers = #tpu.dot_dimension_numbers<[1], [0], [0], [1], [0, 0, 1, 1], [], []>} : vector<20x32xbf16>, vector<32x64xbf16>, vector<20x64xf32> -> vector<20x64xf32>
    %6 = arith.addf %0, %5 : vector<20x64xf32>
    %c0_6 = arith.constant 0 : index
    %c30 = arith.constant 30 : index
    %c0_7 = arith.constant 0 : index
    %7 = vector.load %arg1[%c0_6, %c30, %c0_7] : memref<1x120x32xbf16, #tpu.memory_space<vmem>>, vector<1x20x32xbf16>
    %8 = vector.shape_cast %7 : vector<1x20x32xbf16> to vector<20x32xbf16>
    %c1 = arith.constant 1 : index
    %c0_8 = arith.constant 0 : index
    %c0_9 = arith.constant 0 : index
    %9 = vector.load %arg2[%c1, %c0_8, %c0_9] : memref<9x32x64xbf16, #tpu.memory_space<vmem>>, vector<1x32x64xbf16>
    %10 = vector.shape_cast %9 : vector<1x32x64xbf16> to vector<32x64xbf16>
    %cst_10 = arith.constant dense<0.000000e+00> : vector<20x64xf32>
    %11 = tpu.matmul %8, %10, %cst_10 {dimension_numbers = #tpu.dot_dimension_numbers<[1], [0], [0], [1], [0, 0, 1, 1], [], []>} : vector<20x32xbf16>, vector<32x64xbf16>, vector<20x64xf32> -> vector<20x64xf32>
    %12 = arith.addf %6, %11 : vector<20x64xf32>
    %c0_11 = arith.constant 0 : index
    %c1_12 = arith.constant 1 : index
    %c0_13 = arith.constant 0 : index
    %13 = vector.load %arg1[%c0_11, %c1_12, %c0_13] : memref<1x120x32xbf16, #tpu.memory_space<vmem>>, vector<1x20x32xbf16>
    %14 = vector.shape_cast %13 : vector<1x20x32xbf16> to vector<20x32xbf16>
    %c2 = arith.constant 2 : index
    %c0_14 = arith.constant 0 : index
    %c0_15 = arith.constant 0 : index
    %15 = vector.load %arg2[%c2, %c0_14, %c0_15] : memref<9x32x64xbf16, #tpu.memory_space<vmem>>, vector<1x32x64xbf16>
    %16 = vector.shape_cast %15 : vector<1x32x64xbf16> to vector<32x64xbf16>
    %cst_16 = arith.constant dense<0.000000e+00> : vector<20x64xf32>
    %17 = tpu.matmul %14, %16, %cst_16 {dimension_numbers = #tpu.dot_dimension_numbers<[1], [0], [0], [1], [0, 0, 1, 1], [], []>} : vector<20x32xbf16>, vector<32x64xbf16>, vector<20x64xf32> -> vector<20x64xf32>
    %18 = arith.addf %12, %17 : vector<20x64xf32>
    %c0_17 = arith.constant 0 : index
    %c60 = arith.constant 60 : index
    %c0_18 = arith.constant 0 : index
    %19 = vector.load %arg1[%c0_17, %c60, %c0_18] : memref<1x120x32xbf16, #tpu.memory_space<vmem>>, vector<1x20x32xbf16>
    %20 = vector.shape_cast %19 : vector<1x20x32xbf16> to vector<20x32xbf16>
    %c3 = arith.constant 3 : index
    %c0_19 = arith.constant 0 : index
    %c0_20 = arith.constant 0 : index
    %21 = vector.load %arg2[%c3, %c0_19, %c0_20] : memref<9x32x64xbf16, #tpu.memory_space<vmem>>, vector<1x32x64xbf16>
    %22 = vector.shape_cast %21 : vector<1x32x64xbf16> to vector<32x64xbf16>
    %cst_21 = arith.constant dense<0.000000e+00> : vector<20x64xf32>
    %23 = tpu.matmul %20, %22, %cst_21 {dimension_numbers = #tpu.dot_dimension_numbers<[1], [0], [0], [1], [0, 0, 1, 1], [], []>} : vector<20x32xbf16>, vector<32x64xbf16>, vector<20x64xf32> -> vector<20x64xf32>
    %24 = arith.addf %18, %23 : vector<20x64xf32>
    %c0_22 = arith.constant 0 : index
    %c90 = arith.constant 90 : index
    %c0_23 = arith.constant 0 : index
    %25 = vector.load %arg1[%c0_22, %c90, %c0_23] : memref<1x120x32xbf16, #tpu.memory_space<vmem>>, vector<1x20x32xbf16>
    %26 = vector.shape_cast %25 : vector<1x20x32xbf16> to vector<20x32xbf16>
    %c4 = arith.constant 4 : index
    %c0_24 = arith.constant 0 : index
    %c0_25 = arith.constant 0 : index
    %27 = vector.load %arg2[%c4, %c0_24, %c0_25] : memref<9x32x64xbf16, #tpu.memory_space<vmem>>, vector<1x32x64xbf16>
    %28 = vector.shape_cast %27 : vector<1x32x64xbf16> to vector<32x64xbf16>
    %cst_26 = arith.constant dense<0.000000e+00> : vector<20x64xf32>
    %29 = tpu.matmul %26, %28, %cst_26 {dimension_numbers = #tpu.dot_dimension_numbers<[1], [0], [0], [1], [0, 0, 1, 1], [], []>} : vector<20x32xbf16>, vector<32x64xbf16>, vector<20x64xf32> -> vector<20x64xf32>
    %30 = arith.addf %24, %29 : vector<20x64xf32>
    %c0_27 = arith.constant 0 : index
    %c61 = arith.constant 61 : index
    %c0_28 = arith.constant 0 : index
    %31 = vector.load %arg1[%c0_27, %c61, %c0_28] : memref<1x120x32xbf16, #tpu.memory_space<vmem>>, vector<1x20x32xbf16>
    %32 = vector.shape_cast %31 : vector<1x20x32xbf16> to vector<20x32xbf16>
    %c5 = arith.constant 5 : index
    %c0_29 = arith.constant 0 : index
    %c0_30 = arith.constant 0 : index
    %33 = vector.load %arg2[%c5, %c0_29, %c0_30] : memref<9x32x64xbf16, #tpu.memory_space<vmem>>, vector<1x32x64xbf16>
    %34 = vector.shape_cast %33 : vector<1x32x64xbf16> to vector<32x64xbf16>
    %cst_31 = arith.constant dense<0.000000e+00> : vector<20x64xf32>
    %35 = tpu.matmul %32, %34, %cst_31 {dimension_numbers = #tpu.dot_dimension_numbers<[1], [0], [0], [1], [0, 0, 1, 1], [], []>} : vector<20x32xbf16>, vector<32x64xbf16>, vector<20x64xf32> -> vector<20x64xf32>
    %36 = arith.addf %30, %35 : vector<20x64xf32>
    %c0_32 = arith.constant 0 : index
    %c5_33 = arith.constant 5 : index
    %c0_34 = arith.constant 0 : index
    %37 = vector.load %arg1[%c0_32, %c5_33, %c0_34] : memref<1x120x32xbf16, #tpu.memory_space<vmem>>, vector<1x20x32xbf16>
    %38 = vector.shape_cast %37 : vector<1x20x32xbf16> to vector<20x32xbf16>
    %c6 = arith.constant 6 : index
    %c0_35 = arith.constant 0 : index
    %c0_36 = arith.constant 0 : index
    %39 = vector.load %arg2[%c6, %c0_35, %c0_36] : memref<9x32x64xbf16, #tpu.memory_space<vmem>>, vector<1x32x64xbf16>
    %40 = vector.shape_cast %39 : vector<1x32x64xbf16> to vector<32x64xbf16>
    %cst_37 = arith.constant dense<0.000000e+00> : vector<20x64xf32>
    %41 = tpu.matmul %38, %40, %cst_37 {dimension_numbers = #tpu.dot_dimension_numbers<[1], [0], [0], [1], [0, 0, 1, 1], [], []>} : vector<20x32xbf16>, vector<32x64xbf16>, vector<20x64xf32> -> vector<20x64xf32>
    %42 = arith.addf %36, %41 : vector<20x64xf32>
    %c0_38 = arith.constant 0 : index
    %c35 = arith.constant 35 : index
    %c0_39 = arith.constant 0 : index
    %43 = vector.load %arg1[%c0_38, %c35, %c0_39] : memref<1x120x32xbf16, #tpu.memory_space<vmem>>, vector<1x20x32xbf16>
    %44 = vector.shape_cast %43 : vector<1x20x32xbf16> to vector<20x32xbf16>
    %c7 = arith.constant 7 : index
    %c0_40 = arith.constant 0 : index
    %c0_41 = arith.constant 0 : index
    %45 = vector.load %arg2[%c7, %c0_40, %c0_41] : memref<9x32x64xbf16, #tpu.memory_space<vmem>>, vector<1x32x64xbf16>
    %46 = vector.shape_cast %45 : vector<1x32x64xbf16> to vector<32x64xbf16>
    %cst_42 = arith.constant dense<0.000000e+00> : vector<20x64xf32>
    %47 = tpu.matmul %44, %46, %cst_42 {dimension_numbers = #tpu.dot_dimension_numbers<[1], [0], [0], [1], [0, 0, 1, 1], [], []>} : vector<20x32xbf16>, vector<32x64xbf16>, vector<20x64xf32> -> vector<20x64xf32>
    %48 = arith.addf %42, %47 : vector<20x64xf32>
    %c0_43 = arith.constant 0 : index
    %c6_44 = arith.constant 6 : index
    %c0_45 = arith.constant 0 : index
    %49 = vector.load %arg1[%c0_43, %c6_44, %c0_45] : memref<1x120x32xbf16, #tpu.memory_space<vmem>>, vector<1x20x32xbf16>
    %50 = vector.shape_cast %49 : vector<1x20x32xbf16> to vector<20x32xbf16>
    %c8 = arith.constant 8 : index
    %c0_46 = arith.constant 0 : index
    %c0_47 = arith.constant 0 : index
    %51 = vector.load %arg2[%c8, %c0_46, %c0_47] : memref<9x32x64xbf16, #tpu.memory_space<vmem>>, vector<1x32x64xbf16>
    %52 = vector.shape_cast %51 : vector<1x32x64xbf16> to vector<32x64xbf16>
    %cst_48 = arith.constant dense<0.000000e+00> : vector<20x64xf32>
    %53 = tpu.matmul %50, %52, %cst_48 {dimension_numbers = #tpu.dot_dimension_numbers<[1], [0], [0], [1], [0, 0, 1, 1], [], []>} : vector<20x32xbf16>, vector<32x64xbf16>, vector<20x64xf32> -> vector<20x64xf32>
    %54 = arith.addf %48, %53 : vector<20x64xf32>
    %c0_49 = arith.constant 0 : index
    %c0_50 = arith.constant 0 : index
    %55 = vector.load %arg3[%c0_49, %c0_50] : memref<1x64xf32, #tpu.memory_space<vmem>>, vector<1x64xf32>
    %56 = vector.broadcast %55 : vector<1x64xf32> to vector<20x64xf32>
    %57 = arith.addf %54, %56 : vector<20x64xf32>
    %cst_51 = arith.constant 0.000000e+00 : f32
    %58 = vector.broadcast %cst_51 : f32 to vector<20x64xf32>
    %59 = arith.maximumf %57, %58 : vector<20x64xf32>
    %60 = arith.truncf %59 : vector<20x64xf32> to vector<20x64xbf16>
    %c0_52 = arith.constant 0 : index
    %c0_53 = arith.constant 0 : index
    %c0_54 = arith.constant 0 : index
    %61 = vector.load %arg4[%c0_52, %c0_53, %c0_54] : memref<1x20x64xbf16, #tpu.memory_space<vmem>>, vector<1x20x64xbf16>
    %62 = vector.shape_cast %61 : vector<1x20x64xbf16> to vector<20x64xbf16>
    %63 = vector.shape_cast %60 : vector<20x64xbf16> to vector<1x20x64xbf16>
    tpu.vector_store %arg4[%c0_52, %c0_53, %c0_54], %63 {strides = array<i32>} : memref<1x20x64xbf16, #tpu.memory_space<vmem>>, vector<1x20x64xbf16>,
    return
  }
  func.func @transform_0(%arg0: i32) -> (i32, i32, i32) {
    %c0_i32 = arith.constant 0 : i32
    %c0_i32_0 = arith.constant 0 : i32
    %c0_i32_1 = arith.constant 0 : i32
    return %arg0, %c0_i32, %c0_i32_0 : i32, i32, i32
  }
  func.func @transform_1(%arg0: i32) -> (i32, i32, i32) {
    %c0_i32 = arith.constant 0 : i32
    %c0_i32_0 = arith.constant 0 : i32
    %c0_i32_1 = arith.constant 0 : i32
    %c0_i32_2 = arith.constant 0 : i32
    return %c0_i32, %c0_i32_0, %c0_i32_1 : i32, i32, i32
  }
  func.func @transform_2(%arg0: i32) -> (i32, i32) {
    %c0_i32 = arith.constant 0 : i32
    %c0_i32_0 = arith.constant 0 : i32
    %c0_i32_1 = arith.constant 0 : i32
    return %c0_i32, %c0_i32_0 : i32, i32
  }
  func.func @transform_3(%arg0: i32) -> (i32, i32, i32) {
    %c0_i32 = arith.constant 0 : i32
    %c0_i32_0 = arith.constant 0 : i32
    %c0_i32_1 = arith.constant 0 : i32
    return %arg0, %c0_i32, %c0_i32_0 : i32, i32, i32
  }
}

module attributes {stable_mosaic.version = 11 : i64} {
  func.func @kernel(%arg0: i32, %arg1: memref<1x42x64xbf16, #tpu.memory_space<vmem>>, %arg2: memref<9x64x64xbf16, #tpu.memory_space<vmem>>, %arg3: memref<1x64xf32, #tpu.memory_space<vmem>>, %arg4: memref<1x24x64xbf16, #tpu.memory_space<vmem>>, %arg5: memref<1x24x64xbf16, #tpu.memory_space<vmem>>) attributes {dimension_semantics = [#tpu.dimension_semantics<parallel>], iteration_bounds = array<i64: 2>, scalar_prefetch = 0 : i64, scratch_operands = 0 : i64, tpu.core_type = #tpu.core_type<tc>, window_params = [{transform_indices = @transform_0, window_bounds = array<i64: 1, 42, 64>}, {pipeline_mode = #tpu.pipeline_mode<synchronous>, transform_indices = @transform_1, window_bounds = array<i64: 9, 64, 64>}, {pipeline_mode = #tpu.pipeline_mode<synchronous>, transform_indices = @transform_2, window_bounds = array<i64: 1, 64>}, {transform_indices = @transform_3, window_bounds = array<i64: 1, 24, 64>}, {transform_indices = @transform_4, window_bounds = array<i64: 1, 24, 64>}]} {
    %cst = arith.constant 0.000000e+00 : f32
    %0 = vector.broadcast %cst : f32 to vector<24x64xf32>
    %c0 = arith.constant 0 : index
    %c0_0 = arith.constant 0 : index
    %c0_1 = arith.constant 0 : index
    %1 = vector.load %arg1[%c0, %c0_0, %c0_1] : memref<1x42x64xbf16, #tpu.memory_space<vmem>>, vector<1x24x64xbf16>
    %2 = vector.shape_cast %1 : vector<1x24x64xbf16> to vector<24x64xbf16>
    %c0_2 = arith.constant 0 : index
    %c0_3 = arith.constant 0 : index
    %c0_4 = arith.constant 0 : index
    %3 = vector.load %arg2[%c0_2, %c0_3, %c0_4] : memref<9x64x64xbf16, #tpu.memory_space<vmem>>, vector<1x64x64xbf16>
    %4 = vector.shape_cast %3 : vector<1x64x64xbf16> to vector<64x64xbf16>
    %cst_5 = arith.constant dense<0.000000e+00> : vector<24x64xf32>
    %5 = tpu.matmul %2, %4, %cst_5 {dimension_numbers = #tpu.dot_dimension_numbers<[1], [0], [0], [1], [0, 0, 1, 1], [], []>} : vector<24x64xbf16>, vector<64x64xbf16>, vector<24x64xf32> -> vector<24x64xf32>
    %6 = arith.addf %0, %5 : vector<24x64xf32>
    %c0_6 = arith.constant 0 : index
    %c1 = arith.constant 1 : index
    %c0_7 = arith.constant 0 : index
    %7 = vector.load %arg1[%c0_6, %c1, %c0_7] : memref<1x42x64xbf16, #tpu.memory_space<vmem>>, vector<1x24x64xbf16>
    %8 = vector.shape_cast %7 : vector<1x24x64xbf16> to vector<24x64xbf16>
    %c1_8 = arith.constant 1 : index
    %c0_9 = arith.constant 0 : index
    %c0_10 = arith.constant 0 : index
    %9 = vector.load %arg2[%c1_8, %c0_9, %c0_10] : memref<9x64x64xbf16, #tpu.memory_space<vmem>>, vector<1x64x64xbf16>
    %10 = vector.shape_cast %9 : vector<1x64x64xbf16> to vector<64x64xbf16>
    %cst_11 = arith.constant dense<0.000000e+00> : vector<24x64xf32>
    %11 = tpu.matmul %8, %10, %cst_11 {dimension_numbers = #tpu.dot_dimension_numbers<[1], [0], [0], [1], [0, 0, 1, 1], [], []>} : vector<24x64xbf16>, vector<64x64xbf16>, vector<24x64xf32> -> vector<24x64xf32>
    %12 = arith.addf %6, %11 : vector<24x64xf32>
    %c0_12 = arith.constant 0 : index
    %c2 = arith.constant 2 : index
    %c0_13 = arith.constant 0 : index
    %13 = vector.load %arg1[%c0_12, %c2, %c0_13] : memref<1x42x64xbf16, #tpu.memory_space<vmem>>, vector<1x24x64xbf16>
    %14 = vector.shape_cast %13 : vector<1x24x64xbf16> to vector<24x64xbf16>
    %c2_14 = arith.constant 2 : index
    %c0_15 = arith.constant 0 : index
    %c0_16 = arith.constant 0 : index
    %15 = vector.load %arg2[%c2_14, %c0_15, %c0_16] : memref<9x64x64xbf16, #tpu.memory_space<vmem>>, vector<1x64x64xbf16>
    %16 = vector.shape_cast %15 : vector<1x64x64xbf16> to vector<64x64xbf16>
    %cst_17 = arith.constant dense<0.000000e+00> : vector<24x64xf32>
    %17 = tpu.matmul %14, %16, %cst_17 {dimension_numbers = #tpu.dot_dimension_numbers<[1], [0], [0], [1], [0, 0, 1, 1], [], []>} : vector<24x64xbf16>, vector<64x64xbf16>, vector<24x64xf32> -> vector<24x64xf32>
    %18 = arith.addf %12, %17 : vector<24x64xf32>
    %c0_18 = arith.constant 0 : index
    %c6 = arith.constant 6 : index
    %c0_19 = arith.constant 0 : index
    %19 = vector.load %arg1[%c0_18, %c6, %c0_19] : memref<1x42x64xbf16, #tpu.memory_space<vmem>>, vector<1x24x64xbf16>
    %20 = vector.shape_cast %19 : vector<1x24x64xbf16> to vector<24x64xbf16>
    %c3 = arith.constant 3 : index
    %c0_20 = arith.constant 0 : index
    %c0_21 = arith.constant 0 : index
    %21 = vector.load %arg2[%c3, %c0_20, %c0_21] : memref<9x64x64xbf16, #tpu.memory_space<vmem>>, vector<1x64x64xbf16>
    %22 = vector.shape_cast %21 : vector<1x64x64xbf16> to vector<64x64xbf16>
    %cst_22 = arith.constant dense<0.000000e+00> : vector<24x64xf32>
    %23 = tpu.matmul %20, %22, %cst_22 {dimension_numbers = #tpu.dot_dimension_numbers<[1], [0], [0], [1], [0, 0, 1, 1], [], []>} : vector<24x64xbf16>, vector<64x64xbf16>, vector<24x64xf32> -> vector<24x64xf32>
    %24 = arith.addf %18, %23 : vector<24x64xf32>
    %c0_23 = arith.constant 0 : index
    %c7 = arith.constant 7 : index
    %c0_24 = arith.constant 0 : index
    %25 = vector.load %arg1[%c0_23, %c7, %c0_24] : memref<1x42x64xbf16, #tpu.memory_space<vmem>>, vector<1x24x64xbf16>
    %26 = vector.shape_cast %25 : vector<1x24x64xbf16> to vector<24x64xbf16>
    %c4 = arith.constant 4 : index
    %c0_25 = arith.constant 0 : index
    %c0_26 = arith.constant 0 : index
    %27 = vector.load %arg2[%c4, %c0_25, %c0_26] : memref<9x64x64xbf16, #tpu.memory_space<vmem>>, vector<1x64x64xbf16>
    %28 = vector.shape_cast %27 : vector<1x64x64xbf16> to vector<64x64xbf16>
    %cst_27 = arith.constant dense<0.000000e+00> : vector<24x64xf32>
    %29 = tpu.matmul %26, %28, %cst_27 {dimension_numbers = #tpu.dot_dimension_numbers<[1], [0], [0], [1], [0, 0, 1, 1], [], []>} : vector<24x64xbf16>, vector<64x64xbf16>, vector<24x64xf32> -> vector<24x64xf32>
    %30 = arith.addf %24, %29 : vector<24x64xf32>
    %c0_28 = arith.constant 0 : index
    %c8 = arith.constant 8 : index
    %c0_29 = arith.constant 0 : index
    %31 = vector.load %arg1[%c0_28, %c8, %c0_29] : memref<1x42x64xbf16, #tpu.memory_space<vmem>>, vector<1x24x64xbf16>
    %32 = vector.shape_cast %31 : vector<1x24x64xbf16> to vector<24x64xbf16>
    %c5 = arith.constant 5 : index
    %c0_30 = arith.constant 0 : index
    %c0_31 = arith.constant 0 : index
    %33 = vector.load %arg2[%c5, %c0_30, %c0_31] : memref<9x64x64xbf16, #tpu.memory_space<vmem>>, vector<1x64x64xbf16>
    %34 = vector.shape_cast %33 : vector<1x64x64xbf16> to vector<64x64xbf16>
    %cst_32 = arith.constant dense<0.000000e+00> : vector<24x64xf32>
    %35 = tpu.matmul %32, %34, %cst_32 {dimension_numbers = #tpu.dot_dimension_numbers<[1], [0], [0], [1], [0, 0, 1, 1], [], []>} : vector<24x64xbf16>, vector<64x64xbf16>, vector<24x64xf32> -> vector<24x64xf32>
    %36 = arith.addf %30, %35 : vector<24x64xf32>
    %c0_33 = arith.constant 0 : index
    %c12 = arith.constant 12 : index
    %c0_34 = arith.constant 0 : index
    %37 = vector.load %arg1[%c0_33, %c12, %c0_34] : memref<1x42x64xbf16, #tpu.memory_space<vmem>>, vector<1x24x64xbf16>
    %38 = vector.shape_cast %37 : vector<1x24x64xbf16> to vector<24x64xbf16>
    %c6_35 = arith.constant 6 : index
    %c0_36 = arith.constant 0 : index
    %c0_37 = arith.constant 0 : index
    %39 = vector.load %arg2[%c6_35, %c0_36, %c0_37] : memref<9x64x64xbf16, #tpu.memory_space<vmem>>, vector<1x64x64xbf16>
    %40 = vector.shape_cast %39 : vector<1x64x64xbf16> to vector<64x64xbf16>
    %cst_38 = arith.constant dense<0.000000e+00> : vector<24x64xf32>
    %41 = tpu.matmul %38, %40, %cst_38 {dimension_numbers = #tpu.dot_dimension_numbers<[1], [0], [0], [1], [0, 0, 1, 1], [], []>} : vector<24x64xbf16>, vector<64x64xbf16>, vector<24x64xf32> -> vector<24x64xf32>
    %42 = arith.addf %36, %41 : vector<24x64xf32>
    %c0_39 = arith.constant 0 : index
    %c13 = arith.constant 13 : index
    %c0_40 = arith.constant 0 : index
    %43 = vector.load %arg1[%c0_39, %c13, %c0_40] : memref<1x42x64xbf16, #tpu.memory_space<vmem>>, vector<1x24x64xbf16>
    %44 = vector.shape_cast %43 : vector<1x24x64xbf16> to vector<24x64xbf16>
    %c7_41 = arith.constant 7 : index
    %c0_42 = arith.constant 0 : index
    %c0_43 = arith.constant 0 : index
    %45 = vector.load %arg2[%c7_41, %c0_42, %c0_43] : memref<9x64x64xbf16, #tpu.memory_space<vmem>>, vector<1x64x64xbf16>
    %46 = vector.shape_cast %45 : vector<1x64x64xbf16> to vector<64x64xbf16>
    %cst_44 = arith.constant dense<0.000000e+00> : vector<24x64xf32>
    %47 = tpu.matmul %44, %46, %cst_44 {dimension_numbers = #tpu.dot_dimension_numbers<[1], [0], [0], [1], [0, 0, 1, 1], [], []>} : vector<24x64xbf16>, vector<64x64xbf16>, vector<24x64xf32> -> vector<24x64xf32>
    %48 = arith.addf %42, %47 : vector<24x64xf32>
    %c0_45 = arith.constant 0 : index
    %c14 = arith.constant 14 : index
    %c0_46 = arith.constant 0 : index
    %49 = vector.load %arg1[%c0_45, %c14, %c0_46] : memref<1x42x64xbf16, #tpu.memory_space<vmem>>, vector<1x24x64xbf16>
    %50 = vector.shape_cast %49 : vector<1x24x64xbf16> to vector<24x64xbf16>
    %c8_47 = arith.constant 8 : index
    %c0_48 = arith.constant 0 : index
    %c0_49 = arith.constant 0 : index
    %51 = vector.load %arg2[%c8_47, %c0_48, %c0_49] : memref<9x64x64xbf16, #tpu.memory_space<vmem>>, vector<1x64x64xbf16>
    %52 = vector.shape_cast %51 : vector<1x64x64xbf16> to vector<64x64xbf16>
    %cst_50 = arith.constant dense<0.000000e+00> : vector<24x64xf32>
    %53 = tpu.matmul %50, %52, %cst_50 {dimension_numbers = #tpu.dot_dimension_numbers<[1], [0], [0], [1], [0, 0, 1, 1], [], []>} : vector<24x64xbf16>, vector<64x64xbf16>, vector<24x64xf32> -> vector<24x64xf32>
    %54 = arith.addf %48, %53 : vector<24x64xf32>
    %c0_51 = arith.constant 0 : index
    %c0_52 = arith.constant 0 : index
    %55 = vector.load %arg3[%c0_51, %c0_52] : memref<1x64xf32, #tpu.memory_space<vmem>>, vector<1x64xf32>
    %56 = vector.broadcast %55 : vector<1x64xf32> to vector<24x64xf32>
    %57 = arith.addf %54, %56 : vector<24x64xf32>
    %c0_53 = arith.constant 0 : index
    %c0_54 = arith.constant 0 : index
    %c0_55 = arith.constant 0 : index
    %58 = vector.load %arg4[%c0_53, %c0_54, %c0_55] : memref<1x24x64xbf16, #tpu.memory_space<vmem>>, vector<1x24x64xbf16>
    %59 = vector.shape_cast %58 : vector<1x24x64xbf16> to vector<24x64xbf16>
    %60 = arith.extf %59 : vector<24x64xbf16> to vector<24x64xf32>
    %61 = arith.addf %57, %60 : vector<24x64xf32>
    %cst_56 = arith.constant 0.000000e+00 : f32
    %62 = vector.broadcast %cst_56 : f32 to vector<24x64xf32>
    %63 = arith.maximumf %61, %62 : vector<24x64xf32>
    %64 = arith.truncf %63 : vector<24x64xf32> to vector<24x64xbf16>
    %c0_57 = arith.constant 0 : index
    %c0_58 = arith.constant 0 : index
    %c0_59 = arith.constant 0 : index
    %65 = vector.load %arg5[%c0_57, %c0_58, %c0_59] : memref<1x24x64xbf16, #tpu.memory_space<vmem>>, vector<1x24x64xbf16>
    %66 = vector.shape_cast %65 : vector<1x24x64xbf16> to vector<24x64xbf16>
    %67 = vector.shape_cast %64 : vector<24x64xbf16> to vector<1x24x64xbf16>
    tpu.vector_store %arg5[%c0_57, %c0_58, %c0_59], %67 {strides = array<i32>} : memref<1x24x64xbf16, #tpu.memory_space<vmem>>, vector<1x24x64xbf16>,
    return
  }
  func.func @transform_0(%arg0: i32) -> (i32, i32, i32) {
    %c0_i32 = arith.constant 0 : i32
    %c0_i32_0 = arith.constant 0 : i32
    %c0_i32_1 = arith.constant 0 : i32
    return %arg0, %c0_i32, %c0_i32_0 : i32, i32, i32
  }
  func.func @transform_1(%arg0: i32) -> (i32, i32, i32) {
    %c0_i32 = arith.constant 0 : i32
    %c0_i32_0 = arith.constant 0 : i32
    %c0_i32_1 = arith.constant 0 : i32
    %c0_i32_2 = arith.constant 0 : i32
    return %c0_i32, %c0_i32_0, %c0_i32_1 : i32, i32, i32
  }
  func.func @transform_2(%arg0: i32) -> (i32, i32) {
    %c0_i32 = arith.constant 0 : i32
    %c0_i32_0 = arith.constant 0 : i32
    %c0_i32_1 = arith.constant 0 : i32
    return %c0_i32, %c0_i32_0 : i32, i32
  }
  func.func @transform_3(%arg0: i32) -> (i32, i32, i32) {
    %c0_i32 = arith.constant 0 : i32
    %c0_i32_0 = arith.constant 0 : i32
    %c0_i32_1 = arith.constant 0 : i32
    return %arg0, %c0_i32, %c0_i32_0 : i32, i32, i32
  }
  func.func @transform_4(%arg0: i32) -> (i32, i32, i32) {
    %c0_i32 = arith.constant 0 : i32
    %c0_i32_0 = arith.constant 0 : i32
    %c0_i32_1 = arith.constant 0 : i32
    return %arg0, %c0_i32, %c0_i32_0 : i32, i32, i32
  }
}

module attributes {stable_mosaic.version = 11 : i64} {
  func.func @head_kernel(%arg0: memref<2x16x64xbf16, #tpu.memory_space<vmem>>, %arg1: memref<64x10xf32, #tpu.memory_space<vmem>>, %arg2: memref<1x10xf32, #tpu.memory_space<vmem>>, %arg3: memref<2x10xf32, #tpu.memory_space<vmem>>) attributes {dimension_semantics = [], scalar_prefetch = 0 : i64, scratch_operands = 0 : i64, tpu.core_type = #tpu.core_type<tc>} {
    %c0 = arith.constant 0 : index
    %c0_0 = arith.constant 0 : index
    %c0_1 = arith.constant 0 : index
    %0 = vector.load %arg0[%c0, %c0_0, %c0_1] : memref<2x16x64xbf16, #tpu.memory_space<vmem>>, vector<2x16x64xbf16>
    %1 = arith.extf %0 : vector<2x16x64xbf16> to vector<2x16x64xf32>
    %cst = arith.constant dense<0.000000e+00> : vector<2x64xf32>
    %2 = vector.multi_reduction <add>, %1, %cst [1] : vector<2x16x64xf32> to vector<2x64xf32>
    %cst_2 = arith.constant 1.600000e+01 : f32
    %3 = vector.broadcast %cst_2 : f32 to vector<2x64xf32>
    %4 = arith.divf %2, %3 : vector<2x64xf32>
    %c0_3 = arith.constant 0 : index
    %c0_4 = arith.constant 0 : index
    %5 = vector.load %arg1[%c0_3, %c0_4] : memref<64x10xf32, #tpu.memory_space<vmem>>, vector<64x10xf32>
    %cst_5 = arith.constant dense<0.000000e+00> : vector<2x10xf32>
    %6 = tpu.matmul %4, %5, %cst_5 {dimension_numbers = #tpu.dot_dimension_numbers<[1], [0], [0], [1], [0, 0, 1, 1], [], []>} : vector<2x64xf32>, vector<64x10xf32>, vector<2x10xf32> -> vector<2x10xf32>
    %c0_6 = arith.constant 0 : index
    %c0_7 = arith.constant 0 : index
    %7 = vector.load %arg2[%c0_6, %c0_7] : memref<1x10xf32, #tpu.memory_space<vmem>>, vector<1x10xf32>
    %8 = vector.broadcast %7 : vector<1x10xf32> to vector<2x10xf32>
    %9 = arith.addf %6, %8 : vector<2x10xf32>
    %c0_8 = arith.constant 0 : index
    %c0_9 = arith.constant 0 : index
    %10 = vector.load %arg3[%c0_8, %c0_9] : memref<2x10xf32, #tpu.memory_space<vmem>>, vector<2x10xf32>
    tpu.vector_store %arg3[%c0_8, %c0_9], %9 {strides = array<i32>} : memref<2x10xf32, #tpu.memory_space<vmem>>, vector<2x10xf32>,
    return
  }
}

</mosaic_0001>

<bundles_post_ra>
// kernel: resnet_forward.8
= control target key start
LH: loop header
LB: loop body
LE: loop exit
PB: predicated region body
PF: predicated region fallthrough
CT: control target
= control target key end

     0   :  { %s3631_s12 = smov 0   ;;  %s4733_s0 = inlined_call_operand.vmem [shape: bf16[2,342,3], index: 0, kind: input, shape index: {}]   ;;  %s4734_s1 = inlined_call_operand.vmem [shape: bf16[9,3,16], index: 1, kind: input, shape index: {}]   ;;  %s4735_s2 = inlined_call_operand.vmem [shape: f32[1,16], index: 2, kind: input, shape index: {}]   ;;  %s4736_s3 = inlined_call_operand.vmem [shape: bf16[2,288,16], index: 3, kind: output, shape index: {}]  }
   0x1 LB: > { %s3125_s13 = sadd.s32 4294967295, %s3608_s12   ;;  %p3129_p0 = scmp.ge.s32.totalorder %s3608_s12, 1  ;;  %s3608_s12 = sphi %s3631_s12, %s13_s12  }
   0x2   : > { %p137_p1 = scmp.lt.s32.totalorder %s3608_s12, 3 }
   0x4   : > { %p138_p2 = pnand %p3129_p0, %p137_p1 }
   0x6   : > { %141 = sbr.rel (%p138_p2) target bundleno = 819 (0x333), region = 32 }
   0xb   : > { %v3132_v0 = vld [vmem:[%s4734_s1 + $0x2] sm:$0x3]  ;;  %vm509_vm0 = vcmask 1040384   ;;  %vm510_vm1 = vcmask 1041408   ;;  %p161_p3 = scmp.lt.s32.totalorder %s3125_s13, 1  ;;  %v3610_v1 = vmov 65535  }
   0xc   : > { %v511_v2 = vsel %vm509_vm0, 4294967295, %v3610_v1  ;;  %v3237_v3 = vld [vmem:[%s4734_s1 + $0x4] sm:$0x3]  ;;  %v208_v5 = vld [vmem:[%s4734_s1] sm:$0x3]  ;;  %vm454_vm3 = vcmask 23552  }
   0xd   : > { %v3645_v4 = vsel %vm510_vm1, %v511_v2, 0  ;;  %s4762_s13 = smov (!%p161_p3, %s3125_s13), 1  ;;  %v3343_v6 = vld [vmem:[%s4734_s1 + $0x8] sm:$0x3]  ;;  %vm305_vm2 = vsmask.f32 7424 }
   0xe   : > { %v514_v7 = vand.u32 %v3132_v0, %v3645_v4  ;;  %v852_v8 = vand.u32 %v3237_v3, %v3645_v4  ;;  %v652_v9 = vand.u32 %v3645_v4, %v208_v5  ;;  %v1582_v10 = vand.u32 %v3343_v6, %v3645_v4  ;;  %s3569_s22 = smul.u32 172, %s4762_s13  ;;  %v3256_v48 = vld [vmem:[%s4734_s1 + $0x6] sm:$0x3] }
   0xf   : > { %v1213_v56 = vand.u32 %v3256_v48, %v3645_v4  ;;  %vm759_vm4 = vcmask 1046528   ;;  %vm1356_vm5 = vsmask.f32 6400  ;;  %vm2322_vm6 = vsmask.f32 5376  ;;  %s3570_s11 = smul.u32 144, %s4762_s13 }
  0x10   : > { %3566 = vmatpush.bf16.msra.mxu1 %v514_v7  ;;  %3567 = vmatpush.bf16.msra.mxu2 %v514_v7  ;;  %s3663_s25 = scalar_lea.vmem %s4733_s0, %s3569_s22  ;;  %vm1725_vm7 = vcmask 1045504   ;;  %vm2691_vm8 = vcmask 1044480   ;;  %vm3033_vm9 = vcmask 125952  }
  0x11   : > { %523 = vmatpush.bf16.msra.mxu0 %v514_v7  ;;  %v3666_v11 = vld [vmem:[%s3663_s25 + $0x28] sm:$0xff]  ;;  %v3669_v12 = vld [vmem:[%s3663_s25 + $0x30] sm:$0xff]  ;;  %v3675_v14 = vld [vmem:[%s3663_s25 + $0x58] sm:$0xff]  ;;  %3568 = vmatpush.bf16.msra.mxu3 %v514_v7  ;;  %s4427_s15 = scalar_lea.vmem %s4736_s3, %s3570_s11 }
  0x12   : > { %v3672_v13 = vld [vmem:[%s3663_s25 + $0x50] sm:$0xff]  ;;  %v3678_v15 = vld [vmem:[%s3663_s25] sm:$0xff]   ;;  %v3681_v16 = vld [vmem:[%s3663_s25 + $0x8] sm:$0xff]  ;;  %v346_v17 = vshll.u32 %v3666_v11, 16  ;;  %v350_v18 = vshrl.u32 %v3666_v11, 16  ;;  %v354_v19 = vshll.u32 %v3669_v12, 16 }
  0x13   : > { %v386_v20 = vshll.u32 %v3672_v13, 16  ;;  %v390_v21 = vshrl.u32 %v3672_v13, 16  ;;  %v394_v22 = vshll.u32 %v3675_v14, 16  ;;  %v307_v23 = vshrl.u32 %v3678_v15, 16  ;;  %v3699_v34 = vld [vmem:[%s3663_s25 + $0x78] sm:$0xff]  ;;  %v3523_v35 = vld [vmem:[%s3663_s25 + $0x80] sm:$0xff] }
  0x14   : > { %861 = vmatpush.bf16.msrb.mxu2 %v852_v8  ;;  %661 = vmatpush.bf16.msrb.mxu1 %v652_v9  ;;  %v309_v24 = vshll.u32 %v3678_v15, 16  ;;  %v3691_v25 = vrot.slane %v346_v17, 1  ;;  %v356_v26 = vrot.slane %v354_v19, 1  ;;  %v314_v28 = vshll.u32 %v3681_v16, 16  ;;  %v3708_v40 = vld [vmem:[%s3663_s25 + $0x38] sm:$0xff]  ;;  %v3712_v41 = vld [vmem:[%s3663_s25 + $0x60] sm:$0xff] }
  0x15   : > { %1591 = vmatpush.bf16.msrb.mxu0 %v1582_v10  ;;  %v3693_v27 = vrot.slane %v386_v20, 1  ;;  %v396_v29 = vrot.slane %v394_v22, 1  ;;  %v426_v42 = vshll.u32 %v3699_v34, 16  ;;  %v430_v43 = vshrl.u32 %v3699_v34, 16  ;;  %v3717_v45 = vld [vmem:[%s3663_s25 + $0x10] sm:$0xff]  ;;  %1222 = vmatpush.bf16.msrb.mxu3 %v1213_v56  ;;  %v3524_v62 = vld [vmem:[%s3663_s25 + $0x88] sm:$0xff] }
  0x16   : > { %v311_v30 = vrot.slane %v309_v24, 1  ;;  %v352_v31 = vor.u32 %v350_v18, %v3691_v25  ;;  %v316_v33 = vrot.slane %v314_v28, 1  ;;  %v434_v44 = vshll.u32 %v3523_v35, 16  ;;  %v3736_v63 = vld [vmem:[%s3663_s25 + $0x48] sm:$0xff]  ;;  %v3745_v9 = vld [vmem:[%s3663_s25 + $0x40] sm:$0xff]  ;;  %v3783_v56 = vld [vmem:[%s3663_s25 + $0x70] sm:$0xff] }
  0x17   : > { %v392_v32 = vor.u32 %v390_v21, %v3693_v27  ;;  %v3719_v46 = vrot.slane %v426_v42, 1  ;;  %v358_v49 = vshrl.u32 %v3669_v12, 16  ;;  %v362_v50 = vshll.u32 %v3708_v40, 16  ;;  %v3748_v10 = vld [vmem:[%s3663_s25 + $0x68] sm:$0xff]  ;;  %v3753_v21 = vld [vmem:[%s3663_s25 + $0x18] sm:$0xff] }
  0x18   : > { %v312_v36 = vor.u32 %v311_v30, %v307_v23  ;;  %v357_v37 = vsel %vm305_vm2, %v352_v31, %v356_v26  ;;  %v436_v47 = vrot.slane %v434_v44, 1  ;;  %v398_v51 = vshrl.u32 %v3675_v14, 16  ;;  %v209_v22 = vld [vmem:[%s3663_s25 + $0x90] sm:$0x1]  ;;  %v3762_v31 = vld [vmem:[%s3663_s25 + $0x20] sm:$0xff] }
  0x19   : > { %v397_v38 = vsel %vm305_vm2, %v392_v32, %v396_v29  ;;  %3206 = vmatmul.msk.bf16.vlgmr.msra.gmra.mxu1 %vm454_vm3, %v357_v37  ;;  %v402_v52 = vshll.u32 %v3712_v41, 16  ;;  %v432_v53 = vor.u32 %v430_v43, %v3719_v46  ;;  %v318_v54 = vshrl.u32 %v3681_v16, 16 }
  0x1a   : > { %3211 = vmatmul.msk.bf16.vlgmr.msra.gmra.mxu2 %vm454_vm3, %v397_v38  ;;  %v317_v39 = vsel %vm305_vm2, %v312_v36, %v316_v33  ;;  %v322_v55 = vshll.u32 %v3717_v45, 16  ;;  %v360_v58 = vor.u32 %v358_v49, %v356_v26  ;;  %v364_v59 = vrot.slane %v362_v50, 1 }
  0x1b   : > { %3201 = vmatmul.msk.bf16.vlgmr.msra.gmra.mxu0 %vm454_vm3, %v317_v39  ;;  %v437_v57 = vsel %vm305_vm2, %v432_v53, %v436_v47  ;;  %v400_v60 = vor.u32 %v398_v51, %v396_v29  ;;  %v404_v61 = vrot.slane %v402_v52, 1  ;;  %v320_v0 = vor.u32 %v318_v54, %v316_v33 }
  0x1c   : > { %3216 = vmatmul.msk.bf16.vlgmr.msra.gmra.mxu3 %vm454_vm3, %v437_v57  ;;  %v324_v1 = vrot.slane %v322_v55, 1  ;;  %v365_v2 = vsel %vm305_vm2, %v360_v58, %v364_v59  ;;  %v438_v5 = vshrl.u32 %v3523_v35, 16  ;;  %v442_v6 = vshll.u32 %v3524_v62, 16 }
  0x1d   : > { %v405_v3 = vsel %vm305_vm2, %v400_v60, %v404_v61  ;;  %v378_v7 = vshll.u32 %v3736_v63, 16  ;;  %v382_v20 = vshrl.u32 %v3736_v63, 16  ;;  %v366_v24 = vshrl.u32 %v3708_v40, 16 }
  0x1e   : > { %v325_v8 = vsel %vm305_vm2, %v320_v0, %v324_v1  ;;  %v440_v17 = vor.u32 %v438_v5, %v436_v47  ;;  %v444_v18 = vrot.slane %v442_v6, 1  ;;  %v370_v26 = vshll.u32 %v3745_v9, 16 }
  0x1f   : > { %v380_v19 = vrot.slane %v378_v7, 1  ;;  %v406_v28 = vshrl.u32 %v3712_v41, 16  ;;  %v410_v29 = vshll.u32 %v3748_v10, 16  ;;  %v285_v32 = vunpack.c.l.b16 %v209_v22  ;;  %v3525_v22 = vld [vmem:[%s3663_s25 + $0x10] sm:$0xff] }
  0x20   : > { %v445_v30 = vsel %vm305_vm2, %v440_v17, %v444_v18  ;;  %v326_v35 = vshrl.u32 %v3717_v45, 16  ;;  %v330_v36 = vshll.u32 %v3753_v21, 16  ;;  %v368_v37 = vor.u32 %v366_v24, %v364_v59 }
  0x21   : > { %v384_v23 = vor.u32 %v382_v20, %v380_v19  ;;  %v372_v38 = vrot.slane %v370_v26, 1  ;;  %v408_v39 = vor.u32 %v406_v28, %v404_v61  ;;  %v412_v42 = vrot.slane %v410_v29, 1  ;;  %v3381_v26 = vld [vmem:[%s4734_s1 + $0xc] sm:$0x3] }
  0x22   : > { %v338_v43 = vshll.u32 %v3762_v31, 16  ;;  %v3772_v44 = vpack.c.b16 %v285_v32, %v285_v32  ;;  %v328_v47 = vor.u32 %v326_v35, %v324_v1  ;;  %v332_v48 = vrot.slane %v330_v36, 1  ;;  %v3362_v32 = vld [vmem:[%s4734_s1 + $0xa] sm:$0x3] }
  0x23   : > { %v3766_v33 = vsel %vm305_vm2, %v384_v23, %v3693_v27  ;;  %v373_v27 = vsel %vm305_vm2, %v368_v37, %v372_v38  ;;  %v413_v49 = vsel %vm305_vm2, %v408_v39, %v412_v42  ;;  %v446_v51 = vshrl.u32 %v3524_v62, 16  ;;  %v3487_v37 = vld [vmem:[%s4734_s1 + $0x10] sm:$0x3] }
  0x24   : > { %v340_v50 = vrot.slane %v338_v43, 1  ;;  %v450_v52 = vshll.u32 %v3772_v44, 16  ;;  %v342_v53 = vshrl.u32 %v3762_v31, 16  ;;  %v333_v54 = vsel %vm305_vm2, %v328_v47, %v332_v48 }
  0x25   : > { %v448_v57 = vor.u32 %v446_v51, %v444_v18  ;;  %v374_v60 = vshrl.u32 %v3745_v9, 16  ;;  %v414_v61 = vshrl.u32 %v3748_v10, 16  ;;  %v418_v62 = vshll.u32 %v3783_v56, 16 }
  0x26   : > { %v344_v55 = vor.u32 %v342_v53, %v340_v50  ;;  %v452_v58 = vrot.slane %v450_v52, 1  ;;  %v334_v1 = vshrl.u32 %v3753_v21, 16  ;;  %v2179_v29 = vand.u32 %v3381_v26, %v3645_v4 }
  0x27   : > { %v376_v5 = vor.u32 %v374_v60, %v372_v38  ;;  %v416_v6 = vor.u32 %v414_v61, %v412_v42  ;;  %v420_v7 = vrot.slane %v418_v62, 1  ;;  %v1818_v36 = vand.u32 %v3362_v32, %v3645_v4 }
  0x28   : > { %v349_v59 = vsel %vm305_vm2, %v344_v55, %v3691_v25  ;;  %v453_v0 = vsel %vm305_vm2, %v448_v57, %v452_v58  ;;  %v336_v17 = vor.u32 %v334_v1, %v332_v48  ;;  %2188 = vmatpush.bf16.msra.mxu2 %v2179_v29  ;;  %v2784_v38 = vand.u32 %v3487_v37, %v3645_v4  ;;  %v3526_v48 = vld [vmem:[%s3663_s25 + $0x18] sm:$0xff]  ;;  %v3527_v1 = vld [vmem:[%s3663_s25 + $0x20] sm:$0xff] }
  0x29   : > { %3207 = vmatmul.msk.bf16.gmra.mxu1 %vm454_vm3, %v365_v2  ;;  %v989_v2 = vld [vmem:[%s3663_s25 + $0x8] sm:$0xe]  ;;  %v381_v18 = vsel %vm305_vm2, %v376_v5, %v380_v19  ;;  %v421_v20 = vsel %vm305_vm2, %v416_v6, %v420_v7  ;;  %v1122_v19 = vrot.slane %v3525_v22, 1  ;;  %v422_v39 = vshrl.u32 %v3783_v56, 16 }
  0x2a   : > { %3212 = vmatmul.msk.bf16.gmra.mxu2 %vm454_vm3, %v405_v3  ;;  %v3794_v3 = vld [vmem:[%s3663_s25 + $0xc] sm:$0xf]  ;;  %v1065_v25 = vunpack.c.l.b16 %v989_v2  ;;  %v341_v24 = vsel %vm305_vm2, %v336_v17, %v340_v50  ;;  %1827 = vmatpush.bf16.msra.mxu1 %v1818_v36  ;;  %v1366_v52 = vshrl.u32 %v3525_v22, 16  ;;  %v1369_v53 = vshll.u32 %v3525_v22, 16 }
  0x2b   : > { %3202 = vmatmul.msk.bf16.gmra.mxu0 %vm454_vm3, %v325_v8  ;;  %v4737_v8 = vunpack.c.l.b16 %v3794_v3  ;;  %v424_v43 = vor.u32 %v422_v39, %v420_v7  ;;  %v1126_v5 = vrot.slane %v3527_v1, 1  ;;  %v1375_v6 = vshrl.u32 %v3526_v48, 16 }
  0x2c   : > { %3217 = vmatmul.msk.bf16.gmra.mxu3 %vm454_vm3, %v445_v30  ;;  %v3468_v30 = vld [vmem:[%s4734_s1 + $0xe] sm:$0x3]  ;;  %2793 = vmatpush.bf16.msra.mxu0 %v2784_v38  ;;  %v1368_v58 = vrot.slane %v1366_v52, 1  ;;  %v1371_v60 = vrot.slane %v1369_v53, 2  ;;  %v1378_v7 = vshll.u32 %v3526_v48, 16  ;;  %v3529_v38 = vld [vmem:[%s3663_s25 + $0x30] sm:$0xff] }
  0x2d   : > { %v1102_v23 = vpack.c.b16 %v4737_v8, %v1065_v25  ;;  %v2548_v35 = vand.u32 %v3468_v30, %v3645_v4  ;;  %v429_v47 = vsel %vm305_vm2, %v424_v43, %v3719_v46  ;;  %v3563_v4 = vld [vmem:[%s3663_s25] sm:$0xf0]  ;;  %v1377_v17 = vrot.slane %v1375_v6, 1 }
  0x2e   : > { %v1372_v62 = vor.u32 %v1371_v60, %v1368_v58  ;;  %v1130_v39 = vrot.slane %v3529_v38, 1  ;;  %v3531_v6 = vld [vmem:[%s3663_s25 + $0x40] sm:$0xff] }
  0x2f   : > { %v1121_v28 = vrot.slane %v1102_v23, 1  ;;  %2557 = vmatpush.bf16.msra.mxu3 %v2548_v35  ;;  %v1358_v50 = vshrl.u32 %v1102_v23, 16  ;;  %v1361_v51 = vshll.u32 %v1102_v23, 16  ;;  %v765_v35 = vrot.slane %v3753_v21, 1  ;;  %v3535_v8 = vld [vmem:[%s3663_s25 + $0x60] sm:$0xff] }
  0x31   : > { %v1123_v42 = vsel %vm759_vm4, %v1121_v28, %v1122_v19  ;;  %v1360_v46 = vrot.slane %v1358_v50, 1  ;;  %v1363_v57 = vrot.slane %v1361_v51, 2  ;;  %v1384_v28 = vshrl.u32 %v3527_v1, 16  ;;  %v3530_v51 = vld [vmem:[%s3663_s25 + $0x38] sm:$0xff] }
  0x33   : > { %v1364_v61 = vor.u32 %v1363_v57, %v1360_v46  ;;  %v1386_v30 = vrot.slane %v1384_v28, 1  ;;  %v1405_v46 = vshll.u32 %v3529_v38, 16 }
  0x35   : > { %v1373_v2 = vsel %vm1356_vm5, %v1364_v61, %v1372_v62  ;;  %v1407_v61 = vrot.slane %v1405_v46, 2 }
  0x39   : > { %3208 = vmatmul.msk.bf16.gmra.mxu1 %vm454_vm3, %v373_v27  ;;  %v1124_v27 = vrot.slane %v3526_v48, 1 }
  0x3a   : > { %3213 = vmatmul.msk.bf16.gmra.mxu2 %vm454_vm3, %v413_v49  ;;  %v3564_v49 = vld [vmem:[%s3663_s25] sm:$0xe] }
  0x3b   : > { %3203 = vmatmul.msk.bf16.gmra.mxu0 %vm454_vm3, %v333_v54  ;;  %v3565_v54 = vor.u32 %v3564_v49, %v3563_v4  ;;  %v1125_v55 = vsel %vm759_vm4, %v1122_v19, %v1124_v27  ;;  %v1127_v25 = vsel %vm759_vm4, %v1124_v27, %v1126_v5  ;;  %v1387_v19 = vshll.u32 %v3527_v1, 16 }
  0x3c   : > { %3218 = vmatmul.msk.bf16.gmra.mxu3 %vm454_vm3, %v453_v0  ;;  %v767_v27 = vrot.slane %v3762_v31, 1 }
  0x3d   : > { %v1389_v32 = vrot.slane %v1387_v19, 2  ;;  %v771_v19 = vrot.slane %v3669_v12, 1 }
  0x3f   : > { %v1390_v36 = vor.u32 %v1389_v32, %v1386_v30 }
  0x49   : > { %3209 = vmatmul.msk.bf16.gmra.mxu1 %vm454_vm3, %v381_v18  ;;  %v1380_v18 = vrot.slane %v1378_v7, 2 }
  0x4a   : > { %3214 = vmatmul.msk.bf16.gmra.mxu2 %vm454_vm3, %v421_v20  ;;  %v763_v20 = vrot.slane %v3717_v45, 1 }
  0x4b   : > { %3204 = vmatmul.msk.bf16.gmra.mxu0 %vm454_vm3, %v341_v24  ;;  %v1381_v22 = vor.u32 %v1380_v18, %v1377_v17  ;;  %v1134_v17 = vrot.slane %v3531_v6, 1  ;;  %v1411_v18 = vshrl.u32 %v3530_v51, 16 }
  0x4c   : > { %3325 = vmatmul.msk.bf16.vlgmr.msrb.gmra.mxu3 %vm454_vm3, %v1123_v42  ;;  %v766_v37 = vsel %vm759_vm4, %v763_v20, %v765_v35 }
  0x4d   : > { %v1382_v24 = vsel %vm1356_vm5, %v1372_v62, %v1381_v22  ;;  %v1413_v28 = vrot.slane %v1411_v18, 1 }
  0x59   : > { %3210 = vmatmul.msk.bf16.gmra.mxu1 %vm454_vm3, %v3766_v33  ;;  %v760_v33 = vrot.slane %v3565_v54, 1  ;;  %v1132_v54 = vrot.slane %v3530_v51, 1 }
  0x5a   : > { %3215 = vmatmul.msk.bf16.gmra.mxu2 %vm454_vm3, %v429_v47 }
  0x5b   : > { %3205 = vmatmul.msk.bf16.gmra.mxu0 %vm454_vm3, %v349_v59  ;;  %v761_v59 = vrot.slane %v3681_v16, 1  ;;  %v1133_v60 = vsel %vm759_vm4, %v1130_v39, %v1132_v54 }
  0x5c   : > { %3326 = vmatmul.msk.bf16.gmra.mxu3 %vm454_vm3, %v1125_v55  ;;  %v1402_v55 = vshrl.u32 %v3529_v38, 16 }
  0x5d   : > { %v762_v0 = vsel %vm759_vm4, %v760_v33, %v761_v59  ;;  %v764_v23 = vsel %vm759_vm4, %v761_v59, %v763_v20  ;;  %v1414_v20 = vshll.u32 %v3530_v51, 16  ;;  %v773_v51 = vrot.slane %v3708_v40, 1 }
  0x5e   : > { %v1404_v59 = vrot.slane %v1402_v55, 1 }
  0x60   : > { %v1408_v62 = vor.u32 %v1407_v61, %v1404_v59  ;;  %v3533_v59 = vld [vmem:[%s3663_s25 + $0x50] sm:$0xff] }
  0x69   : > { %3219 = vmatmul.msk.bf16.vlgmr.msrb.gmra.mxu1 %vm454_vm3, %v3678_v15  ;;  %v3528_v15 = vld [vmem:[%s3663_s25 + $0x28] sm:$0xff] }
  0x6a   : > { %3238 = vmatmul.msk.bf16.vlgmr.msrb.gmra.mxu2 %vm454_vm3, %v762_v0  ;;  %v1128_v26 = vrot.slane %v3528_v15, 1  ;;  %v1393_v42 = vshrl.u32 %v3528_v15, 16  ;;  %v1396_v43 = vshll.u32 %v3528_v15, 16 }
  0x6b   : > { %3344 = vmatmul.msk.bf16.vlgmr.msrb.gmra.mxu0 %vm454_vm3, %v1373_v2 }
  0x6c   : > { %3327 = vmatmul.msk.bf16.gmra.mxu3 %vm454_vm3, %v1127_v25  ;;  %v1129_v29 = vsel %vm759_vm4, %v1126_v5, %v1128_v26  ;;  %v1131_v47 = vsel %vm759_vm4, %v1128_v26, %v1130_v39  ;;  %v1395_v48 = vrot.slane %v1393_v42, 1  ;;  %v1398_v4 = vrot.slane %v1396_v43, 2 }
  0x6d   : > { %v1420_v42 = vshrl.u32 %v3531_v6, 16  ;;  %v1423_v43 = vshll.u32 %v3531_v6, 16 }
  0x6e   : > { %v1399_v49 = vor.u32 %v1398_v4, %v1395_v48 }
  0x70   : > { %v1400_v53 = vsel %vm1356_vm5, %v1390_v36, %v1399_v49  ;;  %v1409_v25 = vsel %vm1356_vm5, %v1399_v49, %v1408_v62 }
  0x79   : > { %3220 = vmatmul.msk.bf16.gmra.mxu1 %vm454_vm3, %v3681_v16  ;;  %v1391_v16 = vsel %vm1356_vm5, %v1381_v22, %v1390_v36 }
  0x7a   : > { %3239 = vmatmul.msk.bf16.gmra.mxu2 %vm454_vm3, %v764_v23 }
  0x7b   : > { %3345 = vmatmul.msk.bf16.gmra.mxu0 %vm454_vm3, %v1382_v24  ;;  %v1135_v24 = vsel %vm759_vm4, %v1132_v54, %v1134_v17 }
  0x7c   : > { %3328 = vmatmul.msk.bf16.gmra.mxu3 %vm454_vm3, %v1129_v29 }
  0x89   : > { %3221 = vmatmul.msk.bf16.gmra.mxu1 %vm454_vm3, %v3717_v45  ;;  %v768_v45 = vsel %vm759_vm4, %v765_v35, %v767_v27 }
  0x8a   : > { %3240 = vmatmul.msk.bf16.gmra.mxu2 %vm454_vm3, %v766_v37  ;;  %v3532_v37 = vld [vmem:[%s3663_s25 + $0x48] sm:$0xff] }
  0x8b   : > { %3346 = vmatmul.msk.bf16.gmra.mxu0 %vm454_vm3, %v1391_v16  ;;  %v1136_v39 = vrot.slane %v3532_v37, 1  ;;  %v1432_v6 = vshll.u32 %v3532_v37, 16 }
  0x8c   : > { %3329 = vmatmul.msk.bf16.gmra.mxu3 %vm454_vm3, %v1131_v47 }
  0x96   : > { %v3868_v50 = vpop.f32.mrf.mxu1 }
  0x98   : > { %v3872_v52 = vpop.f32.mrf.mxu0 }
  0x99   : > { %3222 = vmatmul.msk.bf16.gmra.mxu1 %vm454_vm3, %v3753_v21  ;;  %v769_v21 = vrot.slane %v3666_v11, 1 }
  0x9a   : > { %3241 = vmatmul.msk.bf16.gmra.mxu2 %vm454_vm3, %v768_v45  ;;  %v1422_v45 = vrot.slane %v1420_v42, 1  ;;  %v3534_v42 = vld [vmem:[%s3663_s25 + $0x58] sm:$0xff] }
  0x9b   : > { %3347 = vmatmul.msk.bf16.gmra.mxu0 %vm454_vm3, %v1400_v53  ;;  %v770_v5 = vsel %vm759_vm4, %v767_v27, %v769_v21  ;;  %v772_v36 = vsel %vm759_vm4, %v769_v21, %v771_v19  ;;  %v1137_v27 = vsel %vm759_vm4, %v1134_v17, %v1136_v39 }
  0x9c   : > { %3330 = vmatmul.msk.bf16.gmra.mxu3 %vm454_vm3, %v1133_v60  ;;  %v774_v60 = vsel %vm759_vm4, %v771_v19, %v773_v51 }
  0x9d   : > { %v3879_v57 = vpop.f32.mrf.mxu2 }
  0x9e   : > { %v3881_v58 = vpop.f32.mrf.mxu1 }
  0x9f   : > { %v3890_v1 = vpop.f32.mrf.mxu3 }
  0xa0   : > { %v3884_v33 = vpop.f32.mrf.mxu0  ;;  %4739 = vst [vmem:[#allocation2_spill] sm:$0xff] %v3890_v1 }
  0xa5   : > { %v3888_v0 = vpop.f32.mrf.mxu2 }
  0xa6   : > { %v3892_v2 = vpop.f32.mrf.mxu1 }
  0xa7   : > { %v3905_v23 = vpop.f32.mrf.mxu3 }
  0xa8   : > { %v3896_v7 = vpop.f32.mrf.mxu0  ;;  %4740 = vst [vmem:[#allocation3_spill] sm:$0xff] %v3905_v23 }
  0xa9   : > { %3223 = vmatmul.msk.bf16.gmra.mxu1 %vm454_vm3, %v3762_v31  ;;  %v1416_v31 = vrot.slane %v1414_v20, 2 }
  0xaa   : > { %3242 = vmatmul.msk.bf16.gmra.mxu2 %vm454_vm3, %v770_v5  ;;  %v1429_v5 = vshrl.u32 %v3532_v37, 16 }
  0xab   : > { %3348 = vmatmul.msk.bf16.gmra.mxu0 %vm454_vm3, %v1409_v25  ;;  %v1417_v29 = vor.u32 %v1416_v31, %v1413_v28  ;;  %v775_v31 = vrot.slane %v3745_v9, 1 }
  0xac   : > { %3331 = vmatmul.msk.bf16.gmra.mxu3 %vm454_vm3, %v1135_v24  ;;  %v1431_v28 = vrot.slane %v1429_v5, 1 }
  0xad   : > { %v3903_v22 = vpop.f32.mrf.mxu2  ;;  %v1418_v16 = vsel %vm1356_vm5, %v1408_v62, %v1417_v29  ;;  %v1138_v62 = vrot.slane %v3533_v59, 1 }
  0xae   : > { %v3907_v15 = vpop.f32.mrf.mxu1 }
  0xaf   : > { %v3916_v32 = vpop.f32.mrf.mxu3  ;;  %v1139_v20 = vsel %vm759_vm4, %v1136_v39, %v1138_v62 }
  0xb0   : > { %v3910_v26 = vpop.f32.mrf.mxu0  ;;  %4741 = vst [vmem:[#allocation4_spill] sm:$0xff] %v3916_v32 }
  0xb5   : > { %v3914_v30 = vpop.f32.mrf.mxu2 }
  0xb6   : > { %v3918_v35 = vpop.f32.mrf.mxu1 }
  0xb7   : > { %v3931_v48 = vpop.f32.mrf.mxu3 }
  0xb8   : > { %v3922_v38 = vpop.f32.mrf.mxu0  ;;  %4742 = vst [vmem:[#allocation5_spill] sm:$0xff] %v3931_v48 }
  0xb9   : > { %3224 = vmatmul.msk.bf16.gmra.mxu1 %vm454_vm3, %v3666_v11  ;;  %v1425_v11 = vrot.slane %v1423_v43, 2 }
  0xba   : > { %3243 = vmatmul.msk.bf16.gmra.mxu2 %vm454_vm3, %v772_v36 }
  0xbb   : > { %3349 = vmatmul.msk.bf16.gmra.mxu0 %vm454_vm3, %v1418_v16  ;;  %v1426_v53 = vor.u32 %v1425_v11, %v1422_v45  ;;  %v776_v16 = vsel %vm759_vm4, %v773_v51, %v775_v31  ;;  %v1438_v45 = vshrl.u32 %v3533_v59, 16  ;;  %v1441_v11 = vshll.u32 %v3533_v59, 16 }
  0xbc   : > { %3332 = vmatmul.msk.bf16.gmra.mxu3 %vm454_vm3, %v1137_v27  ;;  %v1140_v27 = vrot.slane %v3534_v42, 1 }
  0xbd   : > { %v3929_v47 = vpop.f32.mrf.mxu2  ;;  %v1427_v21 = vsel %vm1356_vm5, %v1417_v29, %v1426_v53 }
  0xbe   : > { %v3933_v4 = vpop.f32.mrf.mxu1  ;;  %v1141_v5 = vsel %vm759_vm4, %v1138_v62, %v1140_v27  ;;  %v1142_v62 = vrot.slane %v3535_v8, 1 }
  0xbf   : > { %v3942_v55 = vpop.f32.mrf.mxu3 }
  0xc0   : > { %v3936_v49 = vpop.f32.mrf.mxu0  ;;  %4743 = vst [vmem:[#allocation6_spill] sm:$0xff] %v3942_v55  ;;  %v1143_v32 = vsel %vm759_vm4, %v1140_v27, %v1142_v62  ;;  %v3536_v27 = vld [vmem:[%s3663_s25 + $0x68] sm:$0xff] }
  0xc5   : > { %v3940_v54 = vpop.f32.mrf.mxu2 }
  0xc6   : > { %v3944_v46 = vpop.f32.mrf.mxu1 }
  0xc7   : > { %v3957_v17 = vpop.f32.mrf.mxu3 }
  0xc8   : > { %v3948_v61 = vpop.f32.mrf.mxu0  ;;  %4744 = vst [vmem:[#allocation7_spill] sm:$0xff] %v3957_v17 }
  0xc9   : > { %3225 = vmatmul.msk.bf16.gmra.mxu1 %vm454_vm3, %v3669_v12  ;;  %v1434_v12 = vrot.slane %v1432_v6, 2 }
  0xca   : > { %3244 = vmatmul.msk.bf16.gmra.mxu2 %vm454_vm3, %v774_v60 }
  0xcb   : > { %3350 = vmatmul.msk.bf16.gmra.mxu0 %vm454_vm3, %v1427_v21  ;;  %v1435_v19 = vor.u32 %v1434_v12, %v1431_v28 }
  0xcc   : > { %3333 = vmatmul.msk.bf16.gmra.mxu3 %vm454_vm3, %v1139_v20  ;;  %v1443_v20 = vrot.slane %v1441_v11, 2  ;;  %v1447_v11 = vshrl.u32 %v3534_v42, 16 }
  0xcd   : > { %v3955_v25 = vpop.f32.mrf.mxu2  ;;  %v1436_v39 = vsel %vm1356_vm5, %v1426_v53, %v1435_v19  ;;  %v1440_v53 = vrot.slane %v1438_v45, 1 }
  0xce   : > { %v3959_v18 = vpop.f32.mrf.mxu1  ;;  %v1449_v1 = vrot.slane %v1447_v11, 1 }
  0xcf   : > { %v1224_v36 = vpop.f32.mrf.mxu3  ;;  %v1444_v28 = vor.u32 %v1443_v20, %v1440_v53 }
  0xd0   : > { %v3962_v24 = vpop.f32.mrf.mxu0 }
  0xd1   : > { %v1445_v55 = vsel %vm1356_vm5, %v1435_v19, %v1444_v28 }
  0xd5   : > { %v3966_v29 = vpop.f32.mrf.mxu2 }
  0xd6   : > { %v3968_v37 = vpop.f32.mrf.mxu1 }
  0xd7   : > { %v1226_v21 = vpop.f32.mrf.mxu3 }
  0xd8   : > { %v3972_v43 = vpop.f32.mrf.mxu0 }
  0xd9   : > { %3226 = vmatmul.msk.bf16.gmra.mxu1 %vm454_vm3, %v3708_v40  ;;  %v777_v40 = vrot.slane %v3736_v63, 1 }
  0xda   : > { %3245 = vmatmul.msk.bf16.gmra.mxu2 %vm454_vm3, %v776_v16 }
  0xdb   : > { %3351 = vmatmul.msk.bf16.gmra.mxu0 %vm454_vm3, %v1436_v39  ;;  %v778_v39 = vsel %vm759_vm4, %v775_v31, %v777_v40 }
  0xdc   : > { %3334 = vmatmul.msk.bf16.gmra.mxu3 %vm454_vm3, %v1141_v5  ;;  %v1450_v5 = vshll.u32 %v3534_v42, 16 }
  0xdd   : > { %v3979_v60 = vpop.f32.mrf.mxu2 }
  0xde   : > { %4745 = vst [vmem:[#allocation8_spill] sm:$0xff] %v3979_v60  ;;  %v3981_v51 = vpop.f32.mrf.mxu1 }
  0xdf   : > { %v1229_v16 = vpop.f32.mrf.mxu3 }
  0xe0   : > { %v3984_v6 = vpop.f32.mrf.mxu0 }
  0xe5   : > { %v3988_v12 = vpop.f32.mrf.mxu2 }
  0xe6   : > { %4746 = vst [vmem:[#allocation9_spill] sm:$0xff] %v3988_v12  ;;  %v663_v59 = vpop.f32.mrf.mxu1 }
  0xe7   : > { %v664_v45 = vadd.f32 %v663_v59, %v3872_v52  ;;  %v1231_v20 = vpop.f32.mrf.mxu3 }
  0xe8   : > { %v1593_v17 = vpop.f32.mrf.mxu0 }
  0xe9   : > { %3227 = vmatmul.msk.bf16.gmra.mxu1 %vm454_vm3, %v3745_v9  ;;  %v1452_v9 = vrot.slane %v1450_v5, 2  ;;  %v1459_v5 = vshll.u32 %v3535_v8, 16 }
  0xea   : > { %3246 = vmatmul.msk.bf16.gmra.mxu2 %vm454_vm3, %v778_v39 }
  0xeb   : > { %3352 = vmatmul.msk.bf16.gmra.mxu0 %vm454_vm3, %v1445_v55  ;;  %v779_v55 = vrot.slane %v3672_v13, 1  ;;  %v1453_v42 = vor.u32 %v1452_v9, %v1449_v1 }
  0xec   : > { %3335 = vmatmul.msk.bf16.gmra.mxu3 %vm454_vm3, %v1143_v32 }
  0xed   : > { %v863_v53 = vpop.f32.mrf.mxu2  ;;  %v780_v60 = vsel %vm759_vm4, %v777_v40, %v779_v55  ;;  %v1454_v11 = vsel %vm1356_vm5, %v1444_v28, %v1453_v42 }
  0xee   : > { %v953_v48 = vadd.f32 %v863_v53, %v664_v45  ;;  %v665_v31 = vpop.f32.mrf.mxu1 }
  0xef   : > { %v666_v52 = vadd.f32 %v665_v31, %v3884_v33  ;;  %v1234_v12 = vpop.f32.mrf.mxu3  ;;  %v1144_v33 = vrot.slane %v3536_v27, 1 }
  0xf0   : > { %v1314_v19 = vadd.f32 %v1224_v36, %v953_v48  ;;  %v1595_v23 = vpop.f32.mrf.mxu0 }
  0xf1   : > { %v1145_v28 = vsel %vm759_vm4, %v1142_v62, %v1144_v33  ;;  %v3537_v62 = vld [vmem:[%s3663_s25 + $0x70] sm:$0xff] }
  0xf2   : > { %v4000_v39 = vadd.f32 %v1593_v17, %v1314_v19  ;;  %v1456_v17 = vshrl.u32 %v3535_v8, 16 }
  0xf5   : > { %v865_v59 = vpop.f32.mrf.mxu2 }
  0xf6   : > { %v954_v45 = vadd.f32 %v865_v59, %v666_v52  ;;  %v668_v53 = vpop.f32.mrf.mxu1  ;;  %v1458_v52 = vrot.slane %v1456_v17, 1  ;;  %v781_v59 = vrot.slane %v3675_v14, 1 }
  0xf7   : > { %v669_v1 = vadd.f32 %v668_v53, %v3896_v7  ;;  %v1236_v31 = vpop.f32.mrf.mxu3 }
  0xf8   : > { %v1315_v48 = vadd.f32 %v1226_v21, %v954_v45  ;;  %v1598_v36 = vpop.f32.mrf.mxu0 }
  0xf9   : > { %3228 = vmatmul.msk.bf16.gmra.mxu1 %vm454_vm3, %v3736_v63 }
  0xfa   : > { %3247 = vmatmul.msk.bf16.gmra.mxu2 %vm454_vm3, %v780_v60  ;;  %v4010_v32 = vadd.f32 %v1595_v23, %v1315_v48  ;;  %v1461_v60 = vrot.slane %v1459_v5, 2 }
  0xfb   : > { %3353 = vmatmul.msk.bf16.gmra.mxu0 %vm454_vm3, %v1454_v11 }
  0xfc   : > { %3336 = vmatmul.msk.bf16.gmra.mxu3 %vm454_vm3, %v1145_v28  ;;  %v1462_v8 = vor.u32 %v1461_v60, %v1458_v52 }
  0xfd   : > { %v868_v40 = vpop.f32.mrf.mxu2 }
  0xfe   : > { %v955_v21 = vadd.f32 %v868_v40, %v669_v1  ;;  %v670_v19 = vpop.f32.mrf.mxu1  ;;  %v782_v1 = vsel %vm759_vm4, %v779_v55, %v781_v59  ;;  %v1463_v17 = vsel %vm1356_vm5, %v1453_v42, %v1462_v8 }
  0xff   : > { %v671_v7 = vadd.f32 %v670_v19, %v3910_v26  ;;  %v1239_v53 = vpop.f32.mrf.mxu3  ;;  %v1146_v26 = vrot.slane %v3537_v62, 1  ;;  %v1468_v19 = vshll.u32 %v3536_v27, 16 }
 0x100   : > { %v1316_v9 = vadd.f32 %v1229_v16, %v955_v21  ;;  %v1600_v63 = vpop.f32.mrf.mxu0  ;;  %v1465_v21 = vshrl.u32 %v3536_v27, 16 }
 0x101   : > { %v1147_v42 = vsel %vm759_vm4, %v1144_v33, %v1146_v26  ;;  %v3538_v33 = vld [vmem:[%s3663_s25 + $0x78] sm:$0xff] }
 0x102   : > { %v4016_v23 = vadd.f32 %v1598_v36, %v1316_v9  ;;  %v1467_v60 = vrot.slane %v1465_v21, 1 }
 0x105   : > { %v870_v45 = vpop.f32.mrf.mxu2 }
 0x106   : > { %v956_v48 = vadd.f32 %v870_v45, %v671_v7  ;;  %v673_v11 = vpop.f32.mrf.mxu1  ;;  %v1470_v7 = vrot.slane %v1468_v19, 2  ;;  %v783_v45 = vrot.slane %v3712_v41, 1 }
 0x107   : > { %v674_v5 = vadd.f32 %v673_v11, %v3922_v38  ;;  %v1241_v28 = vpop.f32.mrf.mxu3 }
 0x108   : > { %v1317_v16 = vadd.f32 %v1231_v20, %v956_v48  ;;  %v1603_v40 = vpop.f32.mrf.mxu0  ;;  %v1471_v27 = vor.u32 %v1470_v7, %v1467_v60 }
 0x109   : > { %3229 = vmatmul.msk.bf16.gmra.mxu1 %vm454_vm3, %v3672_v13 }
 0x10a   : > { %3248 = vmatmul.msk.bf16.gmra.mxu2 %vm454_vm3, %v782_v1  ;;  %v4026_v36 = vadd.f32 %v1600_v63, %v1317_v16  ;;  %v1472_v21 = vsel %vm1356_vm5, %v1462_v8, %v1471_v27 }
 0x10b   : > { %3354 = vmatmul.msk.bf16.gmra.mxu0 %vm454_vm3, %v1463_v17  ;;  %v784_v17 = vsel %vm759_vm4, %v781_v59, %v783_v45 }
 0x10c   : > { %3337 = vmatmul.msk.bf16.gmra.mxu3 %vm454_vm3, %v1147_v42 }
 0x10d   : > { %v873_v55 = vpop.f32.mrf.mxu2 }
 0x10e   : > { %v957_v20 = vadd.f32 %v873_v55, %v674_v5  ;;  %v675_v9 = vpop.f32.mrf.mxu1  ;;  %v1474_v55 = vshrl.u32 %v3537_v62, 16 }
 0x10f   : > { %v676_v38 = vadd.f32 %v675_v9, %v3936_v49  ;;  %v1244_v11 = vpop.f32.mrf.mxu3  ;;  %v1148_v49 = vrot.slane %v3538_v33, 1 }
 0x110   : > { %v1318_v52 = vadd.f32 %v1234_v12, %v957_v20  ;;  %v1605_v13 = vpop.f32.mrf.mxu0  ;;  %v1477_v20 = vshll.u32 %v3537_v62, 16  ;;  %v1476_v60 = vrot.slane %v1474_v55, 1 }
 0x111   : > { %v1149_v8 = vsel %vm759_vm4, %v1146_v26, %v1148_v49  ;;  %v3539_v26 = vld [vmem:[%s3663_s25 + $0x80] sm:$0xff] }
 0x112   : > { %v4032_v63 = vadd.f32 %v1603_v40, %v1318_v52  ;;  %v1479_v7 = vrot.slane %v1477_v20, 2  ;;  %v1483_v20 = vshrl.u32 %v3538_v33, 16 }
 0x114   : > { %v1480_v62 = vor.u32 %v1479_v7, %v1476_v60  ;;  %v787_v7 = vrot.slane %v3783_v56, 1 }
 0x115   : > { %v875_v48 = vpop.f32.mrf.mxu2 }
 0x116   : > { %v958_v1 = vadd.f32 %v875_v48, %v676_v38  ;;  %v678_v16 = vpop.f32.mrf.mxu1  ;;  %v785_v38 = vrot.slane %v3748_v10, 1 }
 0x117   : > { %v679_v19 = vadd.f32 %v678_v16, %v3948_v61  ;;  %v1246_v9 = vpop.f32.mrf.mxu3 }
 0x118   : > { %v1319_v12 = vadd.f32 %v1236_v31, %v958_v1  ;;  %v1608_v5 = vpop.f32.mrf.mxu0 }
 0x119   : > { %3230 = vmatmul.msk.bf16.gmra.mxu1 %vm454_vm3, %v3675_v14 }
 0x11a   : > { %3249 = vmatmul.msk.bf16.gmra.mxu2 %vm454_vm3, %v784_v17  ;;  %v4042_v40 = vadd.f32 %v1605_v13, %v1319_v12  ;;  %v786_v12 = vsel %vm759_vm4, %v783_v45, %v785_v38 }
 0x11b   : > { %3355 = vmatmul.msk.bf16.gmra.mxu0 %vm454_vm3, %v1472_v21 }
 0x11c   : > { %3338 = vmatmul.msk.bf16.gmra.mxu3 %vm454_vm3, %v1149_v8 }
 0x11d   : > { %v878_v59 = vpop.f32.mrf.mxu2 }
 0x11e   : > { %v959_v31 = vadd.f32 %v878_v59, %v679_v19  ;;  %v680_v42 = vpop.f32.mrf.mxu1  ;;  %v1481_v19 = vsel %vm1356_vm5, %v1471_v27, %v1480_v62  ;;  %v1486_v59 = vshll.u32 %v3538_v33, 16 }
 0x11f   : > { %v681_v61 = vadd.f32 %v680_v42, %v3962_v24  ;;  %v1249_v1 = vpop.f32.mrf.mxu3  ;;  %v1150_v24 = vrot.slane %v3539_v26, 1 }
 0x120   : > { %v1320_v52 = vadd.f32 %v1239_v53, %v959_v31  ;;  %v1610_v14 = vpop.f32.mrf.mxu0  ;;  %v1488_v60 = vrot.slane %v1486_v59, 2  ;;  %v1495_v59 = vshll.u32 %v3539_v26, 16 }
 0x121   : > { %v1151_v27 = vsel %vm759_vm4, %v1148_v49, %v1150_v24  ;;  %v3540_v49 = vld [vmem:[%s3663_s25 + $0x88] sm:$0xff] }
 0x122   : > { %v4048_v13 = vadd.f32 %v1608_v5, %v1320_v52  ;;  %v1485_v52 = vrot.slane %v1483_v20, 1  ;;  %v1492_v20 = vshrl.u32 %v3539_v26, 16 }
 0x124   : > { %v1489_v33 = vor.u32 %v1488_v60, %v1485_v52  ;;  %v789_v52 = vrot.slane %v3699_v34, 1 }
 0x125   : > { %v880_v48 = vpop.f32.mrf.mxu2 }
 0x126   : > { %v960_v16 = vadd.f32 %v880_v48, %v681_v61  ;;  %v683_v17 = vpop.f32.mrf.mxu1 }
 0x127   : > { %v684_v55 = vadd.f32 %v683_v17, %v3972_v43  ;;  %v1251_v31 = vpop.f32.mrf.mxu3 }
 0x128   : > { %v1321_v53 = vadd.f32 %v1241_v28, %v960_v16  ;;  %v1613_v21 = vpop.f32.mrf.mxu0 }
 0x129   : > { %3231 = vmatmul.msk.bf16.gmra.mxu1 %vm454_vm3, %v3712_v41 }
 0x12a   : > { %3250 = vmatmul.msk.bf16.gmra.mxu2 %vm454_vm3, %v786_v12  ;;  %v4058_v5 = vadd.f32 %v1610_v14, %v1321_v53  ;;  %v788_v12 = vsel %vm759_vm4, %v785_v38, %v787_v7 }
 0x12b   : > { %3356 = vmatmul.msk.bf16.gmra.mxu0 %vm454_vm3, %v1481_v19  ;;  %v1490_v19 = vsel %vm1356_vm5, %v1480_v62, %v1489_v33 }
 0x12c   : > { %3339 = vmatmul.msk.bf16.gmra.mxu3 %vm454_vm3, %v1151_v27  ;;  %v1494_v27 = vrot.slane %v1492_v20, 1 }
 0x12d   : > { %v883_v45 = vpop.f32.mrf.mxu2 }
 0x12e   : > { %v961_v28 = vadd.f32 %v883_v45, %v684_v55  ;;  %v685_v42 = vpop.f32.mrf.mxu1 }
 0x12f   : > { %v686_v43 = vadd.f32 %v685_v42, %v3984_v6  ;;  %v1254_v48 = vpop.f32.mrf.mxu3  ;;  %v1152_v6 = vrot.slane %v3540_v49, 1 }
 0x130   : > { %v1322_v8 = vadd.f32 %v1244_v11, %v961_v28  ;;  %v1615_v41 = vpop.f32.mrf.mxu0 }
 0x131   : > { %v1153_v62 = vsel %vm759_vm4, %v1150_v24, %v1152_v6  ;;  %v3541_v24 = vld [vmem:[%s3663_s25 + $0x90] sm:$0xff] }
 0x132   : > { %v4064_v14 = vadd.f32 %v1613_v21, %v1322_v8  ;;  %v1497_v8 = vrot.slane %v1495_v59, 2 }
 0x134   : > { %v1498_v26 = vor.u32 %v1497_v8, %v1494_v27 }
 0x135   : > { %v885_v61 = vpop.f32.mrf.mxu2 }
 0x136   : > { %v962_v16 = vadd.f32 %v885_v61, %v686_v43  ;;  %v688_v17 = vpop.f32.mrf.mxu1 }
 0x137   : > { %v689_v55 = vadd.f32 %v688_v17, %v3868_v50  ;;  %v1256_v45 = vpop.f32.mrf.mxu3  ;;  %v790_v17 = vsel %vm759_vm4, %v787_v7, %v789_v52  ;;  %v1501_v7 = vshrl.u32 %v3540_v49, 16 }
 0x138   : > { %v1323_v11 = vadd.f32 %v1246_v9, %v962_v16  ;;  %v1618_v53 = vpop.f32.mrf.mxu0 }
 0x139   : > { %3232 = vmatmul.msk.bf16.gmra.mxu1 %vm454_vm3, %v3748_v10 }
 0x13a   : > { %3251 = vmatmul.msk.bf16.gmra.mxu2 %vm454_vm3, %v788_v12  ;;  %v4074_v21 = vadd.f32 %v1615_v41, %v1323_v11  ;;  %v1499_v11 = vsel %vm1356_vm5, %v1489_v33, %v1498_v26 }
 0x13b   : > { %3357 = vmatmul.msk.bf16.gmra.mxu0 %vm454_vm3, %v1490_v19  ;;  %v1504_v19 = vshll.u32 %v3540_v49, 16 }
 0x13c   : > { %3340 = vmatmul.msk.bf16.gmra.mxu3 %vm454_vm3, %v1153_v62  ;;  %v1025_v62 = vld [vmem:[%s3663_s25 + $0x98] sm:$0x1] }
 0x13d   : > { %v888_v38 = vpop.f32.mrf.mxu2 }
 0x13e   : > { %v963_v9 = vadd.f32 %v888_v38, %v689_v55  ;;  %v690_v28 = vpop.f32.mrf.mxu1 }
 0x13f   : > { %v691_v50 = vadd.f32 %v690_v28, %v3881_v58  ;;  %v1259_v43 = vpop.f32.mrf.mxu3  ;;  %v1154_v58 = vrot.slane %v3541_v24, 1  ;;  %v1506_v28 = vrot.slane %v1504_v19, 2 }
 0x140   : > { %v1324_v42 = vadd.f32 %v1249_v1, %v963_v9  ;;  %v1620_v10 = vpop.f32.mrf.mxu0  ;;  %v1503_v9 = vrot.slane %v1501_v7, 1  ;;  %v3582_v7 = vld [vmem:[%s3663_s25 + $0x78] sm:$0xff] }
 0x142   : > { %v4080_v41 = vadd.f32 %v1618_v53, %v1324_v42 }
 0x145   : > { %v890_v60 = vpop.f32.mrf.mxu2 }
 0x146   : > { %v964_v61 = vadd.f32 %v890_v60, %v691_v50  ;;  %v693_v16 = vpop.f32.mrf.mxu1 }
 0x147   : > { %v694_v53 = vadd.f32 %v693_v16, %v3892_v2  ;;  %v4094_v55 = vpop.f32.mrf.mxu3  ;;  %v4102_v2 = vld [vmem:[%s3663_s25 + $0x80] sm:$0xff] }
 0x148   : > { %v1325_v1 = vadd.f32 %v1251_v31, %v964_v61  ;;  %v1623_v12 = vpop.f32.mrf.mxu0  ;;  %v791_v49 = vrot.slane %v4102_v2, 1 }
 0x149   : > { %3233 = vmatmul.msk.bf16.gmra.mxu1 %vm454_vm3, %v3783_v56  ;;  %v1155_v56 = vsel %vm759_vm4, %v1152_v6, %v1154_v58  ;;  %v1507_v6 = vor.u32 %v1506_v28, %v1503_v9  ;;  %v4126_v28 = vld [vmem:[%s3663_s25 + $0x18] sm:$0xff] }
 0x14a   : > { %3252 = vmatmul.msk.bf16.gmra.mxu2 %vm454_vm3, %v790_v17  ;;  %v4090_v34 = vadd.f32 %v1620_v10, %v1325_v1  ;;  %v1101_v10 = vunpack.c.l.b16 %v1025_v62  ;;  %v792_v61 = vsel %vm759_vm4, %v789_v52, %v791_v49 }
 0x14b   : > { %3358 = vmatmul.msk.bf16.gmra.mxu0 %vm454_vm3, %v1499_v11  ;;  %v1955_v11 = vld [vmem:[%s3663_s25 + $0x10] sm:$0xc] }
 0x14c   : > { %3341 = vmatmul.msk.bf16.gmra.mxu3 %vm454_vm3, %v1155_v56  ;;  %v1120_v16 = vpack.c.b16 %v1101_v10, %v1101_v10  ;;  %v2031_v52 = vunpack.c.l.b16 %v1955_v11 }
 0x14d   : > { %v893_v31 = vpop.f32.mrf.mxu2 }
 0x14e   : > { %v965_v33 = vadd.f32 %v893_v31, %v694_v53  ;;  %v695_v20 = vpop.f32.mrf.mxu1  ;;  %v4112_v53 = vld [vmem:[%s3663_s25 + $0x14] sm:$0xf]  ;;  %v1156_v19 = vrot.slane %v1120_v16, 1  ;;  %v1510_v31 = vshrl.u32 %v3541_v24, 16 }
 0x14f   : > { %v696_v27 = vadd.f32 %v695_v20, %v3907_v15  ;;  %v4106_v8 = vpop.f32.mrf.mxu3 }
 0x150   : > { %v1326_v59 = vadd.f32 %v1254_v48, %v965_v33  ;;  %v1625_v38 = vpop.f32.mrf.mxu0  ;;  %v1513_v33 = vshll.u32 %v3541_v24, 16 }
 0x152   : > { %v4099_v42 = vadd.f32 %v1623_v12, %v1326_v59  ;;  %v1508_v12 = vsel %vm1356_vm5, %v1498_v26, %v1507_v6 }
 0x155   : > { %v895_v48 = vpop.f32.mrf.mxu2 }
 0x156   : > { %v966_v50 = vadd.f32 %v895_v48, %v696_v27  ;;  %v698_v60 = vpop.f32.mrf.mxu1  ;;  %v1512_v48 = vrot.slane %v1510_v31, 1 }
 0x157   : > { %v699_v26 = vadd.f32 %v698_v60, %v3918_v35  ;;  %v4122_v56 = vpop.f32.mrf.mxu3  ;;  %v1350_v35 = vld [vmem:[%s3663_s25 + $0x98] sm:$0x3]  ;;  %v4134_v60 = vld [vmem:[%s3663_s25 + $0x88] sm:$0xff] }
 0x158   : > { %v1327_v17 = vadd.f32 %v1256_v45, %v966_v50  ;;  %v1628_v1 = vpop.f32.mrf.mxu0  ;;  %v4738_v45 = vunpack.c.l.b16 %v4112_v53  ;;  %v1515_v50 = vrot.slane %v1513_v33, 2  ;;  %v793_v24 = vrot.slane %v4134_v60, 1 }
 0x159   : > { %3234 = vmatmul.msk.bf16.gmra.mxu1 %vm454_vm3, %v3582_v7  ;;  %v1354_v7 = vunpack.c.l.b16 %v1350_v35 }
 0x15a   : > { %3253 = vmatmul.msk.bf16.gmra.mxu2 %vm454_vm3, %v792_v61  ;;  %v4117_v15 = vadd.f32 %v1625_v38, %v1327_v17  ;;  %v1157_v38 = vsel %vm759_vm4, %v1154_v58, %v1156_v19  ;;  %v4130_v62 = vpack.c.b16 %v4738_v45, %v2031_v52  ;;  %v2332_v17 = vshrl.u32 %v4126_v28, 16 }
 0x15b   : > { %3359 = vmatmul.msk.bf16.gmra.mxu0 %vm454_vm3, %v1508_v12  ;;  %v1516_v11 = vor.u32 %v1515_v50, %v1512_v48  ;;  %v794_v31 = vsel %vm759_vm4, %v791_v49, %v793_v24 }
 0x15c   : > { %4747 = vst [vmem:[#allocation10_spill] sm:$0xff] %v4117_v15  ;;  %3342 = vmatmul.msk.bf16.gmra.mxu3 %vm454_vm3, %v1157_v38  ;;  %v2324_v58 = vshrl.u32 %v4130_v62, 16  ;;  %v2327_v16 = vshll.u32 %v4130_v62, 16  ;;  %v4150_v15 = vpack.c.b16 %v1354_v7, %v1354_v7  ;;  %v795_v7 = vrot.slane %v3772_v44, 1 }
 0x15d   : > { %v898_v20 = vpop.f32.mrf.mxu2 }
 0x15e   : > { %v967_v59 = vadd.f32 %v898_v20, %v699_v26  ;;  %v700_v9 = vpop.f32.mrf.mxu1  ;;  %v2326_v33 = vrot.slane %v2324_v58, 2  ;;  %v2329_v20 = vrot.slane %v2327_v16, 3 }
 0x15f   : > { %v701_v12 = vadd.f32 %v700_v9, %v3933_v4  ;;  %v4145_v52 = vpop.f32.mrf.mxu3 }
 0x160   : > { %v1328_v10 = vadd.f32 %v1259_v43, %v967_v59  ;;  %v1630_v27 = vpop.f32.mrf.mxu0  ;;  %v2335_v43 = vshll.u32 %v4126_v28, 16  ;;  %v2334_v59 = vrot.slane %v2332_v17, 2  ;;  %v2330_v49 = vor.u32 %v2329_v20, %v2326_v33 }
 0x162   : > { %v4138_v61 = vadd.f32 %v1628_v1, %v1328_v10  ;;  %v2337_v38 = vrot.slane %v2335_v43, 3 }
 0x164   : > { %4748 = vst [vmem:[#allocation11_spill] sm:$0xff] %v4138_v61  ;;  %v1517_v61 = vsel %vm1356_vm5, %v1507_v6, %v1516_v11  ;;  %v2338_v9 = vor.u32 %v2337_v38, %v2334_v59  ;;  %v1522_v6 = vshll.u32 %v4150_v15, 16  ;;  %v796_v38 = vsel %vm759_vm4, %v793_v24, %v795_v7  ;;  %v4195_v7 = vld [vmem:[%s3663_s25 + $0x28] sm:$0xff] }
 0x165   : > { %v900_v19 = vpop.f32.mrf.mxu2 }
 0x166   : > { %v968_v26 = vadd.f32 %v900_v19, %v701_v12  ;;  %v703_v1 = vpop.f32.mrf.mxu1  ;;  %v2339_v16 = vsel %vm2322_vm6, %v2330_v49, %v2338_v9 }
 0x167   : > { %v704_v48 = vadd.f32 %v703_v1, %v3944_v46  ;;  %v4161_v35 = vpop.f32.mrf.mxu3  ;;  %v1524_v46 = vrot.slane %v1522_v6, 2  ;;  %v2685_v6 = vld [vmem:[%s3663_s25 + $0x10] sm:$0x8] }
 0x168   : > { %v1329_v10 = vadd.f32 %v4094_v55, %v968_v26  ;;  %v1633_v45 = vpop.f32.mrf.mxu0  ;;  %v1519_v55 = vshrl.u32 %v4150_v15, 16 }
 0x169   : > { %3235 = vmatmul.msk.bf16.gmra.mxu1 %vm454_vm3, %v4102_v2 }
 0x16a   : > { %3254 = vmatmul.msk.bf16.gmra.mxu2 %vm454_vm3, %v794_v31  ;;  %v4155_v4 = vadd.f32 %v1630_v27, %v1329_v10  ;;  %v4165_v27 = vld [vmem:[%s3663_s25 + $0x20] sm:$0xff]  ;;  %v1521_v43 = vrot.slane %v1519_v55, 1  ;;  %v1719_v10 = vld [vmem:[%s3663_s25 + $0x8] sm:$0xc] }
 0x16b   : > { %3360 = vmatmul.msk.bf16.gmra.mxu0 %vm454_vm3, %v1517_v61  ;;  %v2341_v19 = vshrl.u32 %v4165_v27, 16  ;;  %v2344_v26 = vshll.u32 %v4165_v27, 16 }
 0x16c   : > { %3469 = vmatmul.msk.bf16.vlgmr.msra.gmra.mxu3 %vm454_vm3, %v2339_v16  ;;  %v1525_v1 = vor.u32 %v1524_v46, %v1521_v43 }
 0x16d   : > { %v903_v50 = vpop.f32.mrf.mxu2  ;;  %v2346_v49 = vrot.slane %v2344_v26, 3  ;;  %v4750_v26 = vunpack.c.l.b16 %v4112_v53 }
 0x16e   : > { %v969_v58 = vadd.f32 %v903_v50, %v704_v48  ;;  %v705_v2 = vpop.f32.mrf.mxu1  ;;  %v1526_v55 = vsel %vm1356_vm5, %v1516_v11, %v1525_v1  ;;  %v3584_v1 = vld [vmem:[%s3663_s25 + $0x10] sm:$0xff] }
 0x16f   : > { %v706_v31 = vadd.f32 %v705_v2, %v3959_v18  ;;  %v1723_v18 = vunpack.c.l.b16 %v1719_v10  ;;  %v2693_v10 = vrot.slane %v4126_v28, 3 }
 0x170   : > { %v1330_v61 = vadd.f32 %v4106_v8, %v969_v58  ;;  %v1635_v17 = vpop.f32.mrf.mxu0  ;;  %v4175_v8 = vpop.f32.mrf.mxu3 }
 0x172   : > { %v4169_v12 = vadd.f32 %v1633_v45, %v1330_v61  ;;  %v2343_v45 = vrot.slane %v2341_v19, 2  ;;  %v4749_v61 = vunpack.c.l.b16 %v3794_v3  ;;  %v2087_v3 = vrot.slane %v4130_v62, 2 }
 0x174   : > { %v2347_v24 = vor.u32 %v2346_v49, %v2343_v45  ;;  %v1724_v43 = vpack.c.b16 %v4749_v61, %v1723_v18 }
 0x175   : > { %v905_v33 = vpop.f32.mrf.mxu2 }
 0x176   : > { %v970_v20 = vadd.f32 %v905_v33, %v706_v31  ;;  %v708_v59 = vpop.f32.mrf.mxu1  ;;  %v2348_v46 = vsel %vm2322_vm6, %v2338_v9, %v2347_v24  ;;  %v1727_v33 = vrot.slane %v3584_v1, 2  ;;  %v2350_v9 = vshrl.u32 %v4195_v7, 16 }
 0x177   : > { %v709_v58 = vadd.f32 %v708_v59, %v3968_v37  ;;  %v1726_v37 = vrot.slane %v1724_v43, 2  ;;  %v2088_v59 = vrot.slane %v4126_v28, 2 }
 0x178   : > { %v1331_v44 = vadd.f32 %v4122_v56, %v970_v20  ;;  %v1638_v48 = vpop.f32.mrf.mxu0  ;;  %v2689_v56 = vunpack.c.l.b16 %v2685_v6  ;;  %v4189_v16 = vpop.f32.mrf.mxu3  ;;  %v2352_v6 = vrot.slane %v2350_v9, 2 }
 0x179   : > { %3236 = vmatmul.msk.bf16.gmra.mxu1 %vm454_vm3, %v4134_v60  ;;  %v2089_v62 = vsel %vm1725_vm7, %v2087_v3, %v2088_v59  ;;  %v2090_v3 = vrot.slane %v4165_v27, 2 }
 0x17a   : > { %3255 = vmatmul.msk.bf16.gmra.mxu2 %vm454_vm3, %v796_v38  ;;  %v4185_v50 = vadd.f32 %v1635_v17, %v1331_v44  ;;  %v2690_v31 = vpack.c.b16 %v4750_v26, %v2689_v56  ;;  %v2353_v38 = vshll.u32 %v4195_v7, 16 }
 0x17b   : > { %3361 = vmatmul.msk.bf16.gmra.mxu0 %vm454_vm3, %v1526_v55  ;;  %v1728_v55 = vsel %vm1725_vm7, %v1726_v37, %v1727_v33  ;;  %v3585_v37 = vld [vmem:[%s3663_s25 + $0x18] sm:$0xff] }
 0x17c   : > { %3470 = vmatmul.msk.bf16.gmra.mxu3 %vm454_vm3, %v2348_v46  ;;  %v2692_v53 = vrot.slane %v2690_v31, 3  ;;  %v2355_v18 = vrot.slane %v2353_v38, 3  ;;  %v1729_v1 = vrot.slane %v3585_v37, 2 }
 0x17d   : > { %v908_v2 = vpop.f32.mrf.mxu2 }
 0x17e   : > { %v971_v11 = vadd.f32 %v908_v2, %v709_v58  ;;  %v710_v60 = vpop.f32.mrf.mxu1  ;;  %v2356_v2 = vor.u32 %v2355_v18, %v2352_v6 }
 0x180   : > { %v1332_v17 = vadd.f32 %v4145_v52, %v971_v11  ;;  %v1640_v19 = vpop.f32.mrf.mxu0  ;;  %v711_v52 = vadd.f32 %v710_v60, %v3981_v51  ;;  %v1279_v49 = vpop.f32.mrf.mxu3  ;;  %v2694_v51 = vsel %vm2691_vm8, %v2692_v53, %v2693_v10 }
 0x182   : > { %v4202_v20 = vadd.f32 %v1638_v48, %v1332_v17  ;;  %v4222_v17 = vld [vmem:[%s3663_s25 + $0x30] sm:$0xff] }
 0x183   : > { %v2362_v9 = vshll.u32 %v4222_v17, 16 }
 0x185   : > { %v910_v45 = vpop.f32.mrf.mxu2 }
 0x186   : > { %v972_v44 = vadd.f32 %v910_v45, %v711_v52  ;;  %v713_v48 = vpop.f32.mrf.mxu1 }
 0x187   : > { %v714_v11 = vadd.f32 %v713_v48, %v3879_v57  ;;  %v2359_v57 = vshrl.u32 %v4222_v17, 16  ;;  %v2091_v48 = vsel %vm1725_vm7, %v2088_v59, %v2090_v3 }
 0x188   : > { %v1333_v58 = vadd.f32 %v4161_v35, %v972_v44  ;;  %v1643_v56 = vpop.f32.mrf.mxu0  ;;  %v1281_v43 = vpop.f32.mrf.mxu3  ;;  %v2357_v35 = vsel %vm2322_vm6, %v2347_v24, %v2356_v2  ;;  %v2695_v24 = vrot.slane %v4165_v27, 3  ;;  %v1730_v44 = vsel %vm1725_vm7, %v1727_v33, %v1729_v1 }
 0x189   : > { %3363 = vmatmul.msk.bf16.vlgmr.msra.gmra.mxu1 %vm454_vm3, %v1728_v55  ;;  %v2361_v55 = vrot.slane %v2359_v57, 2 }
 0x18a   : > { %3450 = vmatmul.msk.bf16.vlgmr.msra.gmra.mxu2 %vm454_vm3, %v2089_v62  ;;  %v4216_v28 = vadd.f32 %v1640_v19, %v1333_v58  ;;  %v2364_v62 = vrot.slane %v2362_v9, 3  ;;  %v2696_v58 = vsel %vm2691_vm8, %v2693_v10, %v2695_v24 }
 0x18b   : > { %3488 = vmatmul.msk.bf16.vlgmr.msra.gmra.mxu0 %vm454_vm3, %v2694_v51 }
 0x18c   : > { %3471 = vmatmul.msk.bf16.gmra.mxu3 %vm454_vm3, %v2357_v35  ;;  %v2365_v27 = vor.u32 %v2364_v62, %v2361_v55  ;;  %v3586_v35 = vld [vmem:[%s3663_s25 + $0x20] sm:$0xff] }
 0x18d   : > { %v913_v61 = vpop.f32.mrf.mxu2 }
 0x18e   : > { %v973_v60 = vadd.f32 %v913_v61, %v714_v11  ;;  %v715_v46 = vpop.f32.mrf.mxu1  ;;  %v4246_v61 = vld [vmem:[%s3663_s25 + $0x38] sm:$0xff] }
 0x18f   : > { %v716_v38 = vadd.f32 %v715_v46, %v3888_v0  ;;  %v2371_v37 = vshll.u32 %v4246_v61, 16 }
 0x190   : > { %v1334_v26 = vadd.f32 %v4175_v8, %v973_v60  ;;  %v1645_v31 = vpop.f32.mrf.mxu0  ;;  %v1284_v53 = vpop.f32.mrf.mxu3 }
 0x192   : > { %v4226_v19 = vadd.f32 %v1643_v56, %v1334_v26  ;;  %v1731_v26 = vrot.slane %v3586_v35, 2 }
 0x195   : > { %v915_v52 = vpop.f32.mrf.mxu2 }
 0x196   : > { %v974_v8 = vadd.f32 %v915_v52, %v716_v38  ;;  %v718_v45 = vpop.f32.mrf.mxu1 }
 0x197   : > { %v719_v33 = vadd.f32 %v718_v45, %v3903_v22  ;;  %v2368_v22 = vshrl.u32 %v4246_v61, 16 }
 0x198   : > { %v1335_v6 = vadd.f32 %v4189_v16, %v974_v8  ;;  %v1648_v18 = vpop.f32.mrf.mxu0  ;;  %v1286_v56 = vpop.f32.mrf.mxu3  ;;  %v2366_v16 = vsel %vm2322_vm6, %v2356_v2, %v2365_v27  ;;  %v2697_v2 = vrot.slane %v4195_v7, 3  ;;  %v1732_v8 = vsel %vm1725_vm7, %v1729_v1, %v1731_v26 }
 0x199   : > { %3364 = vmatmul.msk.bf16.gmra.mxu1 %vm454_vm3, %v1730_v44  ;;  %v2370_v44 = vrot.slane %v2368_v22, 2 }
 0x19a   : > { %3451 = vmatmul.msk.bf16.gmra.mxu2 %vm454_vm3, %v2091_v48  ;;  %v4240_v0 = vadd.f32 %v1645_v31, %v1335_v6  ;;  %v2092_v31 = vrot.slane %v4195_v7, 2  ;;  %v2373_v48 = vrot.slane %v2371_v37, 3  ;;  %v2698_v6 = vsel %vm2691_vm8, %v2695_v24, %v2697_v2 }
 0x19b   : > { %3489 = vmatmul.msk.bf16.gmra.mxu0 %vm454_vm3, %v2696_v58 }
 0x19c   : > { %3472 = vmatmul.msk.bf16.gmra.mxu3 %vm454_vm3, %v2366_v16  ;;  %v2093_v45 = vsel %vm1725_vm7, %v2090_v3, %v2092_v31  ;;  %v2374_v7 = vor.u32 %v2373_v48, %v2370_v44  ;;  %v3587_v16 = vld [vmem:[%s3663_s25 + $0x28] sm:$0xff] }
 0x19d   : > { %v918_v59 = vpop.f32.mrf.mxu2 }
 0x19e   : > { %v975_v51 = vadd.f32 %v918_v59, %v719_v33  ;;  %v720_v11 = vpop.f32.mrf.mxu1  ;;  %v4268_v59 = vld [vmem:[%s3663_s25 + $0x40] sm:$0xff] }
 0x19f   : > { %v721_v57 = vadd.f32 %v720_v11, %v3914_v30  ;;  %v2380_v35 = vshll.u32 %v4268_v59, 16 }
 0x1a0   : > { %v1336_v10 = vadd.f32 %v1279_v49, %v975_v51  ;;  %v1650_v60 = vpop.f32.mrf.mxu0  ;;  %v1289_v38 = vpop.f32.mrf.mxu3 }
 0x1a2   : > { %v4249_v46 = vadd.f32 %v1648_v18, %v1336_v10  ;;  %v1733_v10 = vrot.slane %v3587_v16, 2 }
 0x1a5   : > { %v920_v9 = vpop.f32.mrf.mxu2 }
 0x1a6   : > { %v976_v49 = vadd.f32 %v920_v9, %v721_v57  ;;  %v723_v52 = vpop.f32.mrf.mxu1 }
 0x1a7   : > { %v724_v1 = vadd.f32 %v723_v52, %v3929_v47  ;;  %v2377_v47 = vshrl.u32 %v4268_v59, 16 }
 0x1a8   : > { %v1337_v55 = vadd.f32 %v1281_v43, %v976_v49  ;;  %v1653_v62 = vpop.f32.mrf.mxu0  ;;  %v1291_v18 = vpop.f32.mrf.mxu3  ;;  %v2375_v43 = vsel %vm2322_vm6, %v2365_v27, %v2374_v7  ;;  %v2699_v27 = vrot.slane %v4222_v17, 3  ;;  %v1734_v49 = vsel %vm1725_vm7, %v1731_v26, %v1733_v10 }
 0x1a9   : > { %3365 = vmatmul.msk.bf16.gmra.mxu1 %vm454_vm3, %v1732_v8  ;;  %v2379_v8 = vrot.slane %v2377_v47, 2 }
 0x1aa   : > { %3452 = vmatmul.msk.bf16.gmra.mxu2 %vm454_vm3, %v2093_v45  ;;  %v4262_v30 = vadd.f32 %v1650_v60, %v1337_v55  ;;  %v2094_v60 = vrot.slane %v4222_v17, 2  ;;  %v2382_v45 = vrot.slane %v2380_v35, 3  ;;  %v2700_v55 = vsel %vm2691_vm8, %v2697_v2, %v2699_v27 }
 0x1ab   : > { %3490 = vmatmul.msk.bf16.gmra.mxu0 %vm454_vm3, %v2698_v6 }
 0x1ac   : > { %3473 = vmatmul.msk.bf16.gmra.mxu3 %vm454_vm3, %v2375_v43  ;;  %v2095_v52 = vsel %vm1725_vm7, %v2092_v31, %v2094_v60  ;;  %v2383_v17 = vor.u32 %v2382_v45, %v2379_v8  ;;  %v3588_v43 = vld [vmem:[%s3663_s25 + $0x30] sm:$0xff] }
 0x1ad   : > { %v923_v3 = vpop.f32.mrf.mxu2 }
 0x1ae   : > { %v977_v58 = vadd.f32 %v923_v3, %v724_v1  ;;  %v725_v33 = vpop.f32.mrf.mxu1  ;;  %v4290_v3 = vld [vmem:[%s3663_s25 + $0x48] sm:$0xff] }
 0x1af   : > { %v726_v22 = vadd.f32 %v725_v33, %v3940_v54  ;;  %v2389_v16 = vshll.u32 %v4290_v3, 16 }
 0x1b0   : > { %v1338_v24 = vadd.f32 %v1284_v53, %v977_v58  ;;  %v1655_v51 = vpop.f32.mrf.mxu0  ;;  %v1294_v57 = vpop.f32.mrf.mxu3 }
 0x1b2   : > { %v4271_v11 = vadd.f32 %v1653_v62, %v1338_v24  ;;  %v1735_v24 = vrot.slane %v3588_v43, 2  ;;  %v2098_v43 = vrot.slane %v4268_v59, 2 }
 0x1b5   : > { %v925_v37 = vpop.f32.mrf.mxu2 }
 0x1b6   : > { %v978_v53 = vadd.f32 %v925_v37, %v726_v22  ;;  %v728_v9 = vpop.f32.mrf.mxu1 }
 0x1b7   : > { %v729_v26 = vadd.f32 %v728_v9, %v3955_v25  ;;  %v2386_v25 = vshrl.u32 %v4290_v3, 16 }
 0x1b8   : > { %v1339_v44 = vadd.f32 %v1286_v56, %v978_v53  ;;  %v1658_v48 = vpop.f32.mrf.mxu0  ;;  %v1296_v62 = vpop.f32.mrf.mxu3  ;;  %v2384_v56 = vsel %vm2322_vm6, %v2374_v7, %v2383_v17  ;;  %v2701_v7 = vrot.slane %v4246_v61, 3  ;;  %v1736_v53 = vsel %vm1725_vm7, %v1733_v10, %v1735_v24  ;;  %v4751_v10 = vld [vmem:[#allocation8_spill] sm:$0xff] }
 0x1b9   : > { %3366 = vmatmul.msk.bf16.gmra.mxu1 %vm454_vm3, %v1734_v49  ;;  %v2388_v49 = vrot.slane %v2386_v25, 2 }
 0x1ba   : > { %3453 = vmatmul.msk.bf16.gmra.mxu2 %vm454_vm3, %v2095_v52  ;;  %v4284_v54 = vadd.f32 %v1655_v51, %v1339_v44  ;;  %v2096_v51 = vrot.slane %v4246_v61, 2  ;;  %v2391_v52 = vrot.slane %v2389_v16, 3  ;;  %v2702_v44 = vsel %vm2691_vm8, %v2699_v27, %v2701_v7 }
 0x1bb   : > { %3491 = vmatmul.msk.bf16.gmra.mxu0 %vm454_vm3, %v2700_v55 }
 0x1bc   : > { %3474 = vmatmul.msk.bf16.gmra.mxu3 %vm454_vm3, %v2384_v56  ;;  %v2097_v9 = vsel %vm1725_vm7, %v2094_v60, %v2096_v51  ;;  %v2392_v61 = vor.u32 %v2391_v52, %v2388_v49  ;;  %v2099_v49 = vsel %vm1725_vm7, %v2096_v51, %v2098_v43 }
 0x1bd   : > { %v928_v31 = vpop.f32.mrf.mxu2 }
 0x1be   : > { %v979_v6 = vadd.f32 %v928_v31, %v729_v26  ;;  %v730_v1 = vpop.f32.mrf.mxu1 }
 0x1bf   : > { %v731_v47 = vadd.f32 %v730_v1, %v3966_v29 }
 0x1c0   : > { %v1340_v2 = vadd.f32 %v1289_v38, %v979_v6  ;;  %v1660_v58 = vpop.f32.mrf.mxu0  ;;  %v1299_v22 = vpop.f32.mrf.mxu3  ;;  %v4312_v6 = vld [vmem:[%s3663_s25 + $0x50] sm:$0xff] }
 0x1c1   : > { %v2395_v25 = vshrl.u32 %v4312_v6, 16  ;;  %v2398_v16 = vshll.u32 %v4312_v6, 16 }
 0x1c2   : > { %v4293_v33 = vadd.f32 %v1658_v48, %v1340_v2  ;;  %v3589_v2 = vld [vmem:[%s3663_s25 + $0x38] sm:$0xff] }
 0x1c3   : > { %v2397_v52 = vrot.slane %v2395_v25, 2 }
 0x1c5   : > { %v930_v35 = vpop.f32.mrf.mxu2 }
 0x1c6   : > { %v980_v38 = vadd.f32 %v930_v35, %v731_v47  ;;  %v733_v37 = vpop.f32.mrf.mxu1  ;;  %v4752_v47 = vld [vmem:[#allocation9_spill] sm:$0xff] }
 0x1c7   : > { %v734_v48 = vadd.f32 %v733_v37, %v4751_v10 }
 0x1c8   : > { %v1341_v8 = vadd.f32 %v1291_v18, %v980_v38  ;;  %v1663_v45 = vpop.f32.mrf.mxu0  ;;  %v1301_v55 = vpop.f32.mrf.mxu3  ;;  %v2393_v18 = vsel %vm2322_vm6, %v2383_v17, %v2392_v61  ;;  %v2703_v17 = vrot.slane %v4268_v59, 3 }
 0x1c9   : > { %3367 = vmatmul.msk.bf16.gmra.mxu1 %vm454_vm3, %v1736_v53 }
 0x1ca   : > { %3454 = vmatmul.msk.bf16.gmra.mxu2 %vm454_vm3, %v2097_v9  ;;  %v4306_v29 = vadd.f32 %v1660_v58, %v1341_v8  ;;  %v1737_v58 = vrot.slane %v3589_v2, 2  ;;  %v2400_v8 = vrot.slane %v2398_v16, 3  ;;  %v2704_v10 = vsel %vm2691_vm8, %v2701_v7, %v2703_v17 }
 0x1cb   : > { %3492 = vmatmul.msk.bf16.gmra.mxu0 %vm454_vm3, %v2702_v44 }
 0x1cc   : > { %3475 = vmatmul.msk.bf16.gmra.mxu3 %vm454_vm3, %v2393_v18  ;;  %v1738_v9 = vsel %vm1725_vm7, %v1735_v24, %v1737_v58  ;;  %v4753_v24 = vld [vmem:[#allocation2_spill] sm:$0xff] }
 0x1cd   : > { %v933_v60 = vpop.f32.mrf.mxu2 }
 0x1ce   : > { %v981_v26 = vadd.f32 %v933_v60, %v734_v48  ;;  %v735_v31 = vpop.f32.mrf.mxu1  ;;  %v2401_v48 = vor.u32 %v2400_v8, %v2397_v52 }
 0x1cf   : > { %v736_v35 = vadd.f32 %v735_v31, %v4752_v47  ;;  %v2100_v47 = vrot.slane %v4290_v3, 2 }
 0x1d0   : > { %v1342_v27 = vadd.f32 %v1294_v57, %v981_v26  ;;  %v1665_v1 = vpop.f32.mrf.mxu0  ;;  %v1304_v37 = vpop.f32.mrf.mxu3 }
 0x1d2   : > { %v4315_v56 = vadd.f32 %v1663_v45, %v1342_v27  ;;  %v4334_v27 = vld [vmem:[%s3663_s25 + $0x58] sm:$0xff] }
 0x1d5   : > { %v935_v38 = vpop.f32.mrf.mxu2 }
 0x1d6   : > { %v982_v57 = vadd.f32 %v935_v38, %v736_v35  ;;  %v738_v53 = vpop.f32.mrf.mxu1  ;;  %v2404_v35 = vshrl.u32 %v4334_v27, 16  ;;  %v2407_v38 = vshll.u32 %v4334_v27, 16 }
 0x1d7   : > { %v739_v60 = vadd.f32 %v738_v53, %v4753_v24 }
 0x1d8   : > { %v1343_v45 = vadd.f32 %v1296_v62, %v982_v57  ;;  %v1668_v44 = vpop.f32.mrf.mxu0  ;;  %v1306_v26 = vpop.f32.mrf.mxu3  ;;  %v2402_v62 = vsel %vm2322_vm6, %v2392_v61, %v2401_v48  ;;  %v4754_v57 = vld [vmem:[#allocation3_spill] sm:$0xff]  ;;  %v2705_v61 = vrot.slane %v4290_v3, 3 }
 0x1d9   : > { %3368 = vmatmul.msk.bf16.gmra.mxu1 %vm454_vm3, %v1738_v9 }
 0x1da   : > { %3455 = vmatmul.msk.bf16.gmra.mxu2 %vm454_vm3, %v2099_v49  ;;  %v4328_v59 = vadd.f32 %v1665_v1, %v1343_v45  ;;  %v3590_v1 = vld [vmem:[%s3663_s25 + $0x40] sm:$0xff]  ;;  %v2101_v45 = vsel %vm1725_vm7, %v2098_v43, %v2100_v47 }
 0x1db   : > { %3493 = vmatmul.msk.bf16.gmra.mxu0 %vm454_vm3, %v2704_v10  ;;  %v1739_v16 = vrot.slane %v3590_v1, 2  ;;  %v2409_v10 = vrot.slane %v2407_v38, 3 }
 0x1dc   : > { %3476 = vmatmul.msk.bf16.gmra.mxu3 %vm454_vm3, %v2402_v62 }
 0x1dd   : > { %v938_v51 = vpop.f32.mrf.mxu2  ;;  %v1740_v8 = vsel %vm1725_vm7, %v1737_v58, %v1739_v16  ;;  %v4755_v58 = vld [vmem:[#allocation4_spill] sm:$0xff] }
 0x1de   : > { %v983_v31 = vadd.f32 %v938_v51, %v739_v60  ;;  %v740_v18 = vpop.f32.mrf.mxu1  ;;  %v2706_v51 = vsel %vm2691_vm8, %v2703_v17, %v2705_v61 }
 0x1df   : > { %v741_v53 = vadd.f32 %v740_v18, %v4754_v57 }
 0x1e0   : > { %v1344_v7 = vadd.f32 %v1299_v22, %v983_v31  ;;  %v1670_v2 = vpop.f32.mrf.mxu0  ;;  %v1309_v49 = vpop.f32.mrf.mxu3 }
 0x1e2   : > { %v4337_v25 = vadd.f32 %v1668_v44, %v1344_v7  ;;  %v2406_v44 = vrot.slane %v2404_v35, 2  ;;  %v4356_v35 = vld [vmem:[%s3663_s25 + $0x60] sm:$0xff] }
 0x1e4   : > { %v2410_v31 = vor.u32 %v2409_v10, %v2406_v44 }
 0x1e5   : > { %v940_v9 = vpop.f32.mrf.mxu2 }
 0x1e6   : > { %v984_v22 = vadd.f32 %v940_v9, %v741_v53  ;;  %v743_v52 = vpop.f32.mrf.mxu1  ;;  %v2102_v9 = vrot.slane %v4312_v6, 2 }
 0x1e7   : > { %v744_v18 = vadd.f32 %v743_v52, %v4755_v58  ;;  %v2416_v52 = vshll.u32 %v4356_v35, 16 }
 0x1e8   : > { %v1345_v24 = vadd.f32 %v1301_v55, %v984_v22  ;;  %v1673_v60 = vpop.f32.mrf.mxu0  ;;  %v1311_v62 = vpop.f32.mrf.mxu3  ;;  %v2411_v55 = vsel %vm2322_vm6, %v2401_v48, %v2410_v31  ;;  %v2413_v22 = vshrl.u32 %v4356_v35, 16  ;;  %v2707_v48 = vrot.slane %v4312_v6, 3 }
 0x1e9   : > { %3369 = vmatmul.msk.bf16.gmra.mxu1 %vm454_vm3, %v1740_v8  ;;  %v4756_v8 = vld [vmem:[#allocation5_spill] sm:$0xff] }
 0x1ea   : > { %3456 = vmatmul.msk.bf16.gmra.mxu2 %vm454_vm3, %v2101_v45  ;;  %v4350_v3 = vadd.f32 %v1670_v2, %v1345_v24  ;;  %v3591_v2 = vld [vmem:[%s3663_s25 + $0x48] sm:$0xff]  ;;  %v2415_v58 = vrot.slane %v2413_v22, 2 }
 0x1eb   : > { %3494 = vmatmul.msk.bf16.gmra.mxu0 %vm454_vm3, %v2706_v51  ;;  %v1741_v53 = vrot.slane %v3591_v2, 2 }
 0x1ec   : > { %3477 = vmatmul.msk.bf16.gmra.mxu3 %vm454_vm3, %v2411_v55  ;;  %v2708_v55 = vsel %vm2691_vm8, %v2705_v61, %v2707_v48  ;;  %v4380_v61 = vld [vmem:[%s3663_s25 + $0x68] sm:$0xff] }
 0x1ed   : > { %v943_v43 = vpop.f32.mrf.mxu2  ;;  %v1742_v51 = vsel %vm1725_vm7, %v1739_v16, %v1741_v53  ;;  %v4757_v16 = vld [vmem:[#allocation6_spill] sm:$0xff] }
 0x1ee   : > { %v985_v7 = vadd.f32 %v943_v43, %v744_v18  ;;  %v745_v1 = vpop.f32.mrf.mxu1  ;;  %v2418_v18 = vrot.slane %v2416_v52, 3 }
 0x1ef   : > { %v746_v45 = vadd.f32 %v745_v1, %v4756_v8 }
 0x1f0   : > { %v1346_v17 = vadd.f32 %v1304_v37, %v985_v7  ;;  %v1675_v38 = vpop.f32.mrf.mxu0  ;;  %v2559_v10 = vpop.f32.mrf.mxu3  ;;  %v2419_v1 = vor.u32 %v2418_v18, %v2415_v58  ;;  %v4758_v58 = vld [vmem:[#allocation7_spill] sm:$0xff] }
 0x1f2   : > { %v4359_v57 = vadd.f32 %v1673_v60, %v1346_v17  ;;  %v2103_v60 = vsel %vm1725_vm7, %v2100_v47, %v2102_v9  ;;  %v2420_v52 = vsel %vm2322_vm6, %v2410_v31, %v2419_v1  ;;  %v2709_v31 = vrot.slane %v4334_v27, 3 }
 0x1f5   : > { %v945_v44 = vpop.f32.mrf.mxu2 }
 0x1f6   : > { %v986_v37 = vadd.f32 %v945_v44, %v746_v45  ;;  %v748_v24 = vpop.f32.mrf.mxu1  ;;  %v3592_v44 = vld [vmem:[%s3663_s25 + $0x50] sm:$0xff] }
 0x1f7   : > { %v749_v17 = vadd.f32 %v748_v24, %v4757_v16  ;;  %v2422_v24 = vshrl.u32 %v4380_v61, 16 }
 0x1f8   : > { %v1347_v43 = vadd.f32 %v1306_v26, %v986_v37  ;;  %v1678_v7 = vpop.f32.mrf.mxu0  ;;  %v4376_v2 = vpop.f32.mrf.mxu3  ;;  %v1743_v37 = vrot.slane %v3592_v44, 2  ;;  %v2710_v44 = vsel %vm2691_vm8, %v2707_v48, %v2709_v31 }
 0x1f9   : > { %3370 = vmatmul.msk.bf16.gmra.mxu1 %vm454_vm3, %v1742_v51  ;;  %v2104_v51 = vrot.slane %v4334_v27, 2 }
 0x1fa   : > { %3457 = vmatmul.msk.bf16.gmra.mxu2 %vm454_vm3, %v2103_v60  ;;  %v4372_v6 = vadd.f32 %v1675_v38, %v1347_v43  ;;  %v2425_v60 = vshll.u32 %v4380_v61, 16 }
 0x1fb   : > { %3495 = vmatmul.msk.bf16.gmra.mxu0 %vm454_vm3, %v2708_v55 }
 0x1fc   : > { %3478 = vmatmul.msk.bf16.gmra.mxu3 %vm454_vm3, %v2420_v52 }
 0x1fd   : > { %v948_v47 = vpop.f32.mrf.mxu2 }
 0x1fe   : > { %v987_v22 = vadd.f32 %v948_v47, %v749_v17  ;;  %v750_v26 = vpop.f32.mrf.mxu1  ;;  %v2105_v17 = vsel %vm1725_vm7, %v2102_v9, %v2104_v51  ;;  %v2424_v47 = vrot.slane %v2422_v24, 2 }
 0x1ff   : > { %v751_v18 = vadd.f32 %v750_v26, %v4758_v58  ;;  %v4406_v58 = vld [vmem:[%s3663_s25 + $0x70] sm:$0xff] }
 0x200   : > { %v1348_v8 = vadd.f32 %v1309_v49, %v987_v22  ;;  %v1680_v45 = vpop.f32.mrf.mxu0  ;;  %v4391_v55 = vpop.f32.mrf.mxu3  ;;  %v2427_v22 = vrot.slane %v2425_v60, 3 }
 0x202   : > { %v4383_v38 = vadd.f32 %v1678_v7, %v1348_v8  ;;  %v1744_v7 = vsel %vm1725_vm7, %v1741_v53, %v1743_v37  ;;  %v2428_v53 = vor.u32 %v2427_v22, %v2424_v47  ;;  %v2711_v22 = vrot.slane %v4356_v35, 3 }
 0x204   : > { %v2429_v48 = vsel %vm2322_vm6, %v2419_v1, %v2428_v53  ;;  %v2434_v1 = vshll.u32 %v4406_v58, 16 }
 0x205   : > { %v950_v43 = vpop.f32.mrf.mxu2 }
 0x206   : > { %v988_v49 = vadd.f32 %v950_v43, %v751_v18  ;;  %v1829_v16 = vpop.f32.mrf.mxu1 }
 0x207   : > { %v1919_v9 = vadd.f32 %v1829_v16, %v4000_v39  ;;  %v3593_v39 = vld [vmem:[%s3663_s25 + $0x58] sm:$0xff] }
 0x208   : > { %v1349_v52 = vadd.f32 %v1311_v62, %v988_v49  ;;  %v2795_v8 = vpop.f32.mrf.mxu0  ;;  %v4402_v24 = vpop.f32.mrf.mxu3  ;;  %v1745_v16 = vrot.slane %v3593_v39, 2  ;;  %v2712_v39 = vsel %vm2691_vm8, %v2709_v31, %v2711_v22 }
 0x209   : > { %3371 = vmatmul.msk.bf16.gmra.mxu1 %vm454_vm3, %v1744_v7  ;;  %v2106_v7 = vrot.slane %v4356_v35, 2 }
 0x20a   : > { %3458 = vmatmul.msk.bf16.gmra.mxu2 %vm454_vm3, %v2105_v17  ;;  %v4398_v27 = vadd.f32 %v1680_v45, %v1349_v52  ;;  %v4411_v45 = vld [vmem:[%s4735_s2] ss:$0 sm:$0xff]  ;;  %v2431_v17 = vshrl.u32 %v4406_v58, 16 }
 0x20b   : > { %3496 = vmatmul.msk.bf16.gmra.mxu0 %vm454_vm3, %v2710_v44 }
 0x20c   : > { %3479 = vmatmul.msk.bf16.gmra.mxu3 %vm454_vm3, %v2429_v48  ;;  %v2107_v48 = vsel %vm1725_vm7, %v2104_v51, %v2106_v7 }
 0x20d   : > { %v2190_v26 = vpop.f32.mrf.mxu2 }
 0x20e   : > { %v2280_v62 = vadd.f32 %v2190_v26, %v1919_v9  ;;  %v1831_v60 = vpop.f32.mrf.mxu1 }
 0x20f   : > { %v1920_v47 = vadd.f32 %v1831_v60, %v4010_v32  ;;  %v2433_v32 = vrot.slane %v2431_v17, 2  ;;  %v2436_v60 = vrot.slane %v2434_v1, 3 }
 0x210   : > { %v2649_v18 = vadd.f32 %v2559_v10, %v2280_v62  ;;  %v2797_v43 = vpop.f32.mrf.mxu0  ;;  %v4422_v44 = vpop.f32.mrf.mxu3  ;;  %v1746_v62 = vsel %vm1725_vm7, %v1743_v37, %v1745_v16 }
 0x211   : > { %v2437_v37 = vor.u32 %v2436_v60, %v2433_v32  ;;  %v2108_v60 = vrot.slane %v4380_v61, 2 }
 0x212   : > { %v2885_v49 = vadd.f32 %v2795_v8, %v2649_v18 }
 0x214   : > { %v2925_v10 = vadd.f32 %v4411_v45, %v2885_v49 }
 0x215   : > { %v2192_v52 = vpop.f32.mrf.mxu2 }
 0x216   : > { %v2961_v8 = vmax.f32 %v2925_v10, 0.0  ;;  %v2281_v9 = vadd.f32 %v2192_v52, %v1920_v47  ;;  %v1834_v26 = vpop.f32.mrf.mxu1 }
 0x218   : > { %v2997_v35 = vpack.c.bf16 %v2961_v8, %v2961_v8  ;;  %v2650_v18 = vadd.f32 %v4376_v2, %v2281_v9  ;;  %v2800_v49 = vpop.f32.mrf.mxu0  ;;  %v1921_v2 = vadd.f32 %v1834_v26, %v4016_v23  ;;  %v4440_v1 = vpop.f32.mrf.mxu3  ;;  %v4444_v8 = vld [vmem:[%s3663_s25 + $0x78] sm:$0xff]  ;;  %v3594_v23 = vld [vmem:[%s3663_s25 + $0x60] sm:$0xff] }
 0x219   : > { %3372 = vmatmul.msk.bf16.gmra.mxu1 %vm454_vm3, %v1746_v62  ;;  %v1747_v26 = vrot.slane %v3594_v23, 2 }
 0x21a   : > { %3034 = vst.msk [vmem:[%s4427_s15] sm:$0xf] %vm3033_vm9, %v2997_v35  ;;  %v2886_v10 = vadd.f32 %v2797_v43, %v2650_v18  ;;  %3459 = vmatmul.msk.bf16.gmra.mxu2 %vm454_vm3, %v2107_v48  ;;  %v2438_v43 = vsel %vm2322_vm6, %v2428_v53, %v2437_v37  ;;  %v2440_v35 = vshrl.u32 %v4444_v8, 16  ;;  %v2443_v18 = vshll.u32 %v4444_v8, 16 }
 0x21b   : > { %3497 = vmatmul.msk.bf16.gmra.mxu0 %vm454_vm3, %v2712_v39 }
 0x21c   : > { %v2926_v51 = vadd.f32 %v4411_v45, %v2886_v10  ;;  %3480 = vmatmul.msk.bf16.gmra.mxu3 %vm454_vm3, %v2438_v43  ;;  %v2442_v43 = vrot.slane %v2440_v35, 2 }
 0x21d   : > { %v2195_v17 = vpop.f32.mrf.mxu2 }
 0x21e   : > { %v2962_v31 = vmax.f32 %v2926_v51, 0.0  ;;  %v2282_v47 = vadd.f32 %v2195_v17, %v1921_v2  ;;  %v1836_v52 = vpop.f32.mrf.mxu1 }
 0x21f   : > { %v1922_v39 = vadd.f32 %v1836_v52, %v4026_v36 }
 0x220   : > { %v2998_v9 = vpack.c.bf16 %v2962_v31, %v2962_v31  ;;  %v2651_v62 = vadd.f32 %v4391_v55, %v2282_v47  ;;  %v2802_v48 = vpop.f32.mrf.mxu0  ;;  %v2713_v55 = vrot.slane %v4380_v61, 3  ;;  %v4457_v51 = vpop.f32.mrf.mxu3  ;;  %v1748_v31 = vsel %vm1725_vm7, %v1745_v16, %v1747_v26 }
 0x221   : > { %v2109_v47 = vsel %vm1725_vm7, %v2106_v7, %v2108_v60 }
 0x222   : > { %3035 = vst.msk [vmem:[%s4427_s15 + $0x4] sm:$0xf] %vm3033_vm9, %v2998_v9  ;;  %v2887_v32 = vadd.f32 %v2800_v49, %v2651_v62  ;;  %v2445_v9 = vrot.slane %v2443_v18, 3  ;;  %v2714_v36 = vsel %vm2691_vm8, %v2711_v22, %v2713_v55 }
 0x224   : > { %v2927_v53 = vadd.f32 %v4411_v45, %v2887_v32  ;;  %v2446_v16 = vor.u32 %v2445_v9, %v2442_v43 }
 0x225   : > { %v2197_v10 = vpop.f32.mrf.mxu2 }
 0x226   : > { %v2963_v49 = vmax.f32 %v2927_v53, 0.0  ;;  %v2283_v2 = vadd.f32 %v2197_v10, %v1922_v39  ;;  %v1839_v17 = vpop.f32.mrf.mxu1  ;;  %v4474_v39 = vld [vmem:[%s3663_s25 + $0x80] sm:$0xff] }
 0x227   : > { %v2449_v43 = vshrl.u32 %v4474_v39, 16  ;;  %v2452_v9 = vshll.u32 %v4474_v39, 16 }
 0x228   : > { %v2999_v62 = vpack.c.bf16 %v2963_v49, %v2963_v49  ;;  %v2652_v32 = vadd.f32 %v4402_v24, %v2283_v2  ;;  %v2805_v23 = vpop.f32.mrf.mxu0  ;;  %v1923_v24 = vadd.f32 %v1839_v17, %v4032_v63  ;;  %v4470_v35 = vpop.f32.mrf.mxu3  ;;  %v3595_v63 = vld [vmem:[%s3663_s25 + $0x68] sm:$0xff] }
 0x229   : > { %3373 = vmatmul.msk.bf16.gmra.mxu1 %vm454_vm3, %v1748_v31  ;;  %v1749_v17 = vrot.slane %v3595_v63, 2 }
 0x22a   : > { %3036 = vst.msk [vmem:[%s4427_s15 + $0x8] sm:$0xf] %vm3033_vm9, %v2999_v62  ;;  %v2888_v61 = vadd.f32 %v2802_v48, %v2652_v32  ;;  %3460 = vmatmul.msk.bf16.gmra.mxu2 %vm454_vm3, %v2109_v47  ;;  %v2447_v48 = vsel %vm2322_vm6, %v2437_v37, %v2446_v16  ;;  %v2110_v47 = vrot.slane %v4406_v58, 2 }
 0x22b   : > { %3498 = vmatmul.msk.bf16.gmra.mxu0 %vm454_vm3, %v2714_v36 }
 0x22c   : > { %v2928_v7 = vadd.f32 %v4411_v45, %v2888_v61  ;;  %3481 = vmatmul.msk.bf16.gmra.mxu3 %vm454_vm3, %v2447_v48 }
 0x22d   : > { %v2200_v52 = vpop.f32.mrf.mxu2 }
 0x22e   : > { %v2964_v22 = vmax.f32 %v2928_v7, 0.0  ;;  %v2284_v18 = vadd.f32 %v2200_v52, %v1923_v24  ;;  %v1841_v53 = vpop.f32.mrf.mxu1  ;;  %v1750_v24 = vsel %vm1725_vm7, %v1747_v26, %v1749_v17  ;;  %v2111_v52 = vsel %vm1725_vm7, %v2108_v60, %v2110_v47 }
 0x22f   : > { %v1924_v62 = vadd.f32 %v1841_v53, %v4042_v40 }
 0x230   : > { %v3000_v10 = vpack.c.bf16 %v2964_v22, %v2964_v22  ;;  %v2653_v49 = vadd.f32 %v4422_v44, %v2284_v18  ;;  %v2807_v2 = vpop.f32.mrf.mxu0  ;;  %v2715_v44 = vrot.slane %v4406_v58, 3  ;;  %v4487_v36 = vpop.f32.mrf.mxu3  ;;  %v2451_v22 = vrot.slane %v2449_v43, 2 }
 0x231   : > { %v2454_v18 = vrot.slane %v2452_v9, 3  ;;  %v4504_v9 = vld [vmem:[%s3663_s25 + $0x88] sm:$0xff] }
 0x232   : > { %3037 = vst.msk [vmem:[%s4427_s15 + $0xc] sm:$0xf] %vm3033_vm9, %v3000_v10  ;;  %v2889_v31 = vadd.f32 %v2805_v23, %v2653_v49  ;;  %v2716_v40 = vsel %vm2691_vm8, %v2713_v55, %v2715_v44 }
 0x233   : > { %v2455_v26 = vor.u32 %v2454_v18, %v2451_v22 }
 0x234   : > { %v2929_v37 = vadd.f32 %v4411_v45, %v2889_v31 }
 0x235   : > { %v2202_v32 = vpop.f32.mrf.mxu2 }
 0x236   : > { %v2965_v23 = vmax.f32 %v2929_v37, 0.0  ;;  %v2285_v61 = vadd.f32 %v2202_v32, %v1924_v62  ;;  %v1844_v7 = vpop.f32.mrf.mxu1 }
 0x238   : > { %v3001_v48 = vpack.c.bf16 %v2965_v23, %v2965_v23  ;;  %v2654_v10 = vadd.f32 %v4440_v1, %v2285_v61  ;;  %v2810_v49 = vpop.f32.mrf.mxu0  ;;  %v1925_v1 = vadd.f32 %v1844_v7, %v4048_v13  ;;  %v4500_v31 = vpop.f32.mrf.mxu3  ;;  %v3596_v13 = vld [vmem:[%s3663_s25 + $0x70] sm:$0xff]  ;;  %v2112_v7 = vrot.slane %v4444_v8, 2 }
 0x239   : > { %3374 = vmatmul.msk.bf16.gmra.mxu1 %vm454_vm3, %v1750_v24  ;;  %v1751_v61 = vrot.slane %v3596_v13, 2  ;;  %v2458_v24 = vshrl.u32 %v4504_v9, 16  ;;  %v4534_v13 = vld [vmem:[%s3663_s25 + $0x90] sm:$0xff] }
 0x23a   : > { %3038 = vst.msk [vmem:[%s4427_s15 + $0x10] sm:$0xf] %vm3033_vm9, %v3001_v48  ;;  %v2890_v58 = vadd.f32 %v2807_v2, %v2654_v10  ;;  %3461 = vmatmul.msk.bf16.gmra.mxu2 %vm454_vm3, %v2111_v52  ;;  %v2456_v2 = vsel %vm2322_vm6, %v2446_v16, %v2455_v26  ;;  %v2461_v52 = vshll.u32 %v4504_v9, 16 }
 0x23b   : > { %3499 = vmatmul.msk.bf16.gmra.mxu0 %vm454_vm3, %v2716_v40 }
 0x23c   : > { %v2930_v60 = vadd.f32 %v4411_v45, %v2890_v58  ;;  %3482 = vmatmul.msk.bf16.gmra.mxu3 %vm454_vm3, %v2456_v2  ;;  %v1752_v58 = vsel %vm1725_vm7, %v1749_v17, %v1751_v61 }
 0x23d   : > { %v2205_v53 = vpop.f32.mrf.mxu2 }
 0x23e   : > { %v2966_v55 = vmax.f32 %v2930_v60, 0.0  ;;  %v2286_v63 = vadd.f32 %v2205_v53, %v1925_v1  ;;  %v1846_v43 = vpop.f32.mrf.mxu1  ;;  %v2113_v60 = vsel %vm1725_vm7, %v2110_v47, %v2112_v7  ;;  %v2460_v1 = vrot.slane %v2458_v24, 2 }
 0x23f   : > { %v1926_v22 = vadd.f32 %v1846_v43, %v4058_v5  ;;  %v2463_v53 = vrot.slane %v2461_v52, 3 }
 0x240   : > { %v3002_v37 = vpack.c.bf16 %v2966_v55, %v2966_v55  ;;  %v2655_v62 = vadd.f32 %v4457_v51, %v2286_v63  ;;  %v2812_v32 = vpop.f32.mrf.mxu0  ;;  %v2717_v51 = vrot.slane %v4444_v8, 3  ;;  %v4517_v48 = vpop.f32.mrf.mxu3 }
 0x241   : > { %v2464_v17 = vor.u32 %v2463_v53, %v2460_v1 }
 0x242   : > { %3039 = vst.msk [vmem:[%s4427_s15 + $0x14] sm:$0xf] %vm3033_vm9, %v3002_v37  ;;  %v2891_v23 = vadd.f32 %v2810_v49, %v2655_v62  ;;  %v2718_v5 = vsel %vm2691_vm8, %v2715_v44, %v2717_v51 }
 0x244   : > { %v2931_v16 = vadd.f32 %v4411_v45, %v2891_v23 }
 0x245   : > { %v2207_v18 = vpop.f32.mrf.mxu2 }
 0x246   : > { %v2967_v10 = vmax.f32 %v2931_v16, 0.0  ;;  %v2287_v49 = vadd.f32 %v2207_v18, %v1926_v22  ;;  %v1849_v40 = vpop.f32.mrf.mxu1 }
 0x248   : > { %v3003_v55 = vpack.c.bf16 %v2967_v10, %v2967_v10  ;;  %v2656_v63 = vadd.f32 %v4470_v35, %v2287_v49  ;;  %v2815_v2 = vpop.f32.mrf.mxu0  ;;  %v1927_v35 = vadd.f32 %v1849_v40, %v4064_v14  ;;  %v4530_v37 = vpop.f32.mrf.mxu3  ;;  %v3597_v14 = vld [vmem:[%s3663_s25 + $0x78] sm:$0xff]  ;;  %v2114_v10 = vrot.slane %v4474_v39, 2 }
 0x249   : > { %3375 = vmatmul.msk.bf16.gmra.mxu1 %vm454_vm3, %v1752_v58  ;;  %v1753_v18 = vrot.slane %v3597_v14, 2  ;;  %v2467_v49 = vshrl.u32 %v4534_v13, 16  ;;  %v2470_v40 = vshll.u32 %v4534_v13, 16 }
 0x24a   : > { %3040 = vst.msk [vmem:[%s4427_s15 + $0x18] sm:$0xf] %vm3033_vm9, %v3003_v55  ;;  %v2892_v8 = vadd.f32 %v2812_v32, %v2656_v63  ;;  %3462 = vmatmul.msk.bf16.gmra.mxu2 %vm454_vm3, %v2113_v60  ;;  %v2465_v32 = vsel %vm2322_vm6, %v2455_v26, %v2464_v17 }
 0x24b   : > { %3500 = vmatmul.msk.bf16.gmra.mxu0 %vm454_vm3, %v2718_v5  ;;  %v2115_v5 = vsel %vm1725_vm7, %v2112_v7, %v2114_v10 }
 0x24c   : > { %v2932_v47 = vadd.f32 %v4411_v45, %v2892_v8  ;;  %3483 = vmatmul.msk.bf16.gmra.mxu3 %vm454_vm3, %v2465_v32  ;;  %v2469_v8 = vrot.slane %v2467_v49, 2 }
 0x24d   : > { %v2210_v43 = vpop.f32.mrf.mxu2 }
 0x24e   : > { %v2968_v44 = vmax.f32 %v2932_v47, 0.0  ;;  %v2288_v62 = vadd.f32 %v2210_v43, %v1927_v35  ;;  %v1851_v23 = vpop.f32.mrf.mxu1  ;;  %v2472_v47 = vrot.slane %v2470_v40, 3 }
 0x24f   : > { %v1928_v58 = vadd.f32 %v1851_v23, %v4074_v21 }
 0x250   : > { %v3004_v24 = vpack.c.bf16 %v2968_v44, %v2968_v44  ;;  %v2657_v52 = vadd.f32 %v4487_v36, %v2288_v62  ;;  %v2817_v16 = vpop.f32.mrf.mxu0  ;;  %v2719_v36 = vrot.slane %v4474_v39, 3  ;;  %v4547_v1 = vpop.f32.mrf.mxu3 }
 0x252   : > { %3041 = vst.msk [vmem:[%s4427_s15 + $0x1c] sm:$0xf] %vm3033_vm9, %v3004_v24  ;;  %v2893_v22 = vadd.f32 %v2815_v2, %v2657_v52  ;;  %v1754_v2 = vsel %vm1725_vm7, %v1751_v61, %v1753_v18  ;;  %v2720_v21 = vsel %vm2691_vm8, %v2717_v51, %v2719_v36  ;;  %v2473_v61 = vor.u32 %v2472_v47, %v2469_v8 }
 0x254   : > { %v2933_v26 = vadd.f32 %v4411_v45, %v2893_v22  ;;  %v2474_v52 = vsel %vm2322_vm6, %v2464_v17, %v2473_v61 }
 0x255   : > { %v2212_v60 = vpop.f32.mrf.mxu2 }
 0x256   : > { %v2969_v53 = vmax.f32 %v2933_v26, 0.0  ;;  %v2289_v55 = vadd.f32 %v2212_v60, %v1928_v58  ;;  %v1854_v63 = vpop.f32.mrf.mxu1  ;;  %v2116_v58 = vrot.slane %v4504_v9, 2 }
 0x258   : > { %v3005_v35 = vpack.c.bf16 %v2969_v53, %v2969_v53  ;;  %v2658_v43 = vadd.f32 %v4500_v31, %v2289_v55  ;;  %v2820_v44 = vpop.f32.mrf.mxu0  ;;  %v1929_v31 = vadd.f32 %v1854_v63, %v4080_v41  ;;  %v4560_v23 = vpop.f32.mrf.mxu3  ;;  %v3598_v41 = vld [vmem:[%s3663_s25 + $0x80] sm:$0xff] }
 0x259   : > { %3376 = vmatmul.msk.bf16.gmra.mxu1 %vm454_vm3, %v1754_v2  ;;  %v1755_v26 = vrot.slane %v3598_v41, 2 }
 0x25a   : > { %3042 = vst.msk [vmem:[%s4427_s15 + $0x20] sm:$0xf] %vm3033_vm9, %v3005_v35  ;;  %v2894_v39 = vadd.f32 %v2817_v16, %v2658_v43  ;;  %3463 = vmatmul.msk.bf16.gmra.mxu2 %vm454_vm3, %v2115_v5  ;;  %v4564_v16 = vld [vmem:[%s3663_s25 + $0x98] sm:$0xff]  ;;  %v2117_v43 = vsel %vm1725_vm7, %v2114_v10, %v2116_v58 }
 0x25b   : > { %3501 = vmatmul.msk.bf16.gmra.mxu0 %vm454_vm3, %v2720_v21  ;;  %v2476_v60 = vshrl.u32 %v4564_v16, 16  ;;  %v2479_v53 = vshll.u32 %v4564_v16, 16  ;;  %v1756_v35 = vsel %vm1725_vm7, %v1753_v18, %v1755_v26 }
 0x25c   : > { %v2934_v7 = vadd.f32 %v4411_v45, %v2894_v39  ;;  %3484 = vmatmul.msk.bf16.gmra.mxu3 %vm454_vm3, %v2474_v52 }
 0x25d   : > { %v2215_v62 = vpop.f32.mrf.mxu2  ;;  %v2481_v21 = vrot.slane %v2479_v53, 3 }
 0x25e   : > { %v2970_v51 = vmax.f32 %v2934_v7, 0.0  ;;  %v2290_v32 = vadd.f32 %v2215_v62, %v1929_v31  ;;  %v1856_v24 = vpop.f32.mrf.mxu1  ;;  %v2316_v62 = vld [vmem:[%s3663_s25 + $0xa0] sm:$0x7] }
 0x25f   : > { %v1930_v55 = vadd.f32 %v1856_v24, %v4090_v34  ;;  %v2320_v10 = vunpack.c.l.b16 %v2316_v62 }
 0x260   : > { %v3006_v22 = vpack.c.bf16 %v2970_v51, %v2970_v51  ;;  %v2659_v14 = vadd.f32 %v4517_v48, %v2290_v32  ;;  %v2822_v49 = vpop.f32.mrf.mxu0  ;;  %v2721_v48 = vrot.slane %v4504_v9, 3  ;;  %v4577_v2 = vpop.f32.mrf.mxu3 }
 0x262   : > { %3043 = vst.msk [vmem:[%s4427_s15 + $0x24] sm:$0xf] %vm3033_vm9, %v3006_v22  ;;  %v2895_v40 = vadd.f32 %v2820_v44, %v2659_v14  ;;  %v2478_v44 = vrot.slane %v2476_v60, 2  ;;  %v2722_v34 = vsel %vm2691_vm8, %v2719_v36, %v2721_v48 }
 0x264   : > { %v2935_v17 = vadd.f32 %v4411_v45, %v2895_v40  ;;  %v2482_v18 = vor.u32 %v2481_v21, %v2478_v44 }
 0x265   : > { %v2217_v63 = vpop.f32.mrf.mxu2 }
 0x266   : > { %v2971_v5 = vmax.f32 %v2935_v17, 0.0  ;;  %v2291_v8 = vadd.f32 %v2217_v63, %v1930_v55  ;;  %v1859_v47 = vpop.f32.mrf.mxu1  ;;  %v2483_v14 = vsel %vm2322_vm6, %v2473_v61, %v2482_v18  ;;  %v2118_v55 = vrot.slane %v4534_v13, 2 }
 0x268   : > { %v3007_v39 = vpack.c.bf16 %v2971_v5, %v2971_v5  ;;  %v2660_v7 = vadd.f32 %v4530_v37, %v2291_v8  ;;  %v2825_v31 = vpop.f32.mrf.mxu0  ;;  %v1931_v37 = vadd.f32 %v1859_v47, %v4099_v42  ;;  %v4591_v36 = vpop.f32.mrf.mxu3  ;;  %v3599_v42 = vld [vmem:[%s3663_s25 + $0x88] sm:$0xff]  ;;  %v4759_v8 = vld [vmem:[#allocation10_spill] sm:$0xff] }
 0x269   : > { %3377 = vmatmul.msk.bf16.gmra.mxu1 %vm454_vm3, %v1756_v35  ;;  %v1757_v17 = vrot.slane %v3599_v42, 2 }
 0x26a   : > { %3044 = vst.msk [vmem:[%s4427_s15 + $0x28] sm:$0xf] %vm3033_vm9, %v3007_v39  ;;  %v2896_v9 = vadd.f32 %v2822_v49, %v2660_v7  ;;  %3464 = vmatmul.msk.bf16.gmra.mxu2 %vm454_vm3, %v2117_v43  ;;  %v4594_v49 = vpack.c.b16 %v2320_v10, %v2320_v10 }
 0x26b   : > { %3502 = vmatmul.msk.bf16.gmra.mxu0 %vm454_vm3, %v2722_v34  ;;  %v1758_v7 = vsel %vm1725_vm7, %v1755_v26, %v1757_v17 }
 0x26c   : > { %v2936_v51 = vadd.f32 %v4411_v45, %v2896_v9  ;;  %3485 = vmatmul.msk.bf16.gmra.mxu3 %vm454_vm3, %v2483_v14  ;;  %v2485_v63 = vshrl.u32 %v4594_v49, 16  ;;  %v2488_v5 = vshll.u32 %v4594_v49, 16 }
 0x26d   : > { %v2220_v32 = vpop.f32.mrf.mxu2 }
 0x26e   : > { %v2972_v24 = vmax.f32 %v2936_v51, 0.0  ;;  %v2292_v52 = vadd.f32 %v2220_v32, %v1931_v37  ;;  %v1861_v22 = vpop.f32.mrf.mxu1  ;;  %v2487_v34 = vrot.slane %v2485_v63, 2  ;;  %v2490_v62 = vrot.slane %v2488_v5, 3  ;;  %v4760_v32 = vld [vmem:[#allocation11_spill] sm:$0xff]  ;;  %v3600_v63 = vld [vmem:[%s3663_s25 + $0x90] sm:$0xff] }
 0x26f   : > { %v1932_v47 = vadd.f32 %v1861_v22, %v4759_v8  ;;  %v1759_v5 = vrot.slane %v3600_v63, 2 }
 0x270   : > { %v3008_v40 = vpack.c.bf16 %v2972_v24, %v2972_v24  ;;  %v2661_v41 = vadd.f32 %v4547_v1, %v2292_v52  ;;  %v2827_v60 = vpop.f32.mrf.mxu0  ;;  %v2723_v1 = vrot.slane %v4534_v13, 3  ;;  %v4607_v43 = vpop.f32.mrf.mxu3  ;;  %v2491_v26 = vor.u32 %v2490_v62, %v2487_v34 }
 0x272   : > { %3045 = vst.msk [vmem:[%s4427_s15 + $0x2c] sm:$0xf] %vm3033_vm9, %v3008_v40  ;;  %v2897_v53 = vadd.f32 %v2825_v31, %v2661_v41  ;;  %v2119_v31 = vsel %vm1725_vm7, %v2116_v58, %v2118_v55  ;;  %v2724_v37 = vsel %vm2691_vm8, %v2721_v48, %v2723_v1  ;;  %v2492_v40 = vsel %vm2322_vm6, %v2482_v18, %v2491_v26 }
 0x273   : > { %v2725_v18 = vrot.slane %v4564_v16, 3 }
 0x274   : > { %v2937_v61 = vadd.f32 %v4411_v45, %v2897_v53 }
 0x275   : > { %v2222_v35 = vpop.f32.mrf.mxu2 }
 0x276   : > { %v2973_v44 = vmax.f32 %v2937_v61, 0.0  ;;  %v2293_v21 = vadd.f32 %v2222_v35, %v1932_v47  ;;  %v1864_v39 = vpop.f32.mrf.mxu1  ;;  %v2120_v61 = vrot.slane %v4564_v16, 2 }
 0x277   : > { %v1933_v24 = vadd.f32 %v1864_v39, %v4760_v32 }
 0x278   : > { %v3009_v9 = vpack.c.bf16 %v2973_v44, %v2973_v44  ;;  %v2662_v10 = vadd.f32 %v4560_v23, %v2293_v21  ;;  %v2830_v51 = vpop.f32.mrf.mxu0  ;;  %v2601_v52 = vpop.f32.mrf.mxu3 }
 0x279   : > { %3378 = vmatmul.msk.bf16.gmra.mxu1 %vm454_vm3, %v1758_v7  ;;  %v1760_v7 = vsel %vm1725_vm7, %v1757_v17, %v1759_v5 }
 0x27a   : > { %3046 = vst.msk [vmem:[%s4427_s15 + $0x30] sm:$0xf] %vm3033_vm9, %v3009_v9  ;;  %v2898_v13 = vadd.f32 %v2827_v60, %v2662_v10  ;;  %3465 = vmatmul.msk.bf16.gmra.mxu2 %vm454_vm3, %v2119_v31  ;;  %v2121_v31 = vsel %vm1725_vm7, %v2118_v55, %v2120_v61  ;;  %v2726_v10 = vsel %vm2691_vm8, %v2723_v1, %v2725_v18 }
 0x27b   : > { %3503 = vmatmul.msk.bf16.gmra.mxu0 %vm454_vm3, %v2724_v37 }
 0x27c   : > { %v2938_v58 = vadd.f32 %v4411_v45, %v2898_v13  ;;  %3486 = vmatmul.msk.bf16.gmra.mxu3 %vm454_vm3, %v2492_v40 }
 0x27d   : > { %v2225_v23 = vpop.f32.mrf.mxu2 }
 0x27e   : > { %v2974_v22 = vmax.f32 %v2938_v58, 0.0  ;;  %v2294_v48 = vadd.f32 %v2225_v23, %v1933_v24  ;;  %v1866_v14 = vpop.f32.mrf.mxu1 }
 0x27f   : > { %v1934_v47 = vadd.f32 %v1866_v14, %v4155_v4 }
 0x280   : > { %v3010_v41 = vpack.c.bf16 %v2974_v22, %v2974_v22  ;;  %v2663_v60 = vadd.f32 %v4577_v2, %v2294_v48  ;;  %v2832_v53 = vpop.f32.mrf.mxu0  ;;  %v2604_v2 = vpop.f32.mrf.mxu3  ;;  %v1761_v48 = vrot.slane %v4150_v15, 2 }
 0x282   : > { %3047 = vst.msk [vmem:[%s4427_s15 + $0x34] sm:$0xf] %vm3033_vm9, %v3010_v41  ;;  %v2899_v42 = vadd.f32 %v2830_v51, %v2663_v60  ;;  %v1991_v51 = vld [vmem:[%s3663_s25 + $0xa0] sm:$0x3]  ;;  %v2727_v41 = vrot.slane %v4594_v49, 3 }
 0x283   : > { %v2067_v16 = vunpack.c.l.b16 %v1991_v51 }
 0x284   : > { %v2939_v8 = vadd.f32 %v4411_v45, %v2899_v42 }
 0x285   : > { %v2227_v35 = vpop.f32.mrf.mxu2  ;;  %v2086_v58 = vpack.c.b16 %v2067_v16, %v2067_v16 }
 0x286   : > { %v2975_v44 = vmax.f32 %v2939_v8, 0.0  ;;  %v2295_v21 = vadd.f32 %v2227_v35, %v1934_v47  ;;  %v1869_v39 = vpop.f32.mrf.mxu1 }
 0x287   : > { %v1935_v55 = vadd.f32 %v1869_v39, %v4169_v12  ;;  %v2122_v14 = vrot.slane %v2086_v58, 2 }
 0x288   : > { %v3011_v34 = vpack.c.bf16 %v2975_v44, %v2975_v44  ;;  %v2664_v62 = vadd.f32 %v4591_v36, %v2295_v21  ;;  %v2835_v9 = vpop.f32.mrf.mxu0  ;;  %v2606_v37 = vpop.f32.mrf.mxu3  ;;  %v2728_v21 = vsel %vm2691_vm8, %v2725_v18, %v2727_v41 }
 0x289   : > { %3379 = vmatmul.msk.bf16.gmra.mxu1 %vm454_vm3, %v1760_v7  ;;  %v2123_v47 = vsel %vm1725_vm7, %v2120_v61, %v2122_v14 }
 0x28a   : > { %3048 = vst.msk [vmem:[%s4427_s15 + $0x38] sm:$0xf] %vm3033_vm9, %v3011_v34  ;;  %v2900_v4 = vadd.f32 %v2832_v53, %v2664_v62  ;;  %3466 = vmatmul.msk.bf16.gmra.mxu2 %vm454_vm3, %v2121_v31 }
 0x28b   : > { %3504 = vmatmul.msk.bf16.gmra.mxu0 %vm454_vm3, %v2726_v10 }
 0x28c   : > { %v2940_v17 = vadd.f32 %v4411_v45, %v2900_v4 }
 0x28d   : > { %v2230_v36 = vpop.f32.mrf.mxu2 }
 0x28e   : > { %v2976_v13 = vmax.f32 %v2940_v17, 0.0  ;;  %v2296_v1 = vadd.f32 %v2230_v36, %v1935_v55  ;;  %v1871_v26 = vpop.f32.mrf.mxu1 }
 0x28f   : > { %v1936_v12 = vadd.f32 %v1871_v26, %v4185_v50 }
 0x290   : > { %v3012_v32 = vpack.c.bf16 %v2976_v13, %v2976_v13  ;;  %v2665_v24 = vadd.f32 %v4607_v43, %v2296_v1  ;;  %v2837_v23 = vpop.f32.mrf.mxu0  ;;  %v2609_v53 = vpop.f32.mrf.mxu3  ;;  %v1762_v43 = vsel %vm1725_vm7, %v1759_v5, %v1761_v48 }
 0x292   : > { %3049 = vst.msk [vmem:[%s4427_s15 + $0x3c] sm:$0xf] %vm3033_vm9, %v3012_v32  ;;  %v2901_v22 = vadd.f32 %v2835_v9, %v2665_v24 }
 0x294   : > { %v2941_v40 = vadd.f32 %v4411_v45, %v2901_v22 }
 0x295   : > { %v2232_v60 = vpop.f32.mrf.mxu2 }
 0x296   : > { %v2977_v42 = vmax.f32 %v2941_v40, 0.0  ;;  %v2297_v63 = vadd.f32 %v2232_v60, %v1936_v12  ;;  %v1874_v8 = vpop.f32.mrf.mxu1 }
 0x297   : > { %v1937_v5 = vadd.f32 %v1874_v8, %v4202_v20 }
 0x298   : > { %v3013_v35 = vpack.c.bf16 %v2977_v42, %v2977_v42  ;;  %v2666_v44 = vadd.f32 %v2601_v52, %v2297_v63  ;;  %v2840_v15 = vpop.f32.mrf.mxu0  ;;  %v2611_v39 = vpop.f32.mrf.mxu3 }
 0x299   : > { %3380 = vmatmul.msk.bf16.gmra.mxu1 %vm454_vm3, %v1762_v43 }
 0x29a   : > { %3050 = vst.msk [vmem:[%s4427_s15 + $0x40] sm:$0xf] %vm3033_vm9, %v3013_v35  ;;  %v2902_v50 = vadd.f32 %v2837_v23, %v2666_v44  ;;  %3467 = vmatmul.msk.bf16.gmra.mxu2 %vm454_vm3, %v2123_v47 }
 0x29b   : > { %3505 = vmatmul.msk.bf16.gmra.mxu0 %vm454_vm3, %v2728_v21 }
 0x29c   : > { %v2942_v49 = vadd.f32 %v4411_v45, %v2902_v50 }
 0x29d   : > { %v2235_v61 = vpop.f32.mrf.mxu2 }
 0x29e   : > { %v2978_v52 = vmax.f32 %v2942_v49, 0.0  ;;  %v2298_v7 = vadd.f32 %v2235_v61, %v1937_v5  ;;  %v1876_v31 = vpop.f32.mrf.mxu1 }
 0x29f   : > { %v1938_v51 = vadd.f32 %v1876_v31, %v4216_v28 }
 0x2a0   : > { %v3014_v18 = vpack.c.bf16 %v2978_v52, %v2978_v52  ;;  %v2667_v34 = vadd.f32 %v2604_v2, %v2298_v7  ;;  %v2842_v62 = vpop.f32.mrf.mxu0  ;;  %v2614_v16 = vpop.f32.mrf.mxu3 }
 0x2a2   : > { %3051 = vst.msk [vmem:[%s4427_s15 + $0x44] sm:$0xf] %vm3033_vm9, %v3014_v18  ;;  %v2903_v9 = vadd.f32 %v2840_v15, %v2667_v34 }
 0x2a4   : > { %v2943_v10 = vadd.f32 %v4411_v45, %v2903_v9 }
 0x2a5   : > { %v2237_v4 = vpop.f32.mrf.mxu2 }
 0x2a6   : > { %v2979_v17 = vmax.f32 %v2943_v10, 0.0  ;;  %v2299_v20 = vadd.f32 %v2237_v4, %v1938_v51  ;;  %v1879_v55 = vpop.f32.mrf.mxu1 }
 0x2a7   : > { %v1939_v58 = vadd.f32 %v1879_v55, %v4226_v19 }
 0x2a8   : > { %v3015_v36 = vpack.c.bf16 %v2979_v17, %v2979_v17  ;;  %v2668_v13 = vadd.f32 %v2606_v37, %v2299_v20  ;;  %v2845_v1 = vpop.f32.mrf.mxu0  ;;  %v2616_v22 = vpop.f32.mrf.mxu3 }
 0x2aa   : > { %3052 = vst.msk [vmem:[%s4427_s15 + $0x48] sm:$0xf] %vm3033_vm9, %v3015_v36  ;;  %v2904_v2 = vadd.f32 %v2842_v62, %v2668_v13 }
 0x2ac   : > { %v2944_v26 = vadd.f32 %v4411_v45, %v2904_v2 }
 0x2ad   : > { %v2240_v32 = vpop.f32.mrf.mxu2 }
 0x2ae   : > { %v2980_v24 = vmax.f32 %v2944_v26, 0.0  ;;  %v2300_v23 = vadd.f32 %v2240_v32, %v1939_v58  ;;  %v1881_v28 = vpop.f32.mrf.mxu1 }
 0x2af   : > { %v1940_v41 = vadd.f32 %v1881_v28, %v4240_v0 }
 0x2b0   : > { %v3016_v48 = vpack.c.bf16 %v2980_v24, %v2980_v24  ;;  %v2669_v14 = vadd.f32 %v2609_v53, %v2300_v23  ;;  %v2847_v40 = vpop.f32.mrf.mxu0  ;;  %v2619_v35 = vpop.f32.mrf.mxu3 }
 0x2b2   : > { %3053 = vst.msk [vmem:[%s4427_s15 + $0x4c] sm:$0xf] %vm3033_vm9, %v3016_v48  ;;  %v2905_v37 = vadd.f32 %v2845_v1, %v2669_v14 }
 0x2b4   : > { %v2945_v12 = vadd.f32 %v4411_v45, %v2905_v37 }
 0x2b5   : > { %v2242_v60 = vpop.f32.mrf.mxu2 }
 0x2b6   : > { %v2981_v42 = vmax.f32 %v2945_v12, 0.0  ;;  %v2301_v63 = vadd.f32 %v2242_v60, %v1940_v41  ;;  %v1884_v19 = vpop.f32.mrf.mxu1 }
 0x2b7   : > { %v1941_v15 = vadd.f32 %v1884_v19, %v4249_v46 }
 0x2b8   : > { %v3017_v8 = vpack.c.bf16 %v2981_v42, %v2981_v42  ;;  %v2670_v43 = vadd.f32 %v2611_v39, %v2301_v63  ;;  %v2850_v47 = vpop.f32.mrf.mxu0  ;;  %v2621_v7 = vpop.f32.mrf.mxu3 }
 0x2ba   : > { %3054 = vst.msk [vmem:[%s4427_s15 + $0x50] sm:$0xf] %vm3033_vm9, %v3017_v8  ;;  %v2906_v53 = vadd.f32 %v2847_v40, %v2670_v43 }
 0x2bc   : > { %v2946_v44 = vadd.f32 %v4411_v45, %v2906_v53 }
 0x2bd   : > { %v2245_v21 = vpop.f32.mrf.mxu2 }
 0x2be   : > { %v2982_v50 = vmax.f32 %v2946_v44, 0.0  ;;  %v2302_v49 = vadd.f32 %v2245_v21, %v1941_v15  ;;  %v1886_v0 = vpop.f32.mrf.mxu1 }
 0x2bf   : > { %v1942_v18 = vadd.f32 %v1886_v0, %v4262_v30 }
 0x2c0   : > { %v3018_v5 = vpack.c.bf16 %v2982_v50, %v2982_v50  ;;  %v2671_v61 = vadd.f32 %v2614_v16, %v2302_v49  ;;  %v2852_v52 = vpop.f32.mrf.mxu0  ;;  %v2624_v36 = vpop.f32.mrf.mxu3 }
 0x2c2   : > { %3055 = vst.msk [vmem:[%s4427_s15 + $0x54] sm:$0xf] %vm3033_vm9, %v3018_v5  ;;  %v2907_v39 = vadd.f32 %v2850_v47, %v2671_v61 }
 0x2c4   : > { %v2947_v31 = vadd.f32 %v4411_v45, %v2907_v39 }
 0x2c5   : > { %v2247_v34 = vpop.f32.mrf.mxu2 }
 0x2c6   : > { %v2983_v62 = vmax.f32 %v2947_v31, 0.0  ;;  %v2303_v9 = vadd.f32 %v2247_v34, %v1942_v18  ;;  %v1889_v46 = vpop.f32.mrf.mxu1 }
 0x2c7   : > { %v1943_v20 = vadd.f32 %v1889_v46, %v4271_v11 }
 0x2c8   : > { %v3019_v10 = vpack.c.bf16 %v2983_v62, %v2983_v62  ;;  %v2672_v51 = vadd.f32 %v2616_v22, %v2303_v9  ;;  %v2855_v4 = vpop.f32.mrf.mxu0  ;;  %v2626_v14 = vpop.f32.mrf.mxu3 }
 0x2ca   : > { %3056 = vst.msk [vmem:[%s4427_s15 + $0x58] sm:$0xf] %vm3033_vm9, %v3019_v10  ;;  %v2908_v16 = vadd.f32 %v2852_v52, %v2672_v51 }
 0x2cc   : > { %v2948_v17 = vadd.f32 %v4411_v45, %v2908_v16 }
 0x2cd   : > { %v2250_v55 = vpop.f32.mrf.mxu2 }
 0x2ce   : > { %v2984_v13 = vmax.f32 %v2948_v17, 0.0  ;;  %v2304_v1 = vadd.f32 %v2250_v55, %v1943_v20  ;;  %v1891_v30 = vpop.f32.mrf.mxu1 }
 0x2cf   : > { %v1944_v23 = vadd.f32 %v1891_v30, %v4284_v54 }
 0x2d0   : > { %v3020_v2 = vpack.c.bf16 %v2984_v13, %v2984_v13  ;;  %v2673_v26 = vadd.f32 %v2619_v35, %v2304_v1  ;;  %v2857_v58 = vpop.f32.mrf.mxu0  ;;  %v2629_v53 = vpop.f32.mrf.mxu3 }
 0x2d2   : > { %3057 = vst.msk [vmem:[%s4427_s15 + $0x5c] sm:$0xf] %vm3033_vm9, %v3020_v2  ;;  %v2909_v32 = vadd.f32 %v2855_v4, %v2673_v26 }
 0x2d4   : > { %v2949_v24 = vadd.f32 %v4411_v45, %v2909_v32 }
 0x2d5   : > { %v2252_v28 = vpop.f32.mrf.mxu2 }
 0x2d6   : > { %v2985_v22 = vmax.f32 %v2949_v24, 0.0  ;;  %v2305_v48 = vadd.f32 %v2252_v28, %v1944_v23  ;;  %v1894_v11 = vpop.f32.mrf.mxu1 }
 0x2d7   : > { %v1945_v42 = vadd.f32 %v1894_v11, %v4293_v33 }
 0x2d8   : > { %v3021_v40 = vpack.c.bf16 %v2985_v22, %v2985_v22  ;;  %v2674_v37 = vadd.f32 %v2621_v7, %v2305_v48  ;;  %v2860_v12 = vpop.f32.mrf.mxu0  ;;  %v2631_v7 = vpop.f32.mrf.mxu3 }
 0x2da   : > { %3058 = vst.msk [vmem:[%s4427_s15 + $0x60] sm:$0xf] %vm3033_vm9, %v3021_v40  ;;  %v2910_v41 = vadd.f32 %v2857_v58, %v2674_v37 }
 0x2dc   : > { %v2950_v60 = vadd.f32 %v4411_v45, %v2910_v41 }
 0x2dd   : > { %v2255_v63 = vpop.f32.mrf.mxu2 }
 0x2de   : > { %v2986_v19 = vmax.f32 %v2950_v60, 0.0  ;;  %v2306_v8 = vadd.f32 %v2255_v63, %v1945_v42  ;;  %v1896_v54 = vpop.f32.mrf.mxu1 }
 0x2df   : > { %v1946_v21 = vadd.f32 %v1896_v54, %v4306_v29 }
 0x2e0   : > { %v3022_v43 = vpack.c.bf16 %v2986_v19, %v2986_v19  ;;  %v2675_v47 = vadd.f32 %v2624_v36, %v2306_v8  ;;  %v2862_v35 = vpop.f32.mrf.mxu0  ;;  %v2634_v55 = vpop.f32.mrf.mxu3 }
 0x2e2   : > { %3059 = vst.msk [vmem:[%s4427_s15 + $0x64] sm:$0xf] %vm3033_vm9, %v3022_v43  ;;  %v2911_v44 = vadd.f32 %v2860_v12, %v2675_v47  ;;  %v3601_v47 = vld [vmem:[%s4735_s2] ss:$0 sm:$0xff] }
 0x2e4   : > { %v2951_v15 = vadd.f32 %v4411_v45, %v2911_v44 }
 0x2e5   : > { %v2257_v50 = vpop.f32.mrf.mxu2 }
 0x2e6   : > { %v2987_v49 = vmax.f32 %v2951_v15, 0.0  ;;  %v2307_v0 = vadd.f32 %v2257_v50, %v1946_v21  ;;  %v1899_v33 = vpop.f32.mrf.mxu1 }
 0x2e7   : > { %v1947_v18 = vadd.f32 %v1899_v33, %v4315_v56 }
 0x2e8   : > { %v3023_v5 = vpack.c.bf16 %v2987_v49, %v2987_v49  ;;  %v2676_v61 = vadd.f32 %v2626_v14, %v2307_v0  ;;  %v2865_v52 = vpop.f32.mrf.mxu0  ;;  %v2636_v22 = vpop.f32.mrf.mxu3 }
 0x2ea   : > { %3060 = vst.msk [vmem:[%s4427_s15 + $0x68] sm:$0xf] %vm3033_vm9, %v3023_v5  ;;  %v2912_v39 = vadd.f32 %v2862_v35, %v2676_v61 }
 0x2ec   : > { %v2952_v31 = vadd.f32 %v4411_v45, %v2912_v39 }
 0x2ed   : > { %v2260_v34 = vpop.f32.mrf.mxu2 }
 0x2ee   : > { %v2988_v62 = vmax.f32 %v2952_v31, 0.0  ;;  %v2308_v9 = vadd.f32 %v2260_v34, %v1947_v18  ;;  %v1901_v29 = vpop.f32.mrf.mxu1 }
 0x2ef   : > { %v1948_v17 = vadd.f32 %v1901_v29, %v4328_v59 }
 0x2f0   : > { %v3024_v46 = vpack.c.bf16 %v2988_v62, %v2988_v62  ;;  %v2677_v10 = vadd.f32 %v2629_v53, %v2308_v9  ;;  %v2867_v51 = vpop.f32.mrf.mxu0  ;;  %v2639_v8 = vpop.f32.mrf.mxu3 }
 0x2f2   : > { %3061 = vst.msk [vmem:[%s4427_s15 + $0x6c] sm:$0xf] %vm3033_vm9, %v3024_v46  ;;  %v2913_v4 = vadd.f32 %v2865_v52, %v2677_v10 }
 0x2f4   : > { %v2953_v16 = vadd.f32 %v4411_v45, %v2913_v4 }
 0x2f5   : > { %v2262_v20 = vpop.f32.mrf.mxu2 }
 0x2f6   : > { %v2989_v36 = vmax.f32 %v2953_v16, 0.0  ;;  %v2309_v13 = vadd.f32 %v2262_v20, %v1948_v17  ;;  %v1904_v56 = vpop.f32.mrf.mxu1 }
 0x2f7   : > { %v1949_v32 = vadd.f32 %v1904_v56, %v4337_v25 }
 0x2f8   : > { %v3025_v1 = vpack.c.bf16 %v2989_v36, %v2989_v36  ;;  %v2678_v30 = vadd.f32 %v2631_v7, %v2309_v13  ;;  %v2870_v2 = vpop.f32.mrf.mxu0  ;;  %v2641_v0 = vpop.f32.mrf.mxu3 }
 0x2fa   : > { %3062 = vst.msk [vmem:[%s4427_s15 + $0x70] sm:$0xf] %vm3033_vm9, %v3025_v1  ;;  %v2914_v26 = vadd.f32 %v2867_v51, %v2678_v30 }
 0x2fc   : > { %v2954_v58 = vadd.f32 %v4411_v45, %v2914_v26 }
 0x2fd   : > { %v2265_v24 = vpop.f32.mrf.mxu2 }
 0x2fe   : > { %v2990_v23 = vmax.f32 %v2954_v58, 0.0  ;;  %v2310_v28 = vadd.f32 %v2265_v24, %v1949_v32  ;;  %v1906_v59 = vpop.f32.mrf.mxu1 }
 0x2ff   : > { %v1950_v12 = vadd.f32 %v1906_v59, %v4350_v3 }
 0x300   : > { %v3026_v48 = vpack.c.bf16 %v2990_v23, %v2990_v23  ;;  %v2679_v11 = vadd.f32 %v2634_v55, %v2310_v28  ;;  %v2872_v14 = vpop.f32.mrf.mxu0  ;;  %v2644_v29 = vpop.f32.mrf.mxu3 }
 0x302   : > { %3063 = vst.msk [vmem:[%s4427_s15 + $0x74] sm:$0xf] %vm3033_vm9, %v3026_v48  ;;  %v2915_v40 = vadd.f32 %v2870_v2, %v2679_v11 }
 0x304   : > { %v2955_v37 = vadd.f32 %v4411_v45, %v2915_v40 }
 0x305   : > { %v2267_v41 = vpop.f32.mrf.mxu2 }
 0x306   : > { %v2991_v60 = vmax.f32 %v2955_v37, 0.0  ;;  %v2311_v42 = vadd.f32 %v2267_v41, %v1950_v12  ;;  %v1909_v25 = vpop.f32.mrf.mxu1 }
 0x307   : > { %v1951_v45 = vadd.f32 %v1909_v25, %v4359_v57 }
 0x308   : > { %v3027_v63 = vpack.c.bf16 %v2991_v60, %v2991_v60  ;;  %v2680_v19 = vadd.f32 %v2636_v22, %v2311_v42  ;;  %v2875_v43 = vpop.f32.mrf.mxu0 }
 0x30a   : > { %3064 = vst.msk [vmem:[%s4427_s15 + $0x78] sm:$0xf] %vm3033_vm9, %v3027_v63  ;;  %v2916_v54 = vadd.f32 %v2872_v14, %v2680_v19 }
 0x30c   : > { %v2956_v35 = vadd.f32 %v3601_v47, %v2916_v54 }
 0x30d   : > { %v2270_v3 = vpop.f32.mrf.mxu2 }
 0x30e   : > { %v2992_v53 = vmax.f32 %v2956_v35, 0.0  ;;  %v2312_v44 = vadd.f32 %v2270_v3, %v1951_v45  ;;  %v1911_v15 = vpop.f32.mrf.mxu1 }
 0x30f   : > { %v1952_v5 = vadd.f32 %v1911_v15, %v4372_v6 }
 0x310   : > { %v3028_v21 = vpack.c.bf16 %v2992_v53, %v2992_v53  ;;  %v2681_v50 = vadd.f32 %v2639_v8, %v2312_v44  ;;  %v2877_v61 = vpop.f32.mrf.mxu0 }
 0x312   : > { %3065 = vst.msk [vmem:[%s4427_s15 + $0x7c] sm:$0xf] %vm3033_vm9, %v3028_v21  ;;  %v2917_v49 = vadd.f32 %v2875_v43, %v2681_v50 }
 0x314   : > { %v2957_v33 = vadd.f32 %v3601_v47, %v2917_v49 }
 0x315   : > { %v2272_v52 = vpop.f32.mrf.mxu2 }
 0x316   : > { %v2993_v39 = vmax.f32 %v2957_v33, 0.0  ;;  %v2313_v7 = vadd.f32 %v2272_v52, %v1952_v5  ;;  %v1914_v57 = vpop.f32.mrf.mxu1 }
 0x317   : > { %v1953_v9 = vadd.f32 %v1914_v57, %v4383_v38  ;;  %v2646_v38 = vpop.f32.mrf.mxu3 }
 0x318   : > { %v3029_v31 = vpack.c.bf16 %v2993_v39, %v2993_v39  ;;  %v2682_v18 = vadd.f32 %v2641_v0, %v2313_v7  ;;  %v2880_v6 = vpop.f32.mrf.mxu0 }
 0x31a   : > { %3066 = vst.msk [vmem:[%s4427_s15 + $0x80] sm:$0xf] %vm3033_vm9, %v3029_v31  ;;  %v2918_v34 = vadd.f32 %v2877_v61, %v2682_v18 }
 0x31c   : > { %v2958_v62 = vadd.f32 %v3601_v47, %v2918_v34 }
 0x31d   : > { %v2275_v46 = vpop.f32.mrf.mxu2 }
 0x31e   : > { %v2994_v10 = vmax.f32 %v2958_v62, 0.0  ;;  %v2314_v51 = vadd.f32 %v2275_v46, %v1953_v9  ;;  %v1916_v17 = vpop.f32.mrf.mxu1 }
 0x31f   : > { %v1954_v36 = vadd.f32 %v1916_v17, %v4398_v27 }
 0x320   : > { %v3030_v4 = vpack.c.bf16 %v2994_v10, %v2994_v10  ;;  %v2683_v16 = vadd.f32 %v2644_v29, %v2314_v51  ;;  %v2882_v26 = vpop.f32.mrf.mxu0 }
 0x322   : > { %3067 = vst.msk [vmem:[%s4427_s15 + $0x84] sm:$0xf] %vm3033_vm9, %v3030_v4  ;;  %v2919_v20 = vadd.f32 %v2880_v6, %v2683_v16 }
 0x324   : > { %v2959_v55 = vadd.f32 %v3601_v47, %v2919_v20 }
 0x325   : > { %v2277_v13 = vpop.f32.mrf.mxu2 }
 0x326   : > { %v2995_v56 = vmax.f32 %v2959_v55, 0.0  ;;  %v2315_v1 = vadd.f32 %v2277_v13, %v1954_v36 }
 0x328   : > { %v3031_v30 = vpack.c.bf16 %v2995_v56, %v2995_v56  ;;  %v2684_v2 = vadd.f32 %v2646_v38, %v2315_v1 }
 0x32a   : > { %3068 = vst.msk [vmem:[%s4427_s15 + $0x88] sm:$0xf] %vm3033_vm9, %v3031_v30  ;;  %v2920_v58 = vadd.f32 %v2882_v26, %v2684_v2 }
 0x32c   : > { %v2960_v32 = vadd.f32 %v3601_v47, %v2920_v58 }
 0x32e   : > { %v2996_v24 = vmax.f32 %v2960_v32, 0.0 }
 0x330   : > { %v3032_v23 = vpack.c.bf16 %v2996_v24, %v2996_v24 }
 0x332   : > { %3069 = vst.msk [vmem:[%s4427_s15 + $0x8c] sm:$0xf] %vm3033_vm9, %v3032_v23 }
 0x333 PF: > { %s13_s12 = sadd.s32 1, %s3608_s12  }
 0x334   : > { %p10_p4 = scmp.ge.s32.totalorder %s13_s12, 4  }
 0x336   :  { %12 = sbr.rel (!%p10_p4) target bundleno = 1 (0x1), region = 70 }

// kernel: resnet_forward.9
= control target key start
LH: loop header
LB: loop body
LE: loop exit
PB: predicated region body
PF: predicated region fallthrough
CT: control target
= control target key end

     0   :  { %s3714_s12 = smov 0   ;;  %s4805_s0 = inlined_call_operand.vmem [shape: bf16[2,342,16], index: 0, kind: input, shape index: {}]   ;;  %s4806_s1 = inlined_call_operand.vmem [shape: bf16[9,16,16], index: 1, kind: input, shape index: {}]   ;;  %s4807_s2 = inlined_call_operand.vmem [shape: f32[1,16], index: 2, kind: input, shape index: {}]   ;;  %s4808_s3 = inlined_call_operand.vmem [shape: bf16[2,288,16], index: 3, kind: output, shape index: {}]  }
   0x1 LB: > { %s3157_s13 = sadd.s32 4294967295, %s3692_s12   ;;  %p3161_p0 = scmp.ge.s32.totalorder %s3692_s12, 1  ;;  %s3692_s12 = sphi %s3714_s12, %s13_s12  }
   0x2   : > { %p137_p1 = scmp.lt.s32.totalorder %s3692_s12, 3 }
   0x4   : > { %p138_p2 = pnand %p3161_p0, %p137_p1 }
   0x6   : > { %141 = sbr.rel (%p138_p2) target bundleno = 819 (0x333), region = 32 }
   0xb   : > { %v3602_v0 = vld [vmem:[%s4806_s1 + $0x8] sm:$0xff]  ;;  %p161_p3 = scmp.lt.s32.totalorder %s3157_s13, 1  ;;  %v3603_v1 = vld [vmem:[%s4806_s1 + $0x10] sm:$0xff]  ;;  %v3601_v2 = vld [vmem:[%s4806_s1] sm:$0xff]  ;;  %vm307_vm0 = vsmask.f32 7424 }
   0xc   : > { %v3622_v3 = vld [vmem:[%s4806_s1 + $0x20] sm:$0xff]  ;;  %3651 = vmatpush.bf16.msra.mxu1 %v3602_v0  ;;  %3652 = vmatpush.bf16.msra.mxu2 %v3602_v0  ;;  %vm462_vm1 = vcmask 130048   ;;  %v3621_v38 = vld [vmem:[%s4806_s1 + $0x18] sm:$0xff]  ;;  %vm764_vm2 = vcmask 1046528   ;;  %vm1369_vm3 = vsmask.f32 6400 }
   0xd   : > { %s4834_s13 = smov (!%p161_p3, %s3157_s13), 1  ;;  %524 = vmatpush.bf16.msra.mxu0 %v3602_v0  ;;  %3653 = vmatpush.bf16.msra.mxu3 %v3602_v0  ;;  %vm2347_vm4 = vsmask.f32 5376  ;;  %vm1742_vm5 = vcmask 1045504   ;;  %vm2720_vm6 = vcmask 1044480   ;;  %vm3065_vm7 = vcmask 125952  }
   0xe   : > { %s3654_s22 = smul.u32 172, %s4834_s13 }
   0xf   : > { %s3655_s11 = smul.u32 144, %s4834_s13 }
  0x10   : > { %869 = vmatpush.bf16.msrb.mxu2 %v3603_v1  ;;  %665 = vmatpush.bf16.msrb.mxu1 %v3601_v2  ;;  %s3740_s25 = scalar_lea.vmem %s4805_s0, %s3654_s22 }
  0x11   : > { %1607 = vmatpush.bf16.msrb.mxu0 %v3622_v3  ;;  %v3743_v4 = vld [vmem:[%s3740_s25 + $0x28] sm:$0xff]  ;;  %v3746_v5 = vld [vmem:[%s3740_s25 + $0x30] sm:$0xff]  ;;  %v3752_v7 = vld [vmem:[%s3740_s25 + $0x58] sm:$0xff]  ;;  %1234 = vmatpush.bf16.msrb.mxu3 %v3621_v38  ;;  %s4499_s15 = scalar_lea.vmem %s4808_s3, %s3655_s11 }
  0x12   : > { %v3749_v6 = vld [vmem:[%s3740_s25 + $0x50] sm:$0xff]  ;;  %v3755_v8 = vld [vmem:[%s3740_s25] sm:$0xff]   ;;  %v3758_v9 = vld [vmem:[%s3740_s25 + $0x8] sm:$0xff]  ;;  %v348_v10 = vshll.u32 %v3743_v4, 16  ;;  %v352_v11 = vshrl.u32 %v3743_v4, 16  ;;  %v356_v12 = vshll.u32 %v3746_v5, 16 }
  0x13   : > { %v388_v13 = vshll.u32 %v3749_v6, 16  ;;  %v392_v14 = vshrl.u32 %v3749_v6, 16  ;;  %v396_v15 = vshll.u32 %v3752_v7, 16  ;;  %v309_v16 = vshrl.u32 %v3755_v8, 16  ;;  %v3776_v27 = vld [vmem:[%s3740_s25 + $0x78] sm:$0xff]  ;;  %v3599_v28 = vld [vmem:[%s3740_s25 + $0x80] sm:$0xff] }
  0x14   : > { %v311_v17 = vshll.u32 %v3755_v8, 16  ;;  %v3768_v18 = vrot.slane %v348_v10, 1  ;;  %v358_v19 = vrot.slane %v356_v12, 1  ;;  %v316_v21 = vshll.u32 %v3758_v9, 16  ;;  %v3785_v33 = vld [vmem:[%s3740_s25 + $0x38] sm:$0xff]  ;;  %v3789_v34 = vld [vmem:[%s3740_s25 + $0x60] sm:$0xff] }
  0x15   : > { %v3770_v20 = vrot.slane %v388_v13, 1  ;;  %v398_v22 = vrot.slane %v396_v15, 1  ;;  %v428_v35 = vshll.u32 %v3776_v27, 16  ;;  %v432_v36 = vshrl.u32 %v3776_v27, 16  ;;  %v3797_v39 = vld [vmem:[%s3740_s25 + $0x10] sm:$0xff]  ;;  %v3600_v54 = vld [vmem:[%s3740_s25 + $0x88] sm:$0xff] }
  0x16   : > { %v313_v23 = vrot.slane %v311_v17, 1  ;;  %v354_v24 = vor.u32 %v352_v11, %v3768_v18  ;;  %v318_v26 = vrot.slane %v316_v21, 1  ;;  %v436_v37 = vshll.u32 %v3599_v28, 16  ;;  %v3812_v55 = vld [vmem:[%s3740_s25 + $0x48] sm:$0xff]  ;;  %v3821_v0 = vld [vmem:[%s3740_s25 + $0x40] sm:$0xff]  ;;  %v3829_v12 = vld [vmem:[%s3740_s25 + $0x18] sm:$0xff] }
  0x17   : > { %v394_v25 = vor.u32 %v392_v14, %v3770_v20  ;;  %v3799_v40 = vrot.slane %v428_v35, 1  ;;  %v360_v42 = vshrl.u32 %v3746_v5, 16  ;;  %v364_v43 = vshll.u32 %v3785_v33, 16  ;;  %v3824_v1 = vld [vmem:[%s3740_s25 + $0x68] sm:$0xff]  ;;  %v210_v13 = vld [vmem:[%s3740_s25 + $0x90] sm:$0x1] }
  0x18   : > { %v314_v29 = vor.u32 %v313_v23, %v309_v16  ;;  %v359_v30 = vsel %vm307_vm0, %v354_v24, %v358_v19  ;;  %v438_v41 = vrot.slane %v436_v37, 1  ;;  %v400_v44 = vshrl.u32 %v3752_v7, 16 }
  0x19   : > { %v399_v31 = vsel %vm307_vm0, %v394_v25, %v398_v22  ;;  %3243 = vmatmul.msk.bf16.vlgmr.msra.gmra.mxu1 %vm462_vm1, %v359_v30  ;;  %v404_v45 = vshll.u32 %v3789_v34, 16  ;;  %v434_v46 = vor.u32 %v432_v36, %v3799_v40  ;;  %v320_v47 = vshrl.u32 %v3758_v9, 16 }
  0x1a   : > { %3248 = vmatmul.msk.bf16.vlgmr.msra.gmra.mxu2 %vm462_vm1, %v399_v31  ;;  %v319_v32 = vsel %vm307_vm0, %v314_v29, %v318_v26  ;;  %v324_v48 = vshll.u32 %v3797_v39, 16  ;;  %v362_v50 = vor.u32 %v360_v42, %v358_v19  ;;  %v366_v51 = vrot.slane %v364_v43, 1 }
  0x1b   : > { %3238 = vmatmul.msk.bf16.vlgmr.msra.gmra.mxu0 %vm462_vm1, %v319_v32  ;;  %v439_v49 = vsel %vm307_vm0, %v434_v46, %v438_v41  ;;  %v402_v52 = vor.u32 %v400_v44, %v398_v22  ;;  %v406_v53 = vrot.slane %v404_v45, 1  ;;  %v322_v56 = vor.u32 %v320_v47, %v318_v26  ;;  %v3838_v22 = vld [vmem:[%s3740_s25 + $0x20] sm:$0xff]  ;;  %v3859_v47 = vld [vmem:[%s3740_s25 + $0x70] sm:$0xff] }
  0x1c   : > { %3253 = vmatmul.msk.bf16.vlgmr.msra.gmra.mxu3 %vm462_vm1, %v439_v49  ;;  %v326_v57 = vrot.slane %v324_v48, 1  ;;  %v367_v58 = vsel %vm307_vm0, %v362_v50, %v366_v51  ;;  %v440_v60 = vshrl.u32 %v3599_v28, 16  ;;  %v444_v61 = vshll.u32 %v3600_v54, 16 }
  0x1d   : > { %v407_v59 = vsel %vm307_vm0, %v402_v52, %v406_v53  ;;  %v380_v62 = vshll.u32 %v3812_v55, 16  ;;  %v384_v11 = vshrl.u32 %v3812_v55, 16  ;;  %v368_v15 = vshrl.u32 %v3785_v33, 16 }
  0x1e   : > { %v327_v63 = vsel %vm307_vm0, %v322_v56, %v326_v57  ;;  %v442_v2 = vor.u32 %v440_v60, %v438_v41  ;;  %v446_v3 = vrot.slane %v444_v61, 1  ;;  %v372_v16 = vshll.u32 %v3821_v0, 16 }
  0x1f   : > { %v382_v10 = vrot.slane %v380_v62, 1  ;;  %v408_v17 = vshrl.u32 %v3789_v34, 16  ;;  %v412_v19 = vshll.u32 %v3824_v1, 16  ;;  %v287_v23 = vunpack.c.l.b16 %v210_v13 }
  0x20   : > { %v447_v21 = vsel %vm307_vm0, %v442_v2, %v446_v3  ;;  %v328_v25 = vshrl.u32 %v3797_v39, 16  ;;  %v332_v26 = vshll.u32 %v3829_v12, 16  ;;  %v370_v28 = vor.u32 %v368_v15, %v366_v51  ;;  %v3641_v15 = vld [vmem:[%s4806_s1 + $0x30] sm:$0xff] }
  0x21   : > { %v386_v14 = vor.u32 %v384_v11, %v382_v10  ;;  %v374_v29 = vrot.slane %v372_v16, 1  ;;  %v410_v30 = vor.u32 %v408_v17, %v406_v53  ;;  %v414_v31 = vrot.slane %v412_v19, 1  ;;  %v3604_v11 = vld [vmem:[%s3740_s25 + $0x10] sm:$0xff]  ;;  %v3642_v17 = vld [vmem:[%s4806_s1 + $0x38] sm:$0xff]  ;;  %v3623_v19 = vld [vmem:[%s4806_s1 + $0x28] sm:$0xff]  ;;  %2212 = vmatpush.bf16.msra.mxu2 %v3641_v15 }
  0x22   : > { %v340_v32 = vshll.u32 %v3838_v22, 16  ;;  %v3848_v35 = vpack.c.b16 %v287_v23, %v287_v23  ;;  %v330_v36 = vor.u32 %v328_v25, %v326_v57  ;;  %v334_v37 = vrot.slane %v332_v26, 1  ;;  %v997_v57 = vld [vmem:[%s3740_s25 + $0x8] sm:$0xe]  ;;  %2585 = vmatpush.bf16.msra.mxu3 %v3642_v17  ;;  %1847 = vmatpush.bf16.msra.mxu1 %v3623_v19 }
  0x23   : > { %v3842_v24 = vsel %vm307_vm0, %v386_v14, %v3770_v20  ;;  %v375_v20 = vsel %vm307_vm0, %v370_v28, %v374_v29  ;;  %v415_v38 = vsel %vm307_vm0, %v410_v30, %v414_v31  ;;  %v448_v42 = vshrl.u32 %v3600_v54, 16  ;;  %v3648_v30 = vld [vmem:[%s3740_s25] sm:$0xf0] }
  0x24   : > { %v342_v41 = vrot.slane %v340_v32, 1  ;;  %v452_v43 = vshll.u32 %v3848_v35, 16  ;;  %v344_v44 = vshrl.u32 %v3838_v22, 16  ;;  %v335_v45 = vsel %vm307_vm0, %v330_v36, %v334_v37  ;;  %v3649_v32 = vld [vmem:[%s3740_s25] sm:$0xe] }
  0x25   : > { %v450_v48 = vor.u32 %v448_v42, %v446_v3  ;;  %v376_v51 = vshrl.u32 %v3821_v0, 16  ;;  %v416_v52 = vshrl.u32 %v3824_v1, 16  ;;  %v420_v53 = vshll.u32 %v3859_v47, 16 }
  0x26   : > { %v346_v46 = vor.u32 %v344_v44, %v342_v41  ;;  %v454_v49 = vrot.slane %v452_v43, 1  ;;  %v336_v56 = vshrl.u32 %v3829_v12, 16  ;;  %v1131_v16 = vrot.slane %v3604_v11, 1 }
  0x27   : > { %v418_v60 = vor.u32 %v416_v52, %v414_v31  ;;  %v422_v61 = vrot.slane %v420_v53, 1  ;;  %v424_v23 = vshrl.u32 %v3859_v47, 16 }
  0x28   : > { %v351_v50 = vsel %vm307_vm0, %v346_v46, %v3768_v18  ;;  %v455_v54 = vsel %vm307_vm0, %v450_v48, %v454_v49  ;;  %v1074_v18 = vunpack.c.l.b16 %v997_v57  ;;  %v766_v46 = vrot.slane %v3758_v9, 1 }
  0x29   : > { %3244 = vmatmul.msk.bf16.gmra.mxu1 %vm462_vm1, %v367_v58  ;;  %v3870_v58 = vld [vmem:[%s3740_s25 + $0xc] sm:$0xf]  ;;  %v423_v3 = vsel %vm307_vm0, %v418_v60, %v422_v61  ;;  %v426_v26 = vor.u32 %v424_v23, %v422_v61  ;;  %v768_v61 = vrot.slane %v3797_v39, 1 }
  0x2a   : > { %3249 = vmatmul.msk.bf16.gmra.mxu2 %vm462_vm1, %v407_v59  ;;  %v378_v59 = vor.u32 %v376_v51, %v374_v29  ;;  %v4809_v62 = vunpack.c.l.b16 %v3870_v58  ;;  %v3605_v29 = vld [vmem:[%s3740_s25 + $0x18] sm:$0xff]  ;;  %v3606_v51 = vld [vmem:[%s3740_s25 + $0x20] sm:$0xff] }
  0x2b   : > { %3239 = vmatmul.msk.bf16.gmra.mxu0 %vm462_vm1, %v327_v63  ;;  %v338_v63 = vor.u32 %v336_v56, %v334_v37  ;;  %v431_v28 = vsel %vm307_vm0, %v426_v26, %v3799_v40  ;;  %v1133_v31 = vrot.slane %v3605_v29, 1  ;;  %v1135_v53 = vrot.slane %v3606_v51, 1 }
  0x2c   : > { %3254 = vmatmul.msk.bf16.gmra.mxu3 %vm462_vm1, %v447_v21  ;;  %v383_v2 = vsel %vm307_vm0, %v378_v59, %v382_v10  ;;  %v1111_v13 = vpack.c.b16 %v4809_v62, %v1074_v18  ;;  %v3643_v21 = vld [vmem:[%s4806_s1 + $0x40] sm:$0xff]  ;;  %v1391_v56 = vshll.u32 %v3605_v29, 16 }
  0x2d   : > { %v343_v14 = vsel %vm307_vm0, %v338_v63, %v342_v41  ;;  %2825 = vmatpush.bf16.msra.mxu0 %v3643_v21  ;;  %v3650_v41 = vor.u32 %v3649_v32, %v3648_v30  ;;  %v1134_v42 = vsel %vm764_vm2, %v1131_v16, %v1133_v31  ;;  %v1136_v57 = vsel %vm764_vm2, %v1133_v31, %v1135_v53  ;;  %v3608_v21 = vld [vmem:[%s3740_s25 + $0x30] sm:$0xff]  ;;  %v3614_v62 = vld [vmem:[%s3740_s25 + $0x60] sm:$0xff] }
  0x2e   : > { %v1130_v10 = vrot.slane %v1111_v13, 1  ;;  %v1371_v36 = vshrl.u32 %v1111_v13, 16  ;;  %v1374_v37 = vshll.u32 %v1111_v13, 16  ;;  %v1393_v60 = vrot.slane %v1391_v56, 2 }
  0x2f   : > { %v769_v63 = vsel %vm764_vm2, %v766_v46, %v768_v61  ;;  %v1400_v13 = vshll.u32 %v3606_v51, 16  ;;  %v1139_v23 = vrot.slane %v3608_v21, 1  ;;  %v772_v31 = vrot.slane %v3838_v22, 1 }
  0x30   : > { %v1132_v25 = vsel %vm764_vm2, %v1130_v10, %v1131_v16  ;;  %v1373_v40 = vrot.slane %v1371_v36, 1  ;;  %v1376_v43 = vrot.slane %v1374_v37, 2  ;;  %v770_v16 = vrot.slane %v3829_v12, 1  ;;  %v3609_v37 = vld [vmem:[%s3740_s25 + $0x38] sm:$0xff] }
  0x31   : > { %v1402_v10 = vrot.slane %v1400_v13, 2  ;;  %v776_v13 = vrot.slane %v3746_v5, 1 }
  0x32   : > { %v1377_v48 = vor.u32 %v1376_v43, %v1373_v40  ;;  %v771_v19 = vsel %vm764_vm2, %v768_v61, %v770_v16  ;;  %v1418_v40 = vshll.u32 %v3608_v21, 16  ;;  %v1427_v61 = vshll.u32 %v3609_v37, 16 }
  0x39   : > { %3245 = vmatmul.msk.bf16.gmra.mxu1 %vm462_vm1, %v375_v20  ;;  %v1379_v20 = vshrl.u32 %v3604_v11, 16 }
  0x3a   : > { %3250 = vmatmul.msk.bf16.gmra.mxu2 %vm462_vm1, %v415_v38  ;;  %v1382_v38 = vshll.u32 %v3604_v11, 16  ;;  %v1397_v11 = vshrl.u32 %v3606_v51, 16 }
  0x3b   : > { %3240 = vmatmul.msk.bf16.gmra.mxu0 %vm462_vm1, %v335_v45  ;;  %v1381_v44 = vrot.slane %v1379_v20, 1 }
  0x3c   : > { %3255 = vmatmul.msk.bf16.gmra.mxu3 %vm462_vm1, %v455_v54  ;;  %v1384_v45 = vrot.slane %v1382_v38, 2  ;;  %v1388_v54 = vshrl.u32 %v3605_v29, 16  ;;  %v1399_v15 = vrot.slane %v1397_v11, 1 }
  0x3e   : > { %v1385_v49 = vor.u32 %v1384_v45, %v1381_v44  ;;  %v1390_v59 = vrot.slane %v1388_v54, 1  ;;  %v1403_v17 = vor.u32 %v1402_v10, %v1399_v15  ;;  %v3610_v54 = vld [vmem:[%s3740_s25 + $0x40] sm:$0xff] }
  0x40   : > { %v1386_v52 = vsel %vm1369_vm3, %v1377_v48, %v1385_v49  ;;  %v1394_v18 = vor.u32 %v1393_v60, %v1390_v59  ;;  %v1420_v48 = vrot.slane %v1418_v40, 2  ;;  %v1143_v59 = vrot.slane %v3610_v54, 1 }
  0x41   : > { %v1424_v60 = vshrl.u32 %v3609_v37, 16 }
  0x43   : > { %v1426_v11 = vrot.slane %v1424_v60, 1 }
  0x49   : > { %3246 = vmatmul.msk.bf16.gmra.mxu1 %vm462_vm1, %v383_v2  ;;  %v1395_v2 = vsel %vm1369_vm3, %v1385_v49, %v1394_v18 }
  0x4a   : > { %3251 = vmatmul.msk.bf16.gmra.mxu2 %vm462_vm1, %v423_v3 }
  0x4b   : > { %3241 = vmatmul.msk.bf16.gmra.mxu0 %vm462_vm1, %v343_v14 }
  0x4c   : > { %3376 = vmatmul.msk.bf16.vlgmr.msrb.gmra.mxu3 %vm462_vm1, %v1132_v25 }
  0x59   : > { %3247 = vmatmul.msk.bf16.gmra.mxu1 %vm462_vm1, %v3842_v24  ;;  %v765_v24 = vrot.slane %v3650_v41, 1  ;;  %v1141_v41 = vrot.slane %v3609_v37, 1  ;;  %v778_v37 = vrot.slane %v3785_v33, 1 }
  0x5a   : > { %3252 = vmatmul.msk.bf16.gmra.mxu2 %vm462_vm1, %v431_v28 }
  0x5b   : > { %3242 = vmatmul.msk.bf16.gmra.mxu0 %vm462_vm1, %v351_v50  ;;  %v767_v50 = vsel %vm764_vm2, %v765_v24, %v766_v46  ;;  %v1142_v45 = vsel %vm764_vm2, %v1139_v23, %v1141_v41 }
  0x5c   : > { %3377 = vmatmul.msk.bf16.gmra.mxu3 %vm462_vm1, %v1134_v42  ;;  %v1415_v42 = vshrl.u32 %v3608_v21, 16 }
  0x5e   : > { %v1417_v46 = vrot.slane %v1415_v42, 1 }
  0x60   : > { %v1421_v49 = vor.u32 %v1420_v48, %v1417_v46  ;;  %v3612_v46 = vld [vmem:[%s3740_s25 + $0x50] sm:$0xff] }
  0x69   : > { %3260 = vmatmul.msk.bf16.vlgmr.msrb.gmra.mxu1 %vm462_vm1, %v3755_v8  ;;  %v3607_v8 = vld [vmem:[%s3740_s25 + $0x28] sm:$0xff] }
  0x6a   : > { %3284 = vmatmul.msk.bf16.vlgmr.msrb.gmra.mxu2 %vm462_vm1, %v767_v50  ;;  %v1137_v3 = vrot.slane %v3607_v8, 1  ;;  %v1406_v25 = vshrl.u32 %v3607_v8, 16  ;;  %v1409_v26 = vshll.u32 %v3607_v8, 16 }
  0x6b   : > { %3400 = vmatmul.msk.bf16.vlgmr.msrb.gmra.mxu0 %vm462_vm1, %v1386_v52 }
  0x6c   : > { %3378 = vmatmul.msk.bf16.gmra.mxu3 %vm462_vm1, %v1136_v57  ;;  %v1138_v14 = vsel %vm764_vm2, %v1135_v53, %v1137_v3  ;;  %v1140_v28 = vsel %vm764_vm2, %v1137_v3, %v1139_v23  ;;  %v1408_v29 = vrot.slane %v1406_v25, 1  ;;  %v1411_v30 = vrot.slane %v1409_v26, 2 }
  0x6d   : > { %v1433_v25 = vshrl.u32 %v3610_v54, 16  ;;  %v1436_v26 = vshll.u32 %v3610_v54, 16 }
  0x6e   : > { %v1412_v32 = vor.u32 %v1411_v30, %v1408_v29 }
  0x70   : > { %v1413_v38 = vsel %vm1369_vm3, %v1403_v17, %v1412_v32  ;;  %v1422_v57 = vsel %vm1369_vm3, %v1412_v32, %v1421_v49 }
  0x79   : > { %3261 = vmatmul.msk.bf16.gmra.mxu1 %vm462_vm1, %v3758_v9  ;;  %v1404_v9 = vsel %vm1369_vm3, %v1394_v18, %v1403_v17 }
  0x7a   : > { %3285 = vmatmul.msk.bf16.gmra.mxu2 %vm462_vm1, %v769_v63 }
  0x7b   : > { %3401 = vmatmul.msk.bf16.gmra.mxu0 %vm462_vm1, %v1395_v2  ;;  %v1144_v2 = vsel %vm764_vm2, %v1141_v41, %v1143_v59 }
  0x7c   : > { %3379 = vmatmul.msk.bf16.gmra.mxu3 %vm462_vm1, %v1138_v14 }
  0x89   : > { %3262 = vmatmul.msk.bf16.gmra.mxu1 %vm462_vm1, %v3797_v39  ;;  %v773_v39 = vsel %vm764_vm2, %v770_v16, %v772_v31 }
  0x8a   : > { %3286 = vmatmul.msk.bf16.gmra.mxu2 %vm462_vm1, %v771_v19  ;;  %v3611_v19 = vld [vmem:[%s3740_s25 + $0x48] sm:$0xff] }
  0x8b   : > { %3402 = vmatmul.msk.bf16.gmra.mxu0 %vm462_vm1, %v1404_v9  ;;  %v1145_v23 = vrot.slane %v3611_v19, 1  ;;  %v1445_v54 = vshll.u32 %v3611_v19, 16 }
  0x8c   : > { %3380 = vmatmul.msk.bf16.gmra.mxu3 %vm462_vm1, %v1140_v28 }
  0x96   : > { %v3940_v36 = vpop.f32.mrf.mxu1 }
  0x98   : > { %v3944_v20 = vpop.f32.mrf.mxu0 }
  0x99   : > { %3263 = vmatmul.msk.bf16.gmra.mxu1 %vm462_vm1, %v3829_v12  ;;  %v774_v12 = vrot.slane %v3743_v4, 1 }
  0x9a   : > { %3287 = vmatmul.msk.bf16.gmra.mxu2 %vm462_vm1, %v773_v39  ;;  %v1435_v39 = vrot.slane %v1433_v25, 1  ;;  %v3613_v25 = vld [vmem:[%s3740_s25 + $0x58] sm:$0xff] }
  0x9b   : > { %3403 = vmatmul.msk.bf16.gmra.mxu0 %vm462_vm1, %v1413_v38  ;;  %v775_v53 = vsel %vm764_vm2, %v772_v31, %v774_v12  ;;  %v777_v17 = vsel %vm764_vm2, %v774_v12, %v776_v13  ;;  %v1146_v31 = vsel %vm764_vm2, %v1143_v59, %v1145_v23 }
  0x9c   : > { %3381 = vmatmul.msk.bf16.gmra.mxu3 %vm462_vm1, %v1142_v45  ;;  %v779_v45 = vsel %vm764_vm2, %v776_v13, %v778_v37 }
  0x9d   : > { %v3951_v43 = vpop.f32.mrf.mxu2 }
  0x9e   : > { %v3953_v44 = vpop.f32.mrf.mxu1 }
  0x9f   : > { %v3962_v51 = vpop.f32.mrf.mxu3 }
  0xa0   : > { %v3956_v24 = vpop.f32.mrf.mxu0  ;;  %4811 = vst [vmem:[#allocation2_spill] sm:$0xff] %v3962_v51 }
  0xa5   : > { %v3960_v50 = vpop.f32.mrf.mxu2 }
  0xa6   : > { %v3964_v52 = vpop.f32.mrf.mxu1 }
  0xa7   : > { %v3977_v63 = vpop.f32.mrf.mxu3 }
  0xa8   : > { %v3968_v56 = vpop.f32.mrf.mxu0  ;;  %4812 = vst [vmem:[#allocation3_spill] sm:$0xff] %v3977_v63 }
  0xa9   : > { %3264 = vmatmul.msk.bf16.gmra.mxu1 %vm462_vm1, %v3838_v22  ;;  %v1429_v22 = vrot.slane %v1427_v61, 2 }
  0xaa   : > { %3288 = vmatmul.msk.bf16.gmra.mxu2 %vm462_vm1, %v775_v53  ;;  %v1442_v53 = vshrl.u32 %v3611_v19, 16 }
  0xab   : > { %3404 = vmatmul.msk.bf16.gmra.mxu0 %vm462_vm1, %v1422_v57  ;;  %v1430_v14 = vor.u32 %v1429_v22, %v1426_v11  ;;  %v780_v22 = vrot.slane %v3821_v0, 1 }
  0xac   : > { %3382 = vmatmul.msk.bf16.gmra.mxu3 %vm462_vm1, %v1144_v2  ;;  %v1444_v11 = vrot.slane %v1442_v53, 1 }
  0xad   : > { %v3975_v18 = vpop.f32.mrf.mxu2  ;;  %v1431_v9 = vsel %vm1369_vm3, %v1421_v49, %v1430_v14  ;;  %v1147_v49 = vrot.slane %v3612_v46, 1 }
  0xae   : > { %v3979_v8 = vpop.f32.mrf.mxu1 }
  0xaf   : > { %v3988_v10 = vpop.f32.mrf.mxu3  ;;  %v1148_v61 = vsel %vm764_vm2, %v1145_v23, %v1147_v49 }
  0xb0   : > { %v3982_v3 = vpop.f32.mrf.mxu0  ;;  %4813 = vst [vmem:[#allocation4_spill] sm:$0xff] %v3988_v10 }
  0xb5   : > { %v3986_v15 = vpop.f32.mrf.mxu2 }
  0xb6   : > { %v3990_v16 = vpop.f32.mrf.mxu1 }
  0xb7   : > { %v4003_v29 = vpop.f32.mrf.mxu3 }
  0xb8   : > { %v3994_v21 = vpop.f32.mrf.mxu0  ;;  %4814 = vst [vmem:[#allocation5_spill] sm:$0xff] %v4003_v29 }
  0xb9   : > { %3265 = vmatmul.msk.bf16.gmra.mxu1 %vm462_vm1, %v3743_v4  ;;  %v1438_v4 = vrot.slane %v1436_v26, 2 }
  0xba   : > { %3289 = vmatmul.msk.bf16.gmra.mxu2 %vm462_vm1, %v777_v17 }
  0xbb   : > { %3405 = vmatmul.msk.bf16.gmra.mxu0 %vm462_vm1, %v1431_v9  ;;  %v1439_v38 = vor.u32 %v1438_v4, %v1435_v39  ;;  %v781_v9 = vsel %vm764_vm2, %v778_v37, %v780_v22  ;;  %v1451_v39 = vshrl.u32 %v3612_v46, 16  ;;  %v1454_v4 = vshll.u32 %v3612_v46, 16 }
  0xbc   : > { %3383 = vmatmul.msk.bf16.gmra.mxu3 %vm462_vm1, %v1146_v31  ;;  %v1149_v31 = vrot.slane %v3613_v25, 1 }
  0xbd   : > { %v4001_v28 = vpop.f32.mrf.mxu2  ;;  %v1440_v12 = vsel %vm1369_vm3, %v1430_v14, %v1439_v38 }
  0xbe   : > { %v4005_v30 = vpop.f32.mrf.mxu1  ;;  %v1150_v53 = vsel %vm764_vm2, %v1147_v49, %v1149_v31  ;;  %v1151_v49 = vrot.slane %v3614_v62, 1 }
  0xbf   : > { %v4014_v42 = vpop.f32.mrf.mxu3 }
  0xc0   : > { %v4008_v32 = vpop.f32.mrf.mxu0  ;;  %4815 = vst [vmem:[#allocation6_spill] sm:$0xff] %v4014_v42  ;;  %v1152_v10 = vsel %vm764_vm2, %v1149_v31, %v1151_v49  ;;  %v3615_v31 = vld [vmem:[%s3740_s25 + $0x68] sm:$0xff] }
  0xc5   : > { %v4012_v41 = vpop.f32.mrf.mxu2 }
  0xc6   : > { %v4016_v40 = vpop.f32.mrf.mxu1 }
  0xc7   : > { %v4029_v59 = vpop.f32.mrf.mxu3 }
  0xc8   : > { %v4020_v48 = vpop.f32.mrf.mxu0  ;;  %4816 = vst [vmem:[#allocation7_spill] sm:$0xff] %v4029_v59 }
  0xc9   : > { %3266 = vmatmul.msk.bf16.gmra.mxu1 %vm462_vm1, %v3746_v5  ;;  %v1447_v5 = vrot.slane %v1445_v54, 2 }
  0xca   : > { %3290 = vmatmul.msk.bf16.gmra.mxu2 %vm462_vm1, %v779_v45 }
  0xcb   : > { %3406 = vmatmul.msk.bf16.gmra.mxu0 %vm462_vm1, %v1440_v12  ;;  %v1448_v13 = vor.u32 %v1447_v5, %v1444_v11 }
  0xcc   : > { %3384 = vmatmul.msk.bf16.gmra.mxu3 %vm462_vm1, %v1148_v61  ;;  %v1456_v61 = vrot.slane %v1454_v4, 2  ;;  %v1460_v4 = vshrl.u32 %v3613_v25, 16 }
  0xcd   : > { %v4027_v57 = vpop.f32.mrf.mxu2  ;;  %v1449_v23 = vsel %vm1369_vm3, %v1439_v38, %v1448_v13  ;;  %v1453_v38 = vrot.slane %v1451_v39, 1 }
  0xce   : > { %v4031_v60 = vpop.f32.mrf.mxu1  ;;  %v1462_v51 = vrot.slane %v1460_v4, 1 }
  0xcf   : > { %v1236_v17 = vpop.f32.mrf.mxu3  ;;  %v1457_v11 = vor.u32 %v1456_v61, %v1453_v38 }
  0xd0   : > { %v4034_v2 = vpop.f32.mrf.mxu0 }
  0xd1   : > { %v1458_v42 = vsel %vm1369_vm3, %v1448_v13, %v1457_v11 }
  0xd5   : > { %v4038_v14 = vpop.f32.mrf.mxu2 }
  0xd6   : > { %v4040_v19 = vpop.f32.mrf.mxu1 }
  0xd7   : > { %v1238_v12 = vpop.f32.mrf.mxu3 }
  0xd8   : > { %v4044_v26 = vpop.f32.mrf.mxu0 }
  0xd9   : > { %3267 = vmatmul.msk.bf16.gmra.mxu1 %vm462_vm1, %v3785_v33  ;;  %v782_v33 = vrot.slane %v3812_v55, 1 }
  0xda   : > { %3291 = vmatmul.msk.bf16.gmra.mxu2 %vm462_vm1, %v781_v9 }
  0xdb   : > { %3407 = vmatmul.msk.bf16.gmra.mxu0 %vm462_vm1, %v1449_v23  ;;  %v783_v23 = vsel %vm764_vm2, %v780_v22, %v782_v33 }
  0xdc   : > { %3385 = vmatmul.msk.bf16.gmra.mxu3 %vm462_vm1, %v1150_v53  ;;  %v1463_v53 = vshll.u32 %v3613_v25, 16 }
  0xdd   : > { %v4051_v45 = vpop.f32.mrf.mxu2 }
  0xde   : > { %4817 = vst [vmem:[#allocation8_spill] sm:$0xff] %v4051_v45  ;;  %v4053_v37 = vpop.f32.mrf.mxu1 }
  0xdf   : > { %v1241_v9 = vpop.f32.mrf.mxu3 }
  0xe0   : > { %v4056_v54 = vpop.f32.mrf.mxu0 }
  0xe5   : > { %v4060_v5 = vpop.f32.mrf.mxu2 }
  0xe6   : > { %4818 = vst [vmem:[#allocation9_spill] sm:$0xff] %v4060_v5  ;;  %v667_v46 = vpop.f32.mrf.mxu1 }
  0xe7   : > { %v668_v39 = vadd.f32 %v667_v46, %v3944_v20  ;;  %v1243_v61 = vpop.f32.mrf.mxu3 }
  0xe8   : > { %v1609_v59 = vpop.f32.mrf.mxu0 }
  0xe9   : > { %3268 = vmatmul.msk.bf16.gmra.mxu1 %vm462_vm1, %v3821_v0  ;;  %v1465_v0 = vrot.slane %v1463_v53, 2  ;;  %v1472_v53 = vshll.u32 %v3614_v62, 16 }
  0xea   : > { %3292 = vmatmul.msk.bf16.gmra.mxu2 %vm462_vm1, %v783_v23 }
  0xeb   : > { %3408 = vmatmul.msk.bf16.gmra.mxu0 %vm462_vm1, %v1458_v42  ;;  %v784_v42 = vrot.slane %v3749_v6, 1  ;;  %v1466_v25 = vor.u32 %v1465_v0, %v1462_v51 }
  0xec   : > { %3386 = vmatmul.msk.bf16.gmra.mxu3 %vm462_vm1, %v1152_v10 }
  0xed   : > { %v871_v38 = vpop.f32.mrf.mxu2  ;;  %v785_v45 = vsel %vm764_vm2, %v782_v33, %v784_v42  ;;  %v1467_v4 = vsel %vm1369_vm3, %v1457_v11, %v1466_v25 }
  0xee   : > { %v961_v29 = vadd.f32 %v871_v38, %v668_v39  ;;  %v669_v22 = vpop.f32.mrf.mxu1 }
  0xef   : > { %v670_v20 = vadd.f32 %v669_v22, %v3956_v24  ;;  %v1246_v5 = vpop.f32.mrf.mxu3  ;;  %v1153_v24 = vrot.slane %v3615_v31, 1 }
  0xf0   : > { %v1326_v13 = vadd.f32 %v1236_v17, %v961_v29  ;;  %v1611_v63 = vpop.f32.mrf.mxu0 }
  0xf1   : > { %v1154_v11 = vsel %vm764_vm2, %v1151_v49, %v1153_v24  ;;  %v3616_v49 = vld [vmem:[%s3740_s25 + $0x70] sm:$0xff] }
  0xf2   : > { %v4072_v23 = vadd.f32 %v1609_v59, %v1326_v13  ;;  %v1469_v59 = vshrl.u32 %v3614_v62, 16 }
  0xf5   : > { %v873_v46 = vpop.f32.mrf.mxu2 }
  0xf6   : > { %v962_v39 = vadd.f32 %v873_v46, %v670_v20  ;;  %v672_v38 = vpop.f32.mrf.mxu1  ;;  %v1471_v20 = vrot.slane %v1469_v59, 1  ;;  %v786_v46 = vrot.slane %v3752_v7, 1 }
  0xf7   : > { %v673_v51 = vadd.f32 %v672_v38, %v3968_v56  ;;  %v1248_v22 = vpop.f32.mrf.mxu3 }
  0xf8   : > { %v1327_v29 = vadd.f32 %v1238_v12, %v962_v39  ;;  %v1614_v17 = vpop.f32.mrf.mxu0 }
  0xf9   : > { %3269 = vmatmul.msk.bf16.gmra.mxu1 %vm462_vm1, %v3812_v55 }
  0xfa   : > { %3293 = vmatmul.msk.bf16.gmra.mxu2 %vm462_vm1, %v785_v45  ;;  %v4082_v10 = vadd.f32 %v1611_v63, %v1327_v29  ;;  %v1474_v45 = vrot.slane %v1472_v53, 2 }
  0xfb   : > { %3409 = vmatmul.msk.bf16.gmra.mxu0 %vm462_vm1, %v1467_v4 }
  0xfc   : > { %3387 = vmatmul.msk.bf16.gmra.mxu3 %vm462_vm1, %v1154_v11  ;;  %v1475_v62 = vor.u32 %v1474_v45, %v1471_v20 }
  0xfd   : > { %v876_v33 = vpop.f32.mrf.mxu2 }
  0xfe   : > { %v963_v12 = vadd.f32 %v876_v33, %v673_v51  ;;  %v674_v13 = vpop.f32.mrf.mxu1  ;;  %v787_v51 = vsel %vm764_vm2, %v784_v42, %v786_v46  ;;  %v1476_v59 = vsel %vm1369_vm3, %v1466_v25, %v1475_v62 }
  0xff   : > { %v675_v56 = vadd.f32 %v674_v13, %v3982_v3  ;;  %v1251_v38 = vpop.f32.mrf.mxu3  ;;  %v1155_v3 = vrot.slane %v3616_v49, 1  ;;  %v1481_v13 = vshll.u32 %v3615_v31, 16 }
 0x100   : > { %v1328_v0 = vadd.f32 %v1241_v9, %v963_v12  ;;  %v1616_v55 = vpop.f32.mrf.mxu0  ;;  %v1478_v12 = vshrl.u32 %v3615_v31, 16 }
 0x101   : > { %v1156_v25 = vsel %vm764_vm2, %v1153_v24, %v1155_v3  ;;  %v3617_v24 = vld [vmem:[%s3740_s25 + $0x78] sm:$0xff] }
 0x102   : > { %v4088_v63 = vadd.f32 %v1614_v17, %v1328_v0  ;;  %v1480_v45 = vrot.slane %v1478_v12, 1 }
 0x105   : > { %v878_v39 = vpop.f32.mrf.mxu2 }
 0x106   : > { %v964_v29 = vadd.f32 %v878_v39, %v675_v56  ;;  %v677_v4 = vpop.f32.mrf.mxu1  ;;  %v1483_v56 = vrot.slane %v1481_v13, 2  ;;  %v788_v39 = vrot.slane %v3789_v34, 1 }
 0x107   : > { %v678_v53 = vadd.f32 %v677_v4, %v3994_v21  ;;  %v1253_v11 = vpop.f32.mrf.mxu3 }
 0x108   : > { %v1329_v9 = vadd.f32 %v1243_v61, %v964_v29  ;;  %v1619_v33 = vpop.f32.mrf.mxu0  ;;  %v1484_v31 = vor.u32 %v1483_v56, %v1480_v45 }
 0x109   : > { %3270 = vmatmul.msk.bf16.gmra.mxu1 %vm462_vm1, %v3749_v6 }
 0x10a   : > { %3294 = vmatmul.msk.bf16.gmra.mxu2 %vm462_vm1, %v787_v51  ;;  %v4098_v17 = vadd.f32 %v1616_v55, %v1329_v9  ;;  %v1485_v12 = vsel %vm1369_vm3, %v1475_v62, %v1484_v31 }
 0x10b   : > { %3410 = vmatmul.msk.bf16.gmra.mxu0 %vm462_vm1, %v1476_v59  ;;  %v789_v59 = vsel %vm764_vm2, %v786_v46, %v788_v39 }
 0x10c   : > { %3388 = vmatmul.msk.bf16.gmra.mxu3 %vm462_vm1, %v1156_v25 }
 0x10d   : > { %v881_v42 = vpop.f32.mrf.mxu2 }
 0x10e   : > { %v965_v61 = vadd.f32 %v881_v42, %v678_v53  ;;  %v679_v0 = vpop.f32.mrf.mxu1  ;;  %v1487_v42 = vshrl.u32 %v3616_v49, 16 }
 0x10f   : > { %v680_v21 = vadd.f32 %v679_v0, %v4008_v32  ;;  %v1256_v4 = vpop.f32.mrf.mxu3  ;;  %v1157_v32 = vrot.slane %v3617_v24, 1 }
 0x110   : > { %v1330_v20 = vadd.f32 %v1246_v5, %v965_v61  ;;  %v1621_v6 = vpop.f32.mrf.mxu0  ;;  %v1490_v61 = vshll.u32 %v3616_v49, 16  ;;  %v1489_v45 = vrot.slane %v1487_v42, 1 }
 0x111   : > { %v1158_v62 = vsel %vm764_vm2, %v1155_v3, %v1157_v32  ;;  %v3618_v3 = vld [vmem:[%s3740_s25 + $0x80] sm:$0xff] }
 0x112   : > { %v4104_v55 = vadd.f32 %v1619_v33, %v1330_v20  ;;  %v1492_v56 = vrot.slane %v1490_v61, 2  ;;  %v1496_v61 = vshrl.u32 %v3617_v24, 16 }
 0x114   : > { %v1493_v49 = vor.u32 %v1492_v56, %v1489_v45  ;;  %v792_v56 = vrot.slane %v3859_v47, 1 }
 0x115   : > { %v883_v29 = vpop.f32.mrf.mxu2 }
 0x116   : > { %v966_v51 = vadd.f32 %v883_v29, %v680_v21  ;;  %v682_v9 = vpop.f32.mrf.mxu1  ;;  %v790_v21 = vrot.slane %v3824_v1, 1 }
 0x117   : > { %v683_v13 = vadd.f32 %v682_v9, %v4020_v48  ;;  %v1258_v0 = vpop.f32.mrf.mxu3 }
 0x118   : > { %v1331_v5 = vadd.f32 %v1248_v22, %v966_v51  ;;  %v1624_v53 = vpop.f32.mrf.mxu0 }
 0x119   : > { %3271 = vmatmul.msk.bf16.gmra.mxu1 %vm462_vm1, %v3752_v7 }
 0x11a   : > { %3295 = vmatmul.msk.bf16.gmra.mxu2 %vm462_vm1, %v789_v59  ;;  %v4114_v33 = vadd.f32 %v1621_v6, %v1331_v5  ;;  %v791_v5 = vsel %vm764_vm2, %v788_v39, %v790_v21 }
 0x11b   : > { %3411 = vmatmul.msk.bf16.gmra.mxu0 %vm462_vm1, %v1485_v12 }
 0x11c   : > { %3389 = vmatmul.msk.bf16.gmra.mxu3 %vm462_vm1, %v1158_v62 }
 0x11d   : > { %v886_v46 = vpop.f32.mrf.mxu2 }
 0x11e   : > { %v967_v22 = vadd.f32 %v886_v46, %v683_v13  ;;  %v684_v25 = vpop.f32.mrf.mxu1  ;;  %v1494_v13 = vsel %vm1369_vm3, %v1484_v31, %v1493_v49  ;;  %v1499_v46 = vshll.u32 %v3617_v24, 16 }
 0x11f   : > { %v685_v48 = vadd.f32 %v684_v25, %v4034_v2  ;;  %v1261_v51 = vpop.f32.mrf.mxu3  ;;  %v1159_v2 = vrot.slane %v3618_v3, 1 }
 0x120   : > { %v1332_v20 = vadd.f32 %v1251_v38, %v967_v22  ;;  %v1626_v7 = vpop.f32.mrf.mxu0  ;;  %v1501_v45 = vrot.slane %v1499_v46, 2  ;;  %v1508_v46 = vshll.u32 %v3618_v3, 16 }
 0x121   : > { %v1160_v31 = vsel %vm764_vm2, %v1157_v32, %v1159_v2  ;;  %v3619_v32 = vld [vmem:[%s3740_s25 + $0x88] sm:$0xff] }
 0x122   : > { %v4120_v6 = vadd.f32 %v1624_v53, %v1332_v20  ;;  %v1498_v20 = vrot.slane %v1496_v61, 1  ;;  %v1505_v61 = vshrl.u32 %v3618_v3, 16 }
 0x124   : > { %v1502_v24 = vor.u32 %v1501_v45, %v1498_v20  ;;  %v794_v20 = vrot.slane %v3776_v27, 1 }
 0x125   : > { %v888_v29 = vpop.f32.mrf.mxu2 }
 0x126   : > { %v968_v9 = vadd.f32 %v888_v29, %v685_v48  ;;  %v687_v59 = vpop.f32.mrf.mxu1 }
 0x127   : > { %v688_v42 = vadd.f32 %v687_v59, %v4044_v26  ;;  %v1263_v22 = vpop.f32.mrf.mxu3 }
 0x128   : > { %v1333_v38 = vadd.f32 %v1253_v11, %v968_v9  ;;  %v1629_v12 = vpop.f32.mrf.mxu0 }
 0x129   : > { %3272 = vmatmul.msk.bf16.gmra.mxu1 %vm462_vm1, %v3789_v34 }
 0x12a   : > { %3296 = vmatmul.msk.bf16.gmra.mxu2 %vm462_vm1, %v791_v5  ;;  %v4130_v53 = vadd.f32 %v1626_v7, %v1333_v38  ;;  %v793_v5 = vsel %vm764_vm2, %v790_v21, %v792_v56 }
 0x12b   : > { %3412 = vmatmul.msk.bf16.gmra.mxu0 %vm462_vm1, %v1494_v13  ;;  %v1503_v13 = vsel %vm1369_vm3, %v1493_v49, %v1502_v24 }
 0x12c   : > { %3390 = vmatmul.msk.bf16.gmra.mxu3 %vm462_vm1, %v1160_v31  ;;  %v1507_v31 = vrot.slane %v1505_v61, 1 }
 0x12d   : > { %v891_v39 = vpop.f32.mrf.mxu2 }
 0x12e   : > { %v969_v11 = vadd.f32 %v891_v39, %v688_v42  ;;  %v689_v25 = vpop.f32.mrf.mxu1 }
 0x12f   : > { %v690_v26 = vadd.f32 %v689_v25, %v4056_v54  ;;  %v1266_v29 = vpop.f32.mrf.mxu3  ;;  %v1161_v54 = vrot.slane %v3619_v32, 1 }
 0x130   : > { %v1334_v62 = vadd.f32 %v1256_v4, %v969_v11  ;;  %v1631_v34 = vpop.f32.mrf.mxu0 }
 0x131   : > { %v1162_v49 = vsel %vm764_vm2, %v1159_v2, %v1161_v54  ;;  %v3620_v2 = vld [vmem:[%s3740_s25 + $0x90] sm:$0xff] }
 0x132   : > { %v4136_v7 = vadd.f32 %v1629_v12, %v1334_v62  ;;  %v1510_v62 = vrot.slane %v1508_v46, 2 }
 0x134   : > { %v1511_v3 = vor.u32 %v1510_v62, %v1507_v31 }
 0x135   : > { %v893_v48 = vpop.f32.mrf.mxu2 }
 0x136   : > { %v970_v9 = vadd.f32 %v893_v48, %v690_v26  ;;  %v692_v59 = vpop.f32.mrf.mxu1 }
 0x137   : > { %v693_v42 = vadd.f32 %v692_v59, %v3940_v36  ;;  %v1268_v39 = vpop.f32.mrf.mxu3  ;;  %v795_v59 = vsel %vm764_vm2, %v792_v56, %v794_v20  ;;  %v1514_v56 = vshrl.u32 %v3619_v32, 16 }
 0x138   : > { %v1335_v4 = vadd.f32 %v1258_v0, %v970_v9  ;;  %v1634_v38 = vpop.f32.mrf.mxu0 }
 0x139   : > { %3273 = vmatmul.msk.bf16.gmra.mxu1 %vm462_vm1, %v3824_v1 }
 0x13a   : > { %3297 = vmatmul.msk.bf16.gmra.mxu2 %vm462_vm1, %v793_v5  ;;  %v4146_v12 = vadd.f32 %v1631_v34, %v1335_v4  ;;  %v1512_v4 = vsel %vm1369_vm3, %v1502_v24, %v1511_v3 }
 0x13b   : > { %3413 = vmatmul.msk.bf16.gmra.mxu0 %vm462_vm1, %v1503_v13  ;;  %v1517_v13 = vshll.u32 %v3619_v32, 16 }
 0x13c   : > { %3391 = vmatmul.msk.bf16.gmra.mxu3 %vm462_vm1, %v1162_v49  ;;  %v1033_v49 = vld [vmem:[%s3740_s25 + $0x98] sm:$0x1] }
 0x13d   : > { %v896_v21 = vpop.f32.mrf.mxu2 }
 0x13e   : > { %v971_v0 = vadd.f32 %v896_v21, %v693_v42  ;;  %v694_v11 = vpop.f32.mrf.mxu1 }
 0x13f   : > { %v695_v36 = vadd.f32 %v694_v11, %v3953_v44  ;;  %v1271_v26 = vpop.f32.mrf.mxu3  ;;  %v1163_v44 = vrot.slane %v3620_v2, 1  ;;  %v1519_v11 = vrot.slane %v1517_v13, 2 }
 0x140   : > { %v1336_v25 = vadd.f32 %v1261_v51, %v971_v0  ;;  %v1636_v1 = vpop.f32.mrf.mxu0  ;;  %v1516_v0 = vrot.slane %v1514_v56, 1  ;;  %v3666_v56 = vld [vmem:[%s3740_s25 + $0x78] sm:$0xff] }
 0x142   : > { %v4152_v34 = vadd.f32 %v1634_v38, %v1336_v25 }
 0x145   : > { %v898_v45 = vpop.f32.mrf.mxu2 }
 0x146   : > { %v972_v48 = vadd.f32 %v898_v45, %v695_v36  ;;  %v697_v9 = vpop.f32.mrf.mxu1 }
 0x147   : > { %v698_v38 = vadd.f32 %v697_v9, %v3964_v52  ;;  %v4166_v42 = vpop.f32.mrf.mxu3  ;;  %v4174_v52 = vld [vmem:[%s3740_s25 + $0x80] sm:$0xff] }
 0x148   : > { %v1337_v51 = vadd.f32 %v1263_v22, %v972_v48  ;;  %v1639_v5 = vpop.f32.mrf.mxu0  ;;  %v796_v32 = vrot.slane %v4174_v52, 1 }
 0x149   : > { %3274 = vmatmul.msk.bf16.gmra.mxu1 %vm462_vm1, %v3859_v47  ;;  %v1164_v47 = vsel %vm764_vm2, %v1161_v54, %v1163_v44  ;;  %v1520_v54 = vor.u32 %v1519_v11, %v1516_v0  ;;  %v4198_v11 = vld [vmem:[%s3740_s25 + $0x18] sm:$0xff] }
 0x14a   : > { %3298 = vmatmul.msk.bf16.gmra.mxu2 %vm462_vm1, %v795_v59  ;;  %v4162_v27 = vadd.f32 %v1636_v1, %v1337_v51  ;;  %v1110_v1 = vunpack.c.l.b16 %v1033_v49  ;;  %v797_v48 = vsel %vm764_vm2, %v794_v20, %v796_v32 }
 0x14b   : > { %3414 = vmatmul.msk.bf16.gmra.mxu0 %vm462_vm1, %v1512_v4  ;;  %v1975_v4 = vld [vmem:[%s3740_s25 + $0x10] sm:$0xc] }
 0x14c   : > { %3392 = vmatmul.msk.bf16.gmra.mxu3 %vm462_vm1, %v1164_v47  ;;  %v1129_v9 = vpack.c.b16 %v1110_v1, %v1110_v1  ;;  %v2052_v20 = vunpack.c.l.b16 %v1975_v4 }
 0x14d   : > { %v901_v22 = vpop.f32.mrf.mxu2 }
 0x14e   : > { %v973_v24 = vadd.f32 %v901_v22, %v698_v38  ;;  %v699_v61 = vpop.f32.mrf.mxu1  ;;  %v4184_v38 = vld [vmem:[%s3740_s25 + $0x14] sm:$0xf]  ;;  %v1165_v13 = vrot.slane %v1129_v9, 1  ;;  %v1523_v22 = vshrl.u32 %v3620_v2, 16 }
 0x14f   : > { %v700_v31 = vadd.f32 %v699_v61, %v3979_v8  ;;  %v4178_v62 = vpop.f32.mrf.mxu3 }
 0x150   : > { %v1338_v46 = vadd.f32 %v1266_v29, %v973_v24  ;;  %v1641_v21 = vpop.f32.mrf.mxu0  ;;  %v1526_v24 = vshll.u32 %v3620_v2, 16 }
 0x152   : > { %v4171_v25 = vadd.f32 %v1639_v5, %v1338_v46  ;;  %v1521_v5 = vsel %vm1369_vm3, %v1511_v3, %v1520_v54 }
 0x155   : > { %v903_v29 = vpop.f32.mrf.mxu2 }
 0x156   : > { %v974_v36 = vadd.f32 %v903_v29, %v700_v31  ;;  %v702_v45 = vpop.f32.mrf.mxu1  ;;  %v1525_v29 = vrot.slane %v1523_v22, 1 }
 0x157   : > { %v703_v3 = vadd.f32 %v702_v45, %v3990_v16  ;;  %v4194_v47 = vpop.f32.mrf.mxu3  ;;  %v1362_v16 = vld [vmem:[%s3740_s25 + $0x98] sm:$0x3]  ;;  %v4206_v45 = vld [vmem:[%s3740_s25 + $0x88] sm:$0xff] }
 0x158   : > { %v1339_v59 = vadd.f32 %v1268_v39, %v974_v36  ;;  %v1644_v51 = vpop.f32.mrf.mxu0  ;;  %v4810_v39 = vunpack.c.l.b16 %v4184_v38  ;;  %v1528_v36 = vrot.slane %v1526_v24, 2  ;;  %v798_v2 = vrot.slane %v4206_v45, 1 }
 0x159   : > { %3275 = vmatmul.msk.bf16.gmra.mxu1 %vm462_vm1, %v3666_v56  ;;  %v1367_v56 = vunpack.c.l.b16 %v1362_v16 }
 0x15a   : > { %3299 = vmatmul.msk.bf16.gmra.mxu2 %vm462_vm1, %v797_v48  ;;  %v4189_v8 = vadd.f32 %v1641_v21, %v1339_v59  ;;  %v1166_v21 = vsel %vm764_vm2, %v1163_v44, %v1165_v13  ;;  %v4202_v49 = vpack.c.b16 %v4810_v39, %v2052_v20  ;;  %v2357_v59 = vshrl.u32 %v4198_v11, 16 }
 0x15b   : > { %3415 = vmatmul.msk.bf16.gmra.mxu0 %vm462_vm1, %v1521_v5  ;;  %v1529_v4 = vor.u32 %v1528_v36, %v1525_v29  ;;  %v799_v22 = vsel %vm764_vm2, %v796_v32, %v798_v2 }
 0x15c   : > { %4819 = vst [vmem:[#allocation10_spill] sm:$0xff] %v4189_v8  ;;  %3393 = vmatmul.msk.bf16.gmra.mxu3 %vm462_vm1, %v1166_v21  ;;  %v2349_v44 = vshrl.u32 %v4202_v49, 16  ;;  %v2352_v9 = vshll.u32 %v4202_v49, 16  ;;  %v4222_v8 = vpack.c.b16 %v1367_v56, %v1367_v56  ;;  %v800_v56 = vrot.slane %v3848_v35, 1 }
 0x15d   : > { %v906_v61 = vpop.f32.mrf.mxu2 }
 0x15e   : > { %v975_v46 = vadd.f32 %v906_v61, %v703_v3  ;;  %v704_v0 = vpop.f32.mrf.mxu1  ;;  %v2351_v24 = vrot.slane %v2349_v44, 2  ;;  %v2354_v61 = vrot.slane %v2352_v9, 3 }
 0x15f   : > { %v705_v5 = vadd.f32 %v704_v0, %v4005_v30  ;;  %v4217_v20 = vpop.f32.mrf.mxu3 }
 0x160   : > { %v1340_v1 = vadd.f32 %v1271_v26, %v975_v46  ;;  %v1646_v31 = vpop.f32.mrf.mxu0  ;;  %v2360_v26 = vshll.u32 %v4198_v11, 16  ;;  %v2359_v46 = vrot.slane %v2357_v59, 2  ;;  %v2355_v32 = vor.u32 %v2354_v61, %v2351_v24 }
 0x162   : > { %v4210_v48 = vadd.f32 %v1644_v51, %v1340_v1  ;;  %v2362_v21 = vrot.slane %v2360_v26, 3 }
 0x164   : > { %4820 = vst [vmem:[#allocation11_spill] sm:$0xff] %v4210_v48  ;;  %v1530_v48 = vsel %vm1369_vm3, %v1520_v54, %v1529_v4  ;;  %v2363_v0 = vor.u32 %v2362_v21, %v2359_v46  ;;  %v1535_v54 = vshll.u32 %v4222_v8, 16  ;;  %v801_v21 = vsel %vm764_vm2, %v798_v2, %v800_v56  ;;  %v4267_v56 = vld [vmem:[%s3740_s25 + $0x28] sm:$0xff] }
 0x165   : > { %v908_v13 = vpop.f32.mrf.mxu2 }
 0x166   : > { %v976_v3 = vadd.f32 %v908_v13, %v705_v5  ;;  %v707_v51 = vpop.f32.mrf.mxu1  ;;  %v2364_v9 = vsel %vm2347_vm4, %v2355_v32, %v2363_v0 }
 0x167   : > { %v708_v29 = vadd.f32 %v707_v51, %v4016_v40  ;;  %v4233_v16 = vpop.f32.mrf.mxu3  ;;  %v1537_v40 = vrot.slane %v1535_v54, 2  ;;  %v2713_v54 = vld [vmem:[%s3740_s25 + $0x10] sm:$0x8] }
 0x168   : > { %v1341_v1 = vadd.f32 %v4166_v42, %v976_v3  ;;  %v1649_v39 = vpop.f32.mrf.mxu0  ;;  %v1532_v42 = vshrl.u32 %v4222_v8, 16 }
 0x169   : > { %3276 = vmatmul.msk.bf16.gmra.mxu1 %vm462_vm1, %v4174_v52 }
 0x16a   : > { %3300 = vmatmul.msk.bf16.gmra.mxu2 %vm462_vm1, %v799_v22  ;;  %v4227_v30 = vadd.f32 %v1646_v31, %v1341_v1  ;;  %v4237_v31 = vld [vmem:[%s3740_s25 + $0x20] sm:$0xff]  ;;  %v1534_v26 = vrot.slane %v1532_v42, 1  ;;  %v1735_v1 = vld [vmem:[%s3740_s25 + $0x8] sm:$0xc] }
 0x16b   : > { %3416 = vmatmul.msk.bf16.gmra.mxu0 %vm462_vm1, %v1530_v48  ;;  %v2366_v13 = vshrl.u32 %v4237_v31, 16  ;;  %v2369_v3 = vshll.u32 %v4237_v31, 16 }
 0x16c   : > { %3540 = vmatmul.msk.bf16.vlgmr.msra.gmra.mxu3 %vm462_vm1, %v2364_v9  ;;  %v1538_v51 = vor.u32 %v1537_v40, %v1534_v26 }
 0x16d   : > { %v911_v36 = vpop.f32.mrf.mxu2  ;;  %v2371_v32 = vrot.slane %v2369_v3, 3  ;;  %v4822_v3 = vunpack.c.l.b16 %v4184_v38 }
 0x16e   : > { %v977_v44 = vadd.f32 %v911_v36, %v708_v29  ;;  %v709_v52 = vpop.f32.mrf.mxu1  ;;  %v1539_v42 = vsel %vm1369_vm3, %v1529_v4, %v1538_v51  ;;  %v3668_v51 = vld [vmem:[%s3740_s25 + $0x10] sm:$0xff] }
 0x16f   : > { %v710_v22 = vadd.f32 %v709_v52, %v4031_v60  ;;  %v1740_v60 = vunpack.c.l.b16 %v1735_v1  ;;  %v2722_v1 = vrot.slane %v4198_v11, 3 }
 0x170   : > { %v1342_v48 = vadd.f32 %v4178_v62, %v977_v44  ;;  %v1651_v59 = vpop.f32.mrf.mxu0  ;;  %v4247_v62 = vpop.f32.mrf.mxu3 }
 0x172   : > { %v4241_v5 = vadd.f32 %v1649_v39, %v1342_v48  ;;  %v2368_v39 = vrot.slane %v2366_v13, 2  ;;  %v4821_v48 = vunpack.c.l.b16 %v3870_v58  ;;  %v2108_v58 = vrot.slane %v4202_v49, 2 }
 0x174   : > { %v2372_v2 = vor.u32 %v2371_v32, %v2368_v39  ;;  %v1741_v26 = vpack.c.b16 %v4821_v48, %v1740_v60 }
 0x175   : > { %v913_v24 = vpop.f32.mrf.mxu2 }
 0x176   : > { %v978_v61 = vadd.f32 %v913_v24, %v710_v22  ;;  %v712_v46 = vpop.f32.mrf.mxu1  ;;  %v2373_v40 = vsel %vm2347_vm4, %v2363_v0, %v2372_v2  ;;  %v1744_v24 = vrot.slane %v3668_v51, 2  ;;  %v2375_v0 = vshrl.u32 %v4267_v56, 16 }
 0x177   : > { %v713_v44 = vadd.f32 %v712_v46, %v4040_v19  ;;  %v1743_v19 = vrot.slane %v1741_v26, 2  ;;  %v2109_v46 = vrot.slane %v4198_v11, 2 }
 0x178   : > { %v1343_v35 = vadd.f32 %v4194_v47, %v978_v61  ;;  %v1654_v29 = vpop.f32.mrf.mxu0  ;;  %v2718_v47 = vunpack.c.l.b16 %v2713_v54  ;;  %v4261_v9 = vpop.f32.mrf.mxu3  ;;  %v2377_v54 = vrot.slane %v2375_v0, 2 }
 0x179   : > { %3277 = vmatmul.msk.bf16.gmra.mxu1 %vm462_vm1, %v4206_v45  ;;  %v2110_v49 = vsel %vm1742_vm5, %v2108_v58, %v2109_v46  ;;  %v2111_v58 = vrot.slane %v4237_v31, 2 }
 0x17a   : > { %3301 = vmatmul.msk.bf16.gmra.mxu2 %vm462_vm1, %v801_v21  ;;  %v4257_v36 = vadd.f32 %v1651_v59, %v1343_v35  ;;  %v2719_v22 = vpack.c.b16 %v4822_v3, %v2718_v47  ;;  %v2378_v21 = vshll.u32 %v4267_v56, 16 }
 0x17b   : > { %3417 = vmatmul.msk.bf16.gmra.mxu0 %vm462_vm1, %v1539_v42  ;;  %v1745_v42 = vsel %vm1742_vm5, %v1743_v19, %v1744_v24  ;;  %v3669_v19 = vld [vmem:[%s3740_s25 + $0x18] sm:$0xff] }
 0x17c   : > { %3541 = vmatmul.msk.bf16.gmra.mxu3 %vm462_vm1, %v2373_v40  ;;  %v2721_v38 = vrot.slane %v2719_v22, 3  ;;  %v2380_v60 = vrot.slane %v2378_v21, 3  ;;  %v1746_v51 = vrot.slane %v3669_v19, 2 }
 0x17d   : > { %v916_v52 = vpop.f32.mrf.mxu2 }
 0x17e   : > { %v979_v4 = vadd.f32 %v916_v52, %v713_v44  ;;  %v714_v45 = vpop.f32.mrf.mxu1  ;;  %v2381_v52 = vor.u32 %v2380_v60, %v2377_v54 }
 0x180   : > { %v1344_v59 = vadd.f32 %v4217_v20, %v979_v4  ;;  %v1656_v13 = vpop.f32.mrf.mxu0  ;;  %v715_v20 = vadd.f32 %v714_v45, %v4053_v37  ;;  %v1291_v32 = vpop.f32.mrf.mxu3  ;;  %v2723_v37 = vsel %vm2720_vm6, %v2721_v38, %v2722_v1 }
 0x182   : > { %v4274_v61 = vadd.f32 %v1654_v29, %v1344_v59  ;;  %v4294_v59 = vld [vmem:[%s3740_s25 + $0x30] sm:$0xff] }
 0x183   : > { %v2387_v0 = vshll.u32 %v4294_v59, 16 }
 0x185   : > { %v918_v39 = vpop.f32.mrf.mxu2 }
 0x186   : > { %v980_v35 = vadd.f32 %v918_v39, %v715_v20  ;;  %v717_v29 = vpop.f32.mrf.mxu1 }
 0x187   : > { %v718_v4 = vadd.f32 %v717_v29, %v3951_v43  ;;  %v2384_v43 = vshrl.u32 %v4294_v59, 16  ;;  %v2112_v29 = vsel %vm1742_vm5, %v2109_v46, %v2111_v58 }
 0x188   : > { %v1345_v44 = vadd.f32 %v4233_v16, %v980_v35  ;;  %v1659_v47 = vpop.f32.mrf.mxu0  ;;  %v1293_v26 = vpop.f32.mrf.mxu3  ;;  %v2382_v16 = vsel %vm2347_vm4, %v2372_v2, %v2381_v52  ;;  %v2724_v2 = vrot.slane %v4237_v31, 3  ;;  %v1747_v35 = vsel %vm1742_vm5, %v1744_v24, %v1746_v51 }
 0x189   : > { %3424 = vmatmul.msk.bf16.vlgmr.msra.gmra.mxu1 %vm462_vm1, %v1745_v42  ;;  %v2386_v42 = vrot.slane %v2384_v43, 2 }
 0x18a   : > { %3516 = vmatmul.msk.bf16.vlgmr.msra.gmra.mxu2 %vm462_vm1, %v2110_v49  ;;  %v4288_v11 = vadd.f32 %v1656_v13, %v1345_v44  ;;  %v2389_v49 = vrot.slane %v2387_v0, 3  ;;  %v2725_v44 = vsel %vm2720_vm6, %v2722_v1, %v2724_v2 }
 0x18b   : > { %3564 = vmatmul.msk.bf16.vlgmr.msra.gmra.mxu0 %vm462_vm1, %v2723_v37 }
 0x18c   : > { %3542 = vmatmul.msk.bf16.gmra.mxu3 %vm462_vm1, %v2382_v16  ;;  %v2390_v31 = vor.u32 %v2389_v49, %v2386_v42  ;;  %v3670_v16 = vld [vmem:[%s3740_s25 + $0x20] sm:$0xff] }
 0x18d   : > { %v921_v48 = vpop.f32.mrf.mxu2 }
 0x18e   : > { %v981_v45 = vadd.f32 %v921_v48, %v718_v4  ;;  %v719_v40 = vpop.f32.mrf.mxu1  ;;  %v4318_v48 = vld [vmem:[%s3740_s25 + $0x38] sm:$0xff] }
 0x18f   : > { %v720_v21 = vadd.f32 %v719_v40, %v3960_v50  ;;  %v2396_v19 = vshll.u32 %v4318_v48, 16 }
 0x190   : > { %v1346_v3 = vadd.f32 %v4247_v62, %v981_v45  ;;  %v1661_v22 = vpop.f32.mrf.mxu0  ;;  %v1296_v38 = vpop.f32.mrf.mxu3 }
 0x192   : > { %v4298_v13 = vadd.f32 %v1659_v47, %v1346_v3  ;;  %v1748_v3 = vrot.slane %v3670_v16, 2 }
 0x195   : > { %v923_v20 = vpop.f32.mrf.mxu2 }
 0x196   : > { %v982_v62 = vadd.f32 %v923_v20, %v720_v21  ;;  %v722_v39 = vpop.f32.mrf.mxu1 }
 0x197   : > { %v723_v24 = vadd.f32 %v722_v39, %v3975_v18  ;;  %v2393_v18 = vshrl.u32 %v4318_v48, 16 }
 0x198   : > { %v1347_v54 = vadd.f32 %v4261_v9, %v982_v62  ;;  %v1664_v60 = vpop.f32.mrf.mxu0  ;;  %v1298_v47 = vpop.f32.mrf.mxu3  ;;  %v2391_v9 = vsel %vm2347_vm4, %v2381_v52, %v2390_v31  ;;  %v2726_v52 = vrot.slane %v4267_v56, 3  ;;  %v1749_v62 = vsel %vm1742_vm5, %v1746_v51, %v1748_v3 }
 0x199   : > { %3425 = vmatmul.msk.bf16.gmra.mxu1 %vm462_vm1, %v1747_v35  ;;  %v2395_v35 = vrot.slane %v2393_v18, 2 }
 0x19a   : > { %3517 = vmatmul.msk.bf16.gmra.mxu2 %vm462_vm1, %v2112_v29  ;;  %v4312_v50 = vadd.f32 %v1661_v22, %v1347_v54  ;;  %v2113_v22 = vrot.slane %v4267_v56, 2  ;;  %v2398_v29 = vrot.slane %v2396_v19, 3  ;;  %v2727_v54 = vsel %vm2720_vm6, %v2724_v2, %v2726_v52 }
 0x19b   : > { %3565 = vmatmul.msk.bf16.gmra.mxu0 %vm462_vm1, %v2725_v44 }
 0x19c   : > { %3543 = vmatmul.msk.bf16.gmra.mxu3 %vm462_vm1, %v2391_v9  ;;  %v2114_v39 = vsel %vm1742_vm5, %v2111_v58, %v2113_v22  ;;  %v2399_v56 = vor.u32 %v2398_v29, %v2395_v35  ;;  %v3671_v9 = vld [vmem:[%s3740_s25 + $0x28] sm:$0xff] }
 0x19d   : > { %v926_v46 = vpop.f32.mrf.mxu2 }
 0x19e   : > { %v983_v37 = vadd.f32 %v926_v46, %v723_v24  ;;  %v724_v4 = vpop.f32.mrf.mxu1  ;;  %v4340_v46 = vld [vmem:[%s3740_s25 + $0x40] sm:$0xff] }
 0x19f   : > { %v725_v43 = vadd.f32 %v724_v4, %v3986_v15  ;;  %v2405_v16 = vshll.u32 %v4340_v46, 16 }
 0x1a0   : > { %v1348_v1 = vadd.f32 %v1291_v32, %v983_v37  ;;  %v1666_v45 = vpop.f32.mrf.mxu0  ;;  %v1301_v21 = vpop.f32.mrf.mxu3 }
 0x1a2   : > { %v4321_v40 = vadd.f32 %v1664_v60, %v1348_v1  ;;  %v1750_v1 = vrot.slane %v3671_v9, 2 }
 0x1a5   : > { %v928_v0 = vpop.f32.mrf.mxu2 }
 0x1a6   : > { %v984_v32 = vadd.f32 %v928_v0, %v725_v43  ;;  %v727_v20 = vpop.f32.mrf.mxu1 }
 0x1a7   : > { %v728_v51 = vadd.f32 %v727_v20, %v4001_v28  ;;  %v2402_v28 = vshrl.u32 %v4340_v46, 16 }
 0x1a8   : > { %v1349_v42 = vadd.f32 %v1293_v26, %v984_v32  ;;  %v1669_v49 = vpop.f32.mrf.mxu0  ;;  %v1303_v60 = vpop.f32.mrf.mxu3  ;;  %v2400_v26 = vsel %vm2347_vm4, %v2390_v31, %v2399_v56  ;;  %v2728_v31 = vrot.slane %v4294_v59, 3  ;;  %v1751_v32 = vsel %vm1742_vm5, %v1748_v3, %v1750_v1 }
 0x1a9   : > { %3426 = vmatmul.msk.bf16.gmra.mxu1 %vm462_vm1, %v1749_v62  ;;  %v2404_v62 = vrot.slane %v2402_v28, 2 }
 0x1aa   : > { %3518 = vmatmul.msk.bf16.gmra.mxu2 %vm462_vm1, %v2114_v39  ;;  %v4334_v15 = vadd.f32 %v1666_v45, %v1349_v42  ;;  %v2115_v45 = vrot.slane %v4294_v59, 2  ;;  %v2407_v39 = vrot.slane %v2405_v16, 3  ;;  %v2729_v42 = vsel %vm2720_vm6, %v2726_v52, %v2728_v31 }
 0x1ab   : > { %3566 = vmatmul.msk.bf16.gmra.mxu0 %vm462_vm1, %v2727_v54 }
 0x1ac   : > { %3544 = vmatmul.msk.bf16.gmra.mxu3 %vm462_vm1, %v2400_v26  ;;  %v2116_v20 = vsel %vm1742_vm5, %v2113_v22, %v2115_v45  ;;  %v2408_v59 = vor.u32 %v2407_v39, %v2404_v62  ;;  %v3672_v26 = vld [vmem:[%s3740_s25 + $0x30] sm:$0xff] }
 0x1ad   : > { %v931_v58 = vpop.f32.mrf.mxu2 }
 0x1ae   : > { %v985_v44 = vadd.f32 %v931_v58, %v728_v51  ;;  %v729_v24 = vpop.f32.mrf.mxu1  ;;  %v4362_v58 = vld [vmem:[%s3740_s25 + $0x48] sm:$0xff] }
 0x1af   : > { %v730_v18 = vadd.f32 %v729_v24, %v4012_v41  ;;  %v2414_v9 = vshll.u32 %v4362_v58, 16 }
 0x1b0   : > { %v1350_v2 = vadd.f32 %v1296_v38, %v985_v44  ;;  %v1671_v37 = vpop.f32.mrf.mxu0  ;;  %v1306_v43 = vpop.f32.mrf.mxu3 }
 0x1b2   : > { %v4343_v4 = vadd.f32 %v1669_v49, %v1350_v2  ;;  %v1752_v2 = vrot.slane %v3672_v26, 2  ;;  %v2119_v26 = vrot.slane %v4340_v46, 2 }
 0x1b5   : > { %v933_v19 = vpop.f32.mrf.mxu2 }
 0x1b6   : > { %v986_v38 = vadd.f32 %v933_v19, %v730_v18  ;;  %v732_v0 = vpop.f32.mrf.mxu1 }
 0x1b7   : > { %v733_v3 = vadd.f32 %v732_v0, %v4027_v57  ;;  %v2411_v57 = vshrl.u32 %v4362_v58, 16 }
 0x1b8   : > { %v1351_v35 = vadd.f32 %v1298_v47, %v986_v38  ;;  %v1674_v29 = vpop.f32.mrf.mxu0  ;;  %v1308_v49 = vpop.f32.mrf.mxu3  ;;  %v2409_v47 = vsel %vm2347_vm4, %v2399_v56, %v2408_v59  ;;  %v2730_v56 = vrot.slane %v4318_v48, 3  ;;  %v1753_v38 = vsel %vm1742_vm5, %v1750_v1, %v1752_v2  ;;  %v4823_v1 = vld [vmem:[#allocation8_spill] sm:$0xff] }
 0x1b9   : > { %3427 = vmatmul.msk.bf16.gmra.mxu1 %vm462_vm1, %v1751_v32  ;;  %v2413_v32 = vrot.slane %v2411_v57, 2 }
 0x1ba   : > { %3519 = vmatmul.msk.bf16.gmra.mxu2 %vm462_vm1, %v2116_v20  ;;  %v4356_v41 = vadd.f32 %v1671_v37, %v1351_v35  ;;  %v2117_v37 = vrot.slane %v4318_v48, 2  ;;  %v2416_v20 = vrot.slane %v2414_v9, 3  ;;  %v2731_v35 = vsel %vm2720_vm6, %v2728_v31, %v2730_v56 }
 0x1bb   : > { %3567 = vmatmul.msk.bf16.gmra.mxu0 %vm462_vm1, %v2729_v42 }
 0x1bc   : > { %3545 = vmatmul.msk.bf16.gmra.mxu3 %vm462_vm1, %v2409_v47  ;;  %v2118_v0 = vsel %vm1742_vm5, %v2115_v45, %v2117_v37  ;;  %v2417_v48 = vor.u32 %v2416_v20, %v2413_v32  ;;  %v2120_v32 = vsel %vm1742_vm5, %v2117_v37, %v2119_v26 }
 0x1bd   : > { %v936_v22 = vpop.f32.mrf.mxu2 }
 0x1be   : > { %v987_v54 = vadd.f32 %v936_v22, %v733_v3  ;;  %v734_v51 = vpop.f32.mrf.mxu1 }
 0x1bf   : > { %v735_v28 = vadd.f32 %v734_v51, %v4038_v14 }
 0x1c0   : > { %v1352_v52 = vadd.f32 %v1301_v21, %v987_v54  ;;  %v1676_v44 = vpop.f32.mrf.mxu0  ;;  %v1311_v18 = vpop.f32.mrf.mxu3  ;;  %v4384_v54 = vld [vmem:[%s3740_s25 + $0x50] sm:$0xff] }
 0x1c1   : > { %v2420_v57 = vshrl.u32 %v4384_v54, 16  ;;  %v2423_v9 = vshll.u32 %v4384_v54, 16 }
 0x1c2   : > { %v4365_v24 = vadd.f32 %v1674_v29, %v1352_v52  ;;  %v3673_v52 = vld [vmem:[%s3740_s25 + $0x38] sm:$0xff] }
 0x1c3   : > { %v2422_v20 = vrot.slane %v2420_v57, 2 }
 0x1c5   : > { %v938_v16 = vpop.f32.mrf.mxu2 }
 0x1c6   : > { %v988_v21 = vadd.f32 %v938_v16, %v735_v28  ;;  %v737_v19 = vpop.f32.mrf.mxu1  ;;  %v4824_v28 = vld [vmem:[#allocation9_spill] sm:$0xff] }
 0x1c7   : > { %v738_v29 = vadd.f32 %v737_v19, %v4823_v1 }
 0x1c8   : > { %v1353_v62 = vadd.f32 %v1303_v60, %v988_v21  ;;  %v1679_v39 = vpop.f32.mrf.mxu0  ;;  %v1313_v42 = vpop.f32.mrf.mxu3  ;;  %v2418_v60 = vsel %vm2347_vm4, %v2408_v59, %v2417_v48  ;;  %v2732_v59 = vrot.slane %v4340_v46, 3 }
 0x1c9   : > { %3428 = vmatmul.msk.bf16.gmra.mxu1 %vm462_vm1, %v1753_v38 }
 0x1ca   : > { %3520 = vmatmul.msk.bf16.gmra.mxu2 %vm462_vm1, %v2118_v0  ;;  %v4378_v14 = vadd.f32 %v1676_v44, %v1353_v62  ;;  %v1754_v44 = vrot.slane %v3673_v52, 2  ;;  %v2425_v62 = vrot.slane %v2423_v9, 3  ;;  %v2733_v1 = vsel %vm2720_vm6, %v2730_v56, %v2732_v59 }
 0x1cb   : > { %3568 = vmatmul.msk.bf16.gmra.mxu0 %vm462_vm1, %v2731_v35 }
 0x1cc   : > { %3546 = vmatmul.msk.bf16.gmra.mxu3 %vm462_vm1, %v2418_v60  ;;  %v1755_v0 = vsel %vm1742_vm5, %v1752_v2, %v1754_v44  ;;  %v4825_v2 = vld [vmem:[#allocation2_spill] sm:$0xff] }
 0x1cd   : > { %v941_v45 = vpop.f32.mrf.mxu2 }
 0x1ce   : > { %v989_v3 = vadd.f32 %v941_v45, %v738_v29  ;;  %v739_v22 = vpop.f32.mrf.mxu1  ;;  %v2426_v29 = vor.u32 %v2425_v62, %v2422_v20 }
 0x1cf   : > { %v740_v16 = vadd.f32 %v739_v22, %v4824_v28  ;;  %v2121_v28 = vrot.slane %v4362_v58, 2 }
 0x1d0   : > { %v1354_v31 = vadd.f32 %v1306_v43, %v989_v3  ;;  %v1681_v51 = vpop.f32.mrf.mxu0  ;;  %v1316_v19 = vpop.f32.mrf.mxu3 }
 0x1d2   : > { %v4387_v47 = vadd.f32 %v1679_v39, %v1354_v31  ;;  %v4406_v31 = vld [vmem:[%s3740_s25 + $0x58] sm:$0xff] }
 0x1d5   : > { %v943_v21 = vpop.f32.mrf.mxu2 }
 0x1d6   : > { %v990_v43 = vadd.f32 %v943_v21, %v740_v16  ;;  %v742_v38 = vpop.f32.mrf.mxu1  ;;  %v2429_v16 = vshrl.u32 %v4406_v31, 16  ;;  %v2432_v21 = vshll.u32 %v4406_v31, 16 }
 0x1d7   : > { %v743_v45 = vadd.f32 %v742_v38, %v4825_v2 }
 0x1d8   : > { %v1355_v39 = vadd.f32 %v1308_v49, %v990_v43  ;;  %v1684_v35 = vpop.f32.mrf.mxu0  ;;  %v1318_v3 = vpop.f32.mrf.mxu3  ;;  %v2427_v49 = vsel %vm2347_vm4, %v2417_v48, %v2426_v29  ;;  %v4826_v43 = vld [vmem:[#allocation3_spill] sm:$0xff]  ;;  %v2734_v48 = vrot.slane %v4362_v58, 3 }
 0x1d9   : > { %3429 = vmatmul.msk.bf16.gmra.mxu1 %vm462_vm1, %v1755_v0 }
 0x1da   : > { %3521 = vmatmul.msk.bf16.gmra.mxu2 %vm462_vm1, %v2120_v32  ;;  %v4400_v46 = vadd.f32 %v1681_v51, %v1355_v39  ;;  %v3674_v51 = vld [vmem:[%s3740_s25 + $0x40] sm:$0xff]  ;;  %v2122_v39 = vsel %vm1742_vm5, %v2119_v26, %v2121_v28 }
 0x1db   : > { %3569 = vmatmul.msk.bf16.gmra.mxu0 %vm462_vm1, %v2733_v1  ;;  %v1756_v9 = vrot.slane %v3674_v51, 2  ;;  %v2434_v1 = vrot.slane %v2432_v21, 3 }
 0x1dc   : > { %3547 = vmatmul.msk.bf16.gmra.mxu3 %vm462_vm1, %v2427_v49 }
 0x1dd   : > { %v946_v37 = vpop.f32.mrf.mxu2  ;;  %v1757_v62 = vsel %vm1742_vm5, %v1754_v44, %v1756_v9  ;;  %v4827_v44 = vld [vmem:[#allocation4_spill] sm:$0xff] }
 0x1de   : > { %v991_v22 = vadd.f32 %v946_v37, %v743_v45  ;;  %v744_v60 = vpop.f32.mrf.mxu1  ;;  %v2735_v37 = vsel %vm2720_vm6, %v2732_v59, %v2734_v48 }
 0x1df   : > { %v745_v38 = vadd.f32 %v744_v60, %v4826_v43 }
 0x1e0   : > { %v1356_v56 = vadd.f32 %v1311_v18, %v991_v22  ;;  %v1686_v52 = vpop.f32.mrf.mxu0  ;;  %v1321_v32 = vpop.f32.mrf.mxu3 }
 0x1e2   : > { %v4409_v57 = vadd.f32 %v1684_v35, %v1356_v56  ;;  %v2431_v35 = vrot.slane %v2429_v16, 2  ;;  %v4428_v16 = vld [vmem:[%s3740_s25 + $0x60] sm:$0xff] }
 0x1e4   : > { %v2435_v22 = vor.u32 %v2434_v1, %v2431_v35 }
 0x1e5   : > { %v948_v0 = vpop.f32.mrf.mxu2 }
 0x1e6   : > { %v992_v18 = vadd.f32 %v948_v0, %v745_v38  ;;  %v747_v20 = vpop.f32.mrf.mxu1  ;;  %v2123_v0 = vrot.slane %v4384_v54, 2 }
 0x1e7   : > { %v748_v60 = vadd.f32 %v747_v20, %v4827_v44  ;;  %v2441_v20 = vshll.u32 %v4428_v16, 16 }
 0x1e8   : > { %v1357_v2 = vadd.f32 %v1313_v42, %v992_v18  ;;  %v1689_v45 = vpop.f32.mrf.mxu0  ;;  %v1323_v49 = vpop.f32.mrf.mxu3  ;;  %v2436_v42 = vsel %vm2347_vm4, %v2426_v29, %v2435_v22  ;;  %v2438_v18 = vshrl.u32 %v4428_v16, 16  ;;  %v2736_v29 = vrot.slane %v4384_v54, 3 }
 0x1e9   : > { %3430 = vmatmul.msk.bf16.gmra.mxu1 %vm462_vm1, %v1757_v62  ;;  %v4828_v62 = vld [vmem:[#allocation5_spill] sm:$0xff] }
 0x1ea   : > { %3522 = vmatmul.msk.bf16.gmra.mxu2 %vm462_vm1, %v2122_v39  ;;  %v4422_v58 = vadd.f32 %v1686_v52, %v1357_v2  ;;  %v3675_v52 = vld [vmem:[%s3740_s25 + $0x48] sm:$0xff]  ;;  %v2440_v44 = vrot.slane %v2438_v18, 2 }
 0x1eb   : > { %3570 = vmatmul.msk.bf16.gmra.mxu0 %vm462_vm1, %v2735_v37  ;;  %v1758_v38 = vrot.slane %v3675_v52, 2 }
 0x1ec   : > { %3548 = vmatmul.msk.bf16.gmra.mxu3 %vm462_vm1, %v2436_v42  ;;  %v2737_v42 = vsel %vm2720_vm6, %v2734_v48, %v2736_v29  ;;  %v4452_v48 = vld [vmem:[%s3740_s25 + $0x68] sm:$0xff] }
 0x1ed   : > { %v951_v26 = vpop.f32.mrf.mxu2  ;;  %v1759_v37 = vsel %vm1742_vm5, %v1756_v9, %v1758_v38  ;;  %v4829_v9 = vld [vmem:[#allocation6_spill] sm:$0xff] }
 0x1ee   : > { %v993_v56 = vadd.f32 %v951_v26, %v748_v60  ;;  %v749_v51 = vpop.f32.mrf.mxu1  ;;  %v2443_v60 = vrot.slane %v2441_v20, 3 }
 0x1ef   : > { %v750_v39 = vadd.f32 %v749_v51, %v4828_v62 }
 0x1f0   : > { %v1358_v59 = vadd.f32 %v1316_v19, %v993_v56  ;;  %v1691_v21 = vpop.f32.mrf.mxu0  ;;  %v2587_v1 = vpop.f32.mrf.mxu3  ;;  %v2444_v51 = vor.u32 %v2443_v60, %v2440_v44  ;;  %v4830_v44 = vld [vmem:[#allocation7_spill] sm:$0xff] }
 0x1f2   : > { %v4431_v43 = vadd.f32 %v1689_v45, %v1358_v59  ;;  %v2124_v45 = vsel %vm1742_vm5, %v2121_v28, %v2123_v0  ;;  %v2445_v20 = vsel %vm2347_vm4, %v2435_v22, %v2444_v51  ;;  %v2738_v22 = vrot.slane %v4406_v31, 3 }
 0x1f5   : > { %v953_v35 = vpop.f32.mrf.mxu2 }
 0x1f6   : > { %v994_v19 = vadd.f32 %v953_v35, %v750_v39  ;;  %v752_v2 = vpop.f32.mrf.mxu1  ;;  %v3676_v35 = vld [vmem:[%s3740_s25 + $0x50] sm:$0xff] }
 0x1f7   : > { %v753_v59 = vadd.f32 %v752_v2, %v4829_v9  ;;  %v2447_v2 = vshrl.u32 %v4452_v48, 16 }
 0x1f8   : > { %v1359_v26 = vadd.f32 %v1318_v3, %v994_v19  ;;  %v1694_v56 = vpop.f32.mrf.mxu0  ;;  %v4448_v52 = vpop.f32.mrf.mxu3  ;;  %v1760_v19 = vrot.slane %v3676_v35, 2  ;;  %v2739_v35 = vsel %vm2720_vm6, %v2736_v29, %v2738_v22 }
 0x1f9   : > { %3431 = vmatmul.msk.bf16.gmra.mxu1 %vm462_vm1, %v1759_v37  ;;  %v2125_v37 = vrot.slane %v4406_v31, 2 }
 0x1fa   : > { %3523 = vmatmul.msk.bf16.gmra.mxu2 %vm462_vm1, %v2124_v45  ;;  %v4444_v54 = vadd.f32 %v1691_v21, %v1359_v26  ;;  %v2450_v45 = vshll.u32 %v4452_v48, 16 }
 0x1fb   : > { %3571 = vmatmul.msk.bf16.gmra.mxu0 %vm462_vm1, %v2737_v42 }
 0x1fc   : > { %3549 = vmatmul.msk.bf16.gmra.mxu3 %vm462_vm1, %v2445_v20 }
 0x1fd   : > { %v956_v28 = vpop.f32.mrf.mxu2 }
 0x1fe   : > { %v995_v18 = vadd.f32 %v956_v28, %v753_v59  ;;  %v754_v3 = vpop.f32.mrf.mxu1  ;;  %v2126_v59 = vsel %vm1742_vm5, %v2123_v0, %v2125_v37  ;;  %v2449_v28 = vrot.slane %v2447_v2, 2 }
 0x1ff   : > { %v755_v60 = vadd.f32 %v754_v3, %v4830_v44  ;;  %v4478_v44 = vld [vmem:[%s3740_s25 + $0x70] sm:$0xff] }
 0x200   : > { %v1360_v62 = vadd.f32 %v1321_v32, %v995_v18  ;;  %v1696_v39 = vpop.f32.mrf.mxu0  ;;  %v4463_v42 = vpop.f32.mrf.mxu3  ;;  %v2452_v18 = vrot.slane %v2450_v45, 3 }
 0x202   : > { %v4455_v21 = vadd.f32 %v1694_v56, %v1360_v62  ;;  %v1761_v56 = vsel %vm1742_vm5, %v1758_v38, %v1760_v19  ;;  %v2453_v38 = vor.u32 %v2452_v18, %v2449_v28  ;;  %v2740_v18 = vrot.slane %v4428_v16, 3 }
 0x204   : > { %v2454_v29 = vsel %vm2347_vm4, %v2444_v51, %v2453_v38  ;;  %v2459_v51 = vshll.u32 %v4478_v44, 16 }
 0x205   : > { %v958_v26 = vpop.f32.mrf.mxu2 }
 0x206   : > { %v996_v32 = vadd.f32 %v958_v26, %v755_v60  ;;  %v1849_v9 = vpop.f32.mrf.mxu1 }
 0x207   : > { %v1939_v0 = vadd.f32 %v1849_v9, %v4072_v23  ;;  %v3677_v23 = vld [vmem:[%s3740_s25 + $0x58] sm:$0xff] }
 0x208   : > { %v1361_v20 = vadd.f32 %v1323_v49, %v996_v32  ;;  %v2827_v62 = vpop.f32.mrf.mxu0  ;;  %v4474_v2 = vpop.f32.mrf.mxu3  ;;  %v1762_v9 = vrot.slane %v3677_v23, 2  ;;  %v2741_v23 = vsel %vm2720_vm6, %v2738_v22, %v2740_v18 }
 0x209   : > { %3432 = vmatmul.msk.bf16.gmra.mxu1 %vm462_vm1, %v1761_v56  ;;  %v2127_v56 = vrot.slane %v4428_v16, 2 }
 0x20a   : > { %3524 = vmatmul.msk.bf16.gmra.mxu2 %vm462_vm1, %v2126_v59  ;;  %v4470_v31 = vadd.f32 %v1696_v39, %v1361_v20  ;;  %v4483_v39 = vld [vmem:[%s4807_s2] ss:$0 sm:$0xff]  ;;  %v2456_v59 = vshrl.u32 %v4478_v44, 16 }
 0x20b   : > { %3572 = vmatmul.msk.bf16.gmra.mxu0 %vm462_vm1, %v2739_v35 }
 0x20c   : > { %3550 = vmatmul.msk.bf16.gmra.mxu3 %vm462_vm1, %v2454_v29  ;;  %v2128_v29 = vsel %vm1742_vm5, %v2125_v37, %v2127_v56 }
 0x20d   : > { %v2214_v3 = vpop.f32.mrf.mxu2 }
 0x20e   : > { %v2304_v49 = vadd.f32 %v2214_v3, %v1939_v0  ;;  %v1851_v45 = vpop.f32.mrf.mxu1 }
 0x20f   : > { %v1940_v28 = vadd.f32 %v1851_v45, %v4082_v10  ;;  %v2458_v10 = vrot.slane %v2456_v59, 2  ;;  %v2461_v45 = vrot.slane %v2459_v51, 3 }
 0x210   : > { %v2677_v60 = vadd.f32 %v2587_v1, %v2304_v49  ;;  %v2829_v26 = vpop.f32.mrf.mxu0  ;;  %v4494_v35 = vpop.f32.mrf.mxu3  ;;  %v1763_v49 = vsel %vm1742_vm5, %v1760_v19, %v1762_v9 }
 0x211   : > { %v2462_v19 = vor.u32 %v2461_v45, %v2458_v10  ;;  %v2129_v45 = vrot.slane %v4452_v48, 2 }
 0x212   : > { %v2917_v32 = vadd.f32 %v2827_v62, %v2677_v60 }
 0x214   : > { %v2957_v1 = vadd.f32 %v4483_v39, %v2917_v32 }
 0x215   : > { %v2216_v20 = vpop.f32.mrf.mxu2 }
 0x216   : > { %v2993_v62 = vmax.f32 %v2957_v1, 0.0  ;;  %v2305_v0 = vadd.f32 %v2216_v20, %v1940_v28  ;;  %v1854_v3 = vpop.f32.mrf.mxu1 }
 0x218   : > { %v3029_v16 = vpack.c.bf16 %v2993_v62, %v2993_v62  ;;  %v2678_v60 = vadd.f32 %v4448_v52, %v2305_v0  ;;  %v2832_v32 = vpop.f32.mrf.mxu0  ;;  %v1941_v52 = vadd.f32 %v1854_v3, %v4088_v63  ;;  %v4512_v51 = vpop.f32.mrf.mxu3  ;;  %v4516_v62 = vld [vmem:[%s3740_s25 + $0x78] sm:$0xff]  ;;  %v3678_v63 = vld [vmem:[%s3740_s25 + $0x60] sm:$0xff] }
 0x219   : > { %3433 = vmatmul.msk.bf16.gmra.mxu1 %vm462_vm1, %v1763_v49  ;;  %v1764_v3 = vrot.slane %v3678_v63, 2 }
 0x21a   : > { %3066 = vst.msk [vmem:[%s4499_s15] sm:$0xf] %vm3065_vm7, %v3029_v16  ;;  %v2918_v1 = vadd.f32 %v2829_v26, %v2678_v60  ;;  %3525 = vmatmul.msk.bf16.gmra.mxu2 %vm462_vm1, %v2128_v29  ;;  %v2463_v26 = vsel %vm2347_vm4, %v2453_v38, %v2462_v19  ;;  %v2465_v16 = vshrl.u32 %v4516_v62, 16  ;;  %v2468_v60 = vshll.u32 %v4516_v62, 16 }
 0x21b   : > { %3573 = vmatmul.msk.bf16.gmra.mxu0 %vm462_vm1, %v2741_v23 }
 0x21c   : > { %v2958_v37 = vadd.f32 %v4483_v39, %v2918_v1  ;;  %3551 = vmatmul.msk.bf16.gmra.mxu3 %vm462_vm1, %v2463_v26  ;;  %v2467_v26 = vrot.slane %v2465_v16, 2 }
 0x21d   : > { %v2219_v59 = vpop.f32.mrf.mxu2 }
 0x21e   : > { %v2994_v22 = vmax.f32 %v2958_v37, 0.0  ;;  %v2306_v28 = vadd.f32 %v2219_v59, %v1941_v52  ;;  %v1856_v20 = vpop.f32.mrf.mxu1 }
 0x21f   : > { %v1942_v23 = vadd.f32 %v1856_v20, %v4098_v17 }
 0x220   : > { %v3030_v0 = vpack.c.bf16 %v2994_v22, %v2994_v22  ;;  %v2679_v49 = vadd.f32 %v4463_v42, %v2306_v28  ;;  %v2834_v29 = vpop.f32.mrf.mxu0  ;;  %v2742_v42 = vrot.slane %v4452_v48, 3  ;;  %v4529_v37 = vpop.f32.mrf.mxu3  ;;  %v1765_v22 = vsel %vm1742_vm5, %v1762_v9, %v1764_v3 }
 0x221   : > { %v2130_v28 = vsel %vm1742_vm5, %v2127_v56, %v2129_v45 }
 0x222   : > { %3067 = vst.msk [vmem:[%s4499_s15 + $0x4] sm:$0xf] %vm3065_vm7, %v3030_v0  ;;  %v2919_v10 = vadd.f32 %v2832_v32, %v2679_v49  ;;  %v2470_v0 = vrot.slane %v2468_v60, 3  ;;  %v2743_v17 = vsel %vm2720_vm6, %v2740_v18, %v2742_v42 }
 0x224   : > { %v2959_v38 = vadd.f32 %v4483_v39, %v2919_v10  ;;  %v2471_v9 = vor.u32 %v2470_v0, %v2467_v26 }
 0x225   : > { %v2221_v1 = vpop.f32.mrf.mxu2 }
 0x226   : > { %v2995_v32 = vmax.f32 %v2959_v38, 0.0  ;;  %v2307_v52 = vadd.f32 %v2221_v1, %v1942_v23  ;;  %v1859_v59 = vpop.f32.mrf.mxu1  ;;  %v4546_v23 = vld [vmem:[%s3740_s25 + $0x80] sm:$0xff] }
 0x227   : > { %v2474_v26 = vshrl.u32 %v4546_v23, 16  ;;  %v2477_v0 = vshll.u32 %v4546_v23, 16 }
 0x228   : > { %v3031_v49 = vpack.c.bf16 %v2995_v32, %v2995_v32  ;;  %v2680_v10 = vadd.f32 %v4474_v2, %v2307_v52  ;;  %v2837_v63 = vpop.f32.mrf.mxu0  ;;  %v1943_v2 = vadd.f32 %v1859_v59, %v4104_v55  ;;  %v4542_v16 = vpop.f32.mrf.mxu3  ;;  %v3679_v55 = vld [vmem:[%s3740_s25 + $0x68] sm:$0xff] }
 0x229   : > { %3434 = vmatmul.msk.bf16.gmra.mxu1 %vm462_vm1, %v1765_v22  ;;  %v1766_v59 = vrot.slane %v3679_v55, 2 }
 0x22a   : > { %3068 = vst.msk [vmem:[%s4499_s15 + $0x8] sm:$0xf] %vm3065_vm7, %v3031_v49  ;;  %v2920_v48 = vadd.f32 %v2834_v29, %v2680_v10  ;;  %3526 = vmatmul.msk.bf16.gmra.mxu2 %vm462_vm1, %v2130_v28  ;;  %v2472_v29 = vsel %vm2347_vm4, %v2462_v19, %v2471_v9  ;;  %v2131_v28 = vrot.slane %v4478_v44, 2 }
 0x22b   : > { %3574 = vmatmul.msk.bf16.gmra.mxu0 %vm462_vm1, %v2743_v17 }
 0x22c   : > { %v2960_v56 = vadd.f32 %v4483_v39, %v2920_v48  ;;  %3552 = vmatmul.msk.bf16.gmra.mxu3 %vm462_vm1, %v2472_v29 }
 0x22d   : > { %v2224_v20 = vpop.f32.mrf.mxu2 }
 0x22e   : > { %v2996_v18 = vmax.f32 %v2960_v56, 0.0  ;;  %v2308_v60 = vadd.f32 %v2224_v20, %v1943_v2  ;;  %v1861_v38 = vpop.f32.mrf.mxu1  ;;  %v1767_v2 = vsel %vm1742_vm5, %v1764_v3, %v1766_v59  ;;  %v2132_v20 = vsel %vm1742_vm5, %v2129_v45, %v2131_v28 }
 0x22f   : > { %v1944_v49 = vadd.f32 %v1861_v38, %v4114_v33 }
 0x230   : > { %v3032_v1 = vpack.c.bf16 %v2996_v18, %v2996_v18  ;;  %v2681_v32 = vadd.f32 %v4494_v35, %v2308_v60  ;;  %v2839_v52 = vpop.f32.mrf.mxu0  ;;  %v2744_v35 = vrot.slane %v4478_v44, 3  ;;  %v4559_v17 = vpop.f32.mrf.mxu3  ;;  %v2476_v18 = vrot.slane %v2474_v26, 2 }
 0x231   : > { %v2479_v60 = vrot.slane %v2477_v0, 3  ;;  %v4576_v0 = vld [vmem:[%s3740_s25 + $0x88] sm:$0xff] }
 0x232   : > { %3069 = vst.msk [vmem:[%s4499_s15 + $0xc] sm:$0xf] %vm3065_vm7, %v3032_v1  ;;  %v2921_v22 = vadd.f32 %v2837_v63, %v2681_v32  ;;  %v2745_v33 = vsel %vm2720_vm6, %v2742_v42, %v2744_v35 }
 0x233   : > { %v2480_v3 = vor.u32 %v2479_v60, %v2476_v18 }
 0x234   : > { %v2961_v19 = vadd.f32 %v4483_v39, %v2921_v22 }
 0x235   : > { %v2226_v10 = vpop.f32.mrf.mxu2 }
 0x236   : > { %v2997_v63 = vmax.f32 %v2961_v19, 0.0  ;;  %v2309_v48 = vadd.f32 %v2226_v10, %v1944_v49  ;;  %v1864_v56 = vpop.f32.mrf.mxu1 }
 0x238   : > { %v3033_v29 = vpack.c.bf16 %v2997_v63, %v2997_v63  ;;  %v2682_v1 = vadd.f32 %v4512_v51, %v2309_v48  ;;  %v2842_v32 = vpop.f32.mrf.mxu0  ;;  %v1945_v51 = vadd.f32 %v1864_v56, %v4120_v6  ;;  %v4572_v22 = vpop.f32.mrf.mxu3  ;;  %v3680_v6 = vld [vmem:[%s3740_s25 + $0x70] sm:$0xff]  ;;  %v2133_v56 = vrot.slane %v4516_v62, 2 }
 0x239   : > { %3435 = vmatmul.msk.bf16.gmra.mxu1 %vm462_vm1, %v1767_v2  ;;  %v1768_v48 = vrot.slane %v3680_v6, 2  ;;  %v2483_v2 = vshrl.u32 %v4576_v0, 16  ;;  %v4606_v6 = vld [vmem:[%s3740_s25 + $0x90] sm:$0xff] }
 0x23a   : > { %3070 = vst.msk [vmem:[%s4499_s15 + $0x10] sm:$0xf] %vm3065_vm7, %v3033_v29  ;;  %v2922_v44 = vadd.f32 %v2839_v52, %v2682_v1  ;;  %3527 = vmatmul.msk.bf16.gmra.mxu2 %vm462_vm1, %v2132_v20  ;;  %v2481_v52 = vsel %vm2347_vm4, %v2471_v9, %v2480_v3  ;;  %v2486_v20 = vshll.u32 %v4576_v0, 16 }
 0x23b   : > { %3575 = vmatmul.msk.bf16.gmra.mxu0 %vm462_vm1, %v2745_v33 }
 0x23c   : > { %v2962_v45 = vadd.f32 %v4483_v39, %v2922_v44  ;;  %3553 = vmatmul.msk.bf16.gmra.mxu3 %vm462_vm1, %v2481_v52  ;;  %v1769_v44 = vsel %vm1742_vm5, %v1766_v59, %v1768_v48 }
 0x23d   : > { %v2229_v38 = vpop.f32.mrf.mxu2 }
 0x23e   : > { %v2998_v42 = vmax.f32 %v2962_v45, 0.0  ;;  %v2310_v55 = vadd.f32 %v2229_v38, %v1945_v51  ;;  %v1866_v26 = vpop.f32.mrf.mxu1  ;;  %v2134_v45 = vsel %vm1742_vm5, %v2131_v28, %v2133_v56  ;;  %v2485_v51 = vrot.slane %v2483_v2, 2 }
 0x23f   : > { %v1946_v18 = vadd.f32 %v1866_v26, %v4130_v53  ;;  %v2488_v38 = vrot.slane %v2486_v20, 3 }
 0x240   : > { %v3034_v19 = vpack.c.bf16 %v2998_v42, %v2998_v42  ;;  %v2683_v49 = vadd.f32 %v4529_v37, %v2310_v55  ;;  %v2844_v10 = vpop.f32.mrf.mxu0  ;;  %v2746_v37 = vrot.slane %v4516_v62, 3  ;;  %v4589_v29 = vpop.f32.mrf.mxu3 }
 0x241   : > { %v2489_v59 = vor.u32 %v2488_v38, %v2485_v51 }
 0x242   : > { %3071 = vst.msk [vmem:[%s4499_s15 + $0x14] sm:$0xf] %vm3065_vm7, %v3034_v19  ;;  %v2923_v63 = vadd.f32 %v2842_v32, %v2683_v49  ;;  %v2747_v53 = vsel %vm2720_vm6, %v2744_v35, %v2746_v37 }
 0x244   : > { %v2963_v9 = vadd.f32 %v4483_v39, %v2923_v63 }
 0x245   : > { %v2231_v60 = vpop.f32.mrf.mxu2 }
 0x246   : > { %v2999_v1 = vmax.f32 %v2963_v9, 0.0  ;;  %v2311_v32 = vadd.f32 %v2231_v60, %v1946_v18  ;;  %v1869_v33 = vpop.f32.mrf.mxu1 }
 0x248   : > { %v3035_v42 = vpack.c.bf16 %v2999_v1, %v2999_v1  ;;  %v2684_v55 = vadd.f32 %v4542_v16, %v2311_v32  ;;  %v2847_v52 = vpop.f32.mrf.mxu0  ;;  %v1947_v16 = vadd.f32 %v1869_v33, %v4136_v7  ;;  %v4602_v19 = vpop.f32.mrf.mxu3  ;;  %v3681_v7 = vld [vmem:[%s3740_s25 + $0x78] sm:$0xff]  ;;  %v2135_v1 = vrot.slane %v4546_v23, 2 }
 0x249   : > { %3436 = vmatmul.msk.bf16.gmra.mxu1 %vm462_vm1, %v1769_v44  ;;  %v1770_v60 = vrot.slane %v3681_v7, 2  ;;  %v2492_v32 = vshrl.u32 %v4606_v6, 16  ;;  %v2495_v33 = vshll.u32 %v4606_v6, 16 }
 0x24a   : > { %3072 = vst.msk [vmem:[%s4499_s15 + $0x18] sm:$0xf] %vm3065_vm7, %v3035_v42  ;;  %v2924_v62 = vadd.f32 %v2844_v10, %v2684_v55  ;;  %3528 = vmatmul.msk.bf16.gmra.mxu2 %vm462_vm1, %v2134_v45  ;;  %v2490_v10 = vsel %vm2347_vm4, %v2480_v3, %v2489_v59 }
 0x24b   : > { %3576 = vmatmul.msk.bf16.gmra.mxu0 %vm462_vm1, %v2747_v53  ;;  %v2136_v53 = vsel %vm1742_vm5, %v2133_v56, %v2135_v1 }
 0x24c   : > { %v2964_v28 = vadd.f32 %v4483_v39, %v2924_v62  ;;  %3554 = vmatmul.msk.bf16.gmra.mxu3 %vm462_vm1, %v2490_v10  ;;  %v2494_v62 = vrot.slane %v2492_v32, 2 }
 0x24d   : > { %v2234_v26 = vpop.f32.mrf.mxu2 }
 0x24e   : > { %v3000_v35 = vmax.f32 %v2964_v28, 0.0  ;;  %v2312_v49 = vadd.f32 %v2234_v26, %v1947_v16  ;;  %v1871_v63 = vpop.f32.mrf.mxu1  ;;  %v2497_v28 = vrot.slane %v2495_v33, 3 }
 0x24f   : > { %v1948_v44 = vadd.f32 %v1871_v63, %v4146_v12 }
 0x250   : > { %v3036_v2 = vpack.c.bf16 %v3000_v35, %v3000_v35  ;;  %v2685_v20 = vadd.f32 %v4559_v17, %v2312_v49  ;;  %v2849_v9 = vpop.f32.mrf.mxu0  ;;  %v2748_v17 = vrot.slane %v4546_v23, 3  ;;  %v4619_v51 = vpop.f32.mrf.mxu3 }
 0x252   : > { %3073 = vst.msk [vmem:[%s4499_s15 + $0x1c] sm:$0xf] %vm3065_vm7, %v3036_v2  ;;  %v2925_v18 = vadd.f32 %v2847_v52, %v2685_v20  ;;  %v1771_v52 = vsel %vm1742_vm5, %v1768_v48, %v1770_v60  ;;  %v2749_v12 = vsel %vm2720_vm6, %v2746_v37, %v2748_v17  ;;  %v2498_v48 = vor.u32 %v2497_v28, %v2494_v62 }
 0x254   : > { %v2965_v3 = vadd.f32 %v4483_v39, %v2925_v18  ;;  %v2499_v20 = vsel %vm2347_vm4, %v2489_v59, %v2498_v48 }
 0x255   : > { %v2236_v45 = vpop.f32.mrf.mxu2 }
 0x256   : > { %v3001_v38 = vmax.f32 %v2965_v3, 0.0  ;;  %v2313_v42 = vadd.f32 %v2236_v45, %v1948_v44  ;;  %v1874_v55 = vpop.f32.mrf.mxu1  ;;  %v2137_v44 = vrot.slane %v4576_v0, 2 }
 0x258   : > { %v3037_v16 = vpack.c.bf16 %v3001_v38, %v3001_v38  ;;  %v2686_v26 = vadd.f32 %v4572_v22, %v2313_v42  ;;  %v2852_v35 = vpop.f32.mrf.mxu0  ;;  %v1949_v22 = vadd.f32 %v1874_v55, %v4152_v34  ;;  %v4632_v63 = vpop.f32.mrf.mxu3  ;;  %v3682_v34 = vld [vmem:[%s3740_s25 + $0x80] sm:$0xff] }
 0x259   : > { %3437 = vmatmul.msk.bf16.gmra.mxu1 %vm462_vm1, %v1771_v52  ;;  %v1772_v3 = vrot.slane %v3682_v34, 2 }
 0x25a   : > { %3074 = vst.msk [vmem:[%s4499_s15 + $0x20] sm:$0xf] %vm3065_vm7, %v3037_v16  ;;  %v2926_v23 = vadd.f32 %v2849_v9, %v2686_v26  ;;  %3529 = vmatmul.msk.bf16.gmra.mxu2 %vm462_vm1, %v2136_v53  ;;  %v4636_v9 = vld [vmem:[%s3740_s25 + $0x98] sm:$0xff]  ;;  %v2138_v26 = vsel %vm1742_vm5, %v2135_v1, %v2137_v44 }
 0x25b   : > { %3577 = vmatmul.msk.bf16.gmra.mxu0 %vm462_vm1, %v2749_v12  ;;  %v2501_v45 = vshrl.u32 %v4636_v9, 16  ;;  %v2504_v38 = vshll.u32 %v4636_v9, 16  ;;  %v1773_v16 = vsel %vm1742_vm5, %v1770_v60, %v1772_v3 }
 0x25c   : > { %v2966_v56 = vadd.f32 %v4483_v39, %v2926_v23  ;;  %3555 = vmatmul.msk.bf16.gmra.mxu3 %vm462_vm1, %v2499_v20 }
 0x25d   : > { %v2239_v49 = vpop.f32.mrf.mxu2  ;;  %v2506_v12 = vrot.slane %v2504_v38, 3 }
 0x25e   : > { %v3002_v37 = vmax.f32 %v2966_v56, 0.0  ;;  %v2314_v10 = vadd.f32 %v2239_v49, %v1949_v22  ;;  %v1876_v2 = vpop.f32.mrf.mxu1  ;;  %v2340_v49 = vld [vmem:[%s3740_s25 + $0xa0] sm:$0x7] }
 0x25f   : > { %v1950_v42 = vadd.f32 %v1876_v2, %v4162_v27  ;;  %v2345_v1 = vunpack.c.l.b16 %v2340_v49 }
 0x260   : > { %v3038_v18 = vpack.c.bf16 %v3002_v37, %v3002_v37  ;;  %v2687_v7 = vadd.f32 %v4589_v29, %v2314_v10  ;;  %v2854_v32 = vpop.f32.mrf.mxu0  ;;  %v2750_v29 = vrot.slane %v4576_v0, 3  ;;  %v4649_v52 = vpop.f32.mrf.mxu3 }
 0x262   : > { %3075 = vst.msk [vmem:[%s4499_s15 + $0x24] sm:$0xf] %vm3065_vm7, %v3038_v18  ;;  %v2927_v33 = vadd.f32 %v2852_v35, %v2687_v7  ;;  %v2503_v35 = vrot.slane %v2501_v45, 2  ;;  %v2751_v27 = vsel %vm2720_vm6, %v2748_v17, %v2750_v29 }
 0x264   : > { %v2967_v59 = vadd.f32 %v4483_v39, %v2927_v33  ;;  %v2507_v60 = vor.u32 %v2506_v12, %v2503_v35 }
 0x265   : > { %v2241_v55 = vpop.f32.mrf.mxu2 }
 0x266   : > { %v3003_v53 = vmax.f32 %v2967_v59, 0.0  ;;  %v2315_v62 = vadd.f32 %v2241_v55, %v1950_v42  ;;  %v1879_v28 = vpop.f32.mrf.mxu1  ;;  %v2508_v7 = vsel %vm2347_vm4, %v2498_v48, %v2507_v60  ;;  %v2139_v42 = vrot.slane %v4606_v6, 2 }
 0x268   : > { %v3039_v23 = vpack.c.bf16 %v3003_v53, %v3003_v53  ;;  %v2688_v56 = vadd.f32 %v4602_v19, %v2315_v62  ;;  %v2857_v22 = vpop.f32.mrf.mxu0  ;;  %v1951_v19 = vadd.f32 %v1879_v28, %v4171_v25  ;;  %v4663_v17 = vpop.f32.mrf.mxu3  ;;  %v3683_v25 = vld [vmem:[%s3740_s25 + $0x88] sm:$0xff]  ;;  %v4831_v62 = vld [vmem:[#allocation10_spill] sm:$0xff] }
 0x269   : > { %3438 = vmatmul.msk.bf16.gmra.mxu1 %vm462_vm1, %v1773_v16  ;;  %v1774_v59 = vrot.slane %v3683_v25, 2 }
 0x26a   : > { %3076 = vst.msk [vmem:[%s4499_s15 + $0x28] sm:$0xf] %vm3065_vm7, %v3039_v23  ;;  %v2928_v0 = vadd.f32 %v2854_v32, %v2688_v56  ;;  %3530 = vmatmul.msk.bf16.gmra.mxu2 %vm462_vm1, %v2138_v26  ;;  %v4666_v32 = vpack.c.b16 %v2345_v1, %v2345_v1 }
 0x26b   : > { %3578 = vmatmul.msk.bf16.gmra.mxu0 %vm462_vm1, %v2751_v27  ;;  %v1775_v56 = vsel %vm1742_vm5, %v1772_v3, %v1774_v59 }
 0x26c   : > { %v2968_v37 = vadd.f32 %v4483_v39, %v2928_v0  ;;  %3556 = vmatmul.msk.bf16.gmra.mxu3 %vm462_vm1, %v2508_v7  ;;  %v2510_v55 = vshrl.u32 %v4666_v32, 16  ;;  %v2513_v53 = vshll.u32 %v4666_v32, 16 }
 0x26d   : > { %v2244_v10 = vpop.f32.mrf.mxu2 }
 0x26e   : > { %v3004_v2 = vmax.f32 %v2968_v37, 0.0  ;;  %v2316_v20 = vadd.f32 %v2244_v10, %v1951_v19  ;;  %v1881_v18 = vpop.f32.mrf.mxu1  ;;  %v2512_v27 = vrot.slane %v2510_v55, 2  ;;  %v2515_v49 = vrot.slane %v2513_v53, 3  ;;  %v4832_v10 = vld [vmem:[#allocation11_spill] sm:$0xff]  ;;  %v3684_v55 = vld [vmem:[%s3740_s25 + $0x90] sm:$0xff] }
 0x26f   : > { %v1952_v28 = vadd.f32 %v1881_v18, %v4831_v62  ;;  %v1776_v53 = vrot.slane %v3684_v55, 2 }
 0x270   : > { %v3040_v33 = vpack.c.bf16 %v3004_v2, %v3004_v2  ;;  %v2689_v34 = vadd.f32 %v4619_v51, %v2316_v20  ;;  %v2859_v45 = vpop.f32.mrf.mxu0  ;;  %v2752_v51 = vrot.slane %v4606_v6, 3  ;;  %v4679_v26 = vpop.f32.mrf.mxu3  ;;  %v2516_v3 = vor.u32 %v2515_v49, %v2512_v27 }
 0x272   : > { %3077 = vst.msk [vmem:[%s4499_s15 + $0x2c] sm:$0xf] %vm3065_vm7, %v3040_v33  ;;  %v2929_v38 = vadd.f32 %v2857_v22, %v2689_v34  ;;  %v2140_v22 = vsel %vm1742_vm5, %v2137_v44, %v2139_v42  ;;  %v2753_v19 = vsel %vm2720_vm6, %v2750_v29, %v2752_v51  ;;  %v2517_v33 = vsel %vm2347_vm4, %v2507_v60, %v2516_v3 }
 0x273   : > { %v2754_v60 = vrot.slane %v4636_v9, 3 }
 0x274   : > { %v2969_v48 = vadd.f32 %v4483_v39, %v2929_v38 }
 0x275   : > { %v2246_v16 = vpop.f32.mrf.mxu2 }
 0x276   : > { %v3005_v35 = vmax.f32 %v2969_v48, 0.0  ;;  %v2317_v12 = vadd.f32 %v2246_v16, %v1952_v28  ;;  %v1884_v23 = vpop.f32.mrf.mxu1  ;;  %v2141_v48 = vrot.slane %v4636_v9, 2 }
 0x277   : > { %v1953_v2 = vadd.f32 %v1884_v23, %v4832_v10 }
 0x278   : > { %v3041_v0 = vpack.c.bf16 %v3005_v35, %v3005_v35  ;;  %v2690_v1 = vadd.f32 %v4632_v63, %v2317_v12  ;;  %v2862_v37 = vpop.f32.mrf.mxu0  ;;  %v2629_v20 = vpop.f32.mrf.mxu3 }
 0x279   : > { %3439 = vmatmul.msk.bf16.gmra.mxu1 %vm462_vm1, %v1775_v56  ;;  %v1777_v56 = vsel %vm1742_vm5, %v1774_v59, %v1776_v53 }
 0x27a   : > { %3078 = vst.msk [vmem:[%s4499_s15 + $0x30] sm:$0xf] %vm3065_vm7, %v3041_v0  ;;  %v2930_v6 = vadd.f32 %v2859_v45, %v2690_v1  ;;  %3531 = vmatmul.msk.bf16.gmra.mxu2 %vm462_vm1, %v2140_v22  ;;  %v2142_v22 = vsel %vm1742_vm5, %v2139_v42, %v2141_v48  ;;  %v2755_v1 = vsel %vm2720_vm6, %v2752_v51, %v2754_v60 }
 0x27b   : > { %3579 = vmatmul.msk.bf16.gmra.mxu0 %vm462_vm1, %v2753_v19 }
 0x27c   : > { %v2970_v44 = vadd.f32 %v4483_v39, %v2930_v6  ;;  %3557 = vmatmul.msk.bf16.gmra.mxu3 %vm462_vm1, %v2517_v33 }
 0x27d   : > { %v2249_v63 = vpop.f32.mrf.mxu2 }
 0x27e   : > { %v3006_v18 = vmax.f32 %v2970_v44, 0.0  ;;  %v2318_v29 = vadd.f32 %v2249_v63, %v1953_v2  ;;  %v1886_v7 = vpop.f32.mrf.mxu1 }
 0x27f   : > { %v1954_v28 = vadd.f32 %v1886_v7, %v4227_v30 }
 0x280   : > { %v3042_v34 = vpack.c.bf16 %v3006_v18, %v3006_v18  ;;  %v2691_v45 = vadd.f32 %v4649_v52, %v2318_v29  ;;  %v2864_v38 = vpop.f32.mrf.mxu0  ;;  %v2632_v52 = vpop.f32.mrf.mxu3  ;;  %v1778_v29 = vrot.slane %v4222_v8, 2 }
 0x282   : > { %3079 = vst.msk [vmem:[%s4499_s15 + $0x34] sm:$0xf] %vm3065_vm7, %v3042_v34  ;;  %v2931_v25 = vadd.f32 %v2862_v37, %v2691_v45  ;;  %v2011_v37 = vld [vmem:[%s3740_s25 + $0xa0] sm:$0x3]  ;;  %v2756_v34 = vrot.slane %v4666_v32, 3 }
 0x283   : > { %v2088_v9 = vunpack.c.l.b16 %v2011_v37 }
 0x284   : > { %v2971_v62 = vadd.f32 %v4483_v39, %v2931_v25 }
 0x285   : > { %v2251_v16 = vpop.f32.mrf.mxu2  ;;  %v2107_v44 = vpack.c.b16 %v2088_v9, %v2088_v9 }
 0x286   : > { %v3007_v35 = vmax.f32 %v2971_v62, 0.0  ;;  %v2319_v12 = vadd.f32 %v2251_v16, %v1954_v28  ;;  %v1889_v23 = vpop.f32.mrf.mxu1 }
 0x287   : > { %v1955_v42 = vadd.f32 %v1889_v23, %v4241_v5  ;;  %v2143_v7 = vrot.slane %v2107_v44, 2 }
 0x288   : > { %v3043_v27 = vpack.c.bf16 %v3007_v35, %v3007_v35  ;;  %v2692_v49 = vadd.f32 %v4663_v17, %v2319_v12  ;;  %v2867_v0 = vpop.f32.mrf.mxu0  ;;  %v2634_v19 = vpop.f32.mrf.mxu3  ;;  %v2757_v12 = vsel %vm2720_vm6, %v2754_v60, %v2756_v34 }
 0x289   : > { %3440 = vmatmul.msk.bf16.gmra.mxu1 %vm462_vm1, %v1777_v56  ;;  %v2144_v28 = vsel %vm1742_vm5, %v2141_v48, %v2143_v7 }
 0x28a   : > { %3080 = vst.msk [vmem:[%s4499_s15 + $0x38] sm:$0xf] %vm3065_vm7, %v3043_v27  ;;  %v2932_v30 = vadd.f32 %v2864_v38, %v2692_v49  ;;  %3532 = vmatmul.msk.bf16.gmra.mxu2 %vm462_vm1, %v2142_v22 }
 0x28b   : > { %3580 = vmatmul.msk.bf16.gmra.mxu0 %vm462_vm1, %v2755_v1 }
 0x28c   : > { %v2972_v59 = vadd.f32 %v4483_v39, %v2932_v30 }
 0x28d   : > { %v2254_v17 = vpop.f32.mrf.mxu2 }
 0x28e   : > { %v3008_v6 = vmax.f32 %v2972_v59, 0.0  ;;  %v2320_v51 = vadd.f32 %v2254_v17, %v1955_v42  ;;  %v1891_v3 = vpop.f32.mrf.mxu1 }
 0x28f   : > { %v1956_v5 = vadd.f32 %v1891_v3, %v4257_v36 }
 0x290   : > { %v3044_v10 = vpack.c.bf16 %v3008_v6, %v3008_v6  ;;  %v2693_v2 = vadd.f32 %v4679_v26, %v2320_v51  ;;  %v2869_v63 = vpop.f32.mrf.mxu0  ;;  %v2637_v38 = vpop.f32.mrf.mxu3  ;;  %v1779_v26 = vsel %vm1742_vm5, %v1776_v53, %v1778_v29 }
 0x292   : > { %3081 = vst.msk [vmem:[%s4499_s15 + $0x3c] sm:$0xf] %vm3065_vm7, %v3044_v10  ;;  %v2933_v18 = vadd.f32 %v2867_v0, %v2693_v2 }
 0x294   : > { %v2973_v33 = vadd.f32 %v4483_v39, %v2933_v18 }
 0x295   : > { %v2256_v45 = vpop.f32.mrf.mxu2 }
 0x296   : > { %v3009_v25 = vmax.f32 %v2973_v33, 0.0  ;;  %v2321_v55 = vadd.f32 %v2256_v45, %v1956_v5  ;;  %v1894_v62 = vpop.f32.mrf.mxu1 }
 0x297   : > { %v1957_v53 = vadd.f32 %v1894_v62, %v4274_v61 }
 0x298   : > { %v3045_v16 = vpack.c.bf16 %v3009_v25, %v3009_v25  ;;  %v2694_v35 = vadd.f32 %v2629_v20, %v2321_v55  ;;  %v2872_v8 = vpop.f32.mrf.mxu0  ;;  %v2639_v23 = vpop.f32.mrf.mxu3 }
 0x299   : > { %3441 = vmatmul.msk.bf16.gmra.mxu1 %vm462_vm1, %v1779_v26 }
 0x29a   : > { %3082 = vst.msk [vmem:[%s4499_s15 + $0x40] sm:$0xf] %vm3065_vm7, %v3045_v16  ;;  %v2934_v36 = vadd.f32 %v2869_v63, %v2694_v35  ;;  %3533 = vmatmul.msk.bf16.gmra.mxu2 %vm462_vm1, %v2144_v28 }
 0x29b   : > { %3581 = vmatmul.msk.bf16.gmra.mxu0 %vm462_vm1, %v2757_v12 }
 0x29c   : > { %v2974_v32 = vadd.f32 %v4483_v39, %v2934_v36 }
 0x29d   : > { %v2259_v48 = vpop.f32.mrf.mxu2 }
 0x29e   : > { %v3010_v20 = vmax.f32 %v2974_v32, 0.0  ;;  %v2322_v56 = vadd.f32 %v2259_v48, %v1957_v53  ;;  %v1896_v22 = vpop.f32.mrf.mxu1 }
 0x29f   : > { %v1958_v37 = vadd.f32 %v1896_v22, %v4288_v11 }
 0x2a0   : > { %v3046_v60 = vpack.c.bf16 %v3010_v20, %v3010_v20  ;;  %v2695_v27 = vadd.f32 %v2632_v52, %v2322_v56  ;;  %v2874_v49 = vpop.f32.mrf.mxu0  ;;  %v2642_v9 = vpop.f32.mrf.mxu3 }
 0x2a2   : > { %3083 = vst.msk [vmem:[%s4499_s15 + $0x44] sm:$0xf] %vm3065_vm7, %v3046_v60  ;;  %v2935_v0 = vadd.f32 %v2872_v8, %v2695_v27 }
 0x2a4   : > { %v2975_v1 = vadd.f32 %v4483_v39, %v2935_v0 }
 0x2a5   : > { %v2261_v30 = vpop.f32.mrf.mxu2 }
 0x2a6   : > { %v3011_v59 = vmax.f32 %v2975_v1, 0.0  ;;  %v2323_v61 = vadd.f32 %v2261_v30, %v1958_v37  ;;  %v1899_v42 = vpop.f32.mrf.mxu1 }
 0x2a7   : > { %v1959_v44 = vadd.f32 %v1899_v42, %v4298_v13 }
 0x2a8   : > { %v3047_v17 = vpack.c.bf16 %v3011_v59, %v3011_v59  ;;  %v2696_v6 = vadd.f32 %v2634_v19, %v2323_v61  ;;  %v2877_v51 = vpop.f32.mrf.mxu0  ;;  %v2644_v18 = vpop.f32.mrf.mxu3 }
 0x2aa   : > { %3084 = vst.msk [vmem:[%s4499_s15 + $0x48] sm:$0xf] %vm3065_vm7, %v3047_v17  ;;  %v2936_v52 = vadd.f32 %v2874_v49, %v2696_v6 }
 0x2ac   : > { %v2976_v3 = vadd.f32 %v4483_v39, %v2936_v52 }
 0x2ad   : > { %v2264_v10 = vpop.f32.mrf.mxu2 }
 0x2ae   : > { %v3012_v2 = vmax.f32 %v2976_v3, 0.0  ;;  %v2324_v63 = vadd.f32 %v2264_v10, %v1959_v44  ;;  %v1901_v11 = vpop.f32.mrf.mxu1 }
 0x2af   : > { %v1960_v34 = vadd.f32 %v1901_v11, %v4312_v50 }
 0x2b0   : > { %v3048_v29 = vpack.c.bf16 %v3012_v2, %v3012_v2  ;;  %v2697_v7 = vadd.f32 %v2637_v38, %v2324_v63  ;;  %v2879_v33 = vpop.f32.mrf.mxu0  ;;  %v2647_v16 = vpop.f32.mrf.mxu3 }
 0x2b2   : > { %3085 = vst.msk [vmem:[%s4499_s15 + $0x4c] sm:$0xf] %vm3065_vm7, %v3048_v29  ;;  %v2937_v19 = vadd.f32 %v2877_v51, %v2697_v7 }
 0x2b4   : > { %v2977_v5 = vadd.f32 %v4483_v39, %v2937_v19 }
 0x2b5   : > { %v2266_v45 = vpop.f32.mrf.mxu2 }
 0x2b6   : > { %v3013_v25 = vmax.f32 %v2977_v5, 0.0  ;;  %v2325_v55 = vadd.f32 %v2266_v45, %v1960_v34  ;;  %v1904_v13 = vpop.f32.mrf.mxu1 }
 0x2b7   : > { %v1961_v8 = vadd.f32 %v1904_v13, %v4321_v40 }
 0x2b8   : > { %v3049_v62 = vpack.c.bf16 %v3013_v25, %v3013_v25  ;;  %v2698_v26 = vadd.f32 %v2639_v23, %v2325_v55  ;;  %v2882_v28 = vpop.f32.mrf.mxu0  ;;  %v2649_v56 = vpop.f32.mrf.mxu3 }
 0x2ba   : > { %3086 = vst.msk [vmem:[%s4499_s15 + $0x50] sm:$0xf] %vm3065_vm7, %v3049_v62  ;;  %v2938_v38 = vadd.f32 %v2879_v33, %v2698_v26 }
 0x2bc   : > { %v2978_v35 = vadd.f32 %v4483_v39, %v2938_v38 }
 0x2bd   : > { %v2269_v12 = vpop.f32.mrf.mxu2 }
 0x2be   : > { %v3014_v36 = vmax.f32 %v2978_v35, 0.0  ;;  %v2326_v32 = vadd.f32 %v2269_v12, %v1961_v8  ;;  %v1906_v50 = vpop.f32.mrf.mxu1 }
 0x2bf   : > { %v1962_v60 = vadd.f32 %v1906_v50, %v4334_v15 }
 0x2c0   : > { %v3050_v53 = vpack.c.bf16 %v3014_v36, %v3014_v36  ;;  %v2699_v48 = vadd.f32 %v2642_v9, %v2326_v32  ;;  %v2884_v20 = vpop.f32.mrf.mxu0  ;;  %v2652_v17 = vpop.f32.mrf.mxu3 }
 0x2c2   : > { %3087 = vst.msk [vmem:[%s4499_s15 + $0x54] sm:$0xf] %vm3065_vm7, %v3050_v53  ;;  %v2939_v23 = vadd.f32 %v2882_v28, %v2699_v48 }
 0x2c4   : > { %v2979_v22 = vadd.f32 %v4483_v39, %v2939_v23 }
 0x2c5   : > { %v2271_v27 = vpop.f32.mrf.mxu2 }
 0x2c6   : > { %v3015_v49 = vmax.f32 %v2979_v22, 0.0  ;;  %v2327_v0 = vadd.f32 %v2271_v27, %v1962_v60  ;;  %v1909_v40 = vpop.f32.mrf.mxu1 }
 0x2c7   : > { %v1963_v61 = vadd.f32 %v1909_v40, %v4343_v4 }
 0x2c8   : > { %v3051_v1 = vpack.c.bf16 %v3015_v49, %v3015_v49  ;;  %v2700_v37 = vadd.f32 %v2644_v18, %v2327_v0  ;;  %v2887_v30 = vpop.f32.mrf.mxu0  ;;  %v2654_v7 = vpop.f32.mrf.mxu3 }
 0x2ca   : > { %3088 = vst.msk [vmem:[%s4499_s15 + $0x58] sm:$0xf] %vm3065_vm7, %v3051_v1  ;;  %v2940_v9 = vadd.f32 %v2884_v20, %v2700_v37 }
 0x2cc   : > { %v2980_v59 = vadd.f32 %v4483_v39, %v2940_v9 }
 0x2cd   : > { %v2274_v42 = vpop.f32.mrf.mxu2 }
 0x2ce   : > { %v3016_v6 = vmax.f32 %v2980_v59, 0.0  ;;  %v2328_v51 = vadd.f32 %v2274_v42, %v1963_v61  ;;  %v1911_v15 = vpop.f32.mrf.mxu1 }
 0x2cf   : > { %v1964_v63 = vadd.f32 %v1911_v15, %v4356_v41 }
 0x2d0   : > { %v3052_v52 = vpack.c.bf16 %v3016_v6, %v3016_v6  ;;  %v2701_v3 = vadd.f32 %v2647_v16, %v2328_v51  ;;  %v2889_v44 = vpop.f32.mrf.mxu0  ;;  %v2657_v38 = vpop.f32.mrf.mxu3 }
 0x2d2   : > { %3089 = vst.msk [vmem:[%s4499_s15 + $0x5c] sm:$0xf] %vm3065_vm7, %v3052_v52  ;;  %v2941_v10 = vadd.f32 %v2887_v30, %v2701_v3 }
 0x2d4   : > { %v2981_v2 = vadd.f32 %v4483_v39, %v2941_v10 }
 0x2d5   : > { %v2276_v11 = vpop.f32.mrf.mxu2 }
 0x2d6   : > { %v3017_v18 = vmax.f32 %v2981_v2, 0.0  ;;  %v2329_v29 = vadd.f32 %v2276_v11, %v1964_v63  ;;  %v1914_v4 = vpop.f32.mrf.mxu1 }
 0x2d7   : > { %v1965_v25 = vadd.f32 %v1914_v4, %v4365_v24 }
 0x2d8   : > { %v3053_v33 = vpack.c.bf16 %v3017_v18, %v3017_v18  ;;  %v2702_v19 = vadd.f32 %v2649_v56, %v2329_v29  ;;  %v2892_v5 = vpop.f32.mrf.mxu0  ;;  %v2659_v56 = vpop.f32.mrf.mxu3 }
 0x2da   : > { %3090 = vst.msk [vmem:[%s4499_s15 + $0x60] sm:$0xf] %vm3065_vm7, %v3053_v33  ;;  %v2942_v34 = vadd.f32 %v2889_v44, %v2702_v19 }
 0x2dc   : > { %v2982_v45 = vadd.f32 %v4483_v39, %v2942_v34 }
 0x2dd   : > { %v2279_v55 = vpop.f32.mrf.mxu2 }
 0x2de   : > { %v3018_v13 = vmax.f32 %v2982_v45, 0.0  ;;  %v2330_v62 = vadd.f32 %v2279_v55, %v1965_v25  ;;  %v1916_v41 = vpop.f32.mrf.mxu1 }
 0x2df   : > { %v1966_v12 = vadd.f32 %v1916_v41, %v4378_v14 }
 0x2e0   : > { %v3054_v26 = vpack.c.bf16 %v3018_v13, %v3018_v13  ;;  %v2703_v28 = vadd.f32 %v2652_v17, %v2330_v62  ;;  %v2894_v16 = vpop.f32.mrf.mxu0  ;;  %v2662_v42 = vpop.f32.mrf.mxu3 }
 0x2e2   : > { %3091 = vst.msk [vmem:[%s4499_s15 + $0x64] sm:$0xf] %vm3065_vm7, %v3054_v26  ;;  %v2943_v35 = vadd.f32 %v2892_v5, %v2703_v28  ;;  %v3685_v28 = vld [vmem:[%s4807_s2] ss:$0 sm:$0xff] }
 0x2e4   : > { %v2983_v8 = vadd.f32 %v4483_v39, %v2943_v35 }
 0x2e5   : > { %v2281_v36 = vpop.f32.mrf.mxu2 }
 0x2e6   : > { %v3019_v32 = vmax.f32 %v2983_v8, 0.0  ;;  %v2331_v50 = vadd.f32 %v2281_v36, %v1966_v12  ;;  %v1919_v24 = vpop.f32.mrf.mxu1 }
 0x2e7   : > { %v1967_v60 = vadd.f32 %v1919_v24, %v4387_v47 }
 0x2e8   : > { %v3055_v53 = vpack.c.bf16 %v3019_v32, %v3019_v32  ;;  %v2704_v48 = vadd.f32 %v2654_v7, %v2331_v50  ;;  %v2897_v20 = vpop.f32.mrf.mxu0  ;;  %v2664_v18 = vpop.f32.mrf.mxu3 }
 0x2ea   : > { %3092 = vst.msk [vmem:[%s4499_s15 + $0x68] sm:$0xf] %vm3065_vm7, %v3055_v53  ;;  %v2944_v23 = vadd.f32 %v2894_v16, %v2704_v48 }
 0x2ec   : > { %v2984_v22 = vadd.f32 %v4483_v39, %v2944_v23 }
 0x2ed   : > { %v2284_v27 = vpop.f32.mrf.mxu2 }
 0x2ee   : > { %v3020_v49 = vmax.f32 %v2984_v22, 0.0  ;;  %v2332_v0 = vadd.f32 %v2284_v27, %v1967_v60  ;;  %v1921_v14 = vpop.f32.mrf.mxu1 }
 0x2ef   : > { %v1968_v59 = vadd.f32 %v1921_v14, %v4400_v46 }
 0x2f0   : > { %v3056_v40 = vpack.c.bf16 %v3020_v49, %v3020_v49  ;;  %v2705_v1 = vadd.f32 %v2657_v38, %v2332_v0  ;;  %v2899_v37 = vpop.f32.mrf.mxu0  ;;  %v2667_v62 = vpop.f32.mrf.mxu3 }
 0x2f2   : > { %3093 = vst.msk [vmem:[%s4499_s15 + $0x6c] sm:$0xf] %vm3065_vm7, %v3056_v40  ;;  %v2945_v30 = vadd.f32 %v2897_v20, %v2705_v1 }
 0x2f4   : > { %v2985_v9 = vadd.f32 %v4483_v39, %v2945_v30 }
 0x2f5   : > { %v2286_v61 = vpop.f32.mrf.mxu2 }
 0x2f6   : > { %v3021_v17 = vmax.f32 %v2985_v9, 0.0  ;;  %v2333_v6 = vadd.f32 %v2286_v61, %v1968_v59  ;;  %v1924_v47 = vpop.f32.mrf.mxu1 }
 0x2f7   : > { %v1969_v10 = vadd.f32 %v1924_v47, %v4409_v57 }
 0x2f8   : > { %v3057_v51 = vpack.c.bf16 %v3021_v17, %v3021_v17  ;;  %v2706_v15 = vadd.f32 %v2659_v56, %v2333_v6  ;;  %v2902_v52 = vpop.f32.mrf.mxu0  ;;  %v2669_v50 = vpop.f32.mrf.mxu3 }
 0x2fa   : > { %3094 = vst.msk [vmem:[%s4499_s15 + $0x70] sm:$0xf] %vm3065_vm7, %v3057_v51  ;;  %v2946_v3 = vadd.f32 %v2899_v37, %v2706_v15 }
 0x2fc   : > { %v2986_v44 = vadd.f32 %v4483_v39, %v2946_v3 }
 0x2fd   : > { %v2289_v2 = vpop.f32.mrf.mxu2 }
 0x2fe   : > { %v3022_v63 = vmax.f32 %v2986_v44, 0.0  ;;  %v2334_v11 = vadd.f32 %v2289_v2, %v1969_v10  ;;  %v1926_v46 = vpop.f32.mrf.mxu1 }
 0x2ff   : > { %v1970_v5 = vadd.f32 %v1926_v46, %v4422_v58 }
 0x300   : > { %v3058_v29 = vpack.c.bf16 %v3022_v63, %v3022_v63  ;;  %v2707_v4 = vadd.f32 %v2662_v42, %v2334_v11  ;;  %v2904_v7 = vpop.f32.mrf.mxu0  ;;  %v2672_v14 = vpop.f32.mrf.mxu3 }
 0x302   : > { %3095 = vst.msk [vmem:[%s4499_s15 + $0x74] sm:$0xf] %vm3065_vm7, %v3058_v29  ;;  %v2947_v33 = vadd.f32 %v2902_v52, %v2707_v4 }
 0x304   : > { %v2987_v19 = vadd.f32 %v4483_v39, %v2947_v33 }
 0x305   : > { %v2291_v34 = vpop.f32.mrf.mxu2 }
 0x306   : > { %v3023_v45 = vmax.f32 %v2987_v19, 0.0  ;;  %v2335_v25 = vadd.f32 %v2291_v34, %v1970_v5  ;;  %v1929_v57 = vpop.f32.mrf.mxu1 }
 0x307   : > { %v1971_v39 = vadd.f32 %v1929_v57, %v4431_v43 }
 0x308   : > { %v3059_v55 = vpack.c.bf16 %v3023_v45, %v3023_v45  ;;  %v2708_v13 = vadd.f32 %v2664_v18, %v2335_v25  ;;  %v2907_v26 = vpop.f32.mrf.mxu0 }
 0x30a   : > { %3096 = vst.msk [vmem:[%s4499_s15 + $0x78] sm:$0xf] %vm3065_vm7, %v3059_v55  ;;  %v2948_v41 = vadd.f32 %v2904_v7, %v2708_v13 }
 0x30c   : > { %v2988_v16 = vadd.f32 %v3685_v28, %v2948_v41 }
 0x30d   : > { %v2294_v58 = vpop.f32.mrf.mxu2 }
 0x30e   : > { %v3024_v38 = vmax.f32 %v2988_v16, 0.0  ;;  %v2336_v35 = vadd.f32 %v2294_v58, %v1971_v39  ;;  %v1931_v8 = vpop.f32.mrf.mxu1 }
 0x30f   : > { %v1972_v53 = vadd.f32 %v1931_v8, %v4444_v54 }
 0x310   : > { %v3060_v12 = vpack.c.bf16 %v3024_v38, %v3024_v38  ;;  %v2709_v36 = vadd.f32 %v2667_v62, %v2336_v35  ;;  %v2909_v48 = vpop.f32.mrf.mxu0 }
 0x312   : > { %3097 = vst.msk [vmem:[%s4499_s15 + $0x7c] sm:$0xf] %vm3065_vm7, %v3060_v12  ;;  %v2949_v32 = vadd.f32 %v2907_v26, %v2709_v36 }
 0x314   : > { %v2989_v24 = vadd.f32 %v3685_v28, %v2949_v32 }
 0x315   : > { %v2296_v20 = vpop.f32.mrf.mxu2 }
 0x316   : > { %v3025_v23 = vmax.f32 %v2989_v24, 0.0  ;;  %v2337_v56 = vadd.f32 %v2296_v20, %v1972_v53  ;;  %v1934_v43 = vpop.f32.mrf.mxu1 }
 0x317   : > { %v1973_v0 = vadd.f32 %v1934_v43, %v4455_v21  ;;  %v2674_v21 = vpop.f32.mrf.mxu3 }
 0x318   : > { %v3061_v22 = vpack.c.bf16 %v3025_v23, %v3025_v23  ;;  %v2710_v60 = vadd.f32 %v2669_v50, %v2337_v56  ;;  %v2912_v54 = vpop.f32.mrf.mxu0 }
 0x31a   : > { %3098 = vst.msk [vmem:[%s4499_s15 + $0x80] sm:$0xf] %vm3065_vm7, %v3061_v22  ;;  %v2950_v27 = vadd.f32 %v2909_v48, %v2710_v60 }
 0x31c   : > { %v2990_v49 = vadd.f32 %v3685_v28, %v2950_v27 }
 0x31d   : > { %v2299_v40 = vpop.f32.mrf.mxu2 }
 0x31e   : > { %v3026_v1 = vmax.f32 %v2990_v49, 0.0  ;;  %v2338_v37 = vadd.f32 %v2299_v40, %v1973_v0  ;;  %v1936_v59 = vpop.f32.mrf.mxu1 }
 0x31f   : > { %v1974_v17 = vadd.f32 %v1936_v59, %v4470_v31 }
 0x320   : > { %v3062_v30 = vpack.c.bf16 %v3026_v1, %v3026_v1  ;;  %v2711_v9 = vadd.f32 %v2672_v14, %v2338_v37  ;;  %v2914_v3 = vpop.f32.mrf.mxu0 }
 0x322   : > { %3099 = vst.msk [vmem:[%s4499_s15 + $0x84] sm:$0xf] %vm3065_vm7, %v3062_v30  ;;  %v2951_v61 = vadd.f32 %v2912_v54, %v2711_v9 }
 0x324   : > { %v2991_v42 = vadd.f32 %v3685_v28, %v2951_v61 }
 0x325   : > { %v2301_v6 = vpop.f32.mrf.mxu2 }
 0x326   : > { %v3027_v47 = vmax.f32 %v2991_v42, 0.0  ;;  %v2339_v51 = vadd.f32 %v2301_v6, %v1974_v17 }
 0x328   : > { %v3063_v15 = vpack.c.bf16 %v3027_v47, %v3027_v47  ;;  %v2712_v52 = vadd.f32 %v2674_v21, %v2339_v51 }
 0x32a   : > { %3100 = vst.msk [vmem:[%s4499_s15 + $0x88] sm:$0xf] %vm3065_vm7, %v3063_v15  ;;  %v2952_v44 = vadd.f32 %v2914_v3, %v2712_v52 }
 0x32c   : > { %v2992_v10 = vadd.f32 %v3685_v28, %v2952_v44 }
 0x32e   : > { %v3028_v2 = vmax.f32 %v2992_v10, 0.0 }
 0x330   : > { %v3064_v63 = vpack.c.bf16 %v3028_v2, %v3028_v2 }
 0x332   : > { %3101 = vst.msk [vmem:[%s4499_s15 + $0x8c] sm:$0xf] %vm3065_vm7, %v3064_v63 }
 0x333 PF: > { %s13_s12 = sadd.s32 1, %s3692_s12  }
 0x334   : > { %p10_p4 = scmp.ge.s32.totalorder %s13_s12, 4  }
 0x336   :  { %12 = sbr.rel (!%p10_p4) target bundleno = 1 (0x1), region = 70 }

// kernel: resnet_forward.10
= control target key start
LH: loop header
LB: loop body
LE: loop exit
PB: predicated region body
PF: predicated region fallthrough
CT: control target
= control target key end

     0   :  { %s3976_s15 = smov 0   ;;  %s5141_s0 = inlined_call_operand.vmem [shape: bf16[2,342,16], index: 0, kind: input, shape index: {}]   ;;  %s5142_s1 = inlined_call_operand.vmem [shape: bf16[9,16,16], index: 1, kind: input, shape index: {}]   ;;  %s5143_s2 = inlined_call_operand.vmem [shape: f32[1,16], index: 2, kind: input, shape index: {}]   ;;  %s5144_s3 = inlined_call_operand.vmem [shape: bf16[2,288,16], index: 3, kind: input, shape index: {}]   ;;  %s5145_s4 = inlined_call_operand.vmem [shape: bf16[2,288,16], index: 4, kind: output, shape index: {}]  }
   0x1 LB: > { %s3324_s16 = sadd.s32 4294967295, %s3949_s15   ;;  %p3328_p0 = scmp.ge.s32.totalorder %s3949_s15, 1  ;;  %s3949_s15 = sphi %s3976_s15, %s14_s15  }
   0x2   : > { %p172_p1 = scmp.lt.s32.totalorder %s3949_s15, 3 }
   0x4   : > { %p173_p2 = pnand %p3328_p0, %p172_p1 }
   0x6   : > { %176 = sbr.rel (%p173_p2) target bundleno = 821 (0x335), region = 36 }
   0xb   : > { %v3770_v0 = vld [vmem:[%s5142_s1 + $0x8] sm:$0xff]  ;;  %p203_p3 = scmp.lt.s32.totalorder %s3324_s16, 1  ;;  %v3771_v1 = vld [vmem:[%s5142_s1 + $0x10] sm:$0xff]  ;;  %v3769_v2 = vld [vmem:[%s5142_s1] sm:$0xff]  ;;  %vm354_vm0 = vsmask.f32 7424 }
   0xc   : > { %v3790_v3 = vld [vmem:[%s5142_s1 + $0x20] sm:$0xff]  ;;  %3908 = vmatpush.bf16.msra.mxu1 %v3770_v0  ;;  %3909 = vmatpush.bf16.msra.mxu2 %v3770_v0  ;;  %vm509_vm1 = vcmask 130048   ;;  %v3789_v38 = vld [vmem:[%s5142_s1 + $0x18] sm:$0xff]  ;;  %vm811_vm2 = vcmask 1046528   ;;  %vm1416_vm3 = vsmask.f32 6400 }
   0xd   : > { %s5179_s16 = smov (!%p203_p3, %s3324_s16), 1  ;;  %571 = vmatpush.bf16.msra.mxu0 %v3770_v0  ;;  %3910 = vmatpush.bf16.msra.mxu3 %v3770_v0  ;;  %vm2394_vm4 = vsmask.f32 5376  ;;  %vm1789_vm5 = vcmask 1045504   ;;  %vm2767_vm6 = vcmask 1044480   ;;  %vm3220_vm7 = vcmask 125952  }
   0xe   : > { %s3911_s25 = smul.u32 172, %s5179_s16 }
   0xf   : > { %s3912_s13 = smul.u32 144, %s5179_s16 }
  0x10   : > { %916 = vmatpush.bf16.msrb.mxu2 %v3771_v1  ;;  %712 = vmatpush.bf16.msrb.mxu1 %v3769_v2  ;;  %s4002_s28 = scalar_lea.vmem %s5141_s0, %s3911_s25 }
  0x11   : > { %1654 = vmatpush.bf16.msrb.mxu0 %v3790_v3  ;;  %v4005_v4 = vld [vmem:[%s4002_s28 + $0x28] sm:$0xff]  ;;  %v4008_v5 = vld [vmem:[%s4002_s28 + $0x30] sm:$0xff]  ;;  %v4014_v7 = vld [vmem:[%s4002_s28 + $0x58] sm:$0xff]  ;;  %1281 = vmatpush.bf16.msrb.mxu3 %v3789_v38  ;;  %s4742_s18 = scalar_lea.vmem %s5144_s3, %s3912_s13  ;;  %s4780_s23 = scalar_lea.vmem %s5145_s4, %s3912_s13 }
  0x12   : > { %v4011_v6 = vld [vmem:[%s4002_s28 + $0x50] sm:$0xff]  ;;  %v4017_v8 = vld [vmem:[%s4002_s28] sm:$0xff]   ;;  %v4020_v9 = vld [vmem:[%s4002_s28 + $0x8] sm:$0xff]  ;;  %v395_v10 = vshll.u32 %v4005_v4, 16  ;;  %v399_v11 = vshrl.u32 %v4005_v4, 16  ;;  %v403_v12 = vshll.u32 %v4008_v5, 16 }
  0x13   : > { %v435_v13 = vshll.u32 %v4011_v6, 16  ;;  %v439_v14 = vshrl.u32 %v4011_v6, 16  ;;  %v443_v15 = vshll.u32 %v4014_v7, 16  ;;  %v356_v16 = vshrl.u32 %v4017_v8, 16  ;;  %v4038_v27 = vld [vmem:[%s4002_s28 + $0x78] sm:$0xff]  ;;  %v3767_v28 = vld [vmem:[%s4002_s28 + $0x80] sm:$0xff] }
  0x14   : > { %v358_v17 = vshll.u32 %v4017_v8, 16  ;;  %v4030_v18 = vrot.slane %v395_v10, 1  ;;  %v405_v19 = vrot.slane %v403_v12, 1  ;;  %v363_v21 = vshll.u32 %v4020_v9, 16  ;;  %v4047_v33 = vld [vmem:[%s4002_s28 + $0x38] sm:$0xff]  ;;  %v4051_v34 = vld [vmem:[%s4002_s28 + $0x60] sm:$0xff] }
  0x15   : > { %v4032_v20 = vrot.slane %v435_v13, 1  ;;  %v445_v22 = vrot.slane %v443_v15, 1  ;;  %v475_v35 = vshll.u32 %v4038_v27, 16  ;;  %v479_v36 = vshrl.u32 %v4038_v27, 16  ;;  %v4059_v39 = vld [vmem:[%s4002_s28 + $0x10] sm:$0xff]  ;;  %v3768_v54 = vld [vmem:[%s4002_s28 + $0x88] sm:$0xff] }
  0x16   : > { %v360_v23 = vrot.slane %v358_v17, 1  ;;  %v401_v24 = vor.u32 %v399_v11, %v4030_v18  ;;  %v365_v26 = vrot.slane %v363_v21, 1  ;;  %v483_v37 = vshll.u32 %v3767_v28, 16  ;;  %v4074_v55 = vld [vmem:[%s4002_s28 + $0x48] sm:$0xff]  ;;  %v4083_v0 = vld [vmem:[%s4002_s28 + $0x40] sm:$0xff]  ;;  %v4091_v12 = vld [vmem:[%s4002_s28 + $0x18] sm:$0xff] }
  0x17   : > { %v441_v25 = vor.u32 %v439_v14, %v4032_v20  ;;  %v4061_v40 = vrot.slane %v475_v35, 1  ;;  %v407_v42 = vshrl.u32 %v4008_v5, 16  ;;  %v411_v43 = vshll.u32 %v4047_v33, 16  ;;  %v4086_v1 = vld [vmem:[%s4002_s28 + $0x68] sm:$0xff]  ;;  %v257_v13 = vld [vmem:[%s4002_s28 + $0x90] sm:$0x1] }
  0x18   : > { %v361_v29 = vor.u32 %v360_v23, %v356_v16  ;;  %v406_v30 = vsel %vm354_vm0, %v401_v24, %v405_v19  ;;  %v485_v41 = vrot.slane %v483_v37, 1  ;;  %v447_v44 = vshrl.u32 %v4014_v7, 16 }
  0x19   : > { %v446_v31 = vsel %vm354_vm0, %v441_v25, %v445_v22  ;;  %3411 = vmatmul.msk.bf16.vlgmr.msra.gmra.mxu1 %vm509_vm1, %v406_v30  ;;  %v451_v45 = vshll.u32 %v4051_v34, 16  ;;  %v481_v46 = vor.u32 %v479_v36, %v4061_v40  ;;  %v367_v47 = vshrl.u32 %v4020_v9, 16 }
  0x1a   : > { %3416 = vmatmul.msk.bf16.vlgmr.msra.gmra.mxu2 %vm509_vm1, %v446_v31  ;;  %v366_v32 = vsel %vm354_vm0, %v361_v29, %v365_v26  ;;  %v371_v48 = vshll.u32 %v4059_v39, 16  ;;  %v409_v50 = vor.u32 %v407_v42, %v405_v19  ;;  %v413_v51 = vrot.slane %v411_v43, 1 }
  0x1b   : > { %3406 = vmatmul.msk.bf16.vlgmr.msra.gmra.mxu0 %vm509_vm1, %v366_v32  ;;  %v486_v49 = vsel %vm354_vm0, %v481_v46, %v485_v41  ;;  %v449_v52 = vor.u32 %v447_v44, %v445_v22  ;;  %v453_v53 = vrot.slane %v451_v45, 1  ;;  %v369_v56 = vor.u32 %v367_v47, %v365_v26  ;;  %v4100_v22 = vld [vmem:[%s4002_s28 + $0x20] sm:$0xff]  ;;  %v4121_v47 = vld [vmem:[%s4002_s28 + $0x70] sm:$0xff] }
  0x1c   : > { %3421 = vmatmul.msk.bf16.vlgmr.msra.gmra.mxu3 %vm509_vm1, %v486_v49  ;;  %v373_v57 = vrot.slane %v371_v48, 1  ;;  %v414_v58 = vsel %vm354_vm0, %v409_v50, %v413_v51  ;;  %v487_v60 = vshrl.u32 %v3767_v28, 16  ;;  %v491_v61 = vshll.u32 %v3768_v54, 16 }
  0x1d   : > { %v454_v59 = vsel %vm354_vm0, %v449_v52, %v453_v53  ;;  %v427_v62 = vshll.u32 %v4074_v55, 16  ;;  %v431_v11 = vshrl.u32 %v4074_v55, 16  ;;  %v415_v15 = vshrl.u32 %v4047_v33, 16 }
  0x1e   : > { %v374_v63 = vsel %vm354_vm0, %v369_v56, %v373_v57  ;;  %v489_v2 = vor.u32 %v487_v60, %v485_v41  ;;  %v493_v3 = vrot.slane %v491_v61, 1  ;;  %v419_v16 = vshll.u32 %v4083_v0, 16 }
  0x1f   : > { %v429_v10 = vrot.slane %v427_v62, 1  ;;  %v455_v17 = vshrl.u32 %v4051_v34, 16  ;;  %v459_v19 = vshll.u32 %v4086_v1, 16  ;;  %v334_v23 = vunpack.c.l.b16 %v257_v13 }
  0x20   : > { %v494_v21 = vsel %vm354_vm0, %v489_v2, %v493_v3  ;;  %v375_v25 = vshrl.u32 %v4059_v39, 16  ;;  %v379_v26 = vshll.u32 %v4091_v12, 16  ;;  %v417_v28 = vor.u32 %v415_v15, %v413_v51  ;;  %v3809_v15 = vld [vmem:[%s5142_s1 + $0x30] sm:$0xff] }
  0x21   : > { %v433_v14 = vor.u32 %v431_v11, %v429_v10  ;;  %v421_v29 = vrot.slane %v419_v16, 1  ;;  %v457_v30 = vor.u32 %v455_v17, %v453_v53  ;;  %v461_v31 = vrot.slane %v459_v19, 1  ;;  %v3772_v11 = vld [vmem:[%s4002_s28 + $0x10] sm:$0xff]  ;;  %v3810_v17 = vld [vmem:[%s5142_s1 + $0x38] sm:$0xff]  ;;  %v3791_v19 = vld [vmem:[%s5142_s1 + $0x28] sm:$0xff]  ;;  %2259 = vmatpush.bf16.msra.mxu2 %v3809_v15 }
  0x22   : > { %v387_v32 = vshll.u32 %v4100_v22, 16  ;;  %v4110_v35 = vpack.c.b16 %v334_v23, %v334_v23  ;;  %v377_v36 = vor.u32 %v375_v25, %v373_v57  ;;  %v381_v37 = vrot.slane %v379_v26, 1  ;;  %v1044_v57 = vld [vmem:[%s4002_s28 + $0x8] sm:$0xe]  ;;  %2632 = vmatpush.bf16.msra.mxu3 %v3810_v17  ;;  %1894 = vmatpush.bf16.msra.mxu1 %v3791_v19 }
  0x23   : > { %v4104_v24 = vsel %vm354_vm0, %v433_v14, %v4032_v20  ;;  %v422_v20 = vsel %vm354_vm0, %v417_v28, %v421_v29  ;;  %v462_v38 = vsel %vm354_vm0, %v457_v30, %v461_v31  ;;  %v495_v42 = vshrl.u32 %v3768_v54, 16  ;;  %v3888_v30 = vld [vmem:[%s4002_s28] sm:$0xf0] }
  0x24   : > { %v389_v41 = vrot.slane %v387_v32, 1  ;;  %v499_v43 = vshll.u32 %v4110_v35, 16  ;;  %v391_v44 = vshrl.u32 %v4100_v22, 16  ;;  %v382_v45 = vsel %vm354_vm0, %v377_v36, %v381_v37  ;;  %v3889_v32 = vld [vmem:[%s4002_s28] sm:$0xe] }
  0x25   : > { %v497_v48 = vor.u32 %v495_v42, %v493_v3  ;;  %v423_v51 = vshrl.u32 %v4083_v0, 16  ;;  %v463_v52 = vshrl.u32 %v4086_v1, 16  ;;  %v467_v53 = vshll.u32 %v4121_v47, 16 }
  0x26   : > { %v393_v46 = vor.u32 %v391_v44, %v389_v41  ;;  %v501_v49 = vrot.slane %v499_v43, 1  ;;  %v383_v56 = vshrl.u32 %v4091_v12, 16  ;;  %v1178_v16 = vrot.slane %v3772_v11, 1 }
  0x27   : > { %v465_v60 = vor.u32 %v463_v52, %v461_v31  ;;  %v469_v61 = vrot.slane %v467_v53, 1  ;;  %v471_v23 = vshrl.u32 %v4121_v47, 16 }
  0x28   : > { %v398_v50 = vsel %vm354_vm0, %v393_v46, %v4030_v18  ;;  %v502_v54 = vsel %vm354_vm0, %v497_v48, %v501_v49  ;;  %v1121_v18 = vunpack.c.l.b16 %v1044_v57  ;;  %v813_v46 = vrot.slane %v4020_v9, 1 }
  0x29   : > { %3412 = vmatmul.msk.bf16.gmra.mxu1 %vm509_vm1, %v414_v58  ;;  %v4132_v58 = vld [vmem:[%s4002_s28 + $0xc] sm:$0xf]  ;;  %v470_v3 = vsel %vm354_vm0, %v465_v60, %v469_v61  ;;  %v473_v26 = vor.u32 %v471_v23, %v469_v61  ;;  %v815_v61 = vrot.slane %v4059_v39, 1 }
  0x2a   : > { %3417 = vmatmul.msk.bf16.gmra.mxu2 %vm509_vm1, %v454_v59  ;;  %v425_v59 = vor.u32 %v423_v51, %v421_v29  ;;  %v5146_v62 = vunpack.c.l.b16 %v4132_v58  ;;  %v3773_v29 = vld [vmem:[%s4002_s28 + $0x18] sm:$0xff]  ;;  %v3774_v51 = vld [vmem:[%s4002_s28 + $0x20] sm:$0xff] }
  0x2b   : > { %3407 = vmatmul.msk.bf16.gmra.mxu0 %vm509_vm1, %v374_v63  ;;  %v385_v63 = vor.u32 %v383_v56, %v381_v37  ;;  %v478_v28 = vsel %vm354_vm0, %v473_v26, %v4061_v40  ;;  %v1180_v31 = vrot.slane %v3773_v29, 1  ;;  %v1182_v53 = vrot.slane %v3774_v51, 1 }
  0x2c   : > { %3422 = vmatmul.msk.bf16.gmra.mxu3 %vm509_vm1, %v494_v21  ;;  %v430_v2 = vsel %vm354_vm0, %v425_v59, %v429_v10  ;;  %v1158_v13 = vpack.c.b16 %v5146_v62, %v1121_v18  ;;  %v3811_v21 = vld [vmem:[%s5142_s1 + $0x40] sm:$0xff]  ;;  %v1438_v56 = vshll.u32 %v3773_v29, 16 }
  0x2d   : > { %v390_v14 = vsel %vm354_vm0, %v385_v63, %v389_v41  ;;  %2872 = vmatpush.bf16.msra.mxu0 %v3811_v21  ;;  %v3890_v41 = vor.u32 %v3889_v32, %v3888_v30  ;;  %v1181_v42 = vsel %vm811_vm2, %v1178_v16, %v1180_v31  ;;  %v1183_v57 = vsel %vm811_vm2, %v1180_v31, %v1182_v53  ;;  %v3776_v21 = vld [vmem:[%s4002_s28 + $0x30] sm:$0xff]  ;;  %v3782_v62 = vld [vmem:[%s4002_s28 + $0x60] sm:$0xff] }
  0x2e   : > { %v1177_v10 = vrot.slane %v1158_v13, 1  ;;  %v1418_v36 = vshrl.u32 %v1158_v13, 16  ;;  %v1421_v37 = vshll.u32 %v1158_v13, 16  ;;  %v1440_v60 = vrot.slane %v1438_v56, 2 }
  0x2f   : > { %v816_v63 = vsel %vm811_vm2, %v813_v46, %v815_v61  ;;  %v1447_v13 = vshll.u32 %v3774_v51, 16  ;;  %v1186_v23 = vrot.slane %v3776_v21, 1  ;;  %v819_v31 = vrot.slane %v4100_v22, 1 }
  0x30   : > { %v1179_v25 = vsel %vm811_vm2, %v1177_v10, %v1178_v16  ;;  %v1420_v40 = vrot.slane %v1418_v36, 1  ;;  %v1423_v43 = vrot.slane %v1421_v37, 2  ;;  %v817_v16 = vrot.slane %v4091_v12, 1  ;;  %v3777_v37 = vld [vmem:[%s4002_s28 + $0x38] sm:$0xff] }
  0x31   : > { %v1449_v10 = vrot.slane %v1447_v13, 2  ;;  %v823_v13 = vrot.slane %v4008_v5, 1 }
  0x32   : > { %v1424_v48 = vor.u32 %v1423_v43, %v1420_v40  ;;  %v818_v19 = vsel %vm811_vm2, %v815_v61, %v817_v16  ;;  %v1465_v40 = vshll.u32 %v3776_v21, 16  ;;  %v1474_v61 = vshll.u32 %v3777_v37, 16 }
  0x39   : > { %3413 = vmatmul.msk.bf16.gmra.mxu1 %vm509_vm1, %v422_v20  ;;  %v1426_v20 = vshrl.u32 %v3772_v11, 16 }
  0x3a   : > { %3418 = vmatmul.msk.bf16.gmra.mxu2 %vm509_vm1, %v462_v38  ;;  %v1429_v38 = vshll.u32 %v3772_v11, 16  ;;  %v1444_v11 = vshrl.u32 %v3774_v51, 16 }
  0x3b   : > { %3408 = vmatmul.msk.bf16.gmra.mxu0 %vm509_vm1, %v382_v45  ;;  %v1428_v44 = vrot.slane %v1426_v20, 1 }
  0x3c   : > { %3423 = vmatmul.msk.bf16.gmra.mxu3 %vm509_vm1, %v502_v54  ;;  %v1431_v45 = vrot.slane %v1429_v38, 2  ;;  %v1435_v54 = vshrl.u32 %v3773_v29, 16  ;;  %v1446_v15 = vrot.slane %v1444_v11, 1 }
  0x3e   : > { %v1432_v49 = vor.u32 %v1431_v45, %v1428_v44  ;;  %v1437_v59 = vrot.slane %v1435_v54, 1  ;;  %v1450_v17 = vor.u32 %v1449_v10, %v1446_v15  ;;  %v3778_v54 = vld [vmem:[%s4002_s28 + $0x40] sm:$0xff] }
  0x40   : > { %v1433_v52 = vsel %vm1416_vm3, %v1424_v48, %v1432_v49  ;;  %v1441_v18 = vor.u32 %v1440_v60, %v1437_v59  ;;  %v1467_v48 = vrot.slane %v1465_v40, 2  ;;  %v1190_v59 = vrot.slane %v3778_v54, 1 }
  0x41   : > { %v1471_v60 = vshrl.u32 %v3777_v37, 16 }
  0x43   : > { %v1473_v11 = vrot.slane %v1471_v60, 1 }
  0x49   : > { %3414 = vmatmul.msk.bf16.gmra.mxu1 %vm509_vm1, %v430_v2  ;;  %v1442_v2 = vsel %vm1416_vm3, %v1432_v49, %v1441_v18 }
  0x4a   : > { %3419 = vmatmul.msk.bf16.gmra.mxu2 %vm509_vm1, %v470_v3 }
  0x4b   : > { %3409 = vmatmul.msk.bf16.gmra.mxu0 %vm509_vm1, %v390_v14 }
  0x4c   : > { %3544 = vmatmul.msk.bf16.vlgmr.msrb.gmra.mxu3 %vm509_vm1, %v1179_v25 }
  0x59   : > { %3415 = vmatmul.msk.bf16.gmra.mxu1 %vm509_vm1, %v4104_v24  ;;  %v812_v24 = vrot.slane %v3890_v41, 1  ;;  %v1188_v41 = vrot.slane %v3777_v37, 1  ;;  %v825_v37 = vrot.slane %v4047_v33, 1 }
  0x5a   : > { %3420 = vmatmul.msk.bf16.gmra.mxu2 %vm509_vm1, %v478_v28 }
  0x5b   : > { %3410 = vmatmul.msk.bf16.gmra.mxu0 %vm509_vm1, %v398_v50  ;;  %v814_v50 = vsel %vm811_vm2, %v812_v24, %v813_v46  ;;  %v1189_v45 = vsel %vm811_vm2, %v1186_v23, %v1188_v41 }
  0x5c   : > { %3545 = vmatmul.msk.bf16.gmra.mxu3 %vm509_vm1, %v1181_v42  ;;  %v1462_v42 = vshrl.u32 %v3776_v21, 16 }
  0x5e   : > { %v1464_v46 = vrot.slane %v1462_v42, 1 }
  0x60   : > { %v1468_v49 = vor.u32 %v1467_v48, %v1464_v46  ;;  %v3780_v46 = vld [vmem:[%s4002_s28 + $0x50] sm:$0xff] }
  0x69   : > { %3428 = vmatmul.msk.bf16.vlgmr.msrb.gmra.mxu1 %vm509_vm1, %v4017_v8  ;;  %v3775_v8 = vld [vmem:[%s4002_s28 + $0x28] sm:$0xff] }
  0x6a   : > { %3452 = vmatmul.msk.bf16.vlgmr.msrb.gmra.mxu2 %vm509_vm1, %v814_v50  ;;  %v1184_v3 = vrot.slane %v3775_v8, 1  ;;  %v1453_v25 = vshrl.u32 %v3775_v8, 16  ;;  %v1456_v26 = vshll.u32 %v3775_v8, 16 }
  0x6b   : > { %3568 = vmatmul.msk.bf16.vlgmr.msrb.gmra.mxu0 %vm509_vm1, %v1433_v52 }
  0x6c   : > { %3546 = vmatmul.msk.bf16.gmra.mxu3 %vm509_vm1, %v1183_v57  ;;  %v1185_v14 = vsel %vm811_vm2, %v1182_v53, %v1184_v3  ;;  %v1187_v28 = vsel %vm811_vm2, %v1184_v3, %v1186_v23  ;;  %v1455_v29 = vrot.slane %v1453_v25, 1  ;;  %v1458_v30 = vrot.slane %v1456_v26, 2 }
  0x6d   : > { %v1480_v25 = vshrl.u32 %v3778_v54, 16  ;;  %v1483_v26 = vshll.u32 %v3778_v54, 16 }
  0x6e   : > { %v1459_v32 = vor.u32 %v1458_v30, %v1455_v29 }
  0x70   : > { %v1460_v38 = vsel %vm1416_vm3, %v1450_v17, %v1459_v32  ;;  %v1469_v57 = vsel %vm1416_vm3, %v1459_v32, %v1468_v49 }
  0x79   : > { %3429 = vmatmul.msk.bf16.gmra.mxu1 %vm509_vm1, %v4020_v9  ;;  %v1451_v9 = vsel %vm1416_vm3, %v1441_v18, %v1450_v17 }
  0x7a   : > { %3453 = vmatmul.msk.bf16.gmra.mxu2 %vm509_vm1, %v816_v63 }
  0x7b   : > { %3569 = vmatmul.msk.bf16.gmra.mxu0 %vm509_vm1, %v1442_v2  ;;  %v1191_v2 = vsel %vm811_vm2, %v1188_v41, %v1190_v59 }
  0x7c   : > { %3547 = vmatmul.msk.bf16.gmra.mxu3 %vm509_vm1, %v1185_v14 }
  0x89   : > { %3430 = vmatmul.msk.bf16.gmra.mxu1 %vm509_vm1, %v4059_v39  ;;  %v820_v39 = vsel %vm811_vm2, %v817_v16, %v819_v31 }
  0x8a   : > { %3454 = vmatmul.msk.bf16.gmra.mxu2 %vm509_vm1, %v818_v19  ;;  %v3779_v19 = vld [vmem:[%s4002_s28 + $0x48] sm:$0xff] }
  0x8b   : > { %3570 = vmatmul.msk.bf16.gmra.mxu0 %vm509_vm1, %v1451_v9  ;;  %v1192_v23 = vrot.slane %v3779_v19, 1  ;;  %v1492_v54 = vshll.u32 %v3779_v19, 16 }
  0x8c   : > { %3548 = vmatmul.msk.bf16.gmra.mxu3 %vm509_vm1, %v1187_v28 }
  0x96   : > { %v4202_v36 = vpop.f32.mrf.mxu1 }
  0x98   : > { %v4206_v20 = vpop.f32.mrf.mxu0 }
  0x99   : > { %3431 = vmatmul.msk.bf16.gmra.mxu1 %vm509_vm1, %v4091_v12  ;;  %v821_v12 = vrot.slane %v4005_v4, 1 }
  0x9a   : > { %3455 = vmatmul.msk.bf16.gmra.mxu2 %vm509_vm1, %v820_v39  ;;  %v1482_v39 = vrot.slane %v1480_v25, 1  ;;  %v3781_v25 = vld [vmem:[%s4002_s28 + $0x58] sm:$0xff] }
  0x9b   : > { %3571 = vmatmul.msk.bf16.gmra.mxu0 %vm509_vm1, %v1460_v38  ;;  %v822_v53 = vsel %vm811_vm2, %v819_v31, %v821_v12  ;;  %v824_v17 = vsel %vm811_vm2, %v821_v12, %v823_v13  ;;  %v1193_v31 = vsel %vm811_vm2, %v1190_v59, %v1192_v23 }
  0x9c   : > { %3549 = vmatmul.msk.bf16.gmra.mxu3 %vm509_vm1, %v1189_v45  ;;  %v826_v45 = vsel %vm811_vm2, %v823_v13, %v825_v37 }
  0x9d   : > { %v4213_v43 = vpop.f32.mrf.mxu2 }
  0x9e   : > { %v4215_v44 = vpop.f32.mrf.mxu1 }
  0x9f   : > { %v4224_v51 = vpop.f32.mrf.mxu3 }
  0xa0   : > { %v4218_v24 = vpop.f32.mrf.mxu0  ;;  %5148 = vst [vmem:[#allocation2_spill] sm:$0xff] %v4224_v51 }
  0xa5   : > { %v4222_v50 = vpop.f32.mrf.mxu2 }
  0xa6   : > { %v4226_v52 = vpop.f32.mrf.mxu1 }
  0xa7   : > { %v4239_v63 = vpop.f32.mrf.mxu3 }
  0xa8   : > { %v4230_v56 = vpop.f32.mrf.mxu0  ;;  %5149 = vst [vmem:[#allocation3_spill] sm:$0xff] %v4239_v63 }
  0xa9   : > { %3432 = vmatmul.msk.bf16.gmra.mxu1 %vm509_vm1, %v4100_v22  ;;  %v1476_v22 = vrot.slane %v1474_v61, 2 }
  0xaa   : > { %3456 = vmatmul.msk.bf16.gmra.mxu2 %vm509_vm1, %v822_v53  ;;  %v1489_v53 = vshrl.u32 %v3779_v19, 16 }
  0xab   : > { %3572 = vmatmul.msk.bf16.gmra.mxu0 %vm509_vm1, %v1469_v57  ;;  %v1477_v14 = vor.u32 %v1476_v22, %v1473_v11  ;;  %v827_v22 = vrot.slane %v4083_v0, 1 }
  0xac   : > { %3550 = vmatmul.msk.bf16.gmra.mxu3 %vm509_vm1, %v1191_v2  ;;  %v1491_v11 = vrot.slane %v1489_v53, 1 }
  0xad   : > { %v4237_v18 = vpop.f32.mrf.mxu2  ;;  %v1478_v9 = vsel %vm1416_vm3, %v1468_v49, %v1477_v14  ;;  %v1194_v49 = vrot.slane %v3780_v46, 1 }
  0xae   : > { %v4241_v8 = vpop.f32.mrf.mxu1 }
  0xaf   : > { %v4250_v10 = vpop.f32.mrf.mxu3  ;;  %v1195_v61 = vsel %vm811_vm2, %v1192_v23, %v1194_v49 }
  0xb0   : > { %v4244_v3 = vpop.f32.mrf.mxu0  ;;  %5150 = vst [vmem:[#allocation4_spill] sm:$0xff] %v4250_v10 }
  0xb5   : > { %v4248_v15 = vpop.f32.mrf.mxu2 }
  0xb6   : > { %v4252_v16 = vpop.f32.mrf.mxu1 }
  0xb7   : > { %v4265_v29 = vpop.f32.mrf.mxu3 }
  0xb8   : > { %v4256_v21 = vpop.f32.mrf.mxu0  ;;  %5151 = vst [vmem:[#allocation5_spill] sm:$0xff] %v4265_v29 }
  0xb9   : > { %3433 = vmatmul.msk.bf16.gmra.mxu1 %vm509_vm1, %v4005_v4  ;;  %v1485_v4 = vrot.slane %v1483_v26, 2 }
  0xba   : > { %3457 = vmatmul.msk.bf16.gmra.mxu2 %vm509_vm1, %v824_v17 }
  0xbb   : > { %3573 = vmatmul.msk.bf16.gmra.mxu0 %vm509_vm1, %v1478_v9  ;;  %v1486_v38 = vor.u32 %v1485_v4, %v1482_v39  ;;  %v828_v9 = vsel %vm811_vm2, %v825_v37, %v827_v22  ;;  %v1498_v39 = vshrl.u32 %v3780_v46, 16  ;;  %v1501_v4 = vshll.u32 %v3780_v46, 16 }
  0xbc   : > { %3551 = vmatmul.msk.bf16.gmra.mxu3 %vm509_vm1, %v1193_v31  ;;  %v1196_v31 = vrot.slane %v3781_v25, 1 }
  0xbd   : > { %v4263_v28 = vpop.f32.mrf.mxu2  ;;  %v1487_v12 = vsel %vm1416_vm3, %v1477_v14, %v1486_v38 }
  0xbe   : > { %v4267_v30 = vpop.f32.mrf.mxu1  ;;  %v1197_v53 = vsel %vm811_vm2, %v1194_v49, %v1196_v31  ;;  %v1198_v49 = vrot.slane %v3782_v62, 1 }
  0xbf   : > { %v4276_v42 = vpop.f32.mrf.mxu3 }
  0xc0   : > { %v4270_v32 = vpop.f32.mrf.mxu0  ;;  %5152 = vst [vmem:[#allocation6_spill] sm:$0xff] %v4276_v42  ;;  %v1199_v10 = vsel %vm811_vm2, %v1196_v31, %v1198_v49  ;;  %v3783_v31 = vld [vmem:[%s4002_s28 + $0x68] sm:$0xff] }
  0xc5   : > { %v4274_v41 = vpop.f32.mrf.mxu2 }
  0xc6   : > { %v4278_v40 = vpop.f32.mrf.mxu1 }
  0xc7   : > { %v4291_v59 = vpop.f32.mrf.mxu3 }
  0xc8   : > { %v4282_v48 = vpop.f32.mrf.mxu0  ;;  %5153 = vst [vmem:[#allocation7_spill] sm:$0xff] %v4291_v59 }
  0xc9   : > { %3434 = vmatmul.msk.bf16.gmra.mxu1 %vm509_vm1, %v4008_v5  ;;  %v1494_v5 = vrot.slane %v1492_v54, 2 }
  0xca   : > { %3458 = vmatmul.msk.bf16.gmra.mxu2 %vm509_vm1, %v826_v45 }
  0xcb   : > { %3574 = vmatmul.msk.bf16.gmra.mxu0 %vm509_vm1, %v1487_v12  ;;  %v1495_v13 = vor.u32 %v1494_v5, %v1491_v11 }
  0xcc   : > { %3552 = vmatmul.msk.bf16.gmra.mxu3 %vm509_vm1, %v1195_v61  ;;  %v1503_v61 = vrot.slane %v1501_v4, 2  ;;  %v1507_v4 = vshrl.u32 %v3781_v25, 16 }
  0xcd   : > { %v4289_v57 = vpop.f32.mrf.mxu2  ;;  %v1496_v23 = vsel %vm1416_vm3, %v1486_v38, %v1495_v13  ;;  %v1500_v38 = vrot.slane %v1498_v39, 1 }
  0xce   : > { %v4293_v60 = vpop.f32.mrf.mxu1  ;;  %v1509_v51 = vrot.slane %v1507_v4, 1 }
  0xcf   : > { %v1283_v17 = vpop.f32.mrf.mxu3  ;;  %v1504_v11 = vor.u32 %v1503_v61, %v1500_v38 }
  0xd0   : > { %v4296_v2 = vpop.f32.mrf.mxu0 }
  0xd1   : > { %v1505_v42 = vsel %vm1416_vm3, %v1495_v13, %v1504_v11 }
  0xd5   : > { %v4300_v14 = vpop.f32.mrf.mxu2 }
  0xd6   : > { %v4302_v19 = vpop.f32.mrf.mxu1 }
  0xd7   : > { %v1285_v12 = vpop.f32.mrf.mxu3 }
  0xd8   : > { %v4306_v26 = vpop.f32.mrf.mxu0 }
  0xd9   : > { %3435 = vmatmul.msk.bf16.gmra.mxu1 %vm509_vm1, %v4047_v33  ;;  %v829_v33 = vrot.slane %v4074_v55, 1 }
  0xda   : > { %3459 = vmatmul.msk.bf16.gmra.mxu2 %vm509_vm1, %v828_v9 }
  0xdb   : > { %3575 = vmatmul.msk.bf16.gmra.mxu0 %vm509_vm1, %v1496_v23  ;;  %v830_v23 = vsel %vm811_vm2, %v827_v22, %v829_v33 }
  0xdc   : > { %3553 = vmatmul.msk.bf16.gmra.mxu3 %vm509_vm1, %v1197_v53  ;;  %v1510_v53 = vshll.u32 %v3781_v25, 16 }
  0xdd   : > { %v4313_v45 = vpop.f32.mrf.mxu2 }
  0xde   : > { %5154 = vst [vmem:[#allocation8_spill] sm:$0xff] %v4313_v45  ;;  %v4315_v37 = vpop.f32.mrf.mxu1 }
  0xdf   : > { %v1288_v9 = vpop.f32.mrf.mxu3 }
  0xe0   : > { %v4318_v54 = vpop.f32.mrf.mxu0 }
  0xe5   : > { %v4322_v5 = vpop.f32.mrf.mxu2 }
  0xe6   : > { %5155 = vst [vmem:[#allocation9_spill] sm:$0xff] %v4322_v5  ;;  %v714_v46 = vpop.f32.mrf.mxu1 }
  0xe7   : > { %v715_v39 = vadd.f32 %v714_v46, %v4206_v20  ;;  %v1290_v61 = vpop.f32.mrf.mxu3 }
  0xe8   : > { %v1656_v59 = vpop.f32.mrf.mxu0 }
  0xe9   : > { %3436 = vmatmul.msk.bf16.gmra.mxu1 %vm509_vm1, %v4083_v0  ;;  %v1512_v0 = vrot.slane %v1510_v53, 2  ;;  %v1519_v53 = vshll.u32 %v3782_v62, 16 }
  0xea   : > { %3460 = vmatmul.msk.bf16.gmra.mxu2 %vm509_vm1, %v830_v23 }
  0xeb   : > { %3576 = vmatmul.msk.bf16.gmra.mxu0 %vm509_vm1, %v1505_v42  ;;  %v831_v42 = vrot.slane %v4011_v6, 1  ;;  %v1513_v25 = vor.u32 %v1512_v0, %v1509_v51 }
  0xec   : > { %3554 = vmatmul.msk.bf16.gmra.mxu3 %vm509_vm1, %v1199_v10 }
  0xed   : > { %v918_v38 = vpop.f32.mrf.mxu2  ;;  %v832_v45 = vsel %vm811_vm2, %v829_v33, %v831_v42  ;;  %v1514_v4 = vsel %vm1416_vm3, %v1504_v11, %v1513_v25 }
  0xee   : > { %v1008_v29 = vadd.f32 %v918_v38, %v715_v39  ;;  %v716_v22 = vpop.f32.mrf.mxu1 }
  0xef   : > { %v717_v20 = vadd.f32 %v716_v22, %v4218_v24  ;;  %v1293_v5 = vpop.f32.mrf.mxu3  ;;  %v1200_v24 = vrot.slane %v3783_v31, 1 }
  0xf0   : > { %v1373_v13 = vadd.f32 %v1283_v17, %v1008_v29  ;;  %v1658_v63 = vpop.f32.mrf.mxu0 }
  0xf1   : > { %v1201_v11 = vsel %vm811_vm2, %v1198_v49, %v1200_v24  ;;  %v3784_v49 = vld [vmem:[%s4002_s28 + $0x70] sm:$0xff] }
  0xf2   : > { %v4334_v23 = vadd.f32 %v1656_v59, %v1373_v13  ;;  %v1516_v59 = vshrl.u32 %v3782_v62, 16 }
  0xf5   : > { %v920_v46 = vpop.f32.mrf.mxu2 }
  0xf6   : > { %v1009_v39 = vadd.f32 %v920_v46, %v717_v20  ;;  %v719_v38 = vpop.f32.mrf.mxu1  ;;  %v1518_v20 = vrot.slane %v1516_v59, 1  ;;  %v833_v46 = vrot.slane %v4014_v7, 1 }
  0xf7   : > { %v720_v51 = vadd.f32 %v719_v38, %v4230_v56  ;;  %v1295_v22 = vpop.f32.mrf.mxu3 }
  0xf8   : > { %v1374_v29 = vadd.f32 %v1285_v12, %v1009_v39  ;;  %v1661_v17 = vpop.f32.mrf.mxu0 }
  0xf9   : > { %3437 = vmatmul.msk.bf16.gmra.mxu1 %vm509_vm1, %v4074_v55 }
  0xfa   : > { %3461 = vmatmul.msk.bf16.gmra.mxu2 %vm509_vm1, %v832_v45  ;;  %v4344_v10 = vadd.f32 %v1658_v63, %v1374_v29  ;;  %v1521_v45 = vrot.slane %v1519_v53, 2 }
  0xfb   : > { %3577 = vmatmul.msk.bf16.gmra.mxu0 %vm509_vm1, %v1514_v4 }
  0xfc   : > { %3555 = vmatmul.msk.bf16.gmra.mxu3 %vm509_vm1, %v1201_v11  ;;  %v1522_v62 = vor.u32 %v1521_v45, %v1518_v20 }
  0xfd   : > { %v923_v33 = vpop.f32.mrf.mxu2 }
  0xfe   : > { %v1010_v12 = vadd.f32 %v923_v33, %v720_v51  ;;  %v721_v13 = vpop.f32.mrf.mxu1  ;;  %v834_v51 = vsel %vm811_vm2, %v831_v42, %v833_v46  ;;  %v1523_v59 = vsel %vm1416_vm3, %v1513_v25, %v1522_v62 }
  0xff   : > { %v722_v56 = vadd.f32 %v721_v13, %v4244_v3  ;;  %v1298_v38 = vpop.f32.mrf.mxu3  ;;  %v1202_v3 = vrot.slane %v3784_v49, 1  ;;  %v1528_v13 = vshll.u32 %v3783_v31, 16 }
 0x100   : > { %v1375_v0 = vadd.f32 %v1288_v9, %v1010_v12  ;;  %v1663_v55 = vpop.f32.mrf.mxu0  ;;  %v1525_v12 = vshrl.u32 %v3783_v31, 16 }
 0x101   : > { %v1203_v25 = vsel %vm811_vm2, %v1200_v24, %v1202_v3  ;;  %v3785_v24 = vld [vmem:[%s4002_s28 + $0x78] sm:$0xff] }
 0x102   : > { %v4350_v63 = vadd.f32 %v1661_v17, %v1375_v0  ;;  %v1527_v45 = vrot.slane %v1525_v12, 1 }
 0x105   : > { %v925_v39 = vpop.f32.mrf.mxu2 }
 0x106   : > { %v1011_v29 = vadd.f32 %v925_v39, %v722_v56  ;;  %v724_v4 = vpop.f32.mrf.mxu1  ;;  %v1530_v56 = vrot.slane %v1528_v13, 2  ;;  %v835_v39 = vrot.slane %v4051_v34, 1 }
 0x107   : > { %v725_v53 = vadd.f32 %v724_v4, %v4256_v21  ;;  %v1300_v11 = vpop.f32.mrf.mxu3 }
 0x108   : > { %v1376_v9 = vadd.f32 %v1290_v61, %v1011_v29  ;;  %v1666_v33 = vpop.f32.mrf.mxu0  ;;  %v1531_v31 = vor.u32 %v1530_v56, %v1527_v45 }
 0x109   : > { %3438 = vmatmul.msk.bf16.gmra.mxu1 %vm509_vm1, %v4011_v6 }
 0x10a   : > { %3462 = vmatmul.msk.bf16.gmra.mxu2 %vm509_vm1, %v834_v51  ;;  %v4360_v17 = vadd.f32 %v1663_v55, %v1376_v9  ;;  %v1532_v12 = vsel %vm1416_vm3, %v1522_v62, %v1531_v31 }
 0x10b   : > { %3578 = vmatmul.msk.bf16.gmra.mxu0 %vm509_vm1, %v1523_v59  ;;  %v836_v59 = vsel %vm811_vm2, %v833_v46, %v835_v39 }
 0x10c   : > { %3556 = vmatmul.msk.bf16.gmra.mxu3 %vm509_vm1, %v1203_v25 }
 0x10d   : > { %v928_v42 = vpop.f32.mrf.mxu2 }
 0x10e   : > { %v1012_v61 = vadd.f32 %v928_v42, %v725_v53  ;;  %v726_v0 = vpop.f32.mrf.mxu1  ;;  %v1534_v42 = vshrl.u32 %v3784_v49, 16 }
 0x10f   : > { %v727_v21 = vadd.f32 %v726_v0, %v4270_v32  ;;  %v1303_v4 = vpop.f32.mrf.mxu3  ;;  %v1204_v32 = vrot.slane %v3785_v24, 1 }
 0x110   : > { %v1377_v20 = vadd.f32 %v1293_v5, %v1012_v61  ;;  %v1668_v6 = vpop.f32.mrf.mxu0  ;;  %v1537_v61 = vshll.u32 %v3784_v49, 16  ;;  %v1536_v45 = vrot.slane %v1534_v42, 1 }
 0x111   : > { %v1205_v62 = vsel %vm811_vm2, %v1202_v3, %v1204_v32  ;;  %v3786_v3 = vld [vmem:[%s4002_s28 + $0x80] sm:$0xff] }
 0x112   : > { %v4366_v55 = vadd.f32 %v1666_v33, %v1377_v20  ;;  %v1539_v56 = vrot.slane %v1537_v61, 2  ;;  %v1543_v61 = vshrl.u32 %v3785_v24, 16 }
 0x114   : > { %v1540_v49 = vor.u32 %v1539_v56, %v1536_v45  ;;  %v839_v56 = vrot.slane %v4121_v47, 1 }
 0x115   : > { %v930_v29 = vpop.f32.mrf.mxu2 }
 0x116   : > { %v1013_v51 = vadd.f32 %v930_v29, %v727_v21  ;;  %v729_v9 = vpop.f32.mrf.mxu1  ;;  %v837_v21 = vrot.slane %v4086_v1, 1 }
 0x117   : > { %v730_v13 = vadd.f32 %v729_v9, %v4282_v48  ;;  %v1305_v0 = vpop.f32.mrf.mxu3 }
 0x118   : > { %v1378_v5 = vadd.f32 %v1295_v22, %v1013_v51  ;;  %v1671_v53 = vpop.f32.mrf.mxu0 }
 0x119   : > { %3439 = vmatmul.msk.bf16.gmra.mxu1 %vm509_vm1, %v4014_v7 }
 0x11a   : > { %3463 = vmatmul.msk.bf16.gmra.mxu2 %vm509_vm1, %v836_v59  ;;  %v4376_v33 = vadd.f32 %v1668_v6, %v1378_v5  ;;  %v838_v5 = vsel %vm811_vm2, %v835_v39, %v837_v21 }
 0x11b   : > { %3579 = vmatmul.msk.bf16.gmra.mxu0 %vm509_vm1, %v1532_v12 }
 0x11c   : > { %3557 = vmatmul.msk.bf16.gmra.mxu3 %vm509_vm1, %v1205_v62 }
 0x11d   : > { %v933_v46 = vpop.f32.mrf.mxu2 }
 0x11e   : > { %v1014_v22 = vadd.f32 %v933_v46, %v730_v13  ;;  %v731_v25 = vpop.f32.mrf.mxu1  ;;  %v1541_v13 = vsel %vm1416_vm3, %v1531_v31, %v1540_v49  ;;  %v1546_v46 = vshll.u32 %v3785_v24, 16 }
 0x11f   : > { %v732_v48 = vadd.f32 %v731_v25, %v4296_v2  ;;  %v1308_v51 = vpop.f32.mrf.mxu3  ;;  %v1206_v2 = vrot.slane %v3786_v3, 1 }
 0x120   : > { %v1379_v20 = vadd.f32 %v1298_v38, %v1014_v22  ;;  %v1673_v7 = vpop.f32.mrf.mxu0  ;;  %v1548_v45 = vrot.slane %v1546_v46, 2  ;;  %v1555_v46 = vshll.u32 %v3786_v3, 16 }
 0x121   : > { %v1207_v31 = vsel %vm811_vm2, %v1204_v32, %v1206_v2  ;;  %v3787_v32 = vld [vmem:[%s4002_s28 + $0x88] sm:$0xff] }
 0x122   : > { %v4382_v6 = vadd.f32 %v1671_v53, %v1379_v20  ;;  %v1545_v20 = vrot.slane %v1543_v61, 1  ;;  %v1552_v61 = vshrl.u32 %v3786_v3, 16 }
 0x124   : > { %v1549_v24 = vor.u32 %v1548_v45, %v1545_v20  ;;  %v841_v20 = vrot.slane %v4038_v27, 1 }
 0x125   : > { %v935_v29 = vpop.f32.mrf.mxu2 }
 0x126   : > { %v1015_v9 = vadd.f32 %v935_v29, %v732_v48  ;;  %v734_v59 = vpop.f32.mrf.mxu1 }
 0x127   : > { %v735_v42 = vadd.f32 %v734_v59, %v4306_v26  ;;  %v1310_v22 = vpop.f32.mrf.mxu3 }
 0x128   : > { %v1380_v38 = vadd.f32 %v1300_v11, %v1015_v9  ;;  %v1676_v12 = vpop.f32.mrf.mxu0 }
 0x129   : > { %3440 = vmatmul.msk.bf16.gmra.mxu1 %vm509_vm1, %v4051_v34 }
 0x12a   : > { %3464 = vmatmul.msk.bf16.gmra.mxu2 %vm509_vm1, %v838_v5  ;;  %v4392_v53 = vadd.f32 %v1673_v7, %v1380_v38  ;;  %v840_v5 = vsel %vm811_vm2, %v837_v21, %v839_v56 }
 0x12b   : > { %3580 = vmatmul.msk.bf16.gmra.mxu0 %vm509_vm1, %v1541_v13  ;;  %v1550_v13 = vsel %vm1416_vm3, %v1540_v49, %v1549_v24 }
 0x12c   : > { %3558 = vmatmul.msk.bf16.gmra.mxu3 %vm509_vm1, %v1207_v31  ;;  %v1554_v31 = vrot.slane %v1552_v61, 1 }
 0x12d   : > { %v938_v39 = vpop.f32.mrf.mxu2 }
 0x12e   : > { %v1016_v11 = vadd.f32 %v938_v39, %v735_v42  ;;  %v736_v25 = vpop.f32.mrf.mxu1 }
 0x12f   : > { %v737_v26 = vadd.f32 %v736_v25, %v4318_v54  ;;  %v1313_v29 = vpop.f32.mrf.mxu3  ;;  %v1208_v54 = vrot.slane %v3787_v32, 1 }
 0x130   : > { %v1381_v62 = vadd.f32 %v1303_v4, %v1016_v11  ;;  %v1678_v34 = vpop.f32.mrf.mxu0 }
 0x131   : > { %v1209_v49 = vsel %vm811_vm2, %v1206_v2, %v1208_v54  ;;  %v3788_v2 = vld [vmem:[%s4002_s28 + $0x90] sm:$0xff] }
 0x132   : > { %v4398_v7 = vadd.f32 %v1676_v12, %v1381_v62  ;;  %v1557_v62 = vrot.slane %v1555_v46, 2 }
 0x134   : > { %v1558_v3 = vor.u32 %v1557_v62, %v1554_v31 }
 0x135   : > { %v940_v48 = vpop.f32.mrf.mxu2 }
 0x136   : > { %v1017_v9 = vadd.f32 %v940_v48, %v737_v26  ;;  %v739_v59 = vpop.f32.mrf.mxu1 }
 0x137   : > { %v740_v42 = vadd.f32 %v739_v59, %v4202_v36  ;;  %v1315_v39 = vpop.f32.mrf.mxu3  ;;  %v842_v59 = vsel %vm811_vm2, %v839_v56, %v841_v20  ;;  %v1561_v56 = vshrl.u32 %v3787_v32, 16 }
 0x138   : > { %v1382_v4 = vadd.f32 %v1305_v0, %v1017_v9  ;;  %v1681_v38 = vpop.f32.mrf.mxu0 }
 0x139   : > { %3441 = vmatmul.msk.bf16.gmra.mxu1 %vm509_vm1, %v4086_v1 }
 0x13a   : > { %3465 = vmatmul.msk.bf16.gmra.mxu2 %vm509_vm1, %v840_v5  ;;  %v4408_v12 = vadd.f32 %v1678_v34, %v1382_v4  ;;  %v1559_v4 = vsel %vm1416_vm3, %v1549_v24, %v1558_v3 }
 0x13b   : > { %3581 = vmatmul.msk.bf16.gmra.mxu0 %vm509_vm1, %v1550_v13  ;;  %v1564_v13 = vshll.u32 %v3787_v32, 16 }
 0x13c   : > { %3559 = vmatmul.msk.bf16.gmra.mxu3 %vm509_vm1, %v1209_v49  ;;  %v1080_v49 = vld [vmem:[%s4002_s28 + $0x98] sm:$0x1] }
 0x13d   : > { %v943_v21 = vpop.f32.mrf.mxu2 }
 0x13e   : > { %v1018_v0 = vadd.f32 %v943_v21, %v740_v42  ;;  %v741_v11 = vpop.f32.mrf.mxu1 }
 0x13f   : > { %v742_v36 = vadd.f32 %v741_v11, %v4215_v44  ;;  %v1318_v26 = vpop.f32.mrf.mxu3  ;;  %v1210_v44 = vrot.slane %v3788_v2, 1  ;;  %v1566_v11 = vrot.slane %v1564_v13, 2 }
 0x140   : > { %v1383_v25 = vadd.f32 %v1308_v51, %v1018_v0  ;;  %v1683_v1 = vpop.f32.mrf.mxu0  ;;  %v1563_v0 = vrot.slane %v1561_v56, 1  ;;  %v3923_v56 = vld [vmem:[%s4002_s28 + $0x78] sm:$0xff] }
 0x142   : > { %v4414_v34 = vadd.f32 %v1681_v38, %v1383_v25 }
 0x145   : > { %v945_v45 = vpop.f32.mrf.mxu2 }
 0x146   : > { %v1019_v48 = vadd.f32 %v945_v45, %v742_v36  ;;  %v744_v9 = vpop.f32.mrf.mxu1 }
 0x147   : > { %v745_v38 = vadd.f32 %v744_v9, %v4226_v52  ;;  %v4428_v42 = vpop.f32.mrf.mxu3  ;;  %v4436_v52 = vld [vmem:[%s4002_s28 + $0x80] sm:$0xff] }
 0x148   : > { %v1384_v51 = vadd.f32 %v1310_v22, %v1019_v48  ;;  %v1686_v5 = vpop.f32.mrf.mxu0  ;;  %v843_v32 = vrot.slane %v4436_v52, 1 }
 0x149   : > { %3442 = vmatmul.msk.bf16.gmra.mxu1 %vm509_vm1, %v4121_v47  ;;  %v1211_v47 = vsel %vm811_vm2, %v1208_v54, %v1210_v44  ;;  %v1567_v54 = vor.u32 %v1566_v11, %v1563_v0  ;;  %v4460_v11 = vld [vmem:[%s4002_s28 + $0x18] sm:$0xff] }
 0x14a   : > { %3466 = vmatmul.msk.bf16.gmra.mxu2 %vm509_vm1, %v842_v59  ;;  %v4424_v27 = vadd.f32 %v1683_v1, %v1384_v51  ;;  %v1157_v1 = vunpack.c.l.b16 %v1080_v49  ;;  %v844_v48 = vsel %vm811_vm2, %v841_v20, %v843_v32 }
 0x14b   : > { %3582 = vmatmul.msk.bf16.gmra.mxu0 %vm509_vm1, %v1559_v4  ;;  %v2022_v4 = vld [vmem:[%s4002_s28 + $0x10] sm:$0xc] }
 0x14c   : > { %3560 = vmatmul.msk.bf16.gmra.mxu3 %vm509_vm1, %v1211_v47  ;;  %v1176_v9 = vpack.c.b16 %v1157_v1, %v1157_v1  ;;  %v2099_v20 = vunpack.c.l.b16 %v2022_v4 }
 0x14d   : > { %v948_v22 = vpop.f32.mrf.mxu2 }
 0x14e   : > { %v1020_v24 = vadd.f32 %v948_v22, %v745_v38  ;;  %v746_v61 = vpop.f32.mrf.mxu1  ;;  %v4446_v38 = vld [vmem:[%s4002_s28 + $0x14] sm:$0xf]  ;;  %v1212_v13 = vrot.slane %v1176_v9, 1  ;;  %v1570_v22 = vshrl.u32 %v3788_v2, 16 }
 0x14f   : > { %v747_v31 = vadd.f32 %v746_v61, %v4241_v8  ;;  %v4440_v62 = vpop.f32.mrf.mxu3 }
 0x150   : > { %v1385_v46 = vadd.f32 %v1313_v29, %v1020_v24  ;;  %v1688_v21 = vpop.f32.mrf.mxu0  ;;  %v1573_v24 = vshll.u32 %v3788_v2, 16 }
 0x152   : > { %v4433_v25 = vadd.f32 %v1686_v5, %v1385_v46  ;;  %v1568_v5 = vsel %vm1416_vm3, %v1558_v3, %v1567_v54 }
 0x155   : > { %v950_v29 = vpop.f32.mrf.mxu2 }
 0x156   : > { %v1021_v36 = vadd.f32 %v950_v29, %v747_v31  ;;  %v749_v45 = vpop.f32.mrf.mxu1  ;;  %v1572_v29 = vrot.slane %v1570_v22, 1 }
 0x157   : > { %v750_v3 = vadd.f32 %v749_v45, %v4252_v16  ;;  %v4456_v47 = vpop.f32.mrf.mxu3  ;;  %v1409_v16 = vld [vmem:[%s4002_s28 + $0x98] sm:$0x3]  ;;  %v4468_v45 = vld [vmem:[%s4002_s28 + $0x88] sm:$0xff] }
 0x158   : > { %v1386_v59 = vadd.f32 %v1315_v39, %v1021_v36  ;;  %v1691_v51 = vpop.f32.mrf.mxu0  ;;  %v5147_v39 = vunpack.c.l.b16 %v4446_v38  ;;  %v1575_v36 = vrot.slane %v1573_v24, 2  ;;  %v845_v2 = vrot.slane %v4468_v45, 1 }
 0x159   : > { %3443 = vmatmul.msk.bf16.gmra.mxu1 %vm509_vm1, %v3923_v56  ;;  %v1414_v56 = vunpack.c.l.b16 %v1409_v16 }
 0x15a   : > { %3467 = vmatmul.msk.bf16.gmra.mxu2 %vm509_vm1, %v844_v48  ;;  %v4451_v8 = vadd.f32 %v1688_v21, %v1386_v59  ;;  %v1213_v21 = vsel %vm811_vm2, %v1210_v44, %v1212_v13  ;;  %v4464_v49 = vpack.c.b16 %v5147_v39, %v2099_v20  ;;  %v2404_v59 = vshrl.u32 %v4460_v11, 16 }
 0x15b   : > { %3583 = vmatmul.msk.bf16.gmra.mxu0 %vm509_vm1, %v1568_v5  ;;  %v1576_v4 = vor.u32 %v1575_v36, %v1572_v29  ;;  %v846_v22 = vsel %vm811_vm2, %v843_v32, %v845_v2 }
 0x15c   : > { %5156 = vst [vmem:[#allocation10_spill] sm:$0xff] %v4451_v8  ;;  %3561 = vmatmul.msk.bf16.gmra.mxu3 %vm509_vm1, %v1213_v21  ;;  %v2396_v44 = vshrl.u32 %v4464_v49, 16  ;;  %v2399_v9 = vshll.u32 %v4464_v49, 16  ;;  %v4484_v8 = vpack.c.b16 %v1414_v56, %v1414_v56  ;;  %v847_v56 = vrot.slane %v4110_v35, 1 }
 0x15d   : > { %v953_v61 = vpop.f32.mrf.mxu2 }
 0x15e   : > { %v1022_v46 = vadd.f32 %v953_v61, %v750_v3  ;;  %v751_v0 = vpop.f32.mrf.mxu1  ;;  %v2398_v24 = vrot.slane %v2396_v44, 2  ;;  %v2401_v61 = vrot.slane %v2399_v9, 3 }
 0x15f   : > { %v752_v5 = vadd.f32 %v751_v0, %v4267_v30  ;;  %v4479_v20 = vpop.f32.mrf.mxu3 }
 0x160   : > { %v1387_v1 = vadd.f32 %v1318_v26, %v1022_v46  ;;  %v1693_v31 = vpop.f32.mrf.mxu0  ;;  %v2407_v26 = vshll.u32 %v4460_v11, 16  ;;  %v2406_v46 = vrot.slane %v2404_v59, 2  ;;  %v2402_v32 = vor.u32 %v2401_v61, %v2398_v24 }
 0x162   : > { %v4472_v48 = vadd.f32 %v1691_v51, %v1387_v1  ;;  %v2409_v21 = vrot.slane %v2407_v26, 3 }
 0x164   : > { %5157 = vst [vmem:[#allocation11_spill] sm:$0xff] %v4472_v48  ;;  %v1577_v48 = vsel %vm1416_vm3, %v1567_v54, %v1576_v4  ;;  %v2410_v0 = vor.u32 %v2409_v21, %v2406_v46  ;;  %v1582_v54 = vshll.u32 %v4484_v8, 16  ;;  %v848_v21 = vsel %vm811_vm2, %v845_v2, %v847_v56  ;;  %v4529_v56 = vld [vmem:[%s4002_s28 + $0x28] sm:$0xff] }
 0x165   : > { %v955_v13 = vpop.f32.mrf.mxu2 }
 0x166   : > { %v1023_v3 = vadd.f32 %v955_v13, %v752_v5  ;;  %v754_v51 = vpop.f32.mrf.mxu1  ;;  %v2411_v9 = vsel %vm2394_vm4, %v2402_v32, %v2410_v0 }
 0x167   : > { %v755_v29 = vadd.f32 %v754_v51, %v4278_v40  ;;  %v4495_v16 = vpop.f32.mrf.mxu3  ;;  %v1584_v40 = vrot.slane %v1582_v54, 2  ;;  %v2760_v54 = vld [vmem:[%s4002_s28 + $0x10] sm:$0x8] }
 0x168   : > { %v1388_v1 = vadd.f32 %v4428_v42, %v1023_v3  ;;  %v1696_v39 = vpop.f32.mrf.mxu0  ;;  %v1579_v42 = vshrl.u32 %v4484_v8, 16 }
 0x169   : > { %3444 = vmatmul.msk.bf16.gmra.mxu1 %vm509_vm1, %v4436_v52 }
 0x16a   : > { %3468 = vmatmul.msk.bf16.gmra.mxu2 %vm509_vm1, %v846_v22  ;;  %v4489_v30 = vadd.f32 %v1693_v31, %v1388_v1  ;;  %v4499_v31 = vld [vmem:[%s4002_s28 + $0x20] sm:$0xff]  ;;  %v1581_v26 = vrot.slane %v1579_v42, 1  ;;  %v1782_v1 = vld [vmem:[%s4002_s28 + $0x8] sm:$0xc] }
 0x16b   : > { %3584 = vmatmul.msk.bf16.gmra.mxu0 %vm509_vm1, %v1577_v48  ;;  %v2413_v13 = vshrl.u32 %v4499_v31, 16  ;;  %v2416_v3 = vshll.u32 %v4499_v31, 16 }
 0x16c   : > { %3708 = vmatmul.msk.bf16.vlgmr.msra.gmra.mxu3 %vm509_vm1, %v2411_v9  ;;  %v1585_v51 = vor.u32 %v1584_v40, %v1581_v26 }
 0x16d   : > { %v958_v36 = vpop.f32.mrf.mxu2  ;;  %v2418_v32 = vrot.slane %v2416_v3, 3  ;;  %v5159_v3 = vunpack.c.l.b16 %v4446_v38 }
 0x16e   : > { %v1024_v44 = vadd.f32 %v958_v36, %v755_v29  ;;  %v756_v52 = vpop.f32.mrf.mxu1  ;;  %v1586_v42 = vsel %vm1416_vm3, %v1576_v4, %v1585_v51  ;;  %v3925_v51 = vld [vmem:[%s4002_s28 + $0x10] sm:$0xff] }
 0x16f   : > { %v757_v22 = vadd.f32 %v756_v52, %v4293_v60  ;;  %v1787_v60 = vunpack.c.l.b16 %v1782_v1  ;;  %v2769_v1 = vrot.slane %v4460_v11, 3 }
 0x170   : > { %v1389_v48 = vadd.f32 %v4440_v62, %v1024_v44  ;;  %v1698_v59 = vpop.f32.mrf.mxu0  ;;  %v4509_v62 = vpop.f32.mrf.mxu3 }
 0x172   : > { %v4503_v5 = vadd.f32 %v1696_v39, %v1389_v48  ;;  %v2415_v39 = vrot.slane %v2413_v13, 2  ;;  %v5158_v48 = vunpack.c.l.b16 %v4132_v58  ;;  %v2155_v58 = vrot.slane %v4464_v49, 2 }
 0x174   : > { %v2419_v2 = vor.u32 %v2418_v32, %v2415_v39  ;;  %v1788_v26 = vpack.c.b16 %v5158_v48, %v1787_v60 }
 0x175   : > { %v960_v24 = vpop.f32.mrf.mxu2 }
 0x176   : > { %v1025_v61 = vadd.f32 %v960_v24, %v757_v22  ;;  %v759_v46 = vpop.f32.mrf.mxu1  ;;  %v2420_v40 = vsel %vm2394_vm4, %v2410_v0, %v2419_v2  ;;  %v1791_v24 = vrot.slane %v3925_v51, 2  ;;  %v2422_v0 = vshrl.u32 %v4529_v56, 16 }
 0x177   : > { %v760_v44 = vadd.f32 %v759_v46, %v4302_v19  ;;  %v1790_v19 = vrot.slane %v1788_v26, 2  ;;  %v2156_v46 = vrot.slane %v4460_v11, 2 }
 0x178   : > { %v1390_v35 = vadd.f32 %v4456_v47, %v1025_v61  ;;  %v1701_v29 = vpop.f32.mrf.mxu0  ;;  %v2765_v47 = vunpack.c.l.b16 %v2760_v54  ;;  %v4523_v9 = vpop.f32.mrf.mxu3  ;;  %v2424_v54 = vrot.slane %v2422_v0, 2 }
 0x179   : > { %3445 = vmatmul.msk.bf16.gmra.mxu1 %vm509_vm1, %v4468_v45  ;;  %v2157_v49 = vsel %vm1789_vm5, %v2155_v58, %v2156_v46  ;;  %v2158_v58 = vrot.slane %v4499_v31, 2 }
 0x17a   : > { %3469 = vmatmul.msk.bf16.gmra.mxu2 %vm509_vm1, %v848_v21  ;;  %v4519_v36 = vadd.f32 %v1698_v59, %v1390_v35  ;;  %v2766_v22 = vpack.c.b16 %v5159_v3, %v2765_v47  ;;  %v2425_v21 = vshll.u32 %v4529_v56, 16 }
 0x17b   : > { %3585 = vmatmul.msk.bf16.gmra.mxu0 %vm509_vm1, %v1586_v42  ;;  %v1792_v42 = vsel %vm1789_vm5, %v1790_v19, %v1791_v24  ;;  %v3926_v19 = vld [vmem:[%s4002_s28 + $0x18] sm:$0xff] }
 0x17c   : > { %3709 = vmatmul.msk.bf16.gmra.mxu3 %vm509_vm1, %v2420_v40  ;;  %v2768_v38 = vrot.slane %v2766_v22, 3  ;;  %v2427_v60 = vrot.slane %v2425_v21, 3  ;;  %v1793_v51 = vrot.slane %v3926_v19, 2 }
 0x17d   : > { %v963_v52 = vpop.f32.mrf.mxu2 }
 0x17e   : > { %v1026_v4 = vadd.f32 %v963_v52, %v760_v44  ;;  %v761_v45 = vpop.f32.mrf.mxu1  ;;  %v2428_v52 = vor.u32 %v2427_v60, %v2424_v54 }
 0x180   : > { %v1391_v59 = vadd.f32 %v4479_v20, %v1026_v4  ;;  %v1703_v13 = vpop.f32.mrf.mxu0  ;;  %v762_v20 = vadd.f32 %v761_v45, %v4315_v37  ;;  %v1338_v32 = vpop.f32.mrf.mxu3  ;;  %v2770_v37 = vsel %vm2767_vm6, %v2768_v38, %v2769_v1 }
 0x182   : > { %v4536_v61 = vadd.f32 %v1701_v29, %v1391_v59  ;;  %v4556_v59 = vld [vmem:[%s4002_s28 + $0x30] sm:$0xff] }
 0x183   : > { %v2434_v0 = vshll.u32 %v4556_v59, 16 }
 0x185   : > { %v965_v39 = vpop.f32.mrf.mxu2 }
 0x186   : > { %v1027_v35 = vadd.f32 %v965_v39, %v762_v20  ;;  %v764_v29 = vpop.f32.mrf.mxu1 }
 0x187   : > { %v765_v4 = vadd.f32 %v764_v29, %v4213_v43  ;;  %v2431_v43 = vshrl.u32 %v4556_v59, 16  ;;  %v2159_v29 = vsel %vm1789_vm5, %v2156_v46, %v2158_v58 }
 0x188   : > { %v1392_v44 = vadd.f32 %v4495_v16, %v1027_v35  ;;  %v1706_v47 = vpop.f32.mrf.mxu0  ;;  %v1340_v26 = vpop.f32.mrf.mxu3  ;;  %v2429_v16 = vsel %vm2394_vm4, %v2419_v2, %v2428_v52  ;;  %v2771_v2 = vrot.slane %v4499_v31, 3  ;;  %v1794_v35 = vsel %vm1789_vm5, %v1791_v24, %v1793_v51 }
 0x189   : > { %3592 = vmatmul.msk.bf16.vlgmr.msra.gmra.mxu1 %vm509_vm1, %v1792_v42  ;;  %v2433_v42 = vrot.slane %v2431_v43, 2 }
 0x18a   : > { %3684 = vmatmul.msk.bf16.vlgmr.msra.gmra.mxu2 %vm509_vm1, %v2157_v49  ;;  %v4550_v11 = vadd.f32 %v1703_v13, %v1392_v44  ;;  %v2436_v49 = vrot.slane %v2434_v0, 3  ;;  %v2772_v44 = vsel %vm2767_vm6, %v2769_v1, %v2771_v2 }
 0x18b   : > { %3732 = vmatmul.msk.bf16.vlgmr.msra.gmra.mxu0 %vm509_vm1, %v2770_v37 }
 0x18c   : > { %3710 = vmatmul.msk.bf16.gmra.mxu3 %vm509_vm1, %v2429_v16  ;;  %v2437_v31 = vor.u32 %v2436_v49, %v2433_v42  ;;  %v3927_v16 = vld [vmem:[%s4002_s28 + $0x20] sm:$0xff] }
 0x18d   : > { %v968_v48 = vpop.f32.mrf.mxu2 }
 0x18e   : > { %v1028_v45 = vadd.f32 %v968_v48, %v765_v4  ;;  %v766_v40 = vpop.f32.mrf.mxu1  ;;  %v4580_v48 = vld [vmem:[%s4002_s28 + $0x38] sm:$0xff] }
 0x18f   : > { %v767_v21 = vadd.f32 %v766_v40, %v4222_v50  ;;  %v2443_v19 = vshll.u32 %v4580_v48, 16 }
 0x190   : > { %v1393_v3 = vadd.f32 %v4509_v62, %v1028_v45  ;;  %v1708_v22 = vpop.f32.mrf.mxu0  ;;  %v1343_v38 = vpop.f32.mrf.mxu3 }
 0x192   : > { %v4560_v13 = vadd.f32 %v1706_v47, %v1393_v3  ;;  %v1795_v3 = vrot.slane %v3927_v16, 2 }
 0x195   : > { %v970_v20 = vpop.f32.mrf.mxu2 }
 0x196   : > { %v1029_v62 = vadd.f32 %v970_v20, %v767_v21  ;;  %v769_v39 = vpop.f32.mrf.mxu1 }
 0x197   : > { %v770_v24 = vadd.f32 %v769_v39, %v4237_v18  ;;  %v2440_v18 = vshrl.u32 %v4580_v48, 16 }
 0x198   : > { %v1394_v54 = vadd.f32 %v4523_v9, %v1029_v62  ;;  %v1711_v60 = vpop.f32.mrf.mxu0  ;;  %v1345_v47 = vpop.f32.mrf.mxu3  ;;  %v2438_v9 = vsel %vm2394_vm4, %v2428_v52, %v2437_v31  ;;  %v2773_v52 = vrot.slane %v4529_v56, 3  ;;  %v1796_v62 = vsel %vm1789_vm5, %v1793_v51, %v1795_v3 }
 0x199   : > { %3593 = vmatmul.msk.bf16.gmra.mxu1 %vm509_vm1, %v1794_v35  ;;  %v2442_v35 = vrot.slane %v2440_v18, 2 }
 0x19a   : > { %3685 = vmatmul.msk.bf16.gmra.mxu2 %vm509_vm1, %v2159_v29  ;;  %v4574_v50 = vadd.f32 %v1708_v22, %v1394_v54  ;;  %v2160_v22 = vrot.slane %v4529_v56, 2  ;;  %v2445_v29 = vrot.slane %v2443_v19, 3  ;;  %v2774_v54 = vsel %vm2767_vm6, %v2771_v2, %v2773_v52 }
 0x19b   : > { %3733 = vmatmul.msk.bf16.gmra.mxu0 %vm509_vm1, %v2772_v44 }
 0x19c   : > { %3711 = vmatmul.msk.bf16.gmra.mxu3 %vm509_vm1, %v2438_v9  ;;  %v2161_v39 = vsel %vm1789_vm5, %v2158_v58, %v2160_v22  ;;  %v2446_v56 = vor.u32 %v2445_v29, %v2442_v35  ;;  %v3928_v9 = vld [vmem:[%s4002_s28 + $0x28] sm:$0xff] }
 0x19d   : > { %v973_v46 = vpop.f32.mrf.mxu2 }
 0x19e   : > { %v1030_v37 = vadd.f32 %v973_v46, %v770_v24  ;;  %v771_v4 = vpop.f32.mrf.mxu1  ;;  %v4602_v46 = vld [vmem:[%s4002_s28 + $0x40] sm:$0xff] }
 0x19f   : > { %v772_v43 = vadd.f32 %v771_v4, %v4248_v15  ;;  %v2452_v16 = vshll.u32 %v4602_v46, 16 }
 0x1a0   : > { %v1395_v1 = vadd.f32 %v1338_v32, %v1030_v37  ;;  %v1713_v45 = vpop.f32.mrf.mxu0  ;;  %v1348_v21 = vpop.f32.mrf.mxu3 }
 0x1a2   : > { %v4583_v40 = vadd.f32 %v1711_v60, %v1395_v1  ;;  %v1797_v1 = vrot.slane %v3928_v9, 2 }
 0x1a5   : > { %v975_v0 = vpop.f32.mrf.mxu2 }
 0x1a6   : > { %v1031_v32 = vadd.f32 %v975_v0, %v772_v43  ;;  %v774_v20 = vpop.f32.mrf.mxu1 }
 0x1a7   : > { %v775_v51 = vadd.f32 %v774_v20, %v4263_v28  ;;  %v2449_v28 = vshrl.u32 %v4602_v46, 16 }
 0x1a8   : > { %v1396_v42 = vadd.f32 %v1340_v26, %v1031_v32  ;;  %v1716_v49 = vpop.f32.mrf.mxu0  ;;  %v1350_v60 = vpop.f32.mrf.mxu3  ;;  %v2447_v26 = vsel %vm2394_vm4, %v2437_v31, %v2446_v56  ;;  %v2775_v31 = vrot.slane %v4556_v59, 3  ;;  %v1798_v32 = vsel %vm1789_vm5, %v1795_v3, %v1797_v1 }
 0x1a9   : > { %3594 = vmatmul.msk.bf16.gmra.mxu1 %vm509_vm1, %v1796_v62  ;;  %v2451_v62 = vrot.slane %v2449_v28, 2 }
 0x1aa   : > { %3686 = vmatmul.msk.bf16.gmra.mxu2 %vm509_vm1, %v2161_v39  ;;  %v4596_v15 = vadd.f32 %v1713_v45, %v1396_v42  ;;  %v2162_v45 = vrot.slane %v4556_v59, 2  ;;  %v2454_v39 = vrot.slane %v2452_v16, 3  ;;  %v2776_v42 = vsel %vm2767_vm6, %v2773_v52, %v2775_v31 }
 0x1ab   : > { %3734 = vmatmul.msk.bf16.gmra.mxu0 %vm509_vm1, %v2774_v54 }
 0x1ac   : > { %3712 = vmatmul.msk.bf16.gmra.mxu3 %vm509_vm1, %v2447_v26  ;;  %v2163_v20 = vsel %vm1789_vm5, %v2160_v22, %v2162_v45  ;;  %v2455_v59 = vor.u32 %v2454_v39, %v2451_v62  ;;  %v3929_v26 = vld [vmem:[%s4002_s28 + $0x30] sm:$0xff] }
 0x1ad   : > { %v978_v58 = vpop.f32.mrf.mxu2 }
 0x1ae   : > { %v1032_v44 = vadd.f32 %v978_v58, %v775_v51  ;;  %v776_v24 = vpop.f32.mrf.mxu1  ;;  %v4624_v58 = vld [vmem:[%s4002_s28 + $0x48] sm:$0xff] }
 0x1af   : > { %v777_v18 = vadd.f32 %v776_v24, %v4274_v41  ;;  %v2461_v9 = vshll.u32 %v4624_v58, 16 }
 0x1b0   : > { %v1397_v2 = vadd.f32 %v1343_v38, %v1032_v44  ;;  %v1718_v37 = vpop.f32.mrf.mxu0  ;;  %v1353_v43 = vpop.f32.mrf.mxu3 }
 0x1b2   : > { %v4605_v4 = vadd.f32 %v1716_v49, %v1397_v2  ;;  %v1799_v2 = vrot.slane %v3929_v26, 2  ;;  %v2166_v26 = vrot.slane %v4602_v46, 2 }
 0x1b5   : > { %v980_v19 = vpop.f32.mrf.mxu2 }
 0x1b6   : > { %v1033_v38 = vadd.f32 %v980_v19, %v777_v18  ;;  %v779_v0 = vpop.f32.mrf.mxu1 }
 0x1b7   : > { %v780_v3 = vadd.f32 %v779_v0, %v4289_v57  ;;  %v2458_v57 = vshrl.u32 %v4624_v58, 16 }
 0x1b8   : > { %v1398_v35 = vadd.f32 %v1345_v47, %v1033_v38  ;;  %v1721_v29 = vpop.f32.mrf.mxu0  ;;  %v1355_v49 = vpop.f32.mrf.mxu3  ;;  %v2456_v47 = vsel %vm2394_vm4, %v2446_v56, %v2455_v59  ;;  %v2777_v56 = vrot.slane %v4580_v48, 3  ;;  %v1800_v38 = vsel %vm1789_vm5, %v1797_v1, %v1799_v2  ;;  %v5160_v1 = vld [vmem:[#allocation8_spill] sm:$0xff] }
 0x1b9   : > { %3595 = vmatmul.msk.bf16.gmra.mxu1 %vm509_vm1, %v1798_v32  ;;  %v2460_v32 = vrot.slane %v2458_v57, 2 }
 0x1ba   : > { %3687 = vmatmul.msk.bf16.gmra.mxu2 %vm509_vm1, %v2163_v20  ;;  %v4618_v41 = vadd.f32 %v1718_v37, %v1398_v35  ;;  %v2164_v37 = vrot.slane %v4580_v48, 2  ;;  %v2463_v20 = vrot.slane %v2461_v9, 3  ;;  %v2778_v35 = vsel %vm2767_vm6, %v2775_v31, %v2777_v56 }
 0x1bb   : > { %3735 = vmatmul.msk.bf16.gmra.mxu0 %vm509_vm1, %v2776_v42 }
 0x1bc   : > { %3713 = vmatmul.msk.bf16.gmra.mxu3 %vm509_vm1, %v2456_v47  ;;  %v2165_v0 = vsel %vm1789_vm5, %v2162_v45, %v2164_v37  ;;  %v2464_v48 = vor.u32 %v2463_v20, %v2460_v32  ;;  %v2167_v32 = vsel %vm1789_vm5, %v2164_v37, %v2166_v26 }
 0x1bd   : > { %v983_v22 = vpop.f32.mrf.mxu2 }
 0x1be   : > { %v1034_v54 = vadd.f32 %v983_v22, %v780_v3  ;;  %v781_v51 = vpop.f32.mrf.mxu1 }
 0x1bf   : > { %v782_v28 = vadd.f32 %v781_v51, %v4300_v14 }
 0x1c0   : > { %v1399_v52 = vadd.f32 %v1348_v21, %v1034_v54  ;;  %v1723_v44 = vpop.f32.mrf.mxu0  ;;  %v1358_v18 = vpop.f32.mrf.mxu3  ;;  %v4646_v54 = vld [vmem:[%s4002_s28 + $0x50] sm:$0xff] }
 0x1c1   : > { %v2467_v57 = vshrl.u32 %v4646_v54, 16  ;;  %v2470_v9 = vshll.u32 %v4646_v54, 16 }
 0x1c2   : > { %v4627_v24 = vadd.f32 %v1721_v29, %v1399_v52  ;;  %v3930_v52 = vld [vmem:[%s4002_s28 + $0x38] sm:$0xff] }
 0x1c3   : > { %v2469_v20 = vrot.slane %v2467_v57, 2 }
 0x1c5   : > { %v985_v16 = vpop.f32.mrf.mxu2 }
 0x1c6   : > { %v1035_v21 = vadd.f32 %v985_v16, %v782_v28  ;;  %v784_v19 = vpop.f32.mrf.mxu1  ;;  %v5161_v28 = vld [vmem:[#allocation9_spill] sm:$0xff] }
 0x1c7   : > { %v785_v29 = vadd.f32 %v784_v19, %v5160_v1 }
 0x1c8   : > { %v1400_v62 = vadd.f32 %v1350_v60, %v1035_v21  ;;  %v1726_v39 = vpop.f32.mrf.mxu0  ;;  %v1360_v42 = vpop.f32.mrf.mxu3  ;;  %v2465_v60 = vsel %vm2394_vm4, %v2455_v59, %v2464_v48  ;;  %v2779_v59 = vrot.slane %v4602_v46, 3 }
 0x1c9   : > { %3596 = vmatmul.msk.bf16.gmra.mxu1 %vm509_vm1, %v1800_v38 }
 0x1ca   : > { %3688 = vmatmul.msk.bf16.gmra.mxu2 %vm509_vm1, %v2165_v0  ;;  %v4640_v14 = vadd.f32 %v1723_v44, %v1400_v62  ;;  %v1801_v44 = vrot.slane %v3930_v52, 2  ;;  %v2472_v62 = vrot.slane %v2470_v9, 3  ;;  %v2780_v1 = vsel %vm2767_vm6, %v2777_v56, %v2779_v59 }
 0x1cb   : > { %3736 = vmatmul.msk.bf16.gmra.mxu0 %vm509_vm1, %v2778_v35 }
 0x1cc   : > { %3714 = vmatmul.msk.bf16.gmra.mxu3 %vm509_vm1, %v2465_v60  ;;  %v1802_v0 = vsel %vm1789_vm5, %v1799_v2, %v1801_v44  ;;  %v5162_v2 = vld [vmem:[#allocation2_spill] sm:$0xff] }
 0x1cd   : > { %v988_v45 = vpop.f32.mrf.mxu2 }
 0x1ce   : > { %v1036_v3 = vadd.f32 %v988_v45, %v785_v29  ;;  %v786_v22 = vpop.f32.mrf.mxu1  ;;  %v2473_v29 = vor.u32 %v2472_v62, %v2469_v20 }
 0x1cf   : > { %v787_v16 = vadd.f32 %v786_v22, %v5161_v28  ;;  %v2168_v28 = vrot.slane %v4624_v58, 2 }
 0x1d0   : > { %v1401_v31 = vadd.f32 %v1353_v43, %v1036_v3  ;;  %v1728_v51 = vpop.f32.mrf.mxu0  ;;  %v1363_v19 = vpop.f32.mrf.mxu3 }
 0x1d2   : > { %v4649_v47 = vadd.f32 %v1726_v39, %v1401_v31  ;;  %v4668_v31 = vld [vmem:[%s4002_s28 + $0x58] sm:$0xff] }
 0x1d5   : > { %v990_v21 = vpop.f32.mrf.mxu2 }
 0x1d6   : > { %v1037_v43 = vadd.f32 %v990_v21, %v787_v16  ;;  %v789_v38 = vpop.f32.mrf.mxu1  ;;  %v2476_v16 = vshrl.u32 %v4668_v31, 16  ;;  %v2479_v21 = vshll.u32 %v4668_v31, 16 }
 0x1d7   : > { %v790_v45 = vadd.f32 %v789_v38, %v5162_v2 }
 0x1d8   : > { %v1402_v39 = vadd.f32 %v1355_v49, %v1037_v43  ;;  %v1731_v35 = vpop.f32.mrf.mxu0  ;;  %v1365_v3 = vpop.f32.mrf.mxu3  ;;  %v2474_v49 = vsel %vm2394_vm4, %v2464_v48, %v2473_v29  ;;  %v5163_v43 = vld [vmem:[#allocation3_spill] sm:$0xff]  ;;  %v2781_v48 = vrot.slane %v4624_v58, 3 }
 0x1d9   : > { %3597 = vmatmul.msk.bf16.gmra.mxu1 %vm509_vm1, %v1802_v0 }
 0x1da   : > { %3689 = vmatmul.msk.bf16.gmra.mxu2 %vm509_vm1, %v2167_v32  ;;  %v4662_v46 = vadd.f32 %v1728_v51, %v1402_v39  ;;  %v3931_v51 = vld [vmem:[%s4002_s28 + $0x40] sm:$0xff]  ;;  %v2169_v39 = vsel %vm1789_vm5, %v2166_v26, %v2168_v28 }
 0x1db   : > { %3737 = vmatmul.msk.bf16.gmra.mxu0 %vm509_vm1, %v2780_v1  ;;  %v1803_v9 = vrot.slane %v3931_v51, 2  ;;  %v2481_v1 = vrot.slane %v2479_v21, 3 }
 0x1dc   : > { %3715 = vmatmul.msk.bf16.gmra.mxu3 %vm509_vm1, %v2474_v49 }
 0x1dd   : > { %v993_v37 = vpop.f32.mrf.mxu2  ;;  %v1804_v62 = vsel %vm1789_vm5, %v1801_v44, %v1803_v9  ;;  %v5164_v44 = vld [vmem:[#allocation4_spill] sm:$0xff] }
 0x1de   : > { %v1038_v22 = vadd.f32 %v993_v37, %v790_v45  ;;  %v791_v60 = vpop.f32.mrf.mxu1  ;;  %v2782_v37 = vsel %vm2767_vm6, %v2779_v59, %v2781_v48 }
 0x1df   : > { %v792_v38 = vadd.f32 %v791_v60, %v5163_v43 }
 0x1e0   : > { %v1403_v56 = vadd.f32 %v1358_v18, %v1038_v22  ;;  %v1733_v52 = vpop.f32.mrf.mxu0  ;;  %v1368_v32 = vpop.f32.mrf.mxu3 }
 0x1e2   : > { %v4671_v57 = vadd.f32 %v1731_v35, %v1403_v56  ;;  %v2478_v35 = vrot.slane %v2476_v16, 2  ;;  %v4690_v16 = vld [vmem:[%s4002_s28 + $0x60] sm:$0xff] }
 0x1e4   : > { %v2482_v22 = vor.u32 %v2481_v1, %v2478_v35 }
 0x1e5   : > { %v995_v0 = vpop.f32.mrf.mxu2 }
 0x1e6   : > { %v1039_v18 = vadd.f32 %v995_v0, %v792_v38  ;;  %v794_v20 = vpop.f32.mrf.mxu1  ;;  %v2170_v0 = vrot.slane %v4646_v54, 2 }
 0x1e7   : > { %v795_v60 = vadd.f32 %v794_v20, %v5164_v44  ;;  %v2488_v20 = vshll.u32 %v4690_v16, 16 }
 0x1e8   : > { %v1404_v2 = vadd.f32 %v1360_v42, %v1039_v18  ;;  %v1736_v45 = vpop.f32.mrf.mxu0  ;;  %v1370_v49 = vpop.f32.mrf.mxu3  ;;  %v2483_v42 = vsel %vm2394_vm4, %v2473_v29, %v2482_v22  ;;  %v2485_v18 = vshrl.u32 %v4690_v16, 16  ;;  %v2783_v29 = vrot.slane %v4646_v54, 3 }
 0x1e9   : > { %3598 = vmatmul.msk.bf16.gmra.mxu1 %vm509_vm1, %v1804_v62  ;;  %v5166_v62 = vld [vmem:[#allocation5_spill] sm:$0xff] }
 0x1ea   : > { %3690 = vmatmul.msk.bf16.gmra.mxu2 %vm509_vm1, %v2169_v39  ;;  %v4684_v58 = vadd.f32 %v1733_v52, %v1404_v2  ;;  %v3932_v52 = vld [vmem:[%s4002_s28 + $0x48] sm:$0xff]  ;;  %v2487_v44 = vrot.slane %v2485_v18, 2 }
 0x1eb   : > { %3738 = vmatmul.msk.bf16.gmra.mxu0 %vm509_vm1, %v2782_v37  ;;  %v1805_v38 = vrot.slane %v3932_v52, 2 }
 0x1ec   : > { %3716 = vmatmul.msk.bf16.gmra.mxu3 %vm509_vm1, %v2483_v42  ;;  %v2784_v42 = vsel %vm2767_vm6, %v2781_v48, %v2783_v29  ;;  %v4714_v48 = vld [vmem:[%s4002_s28 + $0x68] sm:$0xff] }
 0x1ed   : > { %v998_v26 = vpop.f32.mrf.mxu2  ;;  %v1806_v37 = vsel %vm1789_vm5, %v1803_v9, %v1805_v38  ;;  %v5168_v9 = vld [vmem:[#allocation6_spill] sm:$0xff] }
 0x1ee   : > { %v1040_v56 = vadd.f32 %v998_v26, %v795_v60  ;;  %v796_v51 = vpop.f32.mrf.mxu1  ;;  %v2490_v60 = vrot.slane %v2488_v20, 3 }
 0x1ef   : > { %v797_v39 = vadd.f32 %v796_v51, %v5166_v62 }
 0x1f0   : > { %v1405_v59 = vadd.f32 %v1363_v19, %v1040_v56  ;;  %v1738_v21 = vpop.f32.mrf.mxu0  ;;  %v2634_v1 = vpop.f32.mrf.mxu3  ;;  %v2491_v51 = vor.u32 %v2490_v60, %v2487_v44  ;;  %v5170_v44 = vld [vmem:[#allocation7_spill] sm:$0xff] }
 0x1f2   : > { %v4693_v43 = vadd.f32 %v1736_v45, %v1405_v59  ;;  %v2171_v45 = vsel %vm1789_vm5, %v2168_v28, %v2170_v0  ;;  %v2492_v20 = vsel %vm2394_vm4, %v2482_v22, %v2491_v51  ;;  %v2785_v22 = vrot.slane %v4668_v31, 3 }
 0x1f4   : > { %5165 = vst [vmem:[#allocation8_spill] sm:$0xff] %v4693_v43 }
 0x1f5   : > { %v1000_v35 = vpop.f32.mrf.mxu2 }
 0x1f6   : > { %v1041_v19 = vadd.f32 %v1000_v35, %v797_v39  ;;  %v799_v2 = vpop.f32.mrf.mxu1  ;;  %v3933_v35 = vld [vmem:[%s4002_s28 + $0x50] sm:$0xff] }
 0x1f7   : > { %v800_v59 = vadd.f32 %v799_v2, %v5168_v9  ;;  %v2494_v2 = vshrl.u32 %v4714_v48, 16 }
 0x1f8   : > { %v1406_v26 = vadd.f32 %v1365_v3, %v1041_v19  ;;  %v1741_v56 = vpop.f32.mrf.mxu0  ;;  %v4710_v52 = vpop.f32.mrf.mxu3  ;;  %v1807_v19 = vrot.slane %v3933_v35, 2  ;;  %v2786_v35 = vsel %vm2767_vm6, %v2783_v29, %v2785_v22 }
 0x1f9   : > { %3599 = vmatmul.msk.bf16.gmra.mxu1 %vm509_vm1, %v1806_v37  ;;  %v2172_v37 = vrot.slane %v4668_v31, 2 }
 0x1fa   : > { %3691 = vmatmul.msk.bf16.gmra.mxu2 %vm509_vm1, %v2171_v45  ;;  %v4706_v54 = vadd.f32 %v1738_v21, %v1406_v26  ;;  %v2497_v45 = vshll.u32 %v4714_v48, 16  ;;  %v1808_v9 = vsel %vm1789_vm5, %v1805_v38, %v1807_v19 }
 0x1fb   : > { %3739 = vmatmul.msk.bf16.gmra.mxu0 %vm509_vm1, %v2784_v42 }
 0x1fc   : > { %5167 = vst [vmem:[#allocation9_spill] sm:$0xff] %v4706_v54  ;;  %3717 = vmatmul.msk.bf16.gmra.mxu3 %vm509_vm1, %v2492_v20 }
 0x1fd   : > { %v1003_v28 = vpop.f32.mrf.mxu2 }
 0x1fe   : > { %v1042_v18 = vadd.f32 %v1003_v28, %v800_v59  ;;  %v801_v3 = vpop.f32.mrf.mxu1  ;;  %v2173_v59 = vsel %vm1789_vm5, %v2170_v0, %v2172_v37  ;;  %v2496_v28 = vrot.slane %v2494_v2, 2  ;;  %v3817_v2 = vld [vmem:[%s4742_s18] sm:$0xff]  }
 0x1ff   : > { %v802_v60 = vadd.f32 %v801_v3, %v5170_v44  ;;  %v4749_v44 = vld [vmem:[%s4002_s28 + $0x70] sm:$0xff] }
 0x200   : > { %v1407_v62 = vadd.f32 %v1368_v32, %v1042_v18  ;;  %v1743_v39 = vpop.f32.mrf.mxu0  ;;  %v4725_v32 = vpop.f32.mrf.mxu3  ;;  %v2499_v18 = vrot.slane %v2497_v45, 3 }
 0x202   : > { %v4717_v21 = vadd.f32 %v1741_v56, %v1407_v62  ;;  %v2500_v3 = vor.u32 %v2499_v18, %v2496_v28  ;;  %v2174_v28 = vrot.slane %v4690_v16, 2 }
 0x204   : > { %5169 = vst [vmem:[#allocation2_spill] sm:$0xff] %v4717_v21  ;;  %v2501_v45 = vsel %vm2394_vm4, %v2491_v51, %v2500_v3  ;;  %v2503_v51 = vshrl.u32 %v4749_v44, 16 }
 0x205   : > { %v1005_v26 = vpop.f32.mrf.mxu2 }
 0x206   : > { %v1043_v42 = vadd.f32 %v1005_v26, %v802_v60  ;;  %v1896_v56 = vpop.f32.mrf.mxu1 }
 0x207   : > { %v1986_v38 = vadd.f32 %v1896_v56, %v4334_v23  ;;  %v4754_v23 = vld [vmem:[%s5143_s2] ss:$0 sm:$0xff]  ;;  %v3818_v56 = vunpack.c.l.bf16 %v3817_v2 }
 0x208   : > { %v1408_v20 = vadd.f32 %v1370_v49, %v1043_v42  ;;  %v2874_v62 = vpop.f32.mrf.mxu0  ;;  %v4744_v0 = vpop.f32.mrf.mxu3 }
 0x209   : > { %3600 = vmatmul.msk.bf16.gmra.mxu1 %vm509_vm1, %v1808_v9  ;;  %v4758_v9 = vld [vmem:[%s4002_s28 + $0x58] sm:$0xff] }
 0x20a   : > { %3692 = vmatmul.msk.bf16.gmra.mxu2 %vm509_vm1, %v2173_v59  ;;  %v4733_v31 = vadd.f32 %v1743_v39, %v1408_v20  ;;  %v1809_v59 = vrot.slane %v4758_v9, 2  ;;  %v2175_v9 = vsel %vm1789_vm5, %v2172_v37, %v2174_v28 }
 0x20b   : > { %3740 = vmatmul.msk.bf16.gmra.mxu0 %vm509_vm1, %v2786_v35 }
 0x20c   : > { %5171 = vst [vmem:[#allocation3_spill] sm:$0xff] %v4733_v31  ;;  %3718 = vmatmul.msk.bf16.gmra.mxu3 %vm509_vm1, %v2501_v45  ;;  %v2505_v31 = vrot.slane %v2503_v51, 2 }
 0x20d   : > { %v2261_v49 = vpop.f32.mrf.mxu2 }
 0x20e   : > { %v2351_v29 = vadd.f32 %v2261_v49, %v1986_v38  ;;  %v1898_v39 = vpop.f32.mrf.mxu1 }
 0x20f   : > { %v1987_v20 = vadd.f32 %v1898_v39, %v4344_v10  ;;  %v3819_v39 = vunpack.c.h.bf16 %v3817_v2  ;;  %v3891_v2 = vld [vmem:[%s4742_s18 + $0x8] sm:$0xff]  }
 0x210   : > { %v2724_v60 = vadd.f32 %v2634_v1, %v2351_v29  ;;  %v2876_v26 = vpop.f32.mrf.mxu0  ;;  %v2506_v1 = vshll.u32 %v4749_v44, 16  ;;  %v4767_v38 = vpop.f32.mrf.mxu3 }
 0x212   : > { %v2964_v42 = vadd.f32 %v2874_v62, %v2724_v60  ;;  %v2787_v62 = vrot.slane %v4690_v16, 3  ;;  %v1810_v60 = vsel %vm1789_vm5, %v1807_v19, %v1809_v59  ;;  %v2508_v21 = vrot.slane %v2506_v1, 3 }
 0x214   : > { %v3004_v18 = vadd.f32 %v4754_v23, %v2964_v42  ;;  %v2788_v10 = vsel %vm2767_vm6, %v2785_v22, %v2787_v62 }
 0x215   : > { %v2263_v35 = vpop.f32.mrf.mxu2 }
 0x216   : > { %v3112_v49 = vadd.f32 %v3818_v56, %v3004_v18  ;;  %v2352_v29 = vadd.f32 %v2263_v35, %v1987_v20  ;;  %v1901_v45 = vpop.f32.mrf.mxu1  ;;  %v4794_v35 = vld [vmem:[%s4002_s28 + $0x78] sm:$0xff] }
 0x217   : > { %v1988_v56 = vadd.f32 %v1901_v45, %v4350_v63  ;;  %v3822_v63 = vunpack.c.l.bf16 %v3891_v2  ;;  %v4799_v45 = vld [vmem:[%s4002_s28 + $0x60] sm:$0xff] }
 0x218   : > { %v3148_v54 = vmax.f32 %v3112_v49, 0.0  ;;  %v2725_v42 = vadd.f32 %v4710_v52, %v2352_v29  ;;  %v2879_v43 = vpop.f32.mrf.mxu0  ;;  %v2509_v52 = vor.u32 %v2508_v21, %v2505_v31  ;;  %v4789_v1 = vpop.f32.mrf.mxu3 }
 0x219   : > { %3601 = vmatmul.msk.bf16.gmra.mxu1 %vm509_vm1, %v1810_v60 }
 0x21a   : > { %v3184_v19 = vpack.c.bf16 %v3148_v54, %v3148_v54  ;;  %v2965_v37 = vadd.f32 %v2876_v26, %v2725_v42  ;;  %3693 = vmatmul.msk.bf16.gmra.mxu2 %vm509_vm1, %v2175_v9  ;;  %v2510_v20 = vsel %vm2394_vm4, %v2500_v3, %v2509_v52  ;;  %v1811_v9 = vrot.slane %v4799_v45, 2 }
 0x21b   : > { %3741 = vmatmul.msk.bf16.gmra.mxu0 %vm509_vm1, %v2788_v10  ;;  %v2176_v42 = vrot.slane %v4714_v48, 2  ;;  %v2512_v10 = vshrl.u32 %v4794_v35, 16  ;;  %v2515_v3 = vshll.u32 %v4794_v35, 16 }
 0x21c   : > { %3221 = vst.msk [vmem:[%s4780_s23] sm:$0xf] %vm3220_vm7, %v3184_v19  ;;  %v3005_v22 = vadd.f32 %v4754_v23, %v2965_v37  ;;  %3719 = vmatmul.msk.bf16.gmra.mxu3 %vm509_vm1, %v2510_v20 }
 0x21d   : > { %v2266_v51 = vpop.f32.mrf.mxu2  ;;  %v2514_v20 = vrot.slane %v2512_v10, 2 }
 0x21e   : > { %v3113_v54 = vadd.f32 %v3819_v39, %v3005_v22  ;;  %v2353_v26 = vadd.f32 %v2266_v51, %v1988_v56  ;;  %v1903_v18 = vpop.f32.mrf.mxu1 }
 0x21f   : > { %v1989_v19 = vadd.f32 %v1903_v18, %v4360_v17 }
 0x220   : > { %v3149_v21 = vmax.f32 %v3113_v54, 0.0  ;;  %v2726_v31 = vadd.f32 %v4725_v32, %v2353_v26  ;;  %v2881_v49 = vpop.f32.mrf.mxu0  ;;  %v4810_v39 = vpop.f32.mrf.mxu3  ;;  %v1812_v54 = vsel %vm1789_vm5, %v1809_v59, %v1811_v9  ;;  %v2177_v26 = vsel %vm1789_vm5, %v2174_v28, %v2176_v42 }
 0x222   : > { %v3185_v29 = vpack.c.bf16 %v3149_v21, %v3149_v21  ;;  %v2966_v60 = vadd.f32 %v2879_v43, %v2726_v31  ;;  %v2789_v43 = vrot.slane %v4714_v48, 3  ;;  %v2517_v21 = vrot.slane %v2515_v3, 3 }
 0x224   : > { %3222 = vst.msk [vmem:[%s4780_s23 + $0x4] sm:$0xf] %vm3220_vm7, %v3185_v29  ;;  %v3006_v32 = vadd.f32 %v4754_v23, %v2966_v60  ;;  %v2790_v17 = vsel %vm2767_vm6, %v2787_v62, %v2789_v43  ;;  %v2518_v59 = vor.u32 %v2517_v21, %v2514_v20  ;;  %v2178_v20 = vrot.slane %v4749_v44, 2 }
 0x225   : > { %v2268_v37 = vpop.f32.mrf.mxu2 }
 0x226   : > { %v3114_v22 = vadd.f32 %v3822_v63, %v3006_v32  ;;  %v2354_v56 = vadd.f32 %v2268_v37, %v1989_v19  ;;  %v1906_v51 = vpop.f32.mrf.mxu1  ;;  %v3823_v63 = vunpack.c.h.bf16 %v3891_v2  ;;  %v3892_v2 = vld [vmem:[%s4742_s18 + $0x10] sm:$0xff]   ;;  %v2519_v3 = vsel %vm2394_vm4, %v2509_v52, %v2518_v59  ;;  %v4830_v32 = vld [vmem:[%s4002_s28 + $0x80] sm:$0xff] }
 0x227   : > { %v1990_v16 = vadd.f32 %v1906_v51, %v4366_v55  ;;  %v3826_v55 = vunpack.c.l.bf16 %v3892_v2  ;;  %v4835_v51 = vld [vmem:[%s4002_s28 + $0x68] sm:$0xff]  ;;  %v2521_v21 = vshrl.u32 %v4830_v32, 16  ;;  %v2524_v52 = vshll.u32 %v4830_v32, 16 }
 0x228   : > { %v3150_v31 = vmax.f32 %v3114_v22, 0.0  ;;  %v2727_v29 = vadd.f32 %v4744_v0, %v2354_v56  ;;  %v2884_v60 = vpop.f32.mrf.mxu0  ;;  %v4825_v62 = vpop.f32.mrf.mxu3 }
 0x229   : > { %3602 = vmatmul.msk.bf16.gmra.mxu1 %vm509_vm1, %v1812_v54 }
 0x22a   : > { %v3186_v48 = vpack.c.bf16 %v3150_v31, %v3150_v31  ;;  %v2967_v18 = vadd.f32 %v2881_v49, %v2727_v29  ;;  %3694 = vmatmul.msk.bf16.gmra.mxu2 %vm509_vm1, %v2177_v26  ;;  %v1813_v26 = vrot.slane %v4835_v51, 2  ;;  %v2791_v29 = vrot.slane %v4749_v44, 3 }
 0x22b   : > { %3742 = vmatmul.msk.bf16.gmra.mxu0 %vm509_vm1, %v2790_v17 }
 0x22c   : > { %3223 = vst.msk [vmem:[%s4780_s23 + $0x8] sm:$0xf] %vm3220_vm7, %v3186_v48  ;;  %v3007_v0 = vadd.f32 %v4754_v23, %v2967_v18  ;;  %3720 = vmatmul.msk.bf16.gmra.mxu3 %vm509_vm1, %v2519_v3 }
 0x22d   : > { %v2271_v28 = vpop.f32.mrf.mxu2 }
 0x22e   : > { %v3115_v49 = vadd.f32 %v3823_v63, %v3007_v0  ;;  %v2355_v45 = vadd.f32 %v2271_v28, %v1990_v16  ;;  %v1908_v10 = vpop.f32.mrf.mxu1  ;;  %v1814_v0 = vsel %vm1789_vm5, %v1811_v9, %v1813_v26  ;;  %v2179_v16 = vsel %vm1789_vm5, %v2176_v42, %v2178_v20 }
 0x22f   : > { %v1991_v31 = vadd.f32 %v1908_v10, %v4376_v33  ;;  %v2523_v28 = vrot.slane %v2521_v21, 2  ;;  %v2792_v33 = vsel %vm2767_vm6, %v2789_v43, %v2791_v29  ;;  %v4864_v21 = vld [vmem:[%s4002_s28 + $0x88] sm:$0xff] }
 0x230   : > { %v3151_v19 = vmax.f32 %v3115_v49, 0.0  ;;  %v2728_v37 = vadd.f32 %v4767_v38, %v2355_v45  ;;  %v2886_v22 = vpop.f32.mrf.mxu0  ;;  %v4846_v17 = vpop.f32.mrf.mxu3  ;;  %v2526_v49 = vrot.slane %v2524_v52, 3 }
 0x232   : > { %v3187_v56 = vpack.c.bf16 %v3151_v19, %v3151_v19  ;;  %v2968_v54 = vadd.f32 %v2884_v60, %v2728_v37  ;;  %v3827_v37 = vunpack.c.h.bf16 %v3892_v2  ;;  %v2527_v9 = vor.u32 %v2526_v49, %v2523_v28  ;;  %v3893_v2 = vld [vmem:[%s4742_s18 + $0x18] sm:$0xff]  }
 0x233   : > { %v2793_v49 = vrot.slane %v4794_v35, 3 }
 0x234   : > { %3224 = vst.msk [vmem:[%s4780_s23 + $0xc] sm:$0xf] %vm3220_vm7, %v3187_v56  ;;  %v3008_v38 = vadd.f32 %v4754_v23, %v2968_v54  ;;  %v2528_v51 = vsel %vm2394_vm4, %v2518_v59, %v2527_v9  ;;  %v2533_v59 = vshll.u32 %v4864_v21, 16 }
 0x235   : > { %v2273_v60 = vpop.f32.mrf.mxu2 }
 0x236   : > { %v3116_v48 = vadd.f32 %v3826_v55, %v3008_v38  ;;  %v2356_v18 = vadd.f32 %v2273_v60, %v1991_v31  ;;  %v1911_v63 = vpop.f32.mrf.mxu1 }
 0x238   : > { %v3152_v45 = vmax.f32 %v3116_v48, 0.0  ;;  %v2729_v3 = vadd.f32 %v4789_v1, %v2356_v18  ;;  %v2889_v19 = vpop.f32.mrf.mxu0  ;;  %v1992_v1 = vadd.f32 %v1911_v63, %v4382_v6  ;;  %v4859_v43 = vpop.f32.mrf.mxu3  ;;  %v3830_v6 = vunpack.c.l.bf16 %v3893_v2  ;;  %v4869_v18 = vld [vmem:[%s4002_s28 + $0x70] sm:$0xff] }
 0x239   : > { %3603 = vmatmul.msk.bf16.gmra.mxu1 %vm509_vm1, %v1814_v0  ;;  %v1815_v63 = vrot.slane %v4869_v18, 2  ;;  %v2180_v0 = vrot.slane %v4794_v35, 2 }
 0x23a   : > { %v3188_v44 = vpack.c.bf16 %v3152_v45, %v3152_v45  ;;  %v2969_v10 = vadd.f32 %v2886_v22, %v2729_v3  ;;  %3695 = vmatmul.msk.bf16.gmra.mxu2 %vm509_vm1, %v2179_v16  ;;  %v2530_v16 = vshrl.u32 %v4864_v21, 16 }
 0x23b   : > { %3743 = vmatmul.msk.bf16.gmra.mxu0 %vm509_vm1, %v2792_v33 }
 0x23c   : > { %3225 = vst.msk [vmem:[%s4780_s23 + $0x10] sm:$0xf] %vm3220_vm7, %v3188_v44  ;;  %v3009_v42 = vadd.f32 %v4754_v23, %v2969_v10  ;;  %3721 = vmatmul.msk.bf16.gmra.mxu3 %vm509_vm1, %v2528_v51  ;;  %v1816_v10 = vsel %vm1789_vm5, %v1813_v26, %v1815_v63  ;;  %v3831_v51 = vunpack.c.h.bf16 %v3893_v2  ;;  %v3894_v2 = vld [vmem:[%s4742_s18 + $0x20] sm:$0xff]  }
 0x23d   : > { %v2276_v56 = vpop.f32.mrf.mxu2 }
 0x23e   : > { %v3117_v22 = vadd.f32 %v3827_v37, %v3009_v42  ;;  %v2357_v54 = vadd.f32 %v2276_v56, %v1992_v1  ;;  %v1913_v55 = vpop.f32.mrf.mxu1  ;;  %v2181_v37 = vsel %vm1789_vm5, %v2178_v20, %v2180_v0  ;;  %v2532_v42 = vrot.slane %v2530_v16, 2 }
 0x23f   : > { %v1993_v28 = vadd.f32 %v1913_v55, %v4392_v53  ;;  %v2535_v1 = vrot.slane %v2533_v59, 3  ;;  %v2794_v53 = vsel %vm2767_vm6, %v2791_v29, %v2793_v49 }
 0x240   : > { %v3153_v52 = vmax.f32 %v3117_v22, 0.0  ;;  %v2730_v38 = vadd.f32 %v4810_v39, %v2357_v54  ;;  %v2891_v31 = vpop.f32.mrf.mxu0  ;;  %v4880_v3 = vpop.f32.mrf.mxu3 }
 0x241   : > { %v2536_v26 = vor.u32 %v2535_v1, %v2532_v42 }
 0x242   : > { %v3189_v60 = vpack.c.bf16 %v3153_v52, %v3153_v52  ;;  %v2970_v48 = vadd.f32 %v2889_v19, %v2730_v38 }
 0x244   : > { %3226 = vst.msk [vmem:[%s4780_s23 + $0x14] sm:$0xf] %vm3220_vm7, %v3189_v60  ;;  %v3010_v39 = vadd.f32 %v4754_v23, %v2970_v48  ;;  %v2537_v48 = vsel %vm2394_vm4, %v2527_v9, %v2536_v26 }
 0x245   : > { %v2278_v45 = vpop.f32.mrf.mxu2 }
 0x246   : > { %v3118_v19 = vadd.f32 %v3830_v6, %v3010_v39  ;;  %v2358_v33 = vadd.f32 %v2278_v45, %v1993_v28  ;;  %v1916_v44 = vpop.f32.mrf.mxu1  ;;  %v4898_v6 = vld [vmem:[%s4002_s28 + $0x90] sm:$0xff]  ;;  %v4903_v45 = vld [vmem:[%s4002_s28 + $0x78] sm:$0xff] }
 0x247   : > { %v2542_v9 = vshll.u32 %v4898_v6, 16 }
 0x248   : > { %v3154_v56 = vmax.f32 %v3118_v19, 0.0  ;;  %v2731_v22 = vadd.f32 %v4825_v62, %v2358_v33  ;;  %v2894_v54 = vpop.f32.mrf.mxu0  ;;  %v1994_v62 = vadd.f32 %v1916_v44, %v4398_v7  ;;  %v4893_v29 = vpop.f32.mrf.mxu3  ;;  %v3834_v7 = vunpack.c.l.bf16 %v3894_v2 }
 0x249   : > { %3604 = vmatmul.msk.bf16.gmra.mxu1 %vm509_vm1, %v1816_v10  ;;  %v1817_v19 = vrot.slane %v4903_v45, 2  ;;  %v2182_v33 = vrot.slane %v4830_v32, 2  ;;  %v2539_v44 = vshrl.u32 %v4898_v6, 16 }
 0x24a   : > { %v3190_v35 = vpack.c.bf16 %v3154_v56, %v3154_v56  ;;  %v2971_v55 = vadd.f32 %v2891_v31, %v2731_v22  ;;  %3696 = vmatmul.msk.bf16.gmra.mxu2 %vm509_vm1, %v2181_v37  ;;  %v2795_v37 = vrot.slane %v4830_v32, 3 }
 0x24b   : > { %3744 = vmatmul.msk.bf16.gmra.mxu0 %vm509_vm1, %v2794_v53  ;;  %v1818_v53 = vsel %vm1789_vm5, %v1815_v63, %v1817_v19 }
 0x24c   : > { %3227 = vst.msk [vmem:[%s4780_s23 + $0x18] sm:$0xf] %vm3220_vm7, %v3190_v35  ;;  %v3011_v20 = vadd.f32 %v4754_v23, %v2971_v55  ;;  %3722 = vmatmul.msk.bf16.gmra.mxu3 %vm509_vm1, %v2537_v48  ;;  %v2183_v35 = vsel %vm1789_vm5, %v2180_v0, %v2182_v33  ;;  %v2541_v55 = vrot.slane %v2539_v44, 2 }
 0x24d   : > { %v2281_v52 = vpop.f32.mrf.mxu2 }
 0x24e   : > { %v3119_v38 = vadd.f32 %v3831_v51, %v3011_v20  ;;  %v2359_v31 = vadd.f32 %v2281_v52, %v1994_v62  ;;  %v1918_v60 = vpop.f32.mrf.mxu1  ;;  %v2544_v51 = vrot.slane %v2542_v9, 3 }
 0x24f   : > { %v1995_v10 = vadd.f32 %v1918_v60, %v4408_v12  ;;  %v2796_v12 = vsel %vm2767_vm6, %v2793_v49, %v2795_v37 }
 0x250   : > { %v3155_v18 = vmax.f32 %v3119_v38, 0.0  ;;  %v2732_v16 = vadd.f32 %v4846_v17, %v2359_v31  ;;  %v2896_v59 = vpop.f32.mrf.mxu0  ;;  %v4914_v1 = vpop.f32.mrf.mxu3  ;;  %v3835_v31 = vunpack.c.h.bf16 %v3894_v2  ;;  %v2545_v63 = vor.u32 %v2544_v51, %v2541_v55  ;;  %v3895_v2 = vld [vmem:[%s4742_s18 + $0x28] sm:$0xff]  }
 0x252   : > { %v3191_v39 = vpack.c.bf16 %v3155_v18, %v3155_v18  ;;  %v2972_v28 = vadd.f32 %v2894_v54, %v2732_v16 }
 0x254   : > { %3228 = vst.msk [vmem:[%s4780_s23 + $0x1c] sm:$0xf] %vm3220_vm7, %v3191_v39  ;;  %v3012_v17 = vadd.f32 %v4754_v23, %v2972_v28  ;;  %v4932_v39 = vld [vmem:[%s4002_s28 + $0x98] sm:$0xff] }
 0x255   : > { %v2283_v42 = vpop.f32.mrf.mxu2 }
 0x256   : > { %v3120_v56 = vadd.f32 %v3834_v7, %v3012_v17  ;;  %v2360_v22 = vadd.f32 %v2283_v42, %v1995_v10  ;;  %v1921_v54 = vpop.f32.mrf.mxu1  ;;  %v4937_v17 = vld [vmem:[%s4002_s28 + $0x80] sm:$0xff]  ;;  %v2184_v42 = vrot.slane %v4864_v21, 2 }
 0x257   : > { %v1819_v10 = vrot.slane %v4937_v17, 2 }
 0x258   : > { %v3156_v20 = vmax.f32 %v3120_v56, 0.0  ;;  %v2733_v62 = vadd.f32 %v4859_v43, %v2360_v22  ;;  %v2899_v52 = vpop.f32.mrf.mxu0  ;;  %v1996_v43 = vadd.f32 %v1921_v54, %v4414_v34  ;;  %v4927_v49 = vpop.f32.mrf.mxu3  ;;  %v3838_v34 = vunpack.c.l.bf16 %v3895_v2 }
 0x259   : > { %3605 = vmatmul.msk.bf16.gmra.mxu1 %vm509_vm1, %v1818_v53  ;;  %v2548_v56 = vshrl.u32 %v4932_v39, 16  ;;  %v2797_v54 = vrot.slane %v4864_v21, 3 }
 0x25a   : > { %v3192_v32 = vpack.c.bf16 %v3156_v20, %v3156_v20  ;;  %v2973_v38 = vadd.f32 %v2896_v59, %v2733_v62  ;;  %3697 = vmatmul.msk.bf16.gmra.mxu2 %vm509_vm1, %v2183_v35  ;;  %v2546_v59 = vsel %vm2394_vm4, %v2536_v26, %v2545_v63  ;;  %v2551_v26 = vshll.u32 %v4932_v39, 16 }
 0x25b   : > { %3745 = vmatmul.msk.bf16.gmra.mxu0 %vm509_vm1, %v2796_v12  ;;  %v1820_v62 = vsel %vm1789_vm5, %v1817_v19, %v1819_v10  ;;  %v2550_v12 = vrot.slane %v2548_v56, 2  ;;  %v3839_v19 = vunpack.c.h.bf16 %v3895_v2 }
 0x25c   : > { %3229 = vst.msk [vmem:[%s4780_s23 + $0x20] sm:$0xf] %vm3220_vm7, %v3192_v32  ;;  %v3013_v0 = vadd.f32 %v4754_v23, %v2973_v38  ;;  %3723 = vmatmul.msk.bf16.gmra.mxu3 %vm509_vm1, %v2546_v59  ;;  %v2553_v32 = vrot.slane %v2551_v26, 3 }
 0x25d   : > { %v2286_v60 = vpop.f32.mrf.mxu2 }
 0x25e   : > { %v3121_v48 = vadd.f32 %v3835_v31, %v3013_v0  ;;  %v2361_v18 = vadd.f32 %v2286_v60, %v1996_v43  ;;  %v1923_v16 = vpop.f32.mrf.mxu1  ;;  %v2798_v0 = vsel %vm2767_vm6, %v2795_v37, %v2797_v54  ;;  %v2387_v43 = vld [vmem:[%s4002_s28 + $0xa0] sm:$0x7] }
 0x25f   : > { %v1997_v22 = vadd.f32 %v1923_v16, %v4424_v27 }
 0x260   : > { %v3157_v28 = vmax.f32 %v3121_v48, 0.0  ;;  %v2734_v7 = vadd.f32 %v4880_v3, %v2361_v18  ;;  %v2901_v45 = vpop.f32.mrf.mxu0  ;;  %v4948_v35 = vpop.f32.mrf.mxu3  ;;  %v2392_v18 = vunpack.c.l.b16 %v2387_v43 }
 0x262   : > { %v3193_v44 = vpack.c.bf16 %v3157_v28, %v3157_v28  ;;  %v2974_v9 = vadd.f32 %v2899_v52, %v2734_v7  ;;  %v2185_v52 = vsel %vm1789_vm5, %v2182_v33, %v2184_v42  ;;  %v2554_v33 = vor.u32 %v2553_v32, %v2550_v12  ;;  %v3896_v7 = vld [vmem:[%s4742_s18 + $0x30] sm:$0xff]  }
 0x263   : > { %v2799_v12 = vrot.slane %v4898_v6, 3 }
 0x264   : > { %3230 = vst.msk [vmem:[%s4780_s23 + $0x24] sm:$0xf] %vm3220_vm7, %v3193_v44  ;;  %v3014_v3 = vadd.f32 %v4754_v23, %v2974_v9  ;;  %v2555_v44 = vsel %vm2394_vm4, %v2545_v63, %v2554_v33  ;;  %v4972_v9 = vpack.c.b16 %v2392_v18, %v2392_v18 }
 0x265   : > { %v2288_v53 = vpop.f32.mrf.mxu2 }
 0x266   : > { %v3122_v55 = vadd.f32 %v3838_v34, %v3014_v3  ;;  %v2362_v51 = vadd.f32 %v2288_v53, %v1997_v22  ;;  %v1926_v20 = vpop.f32.mrf.mxu1  ;;  %v3940_v53 = vld [vmem:[%s4002_s28 + $0x88] sm:$0xff] }
 0x267   : > { %v1998_v16 = vadd.f32 %v1926_v20, %v4433_v25  ;;  %v3842_v25 = vunpack.c.l.bf16 %v3896_v7  ;;  %v2557_v20 = vshrl.u32 %v4972_v9, 16 }
 0x268   : > { %v3158_v27 = vmax.f32 %v3122_v55, 0.0  ;;  %v2735_v38 = vadd.f32 %v4893_v29, %v2362_v51  ;;  %v2904_v31 = vpop.f32.mrf.mxu0  ;;  %v4968_v59 = vpop.f32.mrf.mxu3  ;;  %v1821_v55 = vrot.slane %v3940_v53, 2  ;;  %v2186_v51 = vrot.slane %v4898_v6, 2 }
 0x269   : > { %3606 = vmatmul.msk.bf16.gmra.mxu1 %vm509_vm1, %v1820_v62  ;;  %v2560_v62 = vshll.u32 %v4972_v9, 16 }
 0x26a   : > { %v3194_v60 = vpack.c.bf16 %v3158_v27, %v3158_v27  ;;  %v2975_v48 = vadd.f32 %v2901_v45, %v2735_v38  ;;  %3698 = vmatmul.msk.bf16.gmra.mxu2 %vm509_vm1, %v2185_v52  ;;  %v5172_v52 = vld [vmem:[#allocation10_spill] sm:$0xff]  ;;  %v1822_v43 = vsel %vm1789_vm5, %v1819_v10, %v1821_v55 }
 0x26b   : > { %3746 = vmatmul.msk.bf16.gmra.mxu0 %vm509_vm1, %v2798_v0 }
 0x26c   : > { %3231 = vst.msk [vmem:[%s4780_s23 + $0x28] sm:$0xf] %vm3220_vm7, %v3194_v60  ;;  %v3015_v29 = vadd.f32 %v4754_v23, %v2975_v48  ;;  %3724 = vmatmul.msk.bf16.gmra.mxu3 %vm509_vm1, %v2555_v44  ;;  %v2187_v60 = vsel %vm1789_vm5, %v2184_v42, %v2186_v51  ;;  %v2559_v48 = vrot.slane %v2557_v20, 2  ;;  %v5173_v42 = vld [vmem:[#allocation11_spill] sm:$0xff]  ;;  %v3897_v44 = vld [vmem:[%s4742_s18 + $0x38] sm:$0xff]  }
 0x26d   : > { %v2291_v37 = vpop.f32.mrf.mxu2  ;;  %v3846_v20 = vunpack.c.l.bf16 %v3897_v44 }
 0x26e   : > { %v3123_v28 = vadd.f32 %v3839_v19, %v3015_v29  ;;  %v2363_v2 = vadd.f32 %v2291_v37, %v1998_v16  ;;  %v1928_v45 = vpop.f32.mrf.mxu1  ;;  %v2562_v19 = vrot.slane %v2560_v62, 3  ;;  %v2800_v16 = vsel %vm2767_vm6, %v2797_v54, %v2799_v12  ;;  %v3941_v62 = vld [vmem:[%s4002_s28 + $0x90] sm:$0xff] }
 0x270   : > { %v3159_v34 = vmax.f32 %v3123_v28, 0.0  ;;  %v2736_v56 = vadd.f32 %v4914_v1, %v2363_v2  ;;  %v2906_v26 = vpop.f32.mrf.mxu0  ;;  %v1999_v1 = vadd.f32 %v1928_v45, %v5172_v52  ;;  %v4985_v27 = vpop.f32.mrf.mxu3  ;;  %v3843_v28 = vunpack.c.h.bf16 %v3896_v7 }
 0x271   : > { %v2563_v10 = vor.u32 %v2562_v19, %v2559_v48  ;;  %v2188_v52 = vrot.slane %v4932_v39, 2 }
 0x272   : > { %v3195_v3 = vpack.c.bf16 %v3159_v34, %v3159_v34  ;;  %v2976_v22 = vadd.f32 %v2904_v31, %v2736_v56 }
 0x273   : > { %v2564_v56 = vsel %vm2394_vm4, %v2554_v33, %v2563_v10  ;;  %v2189_v48 = vsel %vm1789_vm5, %v2186_v51, %v2188_v52 }
 0x274   : > { %3232 = vst.msk [vmem:[%s4780_s23 + $0x2c] sm:$0xf] %vm3220_vm7, %v3195_v3  ;;  %v3016_v63 = vadd.f32 %v4754_v23, %v2976_v22 }
 0x275   : > { %v2293_v32 = vpop.f32.mrf.mxu2 }
 0x276   : > { %v3124_v38 = vadd.f32 %v3842_v25, %v3016_v63  ;;  %v2364_v31 = vadd.f32 %v2293_v32, %v1999_v1  ;;  %v1931_v0 = vpop.f32.mrf.mxu1  ;;  %v1823_v63 = vrot.slane %v3941_v62, 2  ;;  %v2801_v32 = vrot.slane %v4932_v39, 3 }
 0x277   : > { %v2000_v21 = vadd.f32 %v1931_v0, %v5173_v42 }
 0x278   : > { %v3160_v18 = vmax.f32 %v3124_v38, 0.0  ;;  %v2737_v6 = vadd.f32 %v4927_v49, %v2364_v31  ;;  %v2909_v29 = vpop.f32.mrf.mxu0  ;;  %v5004_v45 = vpop.f32.mrf.mxu3 }
 0x279   : > { %3607 = vmatmul.msk.bf16.gmra.mxu1 %vm509_vm1, %v1822_v43 }
 0x27a   : > { %v3196_v37 = vpack.c.bf16 %v3160_v18, %v3160_v18  ;;  %v2977_v17 = vadd.f32 %v2906_v26, %v2737_v6  ;;  %3699 = vmatmul.msk.bf16.gmra.mxu2 %vm509_vm1, %v2187_v60  ;;  %v1824_v60 = vsel %vm1789_vm5, %v1821_v55, %v1823_v63 }
 0x27b   : > { %3747 = vmatmul.msk.bf16.gmra.mxu0 %vm509_vm1, %v2800_v16 }
 0x27c   : > { %3233 = vst.msk [vmem:[%s4780_s23 + $0x30] sm:$0xf] %vm3220_vm7, %v3196_v37  ;;  %v3017_v49 = vadd.f32 %v4754_v23, %v2977_v17  ;;  %3725 = vmatmul.msk.bf16.gmra.mxu3 %vm509_vm1, %v2564_v56  ;;  %v3847_v37 = vunpack.c.h.bf16 %v3897_v44 }
 0x27d   : > { %v2296_v2 = vpop.f32.mrf.mxu2 }
 0x27e   : > { %v3125_v54 = vadd.f32 %v3843_v28, %v3017_v49  ;;  %v2365_v7 = vadd.f32 %v2296_v2, %v2000_v21  ;;  %v1933_v34 = vpop.f32.mrf.mxu1  ;;  %v3898_v49 = vld [vmem:[%s4742_s18 + $0x40] sm:$0xff]  }
 0x27f   : > { %v2001_v33 = vadd.f32 %v1933_v34, %v4489_v30  ;;  %v2058_v30 = vld [vmem:[%s4002_s28 + $0xa0] sm:$0x3]  ;;  %v3850_v56 = vunpack.c.l.bf16 %v3898_v49 }
 0x280   : > { %v3161_v26 = vmax.f32 %v3125_v54, 0.0  ;;  %v2738_v3 = vadd.f32 %v4948_v35, %v2365_v7  ;;  %v2911_v22 = vpop.f32.mrf.mxu0  ;;  %v5017_v38 = vpop.f32.mrf.mxu3  ;;  %v2135_v55 = vunpack.c.l.b16 %v2058_v30 }
 0x282   : > { %v3197_v25 = vpack.c.bf16 %v3161_v26, %v3161_v26  ;;  %v2978_v53 = vadd.f32 %v2909_v29, %v2738_v3  ;;  %v2802_v29 = vsel %vm2767_vm6, %v2799_v12, %v2801_v32  ;;  %v2154_v21 = vpack.c.b16 %v2135_v55, %v2135_v55 }
 0x283   : > { %v1825_v26 = vrot.slane %v4484_v8, 2 }
 0x284   : > { %3234 = vst.msk [vmem:[%s4780_s23 + $0x34] sm:$0xf] %vm3220_vm7, %v3197_v25  ;;  %v3018_v1 = vadd.f32 %v4754_v23, %v2978_v53  ;;  %v2190_v3 = vrot.slane %v2154_v21, 2  ;;  %v2803_v25 = vrot.slane %v4972_v9, 3  ;;  %v3851_v9 = vunpack.c.h.bf16 %v3898_v49 }
 0x285   : > { %v2298_v35 = vpop.f32.mrf.mxu2 }
 0x286   : > { %v3126_v31 = vadd.f32 %v3846_v20, %v3018_v1  ;;  %v2366_v0 = vadd.f32 %v2298_v35, %v2001_v33  ;;  %v1936_v43 = vpop.f32.mrf.mxu1  ;;  %v1826_v33 = vsel %vm1789_vm5, %v1823_v63, %v1825_v26  ;;  %v2191_v35 = vsel %vm1789_vm5, %v2188_v52, %v2190_v3  ;;  %v3900_v3 = vld [vmem:[%s4742_s18 + $0x50] sm:$0xff]  }
 0x288   : > { %v3162_v19 = vmax.f32 %v3126_v31, 0.0  ;;  %v2739_v18 = vadd.f32 %v4968_v59, %v2366_v0  ;;  %v2914_v6 = vpop.f32.mrf.mxu0  ;;  %v2002_v59 = vadd.f32 %v1936_v43, %v4503_v5  ;;  %v2681_v17 = vpop.f32.mrf.mxu3  ;;  %v2804_v43 = vsel %vm2767_vm6, %v2801_v32, %v2803_v25 }
 0x289   : > { %3608 = vmatmul.msk.bf16.gmra.mxu1 %vm509_vm1, %v1824_v60 }
 0x28a   : > { %v3198_v39 = vpack.c.bf16 %v3162_v19, %v3162_v19  ;;  %v2979_v16 = vadd.f32 %v2911_v22, %v2739_v18  ;;  %3700 = vmatmul.msk.bf16.gmra.mxu2 %vm509_vm1, %v2189_v48  ;;  %v3899_v18 = vld [vmem:[%s4742_s18 + $0x48] sm:$0xff]  }
 0x28b   : > { %3748 = vmatmul.msk.bf16.gmra.mxu0 %vm509_vm1, %v2802_v29  ;;  %v3854_v55 = vunpack.c.l.bf16 %v3899_v18 }
 0x28c   : > { %3235 = vst.msk [vmem:[%s4780_s23 + $0x38] sm:$0xf] %vm3220_vm7, %v3198_v39  ;;  %v3019_v51 = vadd.f32 %v4754_v23, %v2979_v16 }
 0x28d   : > { %v2301_v12 = vpop.f32.mrf.mxu2 }
 0x28e   : > { %v3127_v28 = vadd.f32 %v3847_v37, %v3019_v51  ;;  %v2367_v10 = vadd.f32 %v2301_v12, %v2002_v59  ;;  %v1938_v42 = vpop.f32.mrf.mxu1 }
 0x28f   : > { %v2003_v22 = vadd.f32 %v1938_v42, %v4519_v36 }
 0x290   : > { %v3163_v2 = vmax.f32 %v3127_v28, 0.0  ;;  %v2740_v54 = vadd.f32 %v4985_v27, %v2367_v10  ;;  %v2916_v7 = vpop.f32.mrf.mxu0  ;;  %v2684_v20 = vpop.f32.mrf.mxu3 }
 0x292   : > { %v3199_v44 = vpack.c.bf16 %v3163_v2, %v3163_v2  ;;  %v2980_v34 = vadd.f32 %v2914_v6, %v2740_v54 }
 0x294   : > { %3236 = vst.msk [vmem:[%s4780_s23 + $0x3c] sm:$0xf] %vm3220_vm7, %v3199_v44  ;;  %v3020_v5 = vadd.f32 %v4754_v23, %v2980_v34 }
 0x295   : > { %v2303_v53 = vpop.f32.mrf.mxu2 }
 0x296   : > { %v3128_v62 = vadd.f32 %v3850_v56, %v3020_v5  ;;  %v2368_v27 = vadd.f32 %v2303_v53, %v2003_v22  ;;  %v1941_v1 = vpop.f32.mrf.mxu1 }
 0x298   : > { %v3164_v8 = vmax.f32 %v3128_v62, 0.0  ;;  %v2741_v31 = vadd.f32 %v5004_v45, %v2368_v27  ;;  %v2919_v0 = vpop.f32.mrf.mxu0  ;;  %v2004_v45 = vadd.f32 %v1941_v1, %v4536_v61  ;;  %v2686_v48 = vpop.f32.mrf.mxu3  ;;  %v3858_v1 = vunpack.c.l.bf16 %v3900_v3 }
 0x299   : > { %3609 = vmatmul.msk.bf16.gmra.mxu1 %vm509_vm1, %v1826_v33 }
 0x29a   : > { %v3200_v36 = vpack.c.bf16 %v3164_v8, %v3164_v8  ;;  %v2981_v60 = vadd.f32 %v2916_v7, %v2741_v31  ;;  %3701 = vmatmul.msk.bf16.gmra.mxu2 %vm509_vm1, %v2191_v35  ;;  %v3855_v7 = vunpack.c.h.bf16 %v3899_v18 }
 0x29b   : > { %3749 = vmatmul.msk.bf16.gmra.mxu0 %vm509_vm1, %v2804_v43 }
 0x29c   : > { %3237 = vst.msk [vmem:[%s4780_s23 + $0x40] sm:$0xf] %vm3220_vm7, %v3200_v36  ;;  %v3021_v63 = vadd.f32 %v4754_v23, %v2981_v60 }
 0x29d   : > { %v2306_v52 = vpop.f32.mrf.mxu2 }
 0x29e   : > { %v3129_v19 = vadd.f32 %v3851_v9, %v3021_v63  ;;  %v2369_v32 = vadd.f32 %v2306_v52, %v2004_v45  ;;  %v1943_v6 = vpop.f32.mrf.mxu1  ;;  %v3859_v45 = vunpack.c.h.bf16 %v3900_v3 }
 0x29f   : > { %v2005_v61 = vadd.f32 %v1943_v6, %v4550_v11  ;;  %v3901_v6 = vld [vmem:[%s4742_s18 + $0x58] sm:$0xff]  }
 0x2a0   : > { %v3165_v29 = vmax.f32 %v3129_v19, 0.0  ;;  %v2742_v30 = vadd.f32 %v5017_v38, %v2369_v32  ;;  %v2921_v39 = vpop.f32.mrf.mxu0  ;;  %v2689_v12 = vpop.f32.mrf.mxu3 }
 0x2a2   : > { %v3201_v16 = vpack.c.bf16 %v3165_v29, %v3165_v29  ;;  %v2982_v37 = vadd.f32 %v2919_v0, %v2742_v30 }
 0x2a4   : > { %3238 = vst.msk [vmem:[%s4780_s23 + $0x44] sm:$0xf] %vm3220_vm7, %v3201_v16  ;;  %v3022_v51 = vadd.f32 %v4754_v23, %v2982_v37 }
 0x2a5   : > { %v2308_v59 = vpop.f32.mrf.mxu2 }
 0x2a6   : > { %v3130_v28 = vadd.f32 %v3854_v55, %v3022_v51  ;;  %v2370_v10 = vadd.f32 %v2308_v59, %v2005_v61  ;;  %v1946_v49 = vpop.f32.mrf.mxu1  ;;  %v3862_v55 = vunpack.c.l.bf16 %v3901_v6 }
 0x2a7   : > { %v2006_v34 = vadd.f32 %v1946_v49, %v4560_v13 }
 0x2a8   : > { %v3166_v42 = vmax.f32 %v3130_v28, 0.0  ;;  %v2743_v21 = vadd.f32 %v2681_v17, %v2370_v10  ;;  %v2924_v38 = vpop.f32.mrf.mxu0  ;;  %v2691_v22 = vpop.f32.mrf.mxu3 }
 0x2aa   : > { %v3202_v2 = vpack.c.bf16 %v3166_v42, %v3166_v42  ;;  %v2983_v54 = vadd.f32 %v2921_v39, %v2743_v21 }
 0x2ac   : > { %3239 = vst.msk [vmem:[%s4780_s23 + $0x48] sm:$0xf] %vm3220_vm7, %v3202_v2  ;;  %v3023_v44 = vadd.f32 %v4754_v23, %v2983_v54  ;;  %v3863_v54 = vunpack.c.h.bf16 %v3901_v6 }
 0x2ad   : > { %v2311_v11 = vpop.f32.mrf.mxu2 }
 0x2ae   : > { %v3131_v56 = vadd.f32 %v3855_v7, %v3023_v44  ;;  %v2371_v26 = vadd.f32 %v2311_v11, %v2006_v34  ;;  %v1948_v5 = vpop.f32.mrf.mxu1 }
 0x2af   : > { %v2007_v35 = vadd.f32 %v1948_v5, %v4574_v50 }
 0x2b0   : > { %v3167_v25 = vmax.f32 %v3131_v56, 0.0  ;;  %v2744_v53 = vadd.f32 %v2684_v20, %v2371_v26  ;;  %v2926_v17 = vpop.f32.mrf.mxu0  ;;  %v2694_v20 = vpop.f32.mrf.mxu3  ;;  %v3902_v26 = vld [vmem:[%s4742_s18 + $0x60] sm:$0xff]  }
 0x2b2   : > { %v3203_v62 = vpack.c.bf16 %v3167_v25, %v3167_v25  ;;  %v2984_v27 = vadd.f32 %v2924_v38, %v2744_v53 }
 0x2b4   : > { %3240 = vst.msk [vmem:[%s4780_s23 + $0x4c] sm:$0xf] %vm3220_vm7, %v3203_v62  ;;  %v3024_v33 = vadd.f32 %v4754_v23, %v2984_v27  ;;  %v3866_v62 = vunpack.c.l.bf16 %v3902_v26 }
 0x2b5   : > { %v2313_v13 = vpop.f32.mrf.mxu2 }
 0x2b6   : > { %v3132_v8 = vadd.f32 %v3858_v1, %v3024_v33  ;;  %v2372_v31 = vadd.f32 %v2313_v13, %v2007_v35  ;;  %v1951_v0 = vpop.f32.mrf.mxu1 }
 0x2b7   : > { %v2008_v19 = vadd.f32 %v1951_v0, %v4583_v40 }
 0x2b8   : > { %v3168_v43 = vmax.f32 %v3132_v8, 0.0  ;;  %v2745_v36 = vadd.f32 %v2686_v48, %v2372_v31  ;;  %v2929_v60 = vpop.f32.mrf.mxu0  ;;  %v2696_v51 = vpop.f32.mrf.mxu3 }
 0x2ba   : > { %v3204_v9 = vpack.c.bf16 %v3168_v43, %v3168_v43  ;;  %v2985_v63 = vadd.f32 %v2926_v17, %v2745_v36 }
 0x2bc   : > { %3241 = vst.msk [vmem:[%s4780_s23 + $0x50] sm:$0xf] %vm3220_vm7, %v3204_v9  ;;  %v3025_v52 = vadd.f32 %v4754_v23, %v2985_v63 }
 0x2bd   : > { %v2316_v50 = vpop.f32.mrf.mxu2 }
 0x2be   : > { %v3133_v32 = vadd.f32 %v3859_v45, %v3025_v52  ;;  %v2373_v18 = vadd.f32 %v2316_v50, %v2008_v19  ;;  %v1953_v29 = vpop.f32.mrf.mxu1  ;;  %v3903_v19 = vld [vmem:[%s4742_s18 + $0x68] sm:$0xff]  }
 0x2bf   : > { %v2009_v59 = vadd.f32 %v1953_v29, %v4596_v15 }
 0x2c0   : > { %v3169_v30 = vmax.f32 %v3133_v32, 0.0  ;;  %v2746_v39 = vadd.f32 %v2689_v12, %v2373_v18  ;;  %v2931_v48 = vpop.f32.mrf.mxu0  ;;  %v2699_v15 = vpop.f32.mrf.mxu3 }
 0x2c2   : > { %v3205_v16 = vpack.c.bf16 %v3169_v30, %v3169_v30  ;;  %v2986_v37 = vadd.f32 %v2929_v60, %v2746_v39 }
 0x2c4   : > { %3242 = vst.msk [vmem:[%s4780_s23 + $0x54] sm:$0xf] %vm3220_vm7, %v3205_v16  ;;  %v3026_v61 = vadd.f32 %v4754_v23, %v2986_v37 }
 0x2c5   : > { %v2318_v40 = vpop.f32.mrf.mxu2 }
 0x2c6   : > { %v3134_v28 = vadd.f32 %v3862_v55, %v3026_v61  ;;  %v2374_v10 = vadd.f32 %v2318_v40, %v2009_v59  ;;  %v1956_v49 = vpop.f32.mrf.mxu1 }
 0x2c7   : > { %v2010_v44 = vadd.f32 %v1956_v49, %v4605_v4 }
 0x2c8   : > { %v3170_v42 = vmax.f32 %v3134_v28, 0.0  ;;  %v2747_v21 = vadd.f32 %v2691_v22, %v2374_v10  ;;  %v2934_v12 = vpop.f32.mrf.mxu0  ;;  %v2701_v8 = vpop.f32.mrf.mxu3 }
 0x2ca   : > { %v3206_v38 = vpack.c.bf16 %v3170_v42, %v3170_v42  ;;  %v2987_v2 = vadd.f32 %v2931_v48, %v2747_v21  ;;  %v3870_v48 = vunpack.c.l.bf16 %v3903_v19  ;;  %v3871_v42 = vunpack.c.h.bf16 %v3903_v19 }
 0x2cc   : > { %3243 = vst.msk [vmem:[%s4780_s23 + $0x58] sm:$0xf] %vm3220_vm7, %v3206_v38  ;;  %v3027_v7 = vadd.f32 %v4754_v23, %v2987_v2 }
 0x2cd   : > { %v2321_v34 = vpop.f32.mrf.mxu2 }
 0x2ce   : > { %v3135_v11 = vadd.f32 %v3863_v54, %v3027_v7  ;;  %v2375_v56 = vadd.f32 %v2321_v34, %v2010_v44  ;;  %v1958_v3 = vpop.f32.mrf.mxu1  ;;  %v3904_v7 = vld [vmem:[%s4742_s18 + $0x70] sm:$0xff]  }
 0x2cf   : > { %v2011_v1 = vadd.f32 %v1958_v3, %v4618_v41  ;;  %v3874_v3 = vunpack.c.l.bf16 %v3904_v7 }
 0x2d0   : > { %v3171_v5 = vmax.f32 %v3135_v11, 0.0  ;;  %v2748_v25 = vadd.f32 %v2694_v20, %v2375_v56  ;;  %v2936_v22 = vpop.f32.mrf.mxu0  ;;  %v3867_v20 = vunpack.c.h.bf16 %v3902_v26  ;;  %v2704_v29 = vpop.f32.mrf.mxu3 }
 0x2d2   : > { %v3207_v53 = vpack.c.bf16 %v3171_v5, %v3171_v5  ;;  %v2988_v17 = vadd.f32 %v2934_v12, %v2748_v25 }
 0x2d4   : > { %3244 = vst.msk [vmem:[%s4780_s23 + $0x5c] sm:$0xf] %vm3220_vm7, %v3207_v53  ;;  %v3028_v27 = vadd.f32 %v4754_v23, %v2988_v17 }
 0x2d5   : > { %v2323_v4 = vpop.f32.mrf.mxu2 }
 0x2d6   : > { %v3136_v33 = vadd.f32 %v3866_v62, %v3028_v27  ;;  %v2376_v35 = vadd.f32 %v2323_v4, %v2011_v1  ;;  %v1961_v13 = vpop.f32.mrf.mxu1 }
 0x2d7   : > { %v2012_v63 = vadd.f32 %v1961_v13, %v4627_v24  ;;  %v3875_v13 = vunpack.c.h.bf16 %v3904_v7  ;;  %v5175_v7 = vld [vmem:[#allocation9_spill] sm:$0xff] }
 0x2d8   : > { %v3172_v31 = vmax.f32 %v3136_v33, 0.0  ;;  %v2749_v0 = vadd.f32 %v2696_v51, %v2376_v35  ;;  %v2939_v43 = vpop.f32.mrf.mxu0  ;;  %v2706_v21 = vpop.f32.mrf.mxu3 }
 0x2da   : > { %v3208_v36 = vpack.c.bf16 %v3172_v31, %v3172_v31  ;;  %v2989_v60 = vadd.f32 %v2936_v22, %v2749_v0 }
 0x2dc   : > { %3245 = vst.msk [vmem:[%s4780_s23 + $0x60] sm:$0xf] %vm3220_vm7, %v3208_v36  ;;  %v3029_v9 = vadd.f32 %v4754_v23, %v2989_v60  ;;  %v5093_v23 = vld [vmem:[%s5143_s2] ss:$0 sm:$0xff]  ;;  %v3905_v36 = vld [vmem:[%s4742_s18 + $0x78] sm:$0xff]  }
 0x2dd   : > { %v2326_v41 = vpop.f32.mrf.mxu2  ;;  %v3878_v19 = vunpack.c.l.bf16 %v3905_v36 }
 0x2de   : > { %v3137_v45 = vadd.f32 %v3867_v20, %v3029_v9  ;;  %v2377_v52 = vadd.f32 %v2326_v41, %v2012_v63  ;;  %v1963_v50 = vpop.f32.mrf.mxu1 }
 0x2df   : > { %v2013_v16 = vadd.f32 %v1963_v50, %v4640_v14 }
 0x2e0   : > { %v3173_v32 = vmax.f32 %v3137_v45, 0.0  ;;  %v2750_v18 = vadd.f32 %v2699_v15, %v2377_v52  ;;  %v2941_v6 = vpop.f32.mrf.mxu0 }
 0x2e2   : > { %v3209_v30 = vpack.c.bf16 %v3173_v32, %v3173_v32  ;;  %v2990_v39 = vadd.f32 %v2939_v43, %v2750_v18 }
 0x2e4   : > { %3246 = vst.msk [vmem:[%s4780_s23 + $0x64] sm:$0xf] %vm3220_vm7, %v3209_v30  ;;  %v3030_v24 = vadd.f32 %v5093_v23, %v2990_v39 }
 0x2e5   : > { %v2328_v37 = vpop.f32.mrf.mxu2 }
 0x2e6   : > { %v3138_v55 = vadd.f32 %v3870_v48, %v3030_v24  ;;  %v2378_v51 = vadd.f32 %v2328_v37, %v2013_v16  ;;  %v1966_v61 = vpop.f32.mrf.mxu1  ;;  %v3879_v37 = vunpack.c.h.bf16 %v3905_v36 }
 0x2e7   : > { %v2014_v38 = vadd.f32 %v1966_v61, %v4649_v47  ;;  %v2709_v47 = vpop.f32.mrf.mxu3  ;;  %v5174_v61 = vld [vmem:[#allocation8_spill] sm:$0xff] }
 0x2e8   : > { %v3174_v59 = vmax.f32 %v3138_v55, 0.0  ;;  %v2751_v40 = vadd.f32 %v2701_v8, %v2378_v51  ;;  %v2944_v28 = vpop.f32.mrf.mxu0 }
 0x2ea   : > { %v3210_v10 = vpack.c.bf16 %v3174_v59, %v3174_v59  ;;  %v2991_v49 = vadd.f32 %v2941_v6, %v2751_v40 }
 0x2ec   : > { %3247 = vst.msk [vmem:[%s4780_s23 + $0x68] sm:$0xf] %vm3220_vm7, %v3210_v10  ;;  %v3031_v12 = vadd.f32 %v5093_v23, %v2991_v49  ;;  %v3906_v10 = vld [vmem:[%s4742_s18 + $0x80] sm:$0xff]  }
 0x2ed   : > { %v2331_v14 = vpop.f32.mrf.mxu2 }
 0x2ee   : > { %v3139_v2 = vadd.f32 %v3871_v42, %v3031_v12  ;;  %v2379_v54 = vadd.f32 %v2331_v14, %v2014_v38  ;;  %v1968_v44 = vpop.f32.mrf.mxu1  ;;  %v3882_v14 = vunpack.c.l.bf16 %v3906_v10 }
 0x2ef   : > { %v2015_v25 = vadd.f32 %v1968_v44, %v4662_v46  ;;  %v2711_v20 = vpop.f32.mrf.mxu3 }
 0x2f0   : > { %v3175_v34 = vmax.f32 %v3139_v2, 0.0  ;;  %v2752_v15 = vadd.f32 %v2704_v29, %v2379_v54  ;;  %v2946_v11 = vpop.f32.mrf.mxu0 }
 0x2f2   : > { %v3211_v56 = vpack.c.bf16 %v3175_v34, %v3175_v34  ;;  %v2992_v26 = vadd.f32 %v2944_v28, %v2752_v15 }
 0x2f4   : > { %3248 = vst.msk [vmem:[%s4780_s23 + $0x6c] sm:$0xf] %vm3220_vm7, %v3211_v56  ;;  %v3032_v5 = vadd.f32 %v5093_v23, %v2992_v26 }
 0x2f5   : > { %v2333_v22 = vpop.f32.mrf.mxu2 }
 0x2f6   : > { %v3140_v53 = vadd.f32 %v3874_v3, %v3032_v5  ;;  %v2380_v17 = vadd.f32 %v2333_v22, %v2015_v25  ;;  %v1971_v62 = vpop.f32.mrf.mxu1 }
 0x2f7   : > { %v2016_v31 = vadd.f32 %v1971_v62, %v4671_v57  ;;  %v2714_v48 = vpop.f32.mrf.mxu3 }
 0x2f8   : > { %v3176_v27 = vmax.f32 %v3140_v53, 0.0  ;;  %v2753_v1 = vadd.f32 %v2706_v21, %v2380_v17  ;;  %v2949_v4 = vpop.f32.mrf.mxu0  ;;  %v5176_v17 = vld [vmem:[#allocation2_spill] sm:$0xff] }
 0x2fa   : > { %v3212_v33 = vpack.c.bf16 %v3176_v27, %v3176_v27  ;;  %v2993_v35 = vadd.f32 %v2946_v11, %v2753_v1 }
 0x2fc   : > { %3249 = vst.msk [vmem:[%s4780_s23 + $0x70] sm:$0xf] %vm3220_vm7, %v3212_v33  ;;  %v3033_v8 = vadd.f32 %v5093_v23, %v2993_v35 }
 0x2fd   : > { %v2336_v46 = vpop.f32.mrf.mxu2 }
 0x2fe   : > { %v3141_v0 = vadd.f32 %v3875_v13, %v3033_v8  ;;  %v2381_v43 = vadd.f32 %v2336_v46, %v2016_v31  ;;  %v1973_v60 = vpop.f32.mrf.mxu1  ;;  %v3907_v13 = vld [vmem:[%s4742_s18 + $0x88] sm:$0xff]  }
 0x2ff   : > { %v2017_v32 = vadd.f32 %v1973_v60, %v4684_v58  ;;  %v2716_v2 = vpop.f32.mrf.mxu3  ;;  %v3886_v36 = vunpack.c.l.bf16 %v3907_v13 }
 0x300   : > { %v3177_v9 = vmax.f32 %v3141_v0, 0.0  ;;  %v2754_v63 = vadd.f32 %v2709_v47, %v2381_v43  ;;  %v2951_v41 = vpop.f32.mrf.mxu0  ;;  %v3883_v47 = vunpack.c.h.bf16 %v3906_v10 }
 0x302   : > { %v3213_v45 = vpack.c.bf16 %v3177_v9, %v3177_v9  ;;  %v2994_v52 = vadd.f32 %v2949_v4, %v2754_v63 }
 0x304   : > { %3250 = vst.msk [vmem:[%s4780_s23 + $0x74] sm:$0xf] %vm3220_vm7, %v3213_v45  ;;  %v3034_v50 = vadd.f32 %v5093_v23, %v2994_v52 }
 0x305   : > { %v2338_v57 = vpop.f32.mrf.mxu2 }
 0x306   : > { %v3142_v18 = vadd.f32 %v3878_v19, %v3034_v50  ;;  %v2382_v6 = vadd.f32 %v2338_v57, %v2017_v32  ;;  %v1976_v29 = vpop.f32.mrf.mxu1 }
 0x307   : > { %v2018_v59 = vadd.f32 %v1976_v29, %v5174_v61  ;;  %v2719_v27 = vpop.f32.mrf.mxu3 }
 0x308   : > { %v3178_v30 = vmax.f32 %v3142_v18, 0.0  ;;  %v2755_v39 = vadd.f32 %v2711_v20, %v2382_v6  ;;  %v2954_v55 = vpop.f32.mrf.mxu0  ;;  %v5177_v20 = vld [vmem:[#allocation3_spill] sm:$0xff]  ;;  %v3887_v6 = vunpack.c.h.bf16 %v3907_v13 }
 0x30a   : > { %v3214_v24 = vpack.c.bf16 %v3178_v30, %v3178_v30  ;;  %v2995_v16 = vadd.f32 %v2951_v41, %v2755_v39 }
 0x30c   : > { %3251 = vst.msk [vmem:[%s4780_s23 + $0x78] sm:$0xf] %vm3220_vm7, %v3214_v24  ;;  %v3035_v51 = vadd.f32 %v5093_v23, %v2995_v16 }
 0x30d   : > { %v2341_v58 = vpop.f32.mrf.mxu2 }
 0x30e   : > { %v3143_v40 = vadd.f32 %v3879_v37, %v3035_v51  ;;  %v2383_v28 = vadd.f32 %v2341_v58, %v2018_v59  ;;  %v1978_v49 = vpop.f32.mrf.mxu1 }
 0x30f   : > { %v2019_v44 = vadd.f32 %v1978_v49, %v5175_v7  ;;  %v2721_v52 = vpop.f32.mrf.mxu3 }
 0x310   : > { %v3179_v42 = vmax.f32 %v3143_v40, 0.0  ;;  %v2756_v21 = vadd.f32 %v2714_v48, %v2383_v28  ;;  %v2956_v34 = vpop.f32.mrf.mxu0 }
 0x312   : > { %v3215_v12 = vpack.c.bf16 %v3179_v42, %v3179_v42  ;;  %v2996_v38 = vadd.f32 %v2954_v55, %v2756_v21 }
 0x314   : > { %3252 = vst.msk [vmem:[%s4780_s23 + $0x7c] sm:$0xf] %vm3220_vm7, %v3215_v12  ;;  %v3036_v54 = vadd.f32 %v5093_v23, %v2996_v38 }
 0x315   : > { %v2343_v15 = vpop.f32.mrf.mxu2 }
 0x316   : > { %v3144_v11 = vadd.f32 %v3882_v14, %v3036_v54  ;;  %v2384_v56 = vadd.f32 %v2343_v15, %v2019_v44  ;;  %v1981_v26 = vpop.f32.mrf.mxu1 }
 0x317   : > { %v2020_v62 = vadd.f32 %v1981_v26, %v5176_v17 }
 0x318   : > { %v3180_v3 = vmax.f32 %v3144_v11, 0.0  ;;  %v2757_v5 = vadd.f32 %v2716_v2, %v2384_v56  ;;  %v2959_v35 = vpop.f32.mrf.mxu0 }
 0x31a   : > { %v3216_v25 = vpack.c.bf16 %v3180_v3, %v3180_v3  ;;  %v2997_v22 = vadd.f32 %v2956_v34, %v2757_v5 }
 0x31c   : > { %3253 = vst.msk [vmem:[%s4780_s23 + $0x80] sm:$0xf] %vm3220_vm7, %v3216_v25  ;;  %v3037_v53 = vadd.f32 %v5093_v23, %v2997_v22 }
 0x31d   : > { %v2346_v1 = vpop.f32.mrf.mxu2 }
 0x31e   : > { %v3145_v4 = vadd.f32 %v3883_v47, %v3037_v53  ;;  %v2385_v33 = vadd.f32 %v2346_v1, %v2020_v62  ;;  %v1983_v46 = vpop.f32.mrf.mxu1 }
 0x31f   : > { %v2021_v9 = vadd.f32 %v1983_v46, %v5177_v20 }
 0x320   : > { %v3181_v8 = vmax.f32 %v3145_v4, 0.0  ;;  %v2758_v31 = vadd.f32 %v2719_v27, %v2385_v33  ;;  %v2961_v32 = vpop.f32.mrf.mxu0 }
 0x322   : > { %v3217_v0 = vpack.c.bf16 %v3181_v8, %v3181_v8  ;;  %v2998_v43 = vadd.f32 %v2959_v35, %v2758_v31 }
 0x324   : > { %3254 = vst.msk [vmem:[%s4780_s23 + $0x84] sm:$0xf] %vm3220_vm7, %v3217_v0  ;;  %v3038_v60 = vadd.f32 %v5093_v23, %v2998_v43 }
 0x325   : > { %v2348_v63 = vpop.f32.mrf.mxu2 }
 0x326   : > { %v3146_v41 = vadd.f32 %v3886_v36, %v3038_v60  ;;  %v2386_v45 = vadd.f32 %v2348_v63, %v2021_v9 }
 0x328   : > { %v3182_v19 = vmax.f32 %v3146_v41, 0.0  ;;  %v2759_v50 = vadd.f32 %v2721_v52, %v2386_v45 }
 0x32a   : > { %v3218_v57 = vpack.c.bf16 %v3182_v19, %v3182_v19  ;;  %v2999_v18 = vadd.f32 %v2961_v32, %v2759_v50 }
 0x32c   : > { %3255 = vst.msk [vmem:[%s4780_s23 + $0x88] sm:$0xf] %vm3220_vm7, %v3218_v57  ;;  %v3039_v29 = vadd.f32 %v5093_v23, %v2999_v18 }
 0x32e   : > { %v3147_v30 = vadd.f32 %v3887_v6, %v3039_v29 }
 0x330   : > { %v3183_v39 = vmax.f32 %v3147_v30, 0.0 }
 0x332   : > { %v3219_v48 = vpack.c.bf16 %v3183_v39, %v3183_v39 }
 0x334   : > { %3256 = vst.msk [vmem:[%s4780_s23 + $0x8c] sm:$0xf] %vm3220_vm7, %v3219_v48 }
 0x335 PF: > { %s14_s15 = sadd.s32 1, %s3949_s15  }
 0x336   : > { %p11_p4 = scmp.ge.s32.totalorder %s14_s15, 4  }
 0x338   :  { %13 = sbr.rel (!%p11_p4) target bundleno = 1 (0x1), region = 77 }

// kernel: resnet_forward.11
= control target key start
LH: loop header
LB: loop body
LE: loop exit
PB: predicated region body
PF: predicated region fallthrough
CT: control target
= control target key end

     0   :  { %s1622_s12 = smov 0   ;;  %s1895_s0 = inlined_call_operand.vmem [shape: bf16[2,360,16], index: 0, kind: input, shape index: {}]   ;;  %s1896_s1 = inlined_call_operand.vmem [shape: bf16[9,16,32], index: 1, kind: input, shape index: {}]   ;;  %s1897_s2 = inlined_call_operand.vmem [shape: f32[1,32], index: 2, kind: input, shape index: {}]   ;;  %s1898_s3 = inlined_call_operand.vmem [shape: bf16[2,72,32], index: 3, kind: output, shape index: {}]  }
   0x1 LB: > { %s1302_s13 = sadd.s32 4294967295, %s1600_s12   ;;  %p1306_p0 = scmp.ge.s32.totalorder %s1600_s12, 1  ;;  %s1600_s12 = sphi %s1622_s12, %s13_s12  }
   0x2   : > { %p137_p1 = scmp.lt.s32.totalorder %s1600_s12, 3 }
   0x4   : > { %p138_p2 = pnand %p1306_p0, %p137_p1 }
   0x5   : > { %p161_p3 = scmp.lt.s32.totalorder (!%p138_p2), %s1302_s13, 1 }
   0x6   : > { %141 = sbr.rel (%p138_p2) target bundleno = 341 (0x155), region = 32 }
   0xb   : > { %v1546_v0 = vld [vmem:[%s1896_s1 + $0x8] sm:$0xff]  ;;  %v1552_v1 = vld [vmem:[%s1896_s1 + $0x10] sm:$0xff]  ;;  %v1540_v2 = vld [vmem:[%s1896_s1] sm:$0xff]  ;;  %s1900_s13 = smov (!%p161_p3, %s1302_s13), 1  ;;  %vm221_vm0 = vcmask 1046528   ;;  %vm237_vm1 = vcmask 130048  }
   0xc   : > { %v1557_v3 = vld [vmem:[%s1896_s1 + $0x18] sm:$0xff]  ;;  %v1563_v4 = vld [vmem:[%s1896_s1 + $0x20] sm:$0xff]  ;;  %1577 = vmatpush.bf16.msra.mxu1 %v1546_v0  ;;  %1578 = vmatpush.bf16.msra.mxu2 %v1546_v0  ;;  %s1580_s24 = smul.u32 180, %s1900_s13  ;;  %v1569_v20 = vld [vmem:[%s1896_s1 + $0x30] sm:$0xff]  ;;  %vm542_vm2 = vcmask 1045504   ;;  %vm653_vm3 = vcmask 1044480  }
   0xd   : > { %1579 = vmatpush.bf16.msra.mxu3 %v1546_v0  ;;  %260 = vmatpush.bf16.msra.mxu0 %v1546_v0  ;;  %v1575_v22 = vld [vmem:[%s1896_s1 + $0x38] sm:$0xff]  ;;  %v1564_v23 = vld [vmem:[%s1896_s1 + $0x28] sm:$0xff]  ;;  %v1576_v27 = vld [vmem:[%s1896_s1 + $0x40] sm:$0xff]  ;;  %vm401_vm4 = vsmask.f32 7424  ;;  %s1581_s11 = smul.u32 36, %s1900_s13 }
   0xe   : > { %s1651_s27 = scalar_lea.vmem %s1895_s0, %s1580_s24  ;;  %vm733_vm5 = vsmask.f32 5376  ;;  %vm1019_vm6 = vsmask.f32 6400  ;;  %vm1237_vm7 = vcmask 257024  }
   0xf   : > { %v1542_v5 = vld [vmem:[%s1651_s27 + $0x34] sm:$0xff]  ;;  %v1543_v6 = vld [vmem:[%s1651_s27 + $0x3c] sm:$0xff]  ;;  %v1544_v7 = vld [vmem:[%s1651_s27 + $0x44] sm:$0xff]  ;;  %s1857_s16 = scalar_lea.vmem %s1898_s3, %s1581_s11 }
  0x10   : > { %469 = vmatpush.bf16.msrb.mxu2 %v1552_v1  ;;  %337 = vmatpush.bf16.msrb.mxu1 %v1540_v2  ;;  %v1329_v8 = vld [vmem:[%s1651_s27 + $0x4c] sm:$0xf]  ;;  %v1545_v9 = vld [vmem:[%s1651_s27 + $0x4c] sm:$0x10]  ;;  %v223_v10 = vrot.slane %v1542_v5, 1  ;;  %v225_v11 = vrot.slane %v1543_v6, 1 }
  0x11   : > { %580 = vmatpush.bf16.msrb.mxu3 %v1557_v3  ;;  %691 = vmatpush.bf16.msrb.mxu0 %v1563_v4  ;;  %v227_v12 = vrot.slane %v1544_v7, 1  ;;  %v1330_v13 = vor.u32 %v1545_v9, %v1329_v8  ;;  %v1313_v14 = vld [vmem:[%s1651_s27 + $0x2c] sm:$0xe]  ;;  %v1541_v15 = vld [vmem:[%s1651_s27 + $0x2c] sm:$0xf0]  ;;  %v1682_v28 = vld [vmem:[%s1651_s27 + $0x60] sm:$0xff] }
  0x12   : > { %v226_v16 = vsel %vm221_vm0, %v223_v10, %v225_v11  ;;  %v1314_v19 = vor.u32 %v1541_v15, %v1313_v14  ;;  %v1400_v25 = vld [vmem:[%s1651_s27 + $0x58] sm:$0xc]  ;;  %v1553_v26 = vld [vmem:[%s1651_s27 + $0x58] sm:$0xf0]  ;;  %v1427_v30 = vld [vmem:[%s1651_s27 + $0x84] sm:$0x8] }
  0x13   : > { %v228_v17 = vsel %vm221_vm0, %v225_v11, %v227_v12  ;;  %v229_v18 = vrot.slane %v1330_v13, 1  ;;  %1336 = vmatmul.msk.bf16.vlgmr.msra.gmra.mxu1 %vm237_vm1, %v226_v16  ;;  %v1684_v29 = vor.u32 %v1553_v26, %v1400_v25  ;;  %v1558_v31 = vld [vmem:[%s1651_s27 + $0x84] sm:$0xf0]  ;;  %v1559_v32 = vld [vmem:[%s1651_s27 + $0x8c] sm:$0xff]  ;;  %v544_v35 = vrot.slane %v1682_v28, 2  ;;  %v1536_v36 = vld [vmem:[%s1651_s27] sm:$0xff] }
  0x14   : > { %1337 = vmatmul.msk.bf16.vlgmr.msra.gmra.mxu2 %vm237_vm1, %v228_v17  ;;  %v222_v21 = vrot.slane %v1314_v19, 1  ;;  %806 = vmatpush.bf16.msra.mxu1 %v1564_v23  ;;  %v1428_v33 = vor.u32 %v1558_v31, %v1427_v30  ;;  %v1547_v38 = vld [vmem:[%s1651_s27] sm:$0xff]  ;;  %v655_v40 = vrot.slane %v1559_v32, 3  ;;  %v1548_v42 = vld [vmem:[%s1651_s27 + $0x8] sm:$0xff]  ;;  %v1560_v51 = vld [vmem:[%s1651_s27 + $0x94] sm:$0xff]  ;;  %v746_v23 = vshll.u32 %v1682_v28, 16 }
  0x15   : > { %1339 = vmatmul.msk.bf16.vlgmr.msra.gmra.mxu3 %vm237_vm1, %v229_v18  ;;  %946 = vmatpush.bf16.msra.mxu2 %v1569_v20  ;;  %v543_v34 = vrot.slane %v1684_v29, 2  ;;  %v230_v37 = vsel %vm221_vm0, %v227_v12, %v229_v18  ;;  %v405_v43 = vshll.u32 %v1547_v38, 16  ;;  %v403_v45 = vshrl.u32 %v1547_v38, 16  ;;  %v1702_v48 = vld [vmem:[%s1651_s27 + $0x68] sm:$0xff]  ;;  %v1549_v57 = vld [vmem:[%s1651_s27 + $0x10] sm:$0xff]  ;;  %v1561_v0 = vld [vmem:[%s1651_s27 + $0x9c] sm:$0xff] }
  0x16   : > { %v224_v24 = vsel %vm221_vm0, %v222_v21, %v223_v10  ;;  %1092 = vmatpush.bf16.msra.mxu3 %v1575_v22  ;;  %v654_v39 = vrot.slane %v1428_v33, 3  ;;  %v410_v47 = vshll.u32 %v1548_v42, 16  ;;  %v546_v52 = vrot.slane %v1702_v48, 2  ;;  %v1537_v53 = vld [vmem:[%s1651_s27 + $0x8] sm:$0xff]  ;;  %v1716_v61 = vld [vmem:[%s1651_s27 + $0x70] sm:$0xff]  ;;  %v1550_v8 = vld [vmem:[%s1651_s27 + $0x18] sm:$0xff] }
  0x17   : > { %1335 = vmatmul.msk.bf16.vlgmr.msra.gmra.mxu0 %vm237_vm1, %v224_v24  ;;  %v545_v41 = vsel %vm542_vm2, %v543_v34, %v544_v35  ;;  %v407_v46 = vrot.slane %v405_v43, 1  ;;  %v657_v55 = vrot.slane %v1560_v51, 3  ;;  %v414_v59 = vshrl.u32 %v1548_v42, 16  ;;  %v1538_v2 = vld [vmem:[%s1651_s27 + $0x10] sm:$0xff]  ;;  %v1724_v6 = vld [vmem:[%s1651_s27 + $0x78] sm:$0xf] }
  0x18   : > { %1171 = vmatpush.bf16.msra.mxu0 %v1576_v27  ;;  %v656_v44 = vsel %vm653_vm3, %v654_v39, %v655_v40  ;;  %v412_v50 = vrot.slane %v410_v47, 1  ;;  %v547_v56 = vsel %vm542_vm2, %v544_v35, %v546_v52  ;;  %v418_v60 = vshll.u32 %v1549_v57, 16  ;;  %v513_v7 = vld [vmem:[%s1651_s27 + $0x7c] sm:$0x3]  ;;  %v1443_v14 = vld [vmem:[%s1651_s27 + $0xa4] sm:$0xf] }
  0x19   : > { %v408_v49 = vor.u32 %v407_v46, %v403_v45  ;;  %v658_v58 = vsel %vm653_vm3, %v655_v40, %v657_v55  ;;  %v548_v1 = vrot.slane %v1716_v61, 2  ;;  %v659_v4 = vrot.slane %v1561_v0, 3  ;;  %v1562_v15 = vld [vmem:[%s1651_s27 + $0xa4] sm:$0x70]  ;;  %v1539_v31 = vld [vmem:[%s1651_s27 + $0x18] sm:$0xff] }
  0x1a   : > { %v416_v62 = vor.u32 %v414_v59, %v412_v50  ;;  %v420_v63 = vrot.slane %v418_v60, 1  ;;  %v535_v10 = vunpack.c.l.b16 %v1724_v6  ;;  %v536_v11 = vunpack.c.l.b16 %v513_v7  ;;  %v841_v0 = vld [vmem:[%s1651_s27 + $0x4] sm:$0xff]  }
  0x1b   : > { %v413_v54 = vsel %vm401_vm4, %v408_v49, %v412_v50  ;;  %v549_v5 = vsel %vm542_vm2, %v546_v52, %v548_v1  ;;  %v660_v9 = vsel %vm653_vm3, %v657_v55, %v659_v4  ;;  %v422_v12 = vshrl.u32 %v1549_v57, 16 }
  0x1c   : > { %v421_v3 = vsel %vm401_vm4, %v416_v62, %v420_v63  ;;  %v426_v13 = vshll.u32 %v1550_v8, 16  ;;  %v541_v16 = vpack.c.b16 %v536_v11, %v535_v10  ;;  %v1444_v19 = vor.u32 %v1562_v15, %v1443_v14 }
  0x1d   : > { %v424_v17 = vor.u32 %v422_v12, %v420_v63  ;;  %v735_v20 = vshrl.u32 %v1684_v29, 16  ;;  %v738_v21 = vshll.u32 %v1684_v29, 16  ;;  %v743_v22 = vshrl.u32 %v1682_v28, 16  ;;  %v1551_v29 = vld [vmem:[%s1651_s27 + $0x20] sm:$0x10]  ;;  %v1565_v12 = vld [vmem:[%s1651_s27 + $0xc] sm:$0xff] }
  0x1e   : > { %v428_v18 = vrot.slane %v426_v13, 1  ;;  %v550_v24 = vrot.slane %v541_v16, 2  ;;  %v748_v30 = vrot.slane %v746_v23, 3  ;;  %v661_v33 = vrot.slane %v1444_v19, 3  ;;  %v1596_v63 = vld [vmem:[%s1651_s27 + $0x4] sm:$0xe] }
  0x1f   : > { %v737_v25 = vrot.slane %v735_v20, 2  ;;  %v740_v26 = vrot.slane %v738_v21, 3  ;;  %v745_v27 = vrot.slane %v743_v22, 2  ;;  %v752_v40 = vshrl.u32 %v1702_v48, 16 }
  0x20   : > { %v429_v32 = vsel %vm401_vm4, %v424_v17, %v428_v18  ;;  %v662_v39 = vsel %vm653_vm3, %v659_v4, %v661_v33  ;;  %v430_v45 = vshrl.u32 %v1550_v8, 16  ;;  %v1135_v15 = vrot.slane %v1565_v12, 1  ;;  %v1572_v17 = vld [vmem:[%s1651_s27 + $0x40] sm:$0xff] }
  0x21   : > { %v741_v34 = vor.u32 %v740_v26, %v737_v25  ;;  %v749_v35 = vor.u32 %v748_v30, %v745_v27  ;;  %v754_v42 = vrot.slane %v752_v40, 2  ;;  %v1038_v20 = vshrl.u32 %v1572_v17, 16 }
  0x22   : > { %v432_v51 = vor.u32 %v430_v45, %v428_v18  ;;  %v882_v18 = vshll.u32 %v841_v0, 16  ;;  %v1041_v21 = vshll.u32 %v1572_v17, 16  ;;  %v880_v22 = vshrl.u32 %v841_v0, 16 }
  0x23   : > { %1360 = vmatmul.msk.bf16.vlgmr.msrb.gmra.mxu1 %vm237_vm1, %v1536_v36  ;;  %v551_v36 = vsel %vm542_vm2, %v548_v1, %v550_v24  ;;  %v750_v38 = vsel %vm733_vm5, %v741_v34, %v749_v35  ;;  %v1595_v1 = vld [vmem:[%s1651_s27 + $0x4] sm:$0xf0]  ;;  %v1040_v25 = vrot.slane %v1038_v20, 1 }
  0x24   : > { %1338 = vmatmul.msk.bf16.gmra.mxu2 %vm237_vm1, %v230_v37  ;;  %v1385_v37 = vld [vmem:[%s1651_s27 + $0x20] sm:$0xf]  ;;  %v1597_v8 = vor.u32 %v1596_v63, %v1595_v1  ;;  %v884_v23 = vrot.slane %v882_v18, 1  ;;  %v1043_v26 = vrot.slane %v1041_v21, 2 }
  0x25   : > { %1418 = vmatmul.msk.bf16.vlgmr.msrb.gmra.mxu3 %vm237_vm1, %v545_v41  ;;  %v1386_v28 = vor.u32 %v1551_v29, %v1385_v37  ;;  %v755_v41 = vshll.u32 %v1702_v48, 16  ;;  %v1570_v48 = vld [vmem:[%s1651_s27 + $0x30] sm:$0xf0]  ;;  %v761_v37 = vshrl.u32 %v1716_v61, 16  ;;  %v764_v29 = vshll.u32 %v1716_v61, 16 }
  0x26   : > { %v1134_v14 = vrot.slane %v1597_v8, 1  ;;  %v885_v27 = vor.u32 %v884_v23, %v880_v22 }
  0x27   : > { %1449 = vmatmul.msk.bf16.vlgmr.msrb.gmra.mxu0 %vm237_vm1, %v656_v44  ;;  %v757_v43 = vrot.slane %v755_v41, 3  ;;  %v180_v44 = vld [vmem:[%s1651_s27 + $0x20] sm:$0xf]  ;;  %v434_v46 = vshll.u32 %v1386_v28, 16  ;;  %v438_v7 = vshrl.u32 %v1386_v28, 16  ;;  %v763_v40 = vrot.slane %v761_v37, 2 }
  0x28   : > { %v303_v50 = vunpack.c.l.b16 %v180_v44  ;;  %v1136_v19 = vsel %vm221_vm0, %v1134_v14, %v1135_v15  ;;  %v766_v41 = vrot.slane %v764_v29, 3  ;;  %v1568_v14 = vld [vmem:[%s1651_s27 + $0x24] sm:$0x10] }
  0x29   : > { %v1756_v47 = vor.u32 %v757_v43, %v754_v42  ;;  %v436_v52 = vrot.slane %v434_v46, 1  ;;  %v891_v42 = vshrl.u32 %v1565_v12, 16  ;;  %v726_v46 = vld [vmem:[%s1651_s27 + $0x7c] sm:$0x7] }
  0x2a   : > { %v731_v61 = vunpack.c.l.b16 %v726_v46 }
  0x2b   : > { %v759_v49 = vsel %vm733_vm5, %v749_v35, %v1756_v47  ;;  %v437_v55 = vsel %vm401_vm4, %v432_v51, %v436_v52  ;;  %v440_v13 = vor.u32 %v438_v7, %v436_v52 }
  0x33   : > { %1361 = vmatmul.msk.bf16.gmra.mxu1 %vm237_vm1, %v1537_v53  ;;  %v1496_v53 = vld [vmem:[%s1651_s27 + $0x30] sm:$0xe] }
  0x34   : > { %1391 = vmatmul.msk.bf16.vlgmr.msrb.gmra.mxu2 %vm237_vm1, %v413_v54  ;;  %v308_v54 = vpack.c.b16 %v303_v50, %v303_v50  ;;  %v1497_v57 = vor.u32 %v1570_v48, %v1496_v53  ;;  %v1567_v53 = vld [vmem:[%s1651_s27 + $0x1c] sm:$0xff]  ;;  %v1512_v48 = vld [vmem:[%s1651_s27 + $0x50] sm:$0xf] }
  0x35   : > { %1419 = vmatmul.msk.bf16.gmra.mxu3 %vm237_vm1, %v547_v56  ;;  %v1571_v56 = vld [vmem:[%s1651_s27 + $0x38] sm:$0xff] }
  0x36   : > { %v1024_v59 = vshll.u32 %v1497_v57, 16  ;;  %v1029_v60 = vshrl.u32 %v1571_v56, 16  ;;  %v1032_v62 = vshll.u32 %v1571_v56, 16 }
  0x37   : > { %1450 = vmatmul.msk.bf16.gmra.mxu0 %vm237_vm1, %v658_v58  ;;  %v1021_v58 = vshrl.u32 %v1497_v57, 16 }
  0x38   : > { %v1031_v4 = vrot.slane %v1029_v60, 1 }
  0x43   : > { %1362 = vmatmul.msk.bf16.gmra.mxu1 %vm237_vm1, %v1538_v2  ;;  %v1023_v2 = vrot.slane %v1021_v58, 1  ;;  %v732_v58 = vpack.c.b16 %v731_v61, %v535_v10 }
  0x44   : > { %1392 = vmatmul.msk.bf16.gmra.mxu2 %vm237_vm1, %v421_v3  ;;  %v1026_v3 = vrot.slane %v1024_v59, 2  ;;  %v1139_v59 = vrot.slane %v1567_v53, 1 }
  0x45   : > { %1420 = vmatmul.msk.bf16.gmra.mxu3 %vm237_vm1, %v549_v5  ;;  %v1034_v5 = vrot.slane %v1032_v62, 2  ;;  %v770_v0 = vshrl.u32 %v732_v58, 16 }
  0x47   : > { %1451 = vmatmul.msk.bf16.gmra.mxu0 %vm237_vm1, %v660_v9  ;;  %v1027_v9 = vor.u32 %v1026_v3, %v1023_v2  ;;  %v1035_v11 = vor.u32 %v1034_v5, %v1031_v4  ;;  %v772_v5 = vrot.slane %v770_v0, 2 }
  0x49   : > { %v1036_v16 = vsel %vm1019_vm6, %v1027_v9, %v1035_v11  ;;  %v903_v9 = vshll.u32 %v1567_v53, 16 }
  0x4b   : > { %v905_v17 = vrot.slane %v903_v9, 1 }
  0x53   : > { %1363 = vmatmul.msk.bf16.gmra.mxu1 %vm237_vm1, %v1539_v31  ;;  %v1044_v31 = vor.u32 %v1043_v26, %v1040_v25 }
  0x54   : > { %1393 = vmatmul.msk.bf16.gmra.mxu2 %vm237_vm1, %v429_v32  ;;  %v1566_v32 = vld [vmem:[%s1651_s27 + $0x14] sm:$0xff] }
  0x55   : > { %1421 = vmatmul.msk.bf16.gmra.mxu3 %vm237_vm1, %v551_v36  ;;  %v1137_v34 = vrot.slane %v1566_v32, 1  ;;  %v1045_v35 = vsel %vm1019_vm6, %v1035_v11, %v1044_v31  ;;  %v1573_v36 = vld [vmem:[%s1651_s27 + $0x48] sm:$0xff]  ;;  %v895_v43 = vshll.u32 %v1566_v32, 16  ;;  %v899_v8 = vshrl.u32 %v1566_v32, 16 }
  0x56   : > { %v1047_v28 = vshrl.u32 %v1573_v36, 16 }
  0x57   : > { %1452 = vmatmul.msk.bf16.gmra.mxu0 %vm237_vm1, %v662_v39  ;;  %v1050_v39 = vshll.u32 %v1573_v36, 16  ;;  %v897_v51 = vrot.slane %v895_v43, 1  ;;  %v1140_v1 = vsel %vm221_vm0, %v1137_v34, %v1139_v59  ;;  %v907_v36 = vshrl.u32 %v1567_v53, 16 }
  0x58   : > { %v1049_v44 = vrot.slane %v1047_v28, 1 }
  0x59   : > { %v1052_v45 = vrot.slane %v1050_v39, 2 }
  0x5b   : > { %v1053_v52 = vor.u32 %v1052_v45, %v1049_v44 }
  0x5d   : > { %v1054_v60 = vsel %vm1019_vm6, %v1044_v31, %v1053_v52 }
  0x63   : > { %1364 = vmatmul.msk.bf16.gmra.mxu1 %vm237_vm1, %v308_v54  ;;  %v1574_v54 = vld [vmem:[%s1651_s27 + $0x50] sm:$0x30] }
  0x64   : > { %1394 = vmatmul.msk.bf16.gmra.mxu2 %vm237_vm1, %v437_v55  ;;  %v1513_v62 = vor.u32 %v1574_v54, %v1512_v48 }
  0x65   : > { %1422 = vmatmul.msk.bf16.gmra.mxu3 %vm237_vm1, %v550_v24  ;;  %v887_v24 = vshll.u32 %v1565_v12, 16 }
  0x66   : > { %v1056_v2 = vshrl.u32 %v1513_v62, 16  ;;  %v1059_v6 = vshll.u32 %v1513_v62, 16 }
  0x67   : > { %1453 = vmatmul.msk.bf16.gmra.mxu0 %vm237_vm1, %v661_v33  ;;  %v889_v30 = vrot.slane %v887_v24, 1 }
  0x68   : > { %v1058_v11 = vrot.slane %v1056_v2, 1  ;;  %v1061_v12 = vrot.slane %v1059_v6, 2 }
  0x69   : > { %v890_v33 = vsel %vm401_vm4, %v885_v27, %v889_v30  ;;  %v893_v50 = vor.u32 %v891_v42, %v889_v30 }
  0x6b   : > { %v898_v57 = vsel %vm401_vm4, %v893_v50, %v897_v51 }
  0x73   : > { %1460 = vmatmul.msk.bf16.vlgmr.msra.gmra.mxu1 %vm237_vm1, %v750_v38  ;;  %v1138_v38 = vsel %vm221_vm0, %v1135_v15, %v1137_v34 }
  0x74   : > { %1395 = vmatmul.msk.bf16.gmra.mxu2 %vm237_vm1, %v440_v13  ;;  %v1481_v13 = vld [vmem:[%s1651_s27 + $0x24] sm:$0xf] }
  0x75   : > { %1518 = vmatmul.msk.bf16.vlgmr.msra.gmra.mxu3 %vm237_vm1, %v1036_v16  ;;  %v901_v16 = vor.u32 %v899_v8, %v897_v51  ;;  %v1482_v21 = vor.u32 %v1568_v14, %v1481_v13 }
  0x77   : > { %1529 = vmatmul.msk.bf16.vlgmr.msra.gmra.mxu0 %vm237_vm1, %v1136_v19  ;;  %v1062_v19 = vor.u32 %v1061_v12, %v1058_v11  ;;  %v906_v25 = vsel %vm401_vm4, %v901_v16, %v905_v17  ;;  %v1141_v26 = vrot.slane %v1482_v21, 1  ;;  %v911_v37 = vshll.u32 %v1482_v21, 16 }
  0x78   : > { %v915_v53 = vshrl.u32 %v1482_v21, 16 }
  0x79   : > { %v1063_v30 = vsel %vm1019_vm6, %v1053_v52, %v1062_v19  ;;  %v1142_v32 = vsel %vm221_vm0, %v1139_v59, %v1141_v26  ;;  %v913_v28 = vrot.slane %v911_v37, 1 }
  0x83   : > { %1461 = vmatmul.msk.bf16.gmra.mxu1 %vm237_vm1, %v759_v49  ;;  %v767_v49 = vor.u32 %v766_v41, %v763_v40 }
  0x84   : > { %1487 = vmatmul.msk.bf16.vlgmr.msra.gmra.mxu2 %vm237_vm1, %v890_v33 }
  0x85   : > { %1519 = vmatmul.msk.bf16.gmra.mxu3 %vm237_vm1, %v1045_v35  ;;  %v768_v56 = vsel %vm733_vm5, %v1756_v47, %v767_v49  ;;  %v773_v47 = vshll.u32 %v732_v58, 16 }
  0x87   : > { %1530 = vmatmul.msk.bf16.gmra.mxu0 %vm237_vm1, %v1138_v38  ;;  %v775_v7 = vrot.slane %v773_v47, 3  ;;  %v909_v38 = vor.u32 %v907_v36, %v905_v17 }
  0x89   : > { %v776_v15 = vor.u32 %v775_v7, %v772_v5  ;;  %v914_v43 = vsel %vm401_vm4, %v909_v38, %v913_v28 }
  0x8b   : > { %v777_v24 = vsel %vm733_vm5, %v767_v49, %v776_v15 }
  0x90   : > { %v267_v55 = vpop.f32.mrf.mxu1 }
  0x93   : > { %1462 = vmatmul.msk.bf16.gmra.mxu1 %vm237_vm1, %v768_v56 }
  0x94   : > { %1488 = vmatmul.msk.bf16.gmra.mxu2 %vm237_vm1, %v898_v57  ;;  %v262_v63 = vpop.f32.mrf.mxu0  ;;  %v917_v57 = vor.u32 %v915_v53, %v913_v28 }
  0x95   : > { %1520 = vmatmul.msk.bf16.gmra.mxu3 %vm237_vm1, %v1054_v60 }
  0x97   : > { %v1804_v10 = vpop.f32.mrf.mxu2  ;;  %1531 = vmatmul.msk.bf16.gmra.mxu0 %vm237_vm1, %v1140_v1 }
  0x98   : > { %v1806_v3 = vpop.f32.mrf.mxu3  ;;  %v269_v4 = vpop.f32.mrf.mxu1 }
  0x9c   : > { %v264_v18 = vpop.f32.mrf.mxu0 }
  0x9f   : > { %v274_v20 = vpop.f32.mrf.mxu2 }
  0xa0   : > { %v284_v22 = vpop.f32.mrf.mxu3  ;;  %v339_v23 = vpop.f32.mrf.mxu1 }
  0xa1   : > { %v340_v27 = vadd.f32 %v339_v23, %v262_v63 }
  0xa3   : > { %1463 = vmatmul.msk.bf16.gmra.mxu1 %vm237_vm1, %v777_v24 }
  0xa4   : > { %1489 = vmatmul.msk.bf16.gmra.mxu2 %vm237_vm1, %v906_v25  ;;  %v693_v31 = vpop.f32.mrf.mxu0 }
  0xa5   : > { %1521 = vmatmul.msk.bf16.gmra.mxu3 %vm237_vm1, %v1063_v30 }
  0xa7   : > { %v277_v33 = vpop.f32.mrf.mxu2  ;;  %1532 = vmatmul.msk.bf16.gmra.mxu0 %vm237_vm1, %v1142_v32 }
  0xa8   : > { %v582_v34 = vpop.f32.mrf.mxu3  ;;  %v341_v35 = vpop.f32.mrf.mxu1 }
  0xa9   : > { %v342_v29 = vadd.f32 %v341_v35, %v264_v18 }
  0xac   : > { %v695_v39 = vpop.f32.mrf.mxu0 }
  0xaf   : > { %v279_v40 = vpop.f32.mrf.mxu2 }
  0xb0   : > { %v584_v41 = vpop.f32.mrf.mxu3  ;;  %v344_v42 = vpop.f32.mrf.mxu1 }
  0xb1   : > { %v345_v44 = vadd.f32 %v344_v42, %v267_v55 }
  0xb3   : > { %1464 = vmatmul.msk.bf16.gmra.mxu1 %vm237_vm1, %v776_v15 }
  0xb4   : > { %1490 = vmatmul.msk.bf16.gmra.mxu2 %vm237_vm1, %v914_v43  ;;  %v698_v45 = vpop.f32.mrf.mxu0 }
  0xb5   : > { %1522 = vmatmul.msk.bf16.gmra.mxu3 %vm237_vm1, %v1062_v19 }
  0xb7   : > { %v471_v46 = vpop.f32.mrf.mxu2  ;;  %1533 = vmatmul.msk.bf16.gmra.mxu0 %vm237_vm1, %v1141_v26 }
  0xb8   : > { %v495_v49 = vadd.f32 %v471_v46, %v340_v27  ;;  %v587_v50 = vpop.f32.mrf.mxu3  ;;  %v346_v51 = vpop.f32.mrf.mxu1 }
  0xb9   : > { %v347_v52 = vadd.f32 %v346_v51, %v269_v4 }
  0xba   : > { %v606_v61 = vadd.f32 %v582_v34, %v495_v49 }
  0xbc   : > { %v1824_v48 = vadd.f32 %v693_v31, %v606_v61  ;;  %v700_v54 = vpop.f32.mrf.mxu0 }
  0xbf   : > { %v473_v55 = vpop.f32.mrf.mxu2 }
  0xc0   : > { %v496_v56 = vadd.f32 %v473_v55, %v342_v29  ;;  %v589_v58 = vpop.f32.mrf.mxu3  ;;  %v349_v59 = vpop.f32.mrf.mxu1 }
  0xc1   : > { %v350_v62 = vadd.f32 %v349_v59, %v1804_v10 }
  0xc2   : > { %v607_v60 = vadd.f32 %v584_v41, %v496_v56 }
  0xc4   : > { %1491 = vmatmul.msk.bf16.gmra.mxu2 %vm237_vm1, %v917_v57  ;;  %v1828_v63 = vadd.f32 %v695_v39, %v607_v60  ;;  %v703_v0 = vpop.f32.mrf.mxu0 }
  0xc7   : > { %v476_v47 = vpop.f32.mrf.mxu2 }
  0xc8   : > { %v497_v1 = vadd.f32 %v476_v47, %v345_v44  ;;  %v592_v2 = vpop.f32.mrf.mxu3  ;;  %v351_v6 = vpop.f32.mrf.mxu1 }
  0xc9   : > { %v352_v5 = vadd.f32 %v351_v6, %v274_v20 }
  0xca   : > { %v608_v4 = vadd.f32 %v587_v50, %v497_v1  ;;  %v1849_v1 = vld [vmem:[%s1897_s2] ss:$0 sm:$0xff] }
  0xcc   : > { %v1830_v7 = vadd.f32 %v698_v45, %v608_v4  ;;  %v705_v8 = vpop.f32.mrf.mxu0 }
  0xcf   : > { %v478_v9 = vpop.f32.mrf.mxu2 }
  0xd0   : > { %v498_v11 = vadd.f32 %v478_v9, %v347_v52  ;;  %v594_v12 = vpop.f32.mrf.mxu3  ;;  %v354_v13 = vpop.f32.mrf.mxu1 }
  0xd1   : > { %v355_v10 = vadd.f32 %v354_v13, %v277_v33 }
  0xd2   : > { %v609_v14 = vadd.f32 %v589_v58, %v498_v11 }
  0xd4   : > { %v1832_v15 = vadd.f32 %v700_v54, %v609_v14  ;;  %v708_v16 = vpop.f32.mrf.mxu0 }
  0xd7   : > { %v481_v17 = vpop.f32.mrf.mxu2 }
  0xd8   : > { %v499_v18 = vadd.f32 %v481_v17, %v350_v62  ;;  %v597_v19 = vpop.f32.mrf.mxu3  ;;  %v356_v21 = vpop.f32.mrf.mxu1 }
  0xd9   : > { %v357_v23 = vadd.f32 %v356_v21, %v279_v40 }
  0xda   : > { %v610_v22 = vadd.f32 %v592_v2, %v499_v18 }
  0xdc   : > { %v1834_v24 = vadd.f32 %v703_v0, %v610_v22  ;;  %v710_v20 = vpop.f32.mrf.mxu0 }
  0xdf   : > { %v483_v25 = vpop.f32.mrf.mxu2 }
  0xe0   : > { %v500_v26 = vadd.f32 %v483_v25, %v352_v5  ;;  %v599_v27 = vpop.f32.mrf.mxu3  ;;  %v359_v30 = vpop.f32.mrf.mxu1 }
  0xe1   : > { %v360_v46 = vadd.f32 %v359_v30, %v1806_v3 }
  0xe2   : > { %v611_v31 = vadd.f32 %v594_v12, %v500_v26 }
  0xe4   : > { %v1836_v32 = vadd.f32 %v705_v8, %v611_v31  ;;  %v713_v33 = vpop.f32.mrf.mxu0 }
  0xe7   : > { %v486_v34 = vpop.f32.mrf.mxu2 }
  0xe8   : > { %v501_v35 = vadd.f32 %v486_v34, %v355_v10  ;;  %v602_v36 = vpop.f32.mrf.mxu3  ;;  %v361_v37 = vpop.f32.mrf.mxu1 }
  0xea   : > { %v612_v29 = vadd.f32 %v597_v19, %v501_v35 }
  0xec   : > { %v1838_v38 = vadd.f32 %v708_v16, %v612_v29  ;;  %v715_v28 = vpop.f32.mrf.mxu0 }
  0xef   : > { %v488_v39 = vpop.f32.mrf.mxu2 }
  0xf0   : > { %v502_v40 = vadd.f32 %v488_v39, %v357_v23  ;;  %v604_v41 = vpop.f32.mrf.mxu3  ;;  %v808_v42 = vpop.f32.mrf.mxu1 }
  0xf1   : > { %v832_v59 = vadd.f32 %v808_v42, %v1824_v48 }
  0xf2   : > { %v613_v43 = vadd.f32 %v599_v27, %v502_v40 }
  0xf4   : > { %v1840_v44 = vadd.f32 %v710_v20, %v613_v43  ;;  %v1173_v45 = vpop.f32.mrf.mxu0 }
  0xf7   : > { %v491_v49 = vpop.f32.mrf.mxu2 }
  0xf8   : > { %v503_v50 = vadd.f32 %v491_v49, %v360_v46  ;;  %v1094_v51 = vpop.f32.mrf.mxu3  ;;  %v810_v61 = vpop.f32.mrf.mxu1 }
  0xf9   : > { %v833_v4 = vadd.f32 %v810_v61, %v1828_v63 }
  0xfa   : > { %v614_v52 = vadd.f32 %v602_v36, %v503_v50 }
  0xfc   : > { %v1843_v53 = vadd.f32 %v713_v33, %v614_v52  ;;  %v1175_v54 = vpop.f32.mrf.mxu0 }
  0xff   : > { %v493_v55 = vpop.f32.mrf.mxu2 }
 0x100   : > { %v1096_v56 = vpop.f32.mrf.mxu3  ;;  %v813_v57 = vpop.f32.mrf.mxu1 }
 0x101   : > { %v834_v16 = vadd.f32 %v813_v57, %v1830_v7 }
 0x104   : > { %v1178_v58 = vpop.f32.mrf.mxu0 }
 0x107   : > { %v948_v60 = vpop.f32.mrf.mxu2 }
 0x108   : > { %v972_v62 = vadd.f32 %v948_v60, %v832_v59  ;;  %v1099_v0 = vpop.f32.mrf.mxu3  ;;  %v815_v47 = vpop.f32.mrf.mxu1 }
 0x109   : > { %v835_v30 = vadd.f32 %v815_v47, %v1832_v15 }
 0x10a   : > { %v1118_v3 = vadd.f32 %v1094_v51, %v972_v62 }
 0x10c   : > { %v1197_v2 = vadd.f32 %v1173_v45, %v1118_v3  ;;  %v1180_v6 = vpop.f32.mrf.mxu0 }
 0x10e   : > { %v1210_v5 = vadd.f32 %v1849_v1, %v1197_v2 }
 0x10f   : > { %v950_v8 = vpop.f32.mrf.mxu2 }
 0x110   : > { %v1219_v9 = vmax.f32 %v1210_v5, 0.0  ;;  %v973_v48 = vadd.f32 %v950_v8, %v833_v4  ;;  %v1101_v11 = vpop.f32.mrf.mxu3  ;;  %v818_v12 = vpop.f32.mrf.mxu1 }
 0x111   : > { %v836_v40 = vadd.f32 %v818_v12, %v1834_v24 }
 0x112   : > { %v1228_v13 = vpack.c.bf16 %v1219_v9, %v1219_v9  ;;  %v1119_v14 = vadd.f32 %v1096_v56, %v973_v48 }
 0x114   : > { %1238 = vst.msk [vmem:[%s1857_s16] sm:$0xf] %vm1237_vm7, %v1228_v13  ;;  %v1198_v63 = vadd.f32 %v1175_v54, %v1119_v14  ;;  %v1183_v10 = vpop.f32.mrf.mxu0 }
 0x116   : > { %v1211_v17 = vadd.f32 %v1849_v1, %v1198_v63 }
 0x117   : > { %v953_v18 = vpop.f32.mrf.mxu2 }
 0x118   : > { %v1220_v19 = vmax.f32 %v1211_v17, 0.0  ;;  %v974_v21 = vadd.f32 %v953_v18, %v834_v16  ;;  %v1104_v22 = vpop.f32.mrf.mxu3  ;;  %v820_v23 = vpop.f32.mrf.mxu1 }
 0x119   : > { %v837_v52 = vadd.f32 %v820_v23, %v1836_v32 }
 0x11a   : > { %v1229_v20 = vpack.c.bf16 %v1220_v19, %v1220_v19  ;;  %v1120_v25 = vadd.f32 %v1099_v0, %v974_v21 }
 0x11c   : > { %1239 = vst.msk [vmem:[%s1857_s16 + $0x4] sm:$0xf] %vm1237_vm7, %v1229_v20  ;;  %v1199_v26 = vadd.f32 %v1178_v58, %v1120_v25  ;;  %v1185_v27 = vpop.f32.mrf.mxu0 }
 0x11e   : > { %v1212_v31 = vadd.f32 %v1849_v1, %v1199_v26 }
 0x11f   : > { %v955_v33 = vpop.f32.mrf.mxu2 }
 0x120   : > { %v1221_v7 = vmax.f32 %v1212_v31, 0.0  ;;  %v975_v34 = vadd.f32 %v955_v33, %v835_v30  ;;  %v1106_v35 = vpop.f32.mrf.mxu3  ;;  %v823_v36 = vpop.f32.mrf.mxu1 }
 0x121   : > { %v838_v47 = vadd.f32 %v823_v36, %v1838_v38 }
 0x122   : > { %v1230_v37 = vpack.c.bf16 %v1221_v7, %v1221_v7  ;;  %v1121_v29 = vadd.f32 %v1101_v11, %v975_v34 }
 0x124   : > { %1240 = vst.msk [vmem:[%s1857_s16 + $0x8] sm:$0xf] %vm1237_vm7, %v1230_v37  ;;  %v1200_v28 = vadd.f32 %v1180_v6, %v1121_v29  ;;  %v1188_v39 = vpop.f32.mrf.mxu0 }
 0x126   : > { %v1213_v41 = vadd.f32 %v1849_v1, %v1200_v28 }
 0x127   : > { %v958_v42 = vpop.f32.mrf.mxu2 }
 0x128   : > { %v1222_v15 = vmax.f32 %v1213_v41, 0.0  ;;  %v976_v43 = vadd.f32 %v958_v42, %v836_v40  ;;  %v1109_v45 = vpop.f32.mrf.mxu3  ;;  %v825_v46 = vpop.f32.mrf.mxu1 }
 0x129   : > { %v839_v12 = vadd.f32 %v825_v46, %v1840_v44 }
 0x12a   : > { %v1231_v49 = vpack.c.bf16 %v1222_v15, %v1222_v15  ;;  %v1122_v50 = vadd.f32 %v1104_v22, %v976_v43 }
 0x12c   : > { %1241 = vst.msk [vmem:[%s1857_s16 + $0xc] sm:$0xf] %vm1237_vm7, %v1231_v49  ;;  %v1201_v51 = vadd.f32 %v1183_v10, %v1122_v50  ;;  %v1190_v61 = vpop.f32.mrf.mxu0 }
 0x12e   : > { %v1214_v54 = vadd.f32 %v1849_v1, %v1201_v51 }
 0x12f   : > { %v960_v55 = vpop.f32.mrf.mxu2 }
 0x130   : > { %v1223_v24 = vmax.f32 %v1214_v54, 0.0  ;;  %v977_v56 = vadd.f32 %v960_v55, %v837_v52  ;;  %v1111_v57 = vpop.f32.mrf.mxu3  ;;  %v828_v58 = vpop.f32.mrf.mxu1 }
 0x131   : > { %v840_v19 = vadd.f32 %v828_v58, %v1843_v53 }
 0x132   : > { %v1232_v59 = vpack.c.bf16 %v1223_v24, %v1223_v24  ;;  %v1123_v60 = vadd.f32 %v1106_v35, %v977_v56 }
 0x134   : > { %1242 = vst.msk [vmem:[%s1857_s16 + $0x10] sm:$0xf] %vm1237_vm7, %v1232_v59  ;;  %v1202_v62 = vadd.f32 %v1185_v27, %v1123_v60  ;;  %v1193_v0 = vpop.f32.mrf.mxu0 }
 0x136   : > { %v1215_v3 = vadd.f32 %v1849_v1, %v1202_v62 }
 0x137   : > { %v963_v2 = vpop.f32.mrf.mxu2 }
 0x138   : > { %v1224_v32 = vmax.f32 %v1215_v3, 0.0  ;;  %v978_v6 = vadd.f32 %v963_v2, %v838_v47  ;;  %v1114_v4 = vpop.f32.mrf.mxu3  ;;  %v830_v5 = vpop.f32.mrf.mxu1 }
 0x13a   : > { %v1233_v8 = vpack.c.bf16 %v1224_v32, %v1224_v32  ;;  %v1124_v9 = vadd.f32 %v1109_v45, %v978_v6 }
 0x13c   : > { %1243 = vst.msk [vmem:[%s1857_s16 + $0x14] sm:$0xf] %vm1237_vm7, %v1233_v8  ;;  %v1203_v48 = vadd.f32 %v1188_v39, %v1124_v9  ;;  %v1195_v11 = vpop.f32.mrf.mxu0 }
 0x13e   : > { %v1216_v13 = vadd.f32 %v1849_v1, %v1203_v48 }
 0x13f   : > { %v965_v38 = vpop.f32.mrf.mxu2 }
 0x140   : > { %v1225_v14 = vmax.f32 %v1216_v13, 0.0  ;;  %v979_v63 = vadd.f32 %v965_v38, %v839_v12  ;;  %v1116_v10 = vpop.f32.mrf.mxu3 }
 0x142   : > { %v1234_v16 = vpack.c.bf16 %v1225_v14, %v1225_v14  ;;  %v1125_v17 = vadd.f32 %v1111_v57, %v979_v63 }
 0x144   : > { %1244 = vst.msk [vmem:[%s1857_s16 + $0x18] sm:$0xf] %vm1237_vm7, %v1234_v16  ;;  %v1204_v18 = vadd.f32 %v1190_v61, %v1125_v17 }
 0x146   : > { %v1217_v21 = vadd.f32 %v1849_v1, %v1204_v18 }
 0x147   : > { %v968_v22 = vpop.f32.mrf.mxu2 }
 0x148   : > { %v1226_v23 = vmax.f32 %v1217_v21, 0.0  ;;  %v980_v44 = vadd.f32 %v968_v22, %v840_v19 }
 0x14a   : > { %v1235_v20 = vpack.c.bf16 %v1226_v23, %v1226_v23  ;;  %v1126_v25 = vadd.f32 %v1114_v4, %v980_v44 }
 0x14c   : > { %1245 = vst.msk [vmem:[%s1857_s16 + $0x1c] sm:$0xf] %vm1237_vm7, %v1235_v20  ;;  %v1205_v26 = vadd.f32 %v1193_v0, %v1126_v25 }
 0x14e   : > { %v1218_v27 = vadd.f32 %v1849_v1, %v1205_v26 }
 0x14f   : > { %v970_v30 = vpop.f32.mrf.mxu2 }
 0x150   : > { %v1227_v31 = vmax.f32 %v1218_v27, 0.0 }
 0x152   : > { %v1236_v33 = vpack.c.bf16 %v1227_v31, %v1227_v31 }
 0x154   : > { %1246 = vst.msk [vmem:[%s1857_s16 + $0x20] sm:$0xf] %vm1237_vm7, %v1236_v33 }
 0x155 PF: > { %s13_s12 = sadd.s32 1, %s1600_s12  }
 0x156   : > { %p10_p4 = scmp.ge.s32.totalorder %s13_s12, 4  }
 0x158   :  { %12 = sbr.rel (!%p10_p4) target bundleno = 1 (0x1), region = 70 }

// kernel: resnet_forward.12
= control target key start
LH: loop header
LB: loop body
LE: loop exit
PB: predicated region body
PF: predicated region fallthrough
CT: control target
= control target key end

     0   :  { %s1686_s15 = smov 0   ;;  %s2051_s0 = inlined_call_operand.vmem [shape: bf16[2,110,32], index: 0, kind: input, shape index: {}]   ;;  %s2052_s1 = inlined_call_operand.vmem [shape: bf16[9,32,32], index: 1, kind: input, shape index: {}]   ;;  %s2053_s2 = inlined_call_operand.vmem [shape: f32[1,32], index: 2, kind: input, shape index: {}]   ;;  %s2054_s3 = inlined_call_operand.vmem [shape: bf16[2,80,32], index: 3, kind: input, shape index: {}]   ;;  %s2055_s4 = inlined_call_operand.vmem [shape: bf16[2,80,32], index: 4, kind: output, shape index: {}]  }
   0x1 LB: > { %s1368_s16 = sadd.s32 4294967295, %s1659_s15   ;;  %p1372_p0 = scmp.ge.s32.totalorder %s1659_s15, 1  ;;  %s1659_s15 = sphi %s1686_s15, %s14_s15  }
   0x2   : > { %p172_p1 = scmp.lt.s32.totalorder %s1659_s15, 3 }
   0x4   : > { %p173_p2 = pnand %p1372_p0, %p172_p1 }
   0x5   : > { %p203_p3 = scmp.lt.s32.totalorder (!%p173_p2), %s1368_s16, 1 }
   0x6   : > { %176 = sbr.rel (%p173_p2) target bundleno = 354 (0x162), region = 36 }
   0xb   : > { %v1582_v0 = vld [vmem:[%s2052_s1 + $0x18] sm:$0xff]  ;;  %v1581_v1 = vld [vmem:[%s2052_s1 + $0x10] sm:$0xff]  ;;  %s2057_s16 = smov (!%p203_p3, %s1368_s16), 1  ;;  %v1584_v2 = vld [vmem:[%s2052_s1 + $0x28] sm:$0xff]  ;;  %vm267_vm0 = vsmask.f32 7424 }
   0xc   : > { %1636 = vmatpush.bf16.msra.mxu1 %v1582_v0  ;;  %1637 = vmatpush.bf16.msra.mxu2 %v1582_v0  ;;  %s1642_s23 = smul.u32 56, %s2057_s16  ;;  %v1580_v3 = vld [vmem:[%s2052_s1 + $0x8] sm:$0xff]  ;;  %v1590_v4 = vld [vmem:[%s2052_s1 + $0x38] sm:$0xff]  ;;  %v1579_v6 = vld [vmem:[%s2052_s1] sm:$0xff]  ;;  %vm324_vm1 = vcmask 261120   ;;  %vm439_vm2 = vcmask 1046528  }
   0xd   : > { %1638 = vmatpush.bf16.msra.mxu3 %v1582_v0  ;;  %346 = vmatpush.bf16.msra.mxu0 %v1582_v0  ;;  %v1592_v5 = vld [vmem:[%s2052_s1 + $0x48] sm:$0xff]  ;;  %v1583_v7 = vld [vmem:[%s2052_s1 + $0x20] sm:$0xff]  ;;  %v1589_v13 = vld [vmem:[%s2052_s1 + $0x30] sm:$0xff]  ;;  %vm657_vm3 = vsmask.f32 6400  ;;  %vm791_vm4 = vcmask 1045504  }
   0xe   : > { %s1718_s6 = scalar_lea.vmem %s2051_s0, %s1642_s23  ;;  %v1591_v19 = vld [vmem:[%s2052_s1 + $0x40] sm:$0xff]  ;;  %v1600_v44 = vld [vmem:[%s2052_s1 + $0x68] sm:$0xff]  ;;  %v1602_v45 = vld [vmem:[%s2052_s1 + $0x78] sm:$0xff]  ;;  %vm1009_vm5 = vsmask.f32 5376  ;;  %vm1143_vm6 = vcmask 1044480  }
   0xf   : > { %v1727_v8 = vld [vmem:[%s1718_s6 + $0x8] sm:$0xff]  ;;  %v1730_v9 = vld [vmem:[%s1718_s6 + $0x10] sm:$0xff]  ;;  %v1733_v10 = vld [vmem:[%s1718_s6 + $0x18] sm:$0xff]  ;;  %vm1290_vm7 = vcmask 257024  }
  0x10   : > { %1639 = vmatpush.bf16.msra.mxu1 %v1581_v1  ;;  %1640 = vmatpush.bf16.msra.mxu2 %v1581_v1  ;;  %v1736_v11 = vld [vmem:[%s1718_s6 + $0x20] sm:$0xff]  ;;  %v233_v12 = vld [vmem:[%s1718_s6 + $0x28] sm:$0x1]  ;;  %v276_v14 = vshll.u32 %v1727_v8, 16  ;;  %v280_v15 = vshrl.u32 %v1727_v8, 16  ;;  %v284_v16 = vshll.u32 %v1730_v9, 16 }
  0x11   : > { %1641 = vmatpush.bf16.msra.mxu3 %v1581_v1  ;;  %347 = vmatpush.bf16.msra.mxu0 %v1581_v1  ;;  %v288_v17 = vshrl.u32 %v1730_v9, 16  ;;  %v1747_v18 = vld [vmem:[%s1718_s6] sm:$0xff]   ;;  %v292_v20 = vshll.u32 %v1733_v10, 16  ;;  %v260_v21 = vunpack.c.l.b16 %v233_v12  ;;  %v300_v22 = vshll.u32 %v1736_v11, 16  ;;  %v1758_v28 = vld [vmem:[%s1718_s6 + $0x8] sm:$0xff]   ;;  %v1594_v46 = vld [vmem:[%s2052_s1 + $0x58] sm:$0xff] }
  0x12   : > { %v304_v23 = vshrl.u32 %v1736_v11, 16  ;;  %v522_v24 = vld [vmem:[%s1718_s6 + $0x4] sm:$0xe]  ;;  %v278_v25 = vrot.slane %v276_v14, 1  ;;  %v286_v26 = vrot.slane %v284_v16, 1  ;;  %v269_v27 = vshrl.u32 %v1747_v18, 16 }
  0x13   : > { %v294_v29 = vrot.slane %v292_v20, 1  ;;  %v1760_v30 = vpack.c.b16 %v260_v21, %v260_v21  ;;  %v302_v31 = vrot.slane %v300_v22, 1  ;;  %v271_v32 = vshll.u32 %v1747_v18, 16  ;;  %v1781_v49 = vld [vmem:[%s1718_s6 + $0xc] sm:$0xff] }
  0x14   : > { %484 = vmatpush.bf16.msrb.mxu2 %v1584_v2  ;;  %402 = vmatpush.bf16.msrb.mxu1 %v1580_v3  ;;  %v282_v33 = vor.u32 %v280_v15, %v278_v25  ;;  %v290_v34 = vor.u32 %v288_v17, %v286_v26  ;;  %v549_v35 = vunpack.c.l.b16 %v522_v24  ;;  %v550_v39 = vunpack.c.l.b16 %v1758_v28  ;;  %v1604_v51 = vld [vmem:[%s2052_s1 + $0x88] sm:$0xff]  ;;  %v1599_v24 = vld [vmem:[%s2052_s1 + $0x60] sm:$0xff] }
  0x15   : > { %610 = vmatpush.bf16.msrb.mxu3 %v1590_v4  ;;  %744 = vmatpush.bf16.msrb.mxu0 %v1592_v5  ;;  %v306_v36 = vor.u32 %v304_v23, %v302_v31  ;;  %v308_v37 = vshll.u32 %v1760_v30, 16  ;;  %v273_v38 = vrot.slane %v271_v32, 1  ;;  %v667_v54 = vshrl.u32 %v1781_v49, 16  ;;  %v1629_v5 = vld [vmem:[%s1718_s6] sm:$0xf0] }
  0x16   : > { %v287_v40 = vsel %vm267_vm0, %v282_v33, %v286_v26  ;;  %v295_v41 = vsel %vm267_vm0, %v290_v34, %v294_v29  ;;  %v560_v50 = vpack.c.b16 %v550_v39, %v549_v35  ;;  %v670_v55 = vshll.u32 %v1781_v49, 16  ;;  %v1593_v26 = vld [vmem:[%s2052_s1 + $0x50] sm:$0xff] }
  0x17   : > { %1405 = vmatmul.msk.bf16.vlgmr.msra.gmra.mxu1 %vm324_vm1, %v287_v40  ;;  %1406 = vmatmul.msk.bf16.vlgmr.msra.gmra.mxu2 %vm324_vm1, %v295_v41  ;;  %v310_v42 = vrot.slane %v308_v37, 1  ;;  %v274_v43 = vor.u32 %v273_v38, %v269_v27  ;;  %v296_v56 = vshrl.u32 %v1733_v10, 16  ;;  %v669_v59 = vrot.slane %v667_v54, 1  ;;  %v1603_v40 = vld [vmem:[%s2052_s1 + $0x80] sm:$0xff] }
  0x18   : > { %485 = vmatpush.bf16.msrb.mxu2 %v1583_v7  ;;  %403 = vmatpush.bf16.msrb.mxu1 %v1579_v6  ;;  %v659_v52 = vshrl.u32 %v560_v50, 16  ;;  %v662_v53 = vshll.u32 %v560_v50, 16  ;;  %v672_v60 = vrot.slane %v670_v55, 2  ;;  %v566_v62 = vrot.slane %v560_v50, 1  ;;  %v1630_v6 = vld [vmem:[%s1718_s6] sm:$0xe] }
  0x19   : > { %611 = vmatpush.bf16.msrb.mxu3 %v1589_v13  ;;  %745 = vmatpush.bf16.msrb.mxu0 %v1591_v19  ;;  %v311_v47 = vsel %vm267_vm0, %v306_v36, %v310_v42  ;;  %v279_v48 = vsel %vm267_vm0, %v274_v43, %v278_v25  ;;  %v298_v61 = vor.u32 %v296_v56, %v294_v29  ;;  %v567_v63 = vrot.slane %v1781_v49, 1  ;;  %v1803_v7 = vld [vmem:[%s1718_s6 + $0x14] sm:$0xff]  ;;  %v1821_v25 = vld [vmem:[%s1718_s6 + $0x1c] sm:$0xff]  ;;  %v1845_v41 = vld [vmem:[%s1718_s6 + $0x24] sm:$0xff] }
  0x1a   : > { %1408 = vmatmul.msk.bf16.vlgmr.msra.gmra.mxu3 %vm324_vm1, %v311_v47  ;;  %1404 = vmatmul.msk.bf16.vlgmr.msra.gmra.mxu0 %vm324_vm1, %v279_v48  ;;  %v661_v57 = vrot.slane %v659_v52, 1  ;;  %v664_v58 = vrot.slane %v662_v53, 2  ;;  %v673_v1 = vor.u32 %v672_v60, %v669_v59  ;;  %v676_v12 = vshrl.u32 %v1803_v7, 16  ;;  %v782_v48 = vld [vmem:[%s1718_s6 + $0x4] sm:$0xc] }
  0x1b   : > { %v303_v2 = vsel %vm267_vm0, %v298_v61, %v302_v31  ;;  %v568_v3 = vsel %vm439_vm2, %v566_v62, %v567_v63  ;;  %v679_v13 = vshll.u32 %v1803_v7, 16  ;;  %v1631_v14 = vor.u32 %v1630_v6, %v1629_v5  ;;  %v648_v52 = vld [vmem:[%s1718_s6 + $0x2c] sm:$0x3]  ;;  %v874_v5 = vld [vmem:[%s1718_s6 + $0x8] sm:$0xc] }
  0x1c   : > { %962 = vmatpush.bf16.msra.mxu2 %v1600_v44  ;;  %836 = vmatpush.bf16.msra.mxu1 %v1594_v46  ;;  %v665_v0 = vor.u32 %v664_v58, %v661_v57  ;;  %v678_v15 = vrot.slane %v676_v12, 1  ;;  %v569_v19 = vrot.slane %v1803_v7, 1  ;;  %v685_v27 = vshrl.u32 %v1821_v25, 16  ;;  %v532_v62 = vld [vmem:[%s1718_s6 + $0x2c] sm:$0x1] }
  0x1d   : > { %1096 = vmatpush.bf16.msra.mxu3 %v1602_v45  ;;  %1188 = vmatpush.bf16.msra.mxu0 %v1604_v51  ;;  %v681_v16 = vrot.slane %v679_v13, 2  ;;  %v440_v17 = vrot.slane %v1631_v14, 1  ;;  %v688_v29 = vshll.u32 %v1821_v25, 16  ;;  %v443_v33 = vrot.slane %v1730_v9, 1 }
  0x1e   : > { %v674_v4 = vsel %vm657_vm3, %v665_v0, %v673_v1  ;;  %v570_v22 = vsel %vm439_vm2, %v567_v63, %v569_v19  ;;  %v687_v31 = vrot.slane %v685_v27, 1  ;;  %v571_v34 = vrot.slane %v1821_v25, 1 }
  0x1f   : > { %v682_v20 = vor.u32 %v681_v16, %v678_v15  ;;  %v690_v32 = vrot.slane %v688_v29, 2  ;;  %v449_v42 = vrot.slane %v1760_v30, 1  ;;  %v694_v43 = vshrl.u32 %v1845_v41, 16  ;;  %v1595_v16 = vld [vmem:[%s1718_s6 + $0x10] sm:$0xff] }
  0x20   : > { %963 = vmatpush.bf16.msra.mxu2 %v1599_v24  ;;  %837 = vmatpush.bf16.msra.mxu1 %v1593_v26  ;;  %v572_v37 = vsel %vm439_vm2, %v569_v19, %v571_v34  ;;  %v697_v44 = vshll.u32 %v1845_v41, 16  ;;  %v445_v50 = vrot.slane %v1733_v10, 1  ;;  %v789_v51 = vunpack.c.l.b16 %v782_v48 }
  0x21   : > { %v683_v23 = vsel %vm657_vm3, %v673_v1, %v682_v20  ;;  %v691_v35 = vor.u32 %v690_v32, %v687_v31  ;;  %1189 = vmatpush.bf16.msra.mxu0 %v1603_v40  ;;  %v696_v46 = vrot.slane %v694_v43, 1  ;;  %v573_v30 = vrot.slane %v1845_v41, 1 }
  0x22   : > { %v699_v47 = vrot.slane %v697_v44, 2  ;;  %v790_v53 = vpack.c.b16 %v550_v39, %v789_v51  ;;  %v655_v55 = vunpack.c.l.b16 %v648_v52  ;;  %v446_v56 = vsel %vm439_vm2, %v443_v33, %v445_v50  ;;  %v1907_v51 = vld [vmem:[%s1718_s6 + $0x20] sm:$0xff] }
  0x23   : > { %v692_v38 = vsel %vm657_vm3, %v682_v20, %v691_v35  ;;  %v793_v58 = vrot.slane %v1781_v49, 2  ;;  %v574_v39 = vsel %vm439_vm2, %v571_v34, %v573_v30  ;;  %v795_v49 = vrot.slane %v1803_v7, 2  ;;  %v1134_v20 = vld [vmem:[%s1718_s6 + $0x8] sm:$0x8] }
  0x24   : > { %v700_v54 = vor.u32 %v699_v47, %v696_v46  ;;  %v792_v57 = vrot.slane %v790_v53, 2  ;;  %v1870_v61 = vpack.c.b16 %v655_v55, %v655_v55  ;;  %v559_v63 = vunpack.c.l.b16 %v532_v62 }
  0x25   : > { %v796_v1 = vsel %vm791_vm4, %v793_v58, %v795_v49  ;;  %v901_v13 = vunpack.c.l.b16 %v874_v5  ;;  %v902_v14 = vunpack.c.h.b16 %v1758_v28  ;;  %v1141_v24 = vunpack.c.l.b16 %v1134_v20 }
  0x26   : > { %v794_v59 = vsel %vm791_vm4, %v792_v57, %v793_v58  ;;  %v701_v60 = vsel %vm657_vm3, %v691_v35, %v700_v54  ;;  %v706_v0 = vshll.u32 %v1870_v61, 16  ;;  %v1145_v34 = vrot.slane %v1595_v16, 3 }
  0x27   : > { %1407 = vmatmul.msk.bf16.gmra.mxu2 %vm324_vm1, %v303_v2  ;;  %1417 = vmatmul.msk.bf16.vlgmr.msrb.gmra.mxu1 %vm324_vm1, %v1747_v18  ;;  %v441_v18 = vrot.slane %v1727_v8, 1  ;;  %v565_v2 = vpack.c.b16 %v559_v63, %v559_v63  ;;  %v912_v19 = vpack.c.b16 %v902_v14, %v901_v13  ;;  %v1142_v29 = vpack.c.b16 %v902_v14, %v1141_v24  ;;  %v1000_v13 = vld [vmem:[%s1718_s6 + $0x30] sm:$0x7] }
  0x28   : > { %v919_v44 = vrot.slane %v1595_v16, 2  ;;  %v1037_v52 = vshrl.u32 %v1907_v51, 16  ;;  %v1040_v53 = vshll.u32 %v1907_v51, 16  ;;  %v797_v55 = vrot.slane %v1821_v25, 2 }
  0x29   : > { %v442_v21 = vsel %vm439_vm2, %v440_v17, %v441_v18  ;;  %v444_v36 = vsel %vm439_vm2, %v441_v18, %v443_v33  ;;  %v575_v6 = vrot.slane %v565_v2, 1  ;;  %v1011_v28 = vshrl.u32 %v912_v19, 16 }
  0x2a   : > { %1467 = vmatmul.msk.bf16.vlgmr.msrb.gmra.mxu3 %vm324_vm1, %v568_v3  ;;  %1484 = vmatmul.msk.bf16.vlgmr.msrb.gmra.mxu0 %vm324_vm1, %v674_v4  ;;  %v708_v4 = vrot.slane %v706_v0, 2  ;;  %v1144_v33 = vrot.slane %v1142_v29, 3  ;;  %v918_v43 = vrot.slane %v912_v19, 2  ;;  %v1149_v58 = vrot.slane %v1907_v51, 3 }
  0x2b   : > { %v576_v17 = vsel %vm439_vm2, %v573_v30, %v575_v6  ;;  %v1039_v30 = vrot.slane %v1037_v52, 2  ;;  %v799_v6 = vrot.slane %v1845_v41, 2 }
  0x2c   : > { %v920_v47 = vsel %vm791_vm4, %v918_v43, %v919_v44 }
  0x37   : > { %1418 = vmatmul.msk.bf16.gmra.mxu1 %vm324_vm1, %v1727_v8  ;;  %1434 = vmatmul.msk.bf16.vlgmr.msrb.gmra.mxu2 %vm324_vm1, %v442_v21  ;;  %v1601_v8 = vld [vmem:[%s2052_s1 + $0x70] sm:$0xff]  ;;  %v1019_v21 = vshrl.u32 %v1595_v16, 16 }
  0x38   : > { %1097 = vmatpush.bf16.msra.mxu3 %v1601_v8 }
  0x39   : > { %v1021_v8 = vrot.slane %v1019_v21, 2 }
  0x3a   : > { %1468 = vmatmul.msk.bf16.gmra.mxu3 %vm324_vm1, %v570_v22  ;;  %1485 = vmatmul.msk.bf16.gmra.mxu0 %vm324_vm1, %v683_v23  ;;  %v1014_v22 = vshll.u32 %v912_v19, 16  ;;  %v1022_v23 = vshll.u32 %v1595_v16, 16  ;;  %v800_v19 = vsel %vm791_vm4, %v797_v55, %v799_v6 }
  0x3c   : > { %v1016_v26 = vrot.slane %v1014_v22, 3  ;;  %v1024_v27 = vrot.slane %v1022_v23, 3 }
  0x3e   : > { %v1025_v32 = vor.u32 %v1024_v27, %v1021_v8 }
  0x47   : > { %1419 = vmatmul.msk.bf16.gmra.mxu1 %vm324_vm1, %v1730_v9  ;;  %1435 = vmatmul.msk.bf16.gmra.mxu2 %vm324_vm1, %v444_v36  ;;  %v447_v9 = vrot.slane %v1736_v11, 1  ;;  %v1146_v36 = vsel %vm1143_vm6, %v1144_v33, %v1145_v34 }
  0x49   : > { %v1854_v45 = vsel %vm439_vm2, %v447_v9, %v449_v42  ;;  %v448_v15 = vsel %vm439_vm2, %v445_v50, %v447_v9 }
  0x4a   : > { %1469 = vmatmul.msk.bf16.gmra.mxu3 %vm324_vm1, %v572_v37  ;;  %1486 = vmatmul.msk.bf16.gmra.mxu0 %vm324_vm1, %v692_v38  ;;  %v1596_v37 = vld [vmem:[%s1718_s6 + $0x18] sm:$0xff] }
  0x4b   : > { %v1028_v38 = vshrl.u32 %v1596_v37, 16  ;;  %v1031_v40 = vshll.u32 %v1596_v37, 16 }
  0x4d   : > { %v1030_v9 = vrot.slane %v1028_v38, 2  ;;  %v1033_v42 = vrot.slane %v1031_v40, 3 }
  0x4f   : > { %v1034_v46 = vor.u32 %v1033_v42, %v1030_v9 }
  0x51   : > { %v1035_v48 = vsel %vm1009_vm5, %v1025_v32, %v1034_v46 }
  0x57   : > { %1420 = vmatmul.msk.bf16.gmra.mxu1 %vm324_vm1, %v1733_v10  ;;  %1436 = vmatmul.msk.bf16.gmra.mxu2 %vm324_vm1, %v446_v56  ;;  %v703_v10 = vshrl.u32 %v1870_v61, 16  ;;  %v921_v56 = vrot.slane %v1596_v37, 2 }
  0x59   : > { %v705_v3 = vrot.slane %v703_v10, 1  ;;  %v1924_v10 = vld [vmem:[%s1718_s6 + $0x28] sm:$0xff] }
  0x5a   : > { %1470 = vmatmul.msk.bf16.gmra.mxu3 %vm324_vm1, %v574_v39  ;;  %1487 = vmatmul.msk.bf16.gmra.mxu0 %vm324_vm1, %v701_v60  ;;  %v798_v39 = vsel %vm791_vm4, %v795_v49, %v797_v55  ;;  %v922_v60 = vsel %vm791_vm4, %v919_v44, %v921_v56  ;;  %v1046_v7 = vshrl.u32 %v1924_v10, 16  ;;  %v1049_v49 = vshll.u32 %v1924_v10, 16 }
  0x5b   : > { %v709_v12 = vor.u32 %v708_v4, %v705_v3  ;;  %v1151_v16 = vrot.slane %v1924_v10, 3 }
  0x5c   : > { %v1048_v4 = vrot.slane %v1046_v7, 2  ;;  %v1051_v5 = vrot.slane %v1049_v49, 3 }
  0x5d   : > { %v710_v18 = vsel %vm657_vm3, %v700_v54, %v709_v12  ;;  %v1042_v54 = vrot.slane %v1040_v53, 3  ;;  %v923_v12 = vrot.slane %v1907_v51, 2  ;;  %v1152_v23 = vsel %vm1143_vm6, %v1149_v58, %v1151_v16 }
  0x5f   : > { %v1043_v57 = vor.u32 %v1042_v54, %v1039_v30  ;;  %v924_v20 = vsel %vm791_vm4, %v921_v56, %v923_v12 }
  0x61   : > { %v1044_v62 = vsel %vm1009_vm5, %v1034_v46, %v1043_v57 }
  0x67   : > { %1421 = vmatmul.msk.bf16.gmra.mxu1 %vm324_vm1, %v1736_v11  ;;  %1437 = vmatmul.msk.bf16.gmra.mxu2 %vm324_vm1, %v448_v15  ;;  %v1013_v11 = vrot.slane %v1011_v28, 2  ;;  %v1052_v15 = vor.u32 %v1051_v5, %v1048_v4 }
  0x69   : > { %v1017_v31 = vor.u32 %v1016_v26, %v1013_v11  ;;  %v1053_v41 = vsel %vm1009_vm5, %v1043_v57, %v1052_v15 }
  0x6a   : > { %1471 = vmatmul.msk.bf16.gmra.mxu3 %vm324_vm1, %v576_v17  ;;  %1488 = vmatmul.msk.bf16.gmra.mxu0 %vm324_vm1, %v710_v18  ;;  %v1007_v17 = vunpack.c.l.b16 %v1000_v13 }
  0x6b   : > { %v1026_v35 = vsel %vm1009_vm5, %v1017_v31, %v1025_v32 }
  0x6c   : > { %v1008_v24 = vpack.c.b16 %v1007_v17, %v1007_v17 }
  0x6e   : > { %v1055_v11 = vshrl.u32 %v1008_v24, 16  ;;  %v1058_v26 = vshll.u32 %v1008_v24, 16  ;;  %v1153_v40 = vrot.slane %v1008_v24, 3 }
  0x70   : > { %v1057_v33 = vrot.slane %v1055_v11, 2 }
  0x77   : > { %1438 = vmatmul.msk.bf16.gmra.mxu2 %vm324_vm1, %v1854_v45  ;;  %1501 = vmatmul.msk.bf16.vlgmr.msra.gmra.mxu1 %vm324_vm1, %v794_v59  ;;  %v1147_v45 = vrot.slane %v1596_v37, 3 }
  0x79   : > { %v1148_v50 = vsel %vm1143_vm6, %v1145_v34, %v1147_v45  ;;  %v1150_v25 = vsel %vm1143_vm6, %v1147_v45, %v1149_v58  ;;  %v1060_v34 = vrot.slane %v1058_v26, 3  ;;  %v884_v45 = vld [vmem:[%s1718_s6 + $0x30] sm:$0x3]  ;;  %s1643_s6 = smul.u32 40, %s2057_s16 }
  0x7a   : > { %1551 = vmatmul.msk.bf16.vlgmr.msra.gmra.mxu3 %vm324_vm1, %v1026_v35  ;;  %1568 = vmatmul.msk.bf16.vlgmr.msra.gmra.mxu0 %vm324_vm1, %v1146_v36  ;;  %v801_v35 = vrot.slane %v1870_v61, 2  ;;  %v925_v36 = vrot.slane %v1924_v10, 2 }
  0x7b   : > { %v1061_v38 = vor.u32 %v1060_v34, %v1057_v33  ;;  %s1992_s10 = scalar_lea.vmem %s2054_s3, %s1643_s6  ;;  %s2005_s14 = scalar_lea.vmem %s2055_s4, %s1643_s6 }
  0x7c   : > { %v802_v42 = vsel %vm791_vm4, %v799_v6, %v801_v35  ;;  %v926_v43 = vsel %vm791_vm4, %v923_v12, %v925_v36 }
  0x87   : > { %1502 = vmatmul.msk.bf16.gmra.mxu1 %vm324_vm1, %v796_v1  ;;  %1534 = vmatmul.msk.bf16.vlgmr.msra.gmra.mxu2 %vm324_vm1, %v920_v47  ;;  %v1062_v47 = vsel %vm1009_vm5, %v1052_v15, %v1061_v38 }
  0x8a   : > { %1552 = vmatmul.msk.bf16.gmra.mxu3 %vm324_vm1, %v1035_v48  ;;  %1569 = vmatmul.msk.bf16.gmra.mxu0 %vm324_vm1, %v1148_v50  ;;  %v1154_v48 = vsel %vm1143_vm6, %v1151_v16, %v1153_v40  ;;  %v911_v50 = vunpack.c.l.b16 %v884_v45 }
  0x8c   : > { %v917_v30 = vpack.c.b16 %v911_v50, %v911_v50 }
  0x94   : > { %v354_v59 = vpop.f32.mrf.mxu1 }
  0x97   : > { %1503 = vmatmul.msk.bf16.gmra.mxu1 %vm324_vm1, %v798_v39  ;;  %1535 = vmatmul.msk.bf16.gmra.mxu2 %vm324_vm1, %v922_v60  ;;  %v349_v63 = vpop.f32.mrf.mxu0 }
  0x9a   : > { %v1926_v0 = vpop.f32.mrf.mxu2  ;;  %1553 = vmatmul.msk.bf16.gmra.mxu3 %vm324_vm1, %v1044_v62  ;;  %1570 = vmatmul.msk.bf16.gmra.mxu0 %vm324_vm1, %v1150_v25 }
  0x9c   : > { %v356_v1 = vpop.f32.mrf.mxu1 }
  0x9d   : > { %v1932_v2 = vpop.f32.mrf.mxu3 }
  0x9f   : > { %v351_v3 = vpop.f32.mrf.mxu0 }
  0xa2   : > { %v1937_v14 = vpop.f32.mrf.mxu2 }
  0xa4   : > { %v405_v18 = vpop.f32.mrf.mxu1 }
  0xa5   : > { %v406_v21 = vadd.f32 %v405_v18, %v349_v63  ;;  %v1942_v28 = vpop.f32.mrf.mxu3 }
  0xa7   : > { %1504 = vmatmul.msk.bf16.gmra.mxu1 %vm324_vm1, %v800_v19  ;;  %1536 = vmatmul.msk.bf16.gmra.mxu2 %vm324_vm1, %v924_v20  ;;  %v747_v22 = vpop.f32.mrf.mxu0 }
  0xaa   : > { %v364_v8 = vpop.f32.mrf.mxu2  ;;  %1554 = vmatmul.msk.bf16.gmra.mxu3 %vm324_vm1, %v1053_v41  ;;  %1571 = vmatmul.msk.bf16.gmra.mxu0 %vm324_vm1, %v1152_v23 }
  0xac   : > { %v407_v27 = vpop.f32.mrf.mxu1 }
  0xad   : > { %v408_v29 = vadd.f32 %v407_v27, %v351_v3  ;;  %v613_v31 = vpop.f32.mrf.mxu3 }
  0xaf   : > { %v749_v32 = vpop.f32.mrf.mxu0 }
  0xb2   : > { %v366_v37 = vpop.f32.mrf.mxu2 }
  0xb4   : > { %v410_v9 = vpop.f32.mrf.mxu1 }
  0xb5   : > { %v411_v44 = vadd.f32 %v410_v9, %v354_v59  ;;  %v615_v46 = vpop.f32.mrf.mxu3  ;;  %v927_v59 = vrot.slane %v917_v30, 2 }
  0xb7   : > { %1505 = vmatmul.msk.bf16.gmra.mxu1 %vm324_vm1, %v802_v42  ;;  %1537 = vmatmul.msk.bf16.gmra.mxu2 %vm324_vm1, %v926_v43  ;;  %v752_v61 = vpop.f32.mrf.mxu0  ;;  %v928_v63 = vsel %vm791_vm4, %v925_v36, %v927_v59 }
  0xba   : > { %v487_v51 = vpop.f32.mrf.mxu2  ;;  %1555 = vmatmul.msk.bf16.gmra.mxu3 %vm324_vm1, %v1062_v47  ;;  %1572 = vmatmul.msk.bf16.gmra.mxu0 %vm324_vm1, %v1154_v48 }
  0xbb   : > { %v512_v52 = vadd.f32 %v487_v51, %v406_v21 }
  0xbc   : > { %v412_v53 = vpop.f32.mrf.mxu1 }
  0xbd   : > { %v638_v54 = vadd.f32 %v613_v31, %v512_v52  ;;  %v413_v55 = vadd.f32 %v412_v53, %v356_v1  ;;  %v618_v56 = vpop.f32.mrf.mxu3 }
  0xbf   : > { %v754_v57 = vpop.f32.mrf.mxu0  ;;  %v1961_v58 = vadd.f32 %v747_v22, %v638_v54 }
  0xc2   : > { %v489_v39 = vpop.f32.mrf.mxu2 }
  0xc3   : > { %v513_v60 = vadd.f32 %v489_v39, %v408_v29 }
  0xc4   : > { %v415_v62 = vpop.f32.mrf.mxu1 }
  0xc5   : > { %v639_v25 = vadd.f32 %v615_v46, %v513_v60  ;;  %v416_v10 = vadd.f32 %v415_v62, %v1926_v0  ;;  %v620_v7 = vpop.f32.mrf.mxu3 }
  0xc7   : > { %1538 = vmatmul.msk.bf16.gmra.mxu2 %vm324_vm1, %v928_v63  ;;  %v757_v49 = vpop.f32.mrf.mxu0  ;;  %v1966_v3 = vadd.f32 %v749_v32, %v639_v25 }
  0xca   : > { %v492_v1 = vpop.f32.mrf.mxu2 }
  0xcb   : > { %v514_v4 = vadd.f32 %v492_v1, %v411_v44 }
  0xcc   : > { %v417_v5 = vpop.f32.mrf.mxu1 }
  0xcd   : > { %v640_v6 = vadd.f32 %v618_v56, %v514_v4  ;;  %v418_v12 = vadd.f32 %v417_v5, %v1937_v14  ;;  %v623_v13 = vpop.f32.mrf.mxu3  ;;  %v1610_v4 = vld [vmem:[%s1992_s10] sm:$0xff]  }
  0xcf   : > { %v759_v15 = vpop.f32.mrf.mxu0  ;;  %v1969_v16 = vadd.f32 %v752_v61, %v640_v6  ;;  %v1998_v6 = vld [vmem:[%s2053_s2] ss:$0 sm:$0xff] }
  0xd2   : > { %v494_v17 = vpop.f32.mrf.mxu2 }
  0xd3   : > { %v515_v18 = vadd.f32 %v494_v17, %v413_v55 }
  0xd4   : > { %v420_v19 = vpop.f32.mrf.mxu1 }
  0xd5   : > { %v641_v0 = vadd.f32 %v620_v7, %v515_v18  ;;  %v421_v20 = vadd.f32 %v420_v19, %v364_v8  ;;  %v625_v21 = vpop.f32.mrf.mxu3 }
  0xd7   : > { %v762_v41 = vpop.f32.mrf.mxu0  ;;  %v1971_v22 = vadd.f32 %v754_v57, %v641_v0 }
  0xda   : > { %v497_v23 = vpop.f32.mrf.mxu2 }
  0xdb   : > { %v516_v24 = vadd.f32 %v497_v23, %v416_v10 }
  0xdc   : > { %v422_v11 = vpop.f32.mrf.mxu1 }
  0xdd   : > { %v642_v26 = vadd.f32 %v623_v13, %v516_v24  ;;  %v423_v27 = vadd.f32 %v422_v11, %v366_v37  ;;  %v628_v29 = vpop.f32.mrf.mxu3 }
  0xdf   : > { %v764_v14 = vpop.f32.mrf.mxu0  ;;  %v1973_v31 = vadd.f32 %v757_v49, %v642_v26  ;;  %v1612_v26 = vunpack.c.h.bf16 %v1610_v4 }
  0xe2   : > { %v499_v32 = vpop.f32.mrf.mxu2 }
  0xe3   : > { %v517_v33 = vadd.f32 %v499_v32, %v418_v12 }
  0xe4   : > { %v425_v34 = vpop.f32.mrf.mxu1 }
  0xe5   : > { %v643_v35 = vadd.f32 %v625_v21, %v517_v33  ;;  %v426_v36 = vadd.f32 %v425_v34, %v1932_v2  ;;  %v630_v8 = vpop.f32.mrf.mxu3 }
  0xe7   : > { %v1976_v38 = vadd.f32 %v759_v15, %v643_v35  ;;  %v767_v40 = vpop.f32.mrf.mxu0  ;;  %v1611_v15 = vunpack.c.l.bf16 %v1610_v4 }
  0xea   : > { %v502_v9 = vpop.f32.mrf.mxu2 }
  0xeb   : > { %v518_v42 = vadd.f32 %v502_v9, %v421_v20 }
  0xec   : > { %v427_v43 = vpop.f32.mrf.mxu1 }
  0xed   : > { %v644_v44 = vadd.f32 %v628_v29, %v518_v42  ;;  %v428_v37 = vadd.f32 %v427_v43, %v1942_v28  ;;  %v633_v46 = vpop.f32.mrf.mxu3 }
  0xef   : > { %v1979_v45 = vadd.f32 %v762_v41, %v644_v44  ;;  %v769_v61 = vpop.f32.mrf.mxu0 }
  0xf2   : > { %v504_v47 = vpop.f32.mrf.mxu2 }
  0xf3   : > { %v519_v48 = vadd.f32 %v504_v47, %v423_v27 }
  0xf4   : > { %v839_v50 = vpop.f32.mrf.mxu1 }
  0xf5   : > { %v645_v51 = vadd.f32 %v630_v8, %v519_v48  ;;  %v635_v2 = vpop.f32.mrf.mxu3  ;;  %v864_v7 = vadd.f32 %v839_v50, %v1961_v58 }
  0xf7   : > { %v1981_v52 = vadd.f32 %v764_v14, %v645_v51  ;;  %v1191_v54 = vpop.f32.mrf.mxu0 }
  0xfa   : > { %v507_v53 = vpop.f32.mrf.mxu2 }
  0xfb   : > { %v520_v30 = vadd.f32 %v507_v53, %v426_v36  ;;  %v1632_v36 = vld [vmem:[%s1992_s10 + $0x8] sm:$0xff]  }
  0xfc   : > { %v841_v57 = vpop.f32.mrf.mxu1  ;;  %v1615_v43 = vunpack.c.l.bf16 %v1632_v36 }
  0xfd   : > { %v646_v55 = vadd.f32 %v633_v46, %v520_v30  ;;  %v1099_v56 = vpop.f32.mrf.mxu3  ;;  %v865_v58 = vadd.f32 %v841_v57, %v1966_v3 }
  0xff   : > { %v1983_v59 = vadd.f32 %v767_v40, %v646_v55  ;;  %v1193_v63 = vpop.f32.mrf.mxu0 }
 0x102   : > { %v509_v28 = vpop.f32.mrf.mxu2 }
 0x103   : > { %v521_v39 = vadd.f32 %v509_v28, %v428_v37 }
 0x104   : > { %v844_v10 = vpop.f32.mrf.mxu1 }
 0x105   : > { %v647_v60 = vadd.f32 %v635_v2, %v521_v39  ;;  %v1101_v62 = vpop.f32.mrf.mxu3  ;;  %v866_v27 = vadd.f32 %v844_v10, %v1969_v16  ;;  %v1633_v39 = vld [vmem:[%s1992_s10 + $0x10] sm:$0xff]  }
 0x107   : > { %v1986_v25 = vadd.f32 %v769_v61, %v647_v60  ;;  %v1196_v17 = vpop.f32.mrf.mxu0 }
 0x10a   : > { %v965_v49 = vpop.f32.mrf.mxu2 }
 0x10b   : > { %v990_v1 = vadd.f32 %v965_v49, %v864_v7 }
 0x10c   : > { %v846_v19 = vpop.f32.mrf.mxu1 }
 0x10d   : > { %v1124_v5 = vadd.f32 %v1099_v56, %v990_v1  ;;  %v1104_v12 = vpop.f32.mrf.mxu3  ;;  %v867_v44 = vadd.f32 %v846_v19, %v1971_v22  ;;  %v1619_v1 = vunpack.c.l.bf16 %v1633_v39 }
 0x10f   : > { %v1216_v13 = vadd.f32 %v1191_v54, %v1124_v5  ;;  %v1198_v32 = vpop.f32.mrf.mxu0  ;;  %v1616_v54 = vunpack.c.h.bf16 %v1632_v36 }
 0x111   : > { %v1230_v18 = vadd.f32 %v1998_v6, %v1216_v13 }
 0x112   : > { %v967_v0 = vpop.f32.mrf.mxu2 }
 0x113   : > { %v1260_v20 = vadd.f32 %v1611_v15, %v1230_v18  ;;  %v991_v21 = vadd.f32 %v967_v0, %v865_v58 }
 0x114   : > { %v849_v35 = vpop.f32.mrf.mxu1 }
 0x115   : > { %v1270_v41 = vmax.f32 %v1260_v20, 0.0  ;;  %v1125_v23 = vadd.f32 %v1101_v62, %v991_v21  ;;  %v1106_v3 = vpop.f32.mrf.mxu3  ;;  %v868_v55 = vadd.f32 %v849_v35, %v1973_v31  ;;  %v1620_v20 = vunpack.c.h.bf16 %v1633_v39 }
 0x117   : > { %v1280_v24 = vpack.c.bf16 %v1270_v41, %v1270_v41  ;;  %v1217_v11 = vadd.f32 %v1193_v63, %v1125_v23  ;;  %v1201_v48 = vpop.f32.mrf.mxu0 }
 0x119   : > { %1291 = vst.msk [vmem:[%s2005_s14] sm:$0xf] %vm1290_vm7, %v1280_v24  ;;  %v1231_v29 = vadd.f32 %v1998_v6, %v1217_v11 }
 0x11a   : > { %v970_v14 = vpop.f32.mrf.mxu2 }
 0x11b   : > { %v1261_v33 = vadd.f32 %v1612_v26, %v1231_v29  ;;  %v992_v34 = vadd.f32 %v970_v14, %v866_v27 }
 0x11c   : > { %v851_v2 = vpop.f32.mrf.mxu1 }
 0x11d   : > { %v1271_v8 = vmax.f32 %v1261_v33, 0.0  ;;  %v1126_v40 = vadd.f32 %v1104_v12, %v992_v34  ;;  %v1109_v46 = vpop.f32.mrf.mxu3  ;;  %v869_v31 = vadd.f32 %v851_v2, %v1976_v38 }
 0x11f   : > { %v1281_v9 = vpack.c.bf16 %v1271_v8, %v1271_v8  ;;  %v1218_v42 = vadd.f32 %v1196_v17, %v1126_v40  ;;  %v1203_v10 = vpop.f32.mrf.mxu0 }
 0x121   : > { %1292 = vst.msk [vmem:[%s2005_s14 + $0x4] sm:$0xf] %vm1290_vm7, %v1281_v9  ;;  %v1232_v16 = vadd.f32 %v1998_v6, %v1218_v42 }
 0x122   : > { %v972_v37 = vpop.f32.mrf.mxu2 }
 0x123   : > { %v1262_v47 = vadd.f32 %v1615_v43, %v1232_v16  ;;  %v993_v61 = vadd.f32 %v972_v37, %v867_v44 }
 0x124   : > { %v854_v4 = vpop.f32.mrf.mxu1 }
 0x125   : > { %v1272_v50 = vmax.f32 %v1262_v47, 0.0  ;;  %v1127_v51 = vadd.f32 %v1106_v3, %v993_v61  ;;  %v1111_v60 = vpop.f32.mrf.mxu3  ;;  %v870_v41 = vadd.f32 %v854_v4, %v1979_v45  ;;  %v1634_v3 = vld [vmem:[%s1992_s10 + $0x18] sm:$0xff]  }
 0x126   : > { %v1623_v33 = vunpack.c.l.bf16 %v1634_v3 }
 0x127   : > { %v1282_v53 = vpack.c.bf16 %v1272_v50, %v1272_v50  ;;  %v1219_v30 = vadd.f32 %v1198_v32, %v1127_v51  ;;  %v1206_v21 = vpop.f32.mrf.mxu0 }
 0x129   : > { %1293 = vst.msk [vmem:[%s2005_s14 + $0x8] sm:$0xf] %vm1290_vm7, %v1282_v53  ;;  %v1233_v22 = vadd.f32 %v1998_v6, %v1219_v30  ;;  %v1635_v53 = vld [vmem:[%s1992_s10 + $0x20] sm:$0xff]  }
 0x12a   : > { %v975_v56 = vpop.f32.mrf.mxu2 }
 0x12b   : > { %v1263_v57 = vadd.f32 %v1616_v54, %v1233_v22  ;;  %v994_v28 = vadd.f32 %v975_v56, %v868_v55 }
 0x12c   : > { %v856_v23 = vpop.f32.mrf.mxu1 }
 0x12d   : > { %v1273_v62 = vmax.f32 %v1263_v57, 0.0  ;;  %v1128_v63 = vadd.f32 %v1109_v46, %v994_v28  ;;  %v1114_v18 = vpop.f32.mrf.mxu3  ;;  %v871_v35 = vadd.f32 %v856_v23, %v1981_v52  ;;  %v1624_v46 = vunpack.c.h.bf16 %v1634_v3 }
 0x12e   : > { %v1627_v57 = vunpack.c.l.bf16 %v1635_v53 }
 0x12f   : > { %v1283_v7 = vpack.c.bf16 %v1273_v62, %v1273_v62  ;;  %v1220_v49 = vadd.f32 %v1201_v48, %v1128_v63  ;;  %v1208_v36 = vpop.f32.mrf.mxu0 }
 0x131   : > { %1294 = vst.msk [vmem:[%s2005_s14 + $0xc] sm:$0xf] %vm1290_vm7, %v1283_v7  ;;  %v1234_v5 = vadd.f32 %v1998_v6, %v1220_v49 }
 0x132   : > { %v977_v12 = vpop.f32.mrf.mxu2 }
 0x133   : > { %v1264_v13 = vadd.f32 %v1619_v1, %v1234_v5  ;;  %v995_v15 = vadd.f32 %v977_v12, %v869_v31  ;;  %v1628_v31 = vunpack.c.h.bf16 %v1635_v53 }
 0x134   : > { %v859_v42 = vpop.f32.mrf.mxu1 }
 0x135   : > { %v1274_v17 = vmax.f32 %v1264_v13, 0.0  ;;  %v1129_v58 = vadd.f32 %v1111_v60, %v995_v15  ;;  %v1116_v34 = vpop.f32.mrf.mxu3  ;;  %v872_v47 = vadd.f32 %v859_v42, %v1983_v59 }
 0x137   : > { %v1284_v19 = vpack.c.bf16 %v1274_v17, %v1274_v17  ;;  %v1221_v0 = vadd.f32 %v1203_v10, %v1129_v58  ;;  %v1211_v2 = vpop.f32.mrf.mxu0 }
 0x139   : > { %1295 = vst.msk [vmem:[%s2005_s14 + $0x10] sm:$0xf] %vm1290_vm7, %v1284_v19  ;;  %v1235_v38 = vadd.f32 %v1998_v6, %v1221_v0 }
 0x13a   : > { %v980_v24 = vpop.f32.mrf.mxu2 }
 0x13b   : > { %v1265_v11 = vadd.f32 %v1620_v20, %v1235_v38  ;;  %v996_v26 = vadd.f32 %v980_v24, %v870_v41 }
 0x13c   : > { %v861_v55 = vpop.f32.mrf.mxu1 }
 0x13d   : > { %v1275_v27 = vmax.f32 %v1265_v11, 0.0  ;;  %v1130_v29 = vadd.f32 %v1114_v18, %v996_v26  ;;  %v1119_v61 = vpop.f32.mrf.mxu3  ;;  %v873_v59 = vadd.f32 %v861_v55, %v1986_v25 }
 0x13f   : > { %v1285_v14 = vpack.c.bf16 %v1275_v27, %v1275_v27  ;;  %v1222_v32 = vadd.f32 %v1206_v21, %v1130_v29  ;;  %v1213_v49 = vpop.f32.mrf.mxu0 }
 0x141   : > { %1296 = vst.msk [vmem:[%s2005_s14 + $0x14] sm:$0xf] %vm1290_vm7, %v1285_v14  ;;  %v1236_v45 = vadd.f32 %v1998_v6, %v1222_v32 }
 0x142   : > { %v982_v8 = vpop.f32.mrf.mxu2 }
 0x143   : > { %v1266_v40 = vadd.f32 %v1623_v33, %v1236_v45  ;;  %v997_v9 = vadd.f32 %v982_v8, %v871_v35 }
 0x145   : > { %v1276_v43 = vmax.f32 %v1266_v40, 0.0  ;;  %v1131_v44 = vadd.f32 %v1116_v34, %v997_v9  ;;  %v1121_v63 = vpop.f32.mrf.mxu3 }
 0x147   : > { %v1286_v16 = vpack.c.bf16 %v1276_v43, %v1276_v43  ;;  %v1223_v37 = vadd.f32 %v1208_v36, %v1131_v44 }
 0x149   : > { %1297 = vst.msk [vmem:[%s2005_s14 + $0x18] sm:$0xf] %vm1290_vm7, %v1286_v16  ;;  %v1237_v52 = vadd.f32 %v1998_v6, %v1223_v37 }
 0x14a   : > { %v985_v48 = vpop.f32.mrf.mxu2 }
 0x14b   : > { %v1267_v50 = vadd.f32 %v1624_v46, %v1237_v52  ;;  %v998_v51 = vadd.f32 %v985_v48, %v872_v47 }
 0x14d   : > { %v1277_v30 = vmax.f32 %v1267_v50, 0.0  ;;  %v1132_v54 = vadd.f32 %v1119_v61, %v998_v51 }
 0x14f   : > { %v1287_v22 = vpack.c.bf16 %v1277_v30, %v1277_v30  ;;  %v1224_v56 = vadd.f32 %v1211_v2, %v1132_v54 }
 0x151   : > { %1298 = vst.msk [vmem:[%s2005_s14 + $0x1c] sm:$0xf] %vm1290_vm7, %v1287_v22  ;;  %v1238_v28 = vadd.f32 %v1998_v6, %v1224_v56 }
 0x152   : > { %v987_v39 = vpop.f32.mrf.mxu2 }
 0x153   : > { %v1268_v60 = vadd.f32 %v1627_v57, %v1238_v28  ;;  %v999_v62 = vadd.f32 %v987_v39, %v873_v59 }
 0x155   : > { %v1278_v10 = vmax.f32 %v1268_v60, 0.0  ;;  %v1133_v7 = vadd.f32 %v1121_v63, %v999_v62 }
 0x157   : > { %v1288_v1 = vpack.c.bf16 %v1278_v10, %v1278_v10  ;;  %v1225_v4 = vadd.f32 %v1213_v49, %v1133_v7 }
 0x159   : > { %1299 = vst.msk [vmem:[%s2005_s14 + $0x20] sm:$0xf] %vm1290_vm7, %v1288_v1  ;;  %v1239_v5 = vadd.f32 %v1998_v6, %v1225_v4 }
 0x15b   : > { %v1269_v25 = vadd.f32 %v1628_v31, %v1239_v5 }
 0x15d   : > { %v1279_v12 = vmax.f32 %v1269_v25, 0.0 }
 0x15f   : > { %v1289_v13 = vpack.c.bf16 %v1279_v12, %v1279_v12 }
 0x161   : > { %1300 = vst.msk [vmem:[%s2005_s14 + $0x24] sm:$0xf] %vm1290_vm7, %v1289_v13 }
 0x162 PF: > { %s14_s15 = sadd.s32 1, %s1659_s15  }
 0x163   : > { %p11_p4 = scmp.ge.s32.totalorder %s14_s15, 4  }
 0x165   :  { %13 = sbr.rel (!%p11_p4) target bundleno = 1 (0x1), region = 77 }

// kernel: resnet_forward.13
= control target key start
LH: loop header
LB: loop body
LE: loop exit
PB: predicated region body
PF: predicated region fallthrough
CT: control target
= control target key end

     0   :  { %s1034_s12 = smov 0   ;;  %s1182_s0 = inlined_call_operand.vmem [shape: bf16[2,120,32], index: 0, kind: input, shape index: {}]   ;;  %s1183_s1 = inlined_call_operand.vmem [shape: bf16[9,32,64], index: 1, kind: input, shape index: {}]   ;;  %s1184_s2 = inlined_call_operand.vmem [shape: f32[1,64], index: 2, kind: input, shape index: {}]   ;;  %s1185_s3 = inlined_call_operand.vmem [shape: bf16[2,20,64], index: 3, kind: output, shape index: {}]  }
   0x1 LB: > { %s809_s13 = sadd.s32 4294967295, %s1012_s12   ;;  %p813_p0 = scmp.ge.s32.totalorder %s1012_s12, 1  ;;  %s1012_s12 = sphi %s1034_s12, %s13_s12  }
   0x2   : > { %p137_p1 = scmp.lt.s32.totalorder %s1012_s12, 3 }
   0x4   : > { %p138_p2 = pnand %p813_p0, %p137_p1 }
   0x5   : > { %p161_p3 = scmp.lt.s32.totalorder (!%p138_p2), %s809_s13, 1 }
   0x6   : > { %141 = sbr.rel (%p138_p2) target bundleno = 228 (0xe4), region = 32 }
   0xb   : > { %v973_v0 = vld [vmem:[%s1183_s1 + $0x18] sm:$0xff]  ;;  %v975_v1 = vld [vmem:[%s1183_s1 + $0x28] sm:$0xff]  ;;  %v972_v3 = vld [vmem:[%s1183_s1 + $0x10] sm:$0xff]  ;;  %s1187_s13 = smov (!%p161_p3, %s809_s13), 1  ;;  %vm214_vm0 = vcmask 261120   ;;  %vm198_vm1 = vcmask 1044480  }
   0xc   : > { %v978_v2 = vld [vmem:[%s1183_s1 + $0x38] sm:$0xff]  ;;  %993 = vmatpush.bf16.msra.mxu1 %v973_v0  ;;  %227 = vmatpush.bf16.msra.mxu0 %v973_v0  ;;  %v970_v4 = vld [vmem:[%s1183_s1 + $0x8] sm:$0xff]  ;;  %v974_v5 = vld [vmem:[%s1183_s1 + $0x20] sm:$0xff]  ;;  %s995_s26 = smul.u32 60, %s1187_s13  ;;  %vm362_vm2 = vcmask 1045504   ;;  %vm421_vm4 = vcmask 1046528  }
   0xd   : > { %331 = vmatpush.bf16.msra.mxu2 %v975_v1  ;;  %390 = vmatpush.bf16.msra.mxu3 %v978_v2  ;;  %v977_v6 = vld [vmem:[%s1183_s1 + $0x30] sm:$0xff]  ;;  %v981_v7 = vld [vmem:[%s1183_s1 + $0x48] sm:$0xff]  ;;  %v990_v9 = vld [vmem:[%s1183_s1 + $0x78] sm:$0xff]  ;;  %vm292_vm3 = vsmask.f32 7424  ;;  %s996_s4 = smul.u32 12, %s1187_s13 }
   0xe   : > { %v988_v8 = vld [vmem:[%s1183_s1 + $0x68] sm:$0xff]  ;;  %s1078_s10 = scalar_lea.vmem %s1182_s0, %s995_s26  ;;  %v969_v10 = vld [vmem:[%s1183_s1] sm:$0xff]  ;;  %v989_v15 = vld [vmem:[%s1183_s1 + $0x70] sm:$0xff]  ;;  %vm628_vm5 = vsmask.f32 6400  ;;  %vm749_vm7 = vcmask 519168  }
   0xf   : > { %v980_v11 = vld [vmem:[%s1183_s1 + $0x40] sm:$0xff]  ;;  %v1087_v12 = vld [vmem:[%s1078_s10 + $0x14] sm:$0xff]   ;;  %v822_v18 = vld [vmem:[%s1078_s10 + $0xc] sm:$0x8]  ;;  %vm483_vm6 = vsmask.f32 5376  ;;  %s170_s7 = scalar_lea.vmem %s1185_s3, %s996_s4 }
  0x10   : > { %994 = vmatpush.bf16.msra.mxu1 %v972_v3  ;;  %228 = vmatpush.bf16.msra.mxu0 %v972_v3  ;;  %v182_v13 = vld [vmem:[%s1078_s10 + $0x18] sm:$0x1]  ;;  %v987_v14 = vld [vmem:[%s1183_s1 + $0x60] sm:$0xff]  ;;  %v194_v16 = vunpack.c.l.b16 %v1087_v12  ;;  %v971_v19 = vld [vmem:[%s1078_s10 + $0xc] sm:$0xf0]  ;;  %v625_v0 = vunpack.c.h.b16 %v1087_v12  ;;  %vm752_vm8 = vcmask 517120  }
  0x11   : > { %332 = vmatpush.bf16.msra.mxu2 %v974_v5  ;;  %v195_v17 = vunpack.c.l.b16 %v182_v13  ;;  %391 = vmatpush.bf16.msra.mxu3 %v977_v6  ;;  %v1100_v20 = vld [vmem:[%s1078_s10] sm:$0xff]  ;;  %v823_v21 = vor.u32 %v971_v19, %v822_v18  ;;  %v283_v22 = vld [vmem:[%s1078_s10 + $0x8] sm:$0x7]  ;;  %v868_v23 = vld [vmem:[%s1078_s10 + $0x1c] sm:$0xc] }
  0x12   : > { %v976_v24 = vld [vmem:[%s1078_s10 + $0x1c] sm:$0xf0]  ;;  %v290_v26 = vunpack.c.l.b16 %v283_v22  ;;  %v293_v27 = vshrl.u32 %v1100_v20, 16  ;;  %v348_v28 = vld [vmem:[%s1078_s10 + $0x24] sm:$0xf]  ;;  %v295_v30 = vshll.u32 %v1100_v20, 16 }
  0x13   : > { %v197_v25 = vpack.c.b16 %v195_v17, %v194_v16  ;;  %v199_v29 = vrot.slane %v823_v21, 3  ;;  %v359_v31 = vunpack.c.l.b16 %v348_v28  ;;  %v869_v32 = vor.u32 %v976_v24, %v868_v23  ;;  %v985_v33 = vld [vmem:[%s1183_s1 + $0x58] sm:$0xff]  ;;  %v992_v36 = vld [vmem:[%s1183_s1 + $0x88] sm:$0xff]  ;;  %v407_v40 = vld [vmem:[%s1078_s10 + $0x34] sm:$0x7] }
  0x14   : > { %271 = vmatpush.bf16.msrb.mxu1 %v970_v4  ;;  %449 = vmatpush.bf16.msrb.mxu0 %v981_v7  ;;  %v291_v35 = vpack.c.b16 %v290_v26, %v290_v26  ;;  %v297_v37 = vrot.slane %v295_v30, 1  ;;  %v984_v45 = vld [vmem:[%s1183_s1 + $0x50] sm:$0xff]  ;;  %v418_v47 = vunpack.c.l.b16 %v407_v40  ;;  %v886_v49 = vld [vmem:[%s1078_s10 + $0x2c] sm:$0xe]  ;;  %v991_v52 = vld [vmem:[%s1183_s1 + $0x80] sm:$0xff]  ;;  %v627_v7 = vpack.c.b16 %v625_v0, %v625_v0 }
  0x15   : > { %600 = vmatpush.bf16.msrb.mxu2 %v988_v8  ;;  %670 = vmatpush.bf16.msrb.mxu3 %v990_v9  ;;  %v200_v34 = vrot.slane %v197_v25, 3  ;;  %v361_v38 = vpack.c.b16 %v359_v31, %v359_v31  ;;  %v363_v39 = vrot.slane %v869_v32, 2  ;;  %v979_v50 = vld [vmem:[%s1078_s10 + $0x2c] sm:$0xf0]  ;;  %v540_v58 = vld [vmem:[%s1078_s10] sm:$0xc] }
  0x16   : > { %v300_v42 = vshll.u32 %v291_v35, 16  ;;  %v298_v43 = vor.u32 %v297_v37, %v293_v27  ;;  %v887_v53 = vor.u32 %v979_v50, %v886_v49  ;;  %v420_v54 = vpack.c.b16 %v418_v47, %v418_v47  ;;  %v615_v55 = vld [vmem:[%s1078_s10 + $0x10] sm:$0xe]  ;;  %v1133_v59 = vld [vmem:[%s1078_s10 + $0x4] sm:$0xf] }
  0x17   : > { %833 = vmatmul.msk.bf16.vlgmr.msra.gmra.mxu1 %vm214_vm0, %v200_v34  ;;  %v201_v41 = vsel %vm198_vm1, %v199_v29, %v200_v34  ;;  %v364_v44 = vrot.slane %v361_v38, 2  ;;  %v624_v60 = vunpack.c.l.b16 %v615_v55  ;;  %v304_v61 = vshrl.u32 %v291_v35, 16  ;;  %v926_v62 = vld [vmem:[%s1078_s10 + $0x8] sm:$0xf]  ;;  %v986_v63 = vld [vmem:[%s1078_s10 + $0x8] sm:$0x10] }
  0x18   : > { %272 = vmatpush.bf16.msrb.mxu1 %v969_v10  ;;  %450 = vmatpush.bf16.msrb.mxu0 %v980_v11  ;;  %v302_v46 = vrot.slane %v300_v42, 1  ;;  %v422_v56 = vrot.slane %v887_v53, 1  ;;  %v423_v57 = vrot.slane %v420_v54, 1  ;;  %v553_v2 = vunpack.c.l.b16 %v540_v58  ;;  %v174_v11 = vld [vmem:[%s1078_s10 + $0x8] sm:$0x3] }
  0x19   : > { %601 = vmatpush.bf16.msrb.mxu2 %v987_v14  ;;  %671 = vmatpush.bf16.msrb.mxu3 %v989_v15  ;;  %v365_v48 = vsel %vm362_vm2, %v363_v39, %v364_v44  ;;  %v554_v3 = vunpack.c.l.b16 %v1133_v59  ;;  %v626_v4 = vpack.c.b16 %v194_v16, %v624_v60  ;;  %v1143_v5 = vor.u32 %v986_v63, %v926_v62  ;;  %v904_v21 = vld [vmem:[%s1078_s10 + $0x1c] sm:$0xc]  ;;  %v982_v26 = vld [vmem:[%s1078_s10 + $0x1c] sm:$0xf0]  ;;  %v908_v29 = vld [vmem:[%s1078_s10 + $0x24] sm:$0xf] }
  0x1a   : > { %832 = vmatmul.msk.bf16.vlgmr.msra.gmra.mxu0 %vm214_vm0, %v201_v41  ;;  %v303_v51 = vsel %vm292_vm3, %v298_v43, %v302_v46  ;;  %878 = vmatmul.msk.bf16.vlgmr.msra.gmra.mxu3 %vm214_vm0, %v365_v48  ;;  %v424_v1 = vsel %vm421_vm4, %v422_v56, %v423_v57  ;;  %v306_v6 = vor.u32 %v304_v61, %v302_v46  ;;  %v638_v14 = vshrl.u32 %v627_v7, 16  ;;  %v983_v30 = vld [vmem:[%s1078_s10 + $0x24] sm:$0x10]  ;;  %v685_v38 = vld [vmem:[%s1078_s10] sm:$0x8] }
  0x1b   : > { %860 = vmatmul.msk.bf16.vlgmr.msra.gmra.mxu2 %vm214_vm0, %v303_v51  ;;  %v557_v8 = vpack.c.b16 %v554_v3, %v553_v2  ;;  %v568_v9 = vshrl.u32 %v1143_v5, 16  ;;  %v630_v10 = vshrl.u32 %v626_v4, 16  ;;  %v571_v12 = vshll.u32 %v1143_v5, 16 }
  0x1c   : > { %525 = vmatpush.bf16.msra.mxu1 %v985_v33  ;;  %721 = vmatpush.bf16.msra.mxu0 %v992_v36  ;;  %v633_v13 = vshll.u32 %v626_v4, 16  ;;  %v641_v15 = vshll.u32 %v627_v7, 16  ;;  %v244_v18 = vunpack.c.l.b16 %v174_v11  ;;  %v640_v24 = vrot.slane %v638_v14, 1 }
  0x1d   : > { %v560_v16 = vshrl.u32 %v557_v8, 16  ;;  %v563_v17 = vshll.u32 %v557_v8, 16  ;;  %v570_v19 = vrot.slane %v568_v9, 2  ;;  %v573_v22 = vrot.slane %v571_v12, 3 }
  0x1e   : > { %v635_v23 = vrot.slane %v633_v13, 2  ;;  %v643_v25 = vrot.slane %v641_v15, 2  ;;  %v246_v31 = vpack.c.b16 %v244_v18, %v244_v18  ;;  %v905_v32 = vor.u32 %v982_v26, %v904_v21 }
  0x1f   : > { %v562_v27 = vrot.slane %v560_v16, 2  ;;  %v565_v28 = vrot.slane %v563_v17, 3  ;;  %v909_v35 = vor.u32 %v983_v30, %v908_v29  ;;  %v574_v37 = vor.u32 %v573_v22, %v570_v19  ;;  %v1005_v30 = vld [vmem:[%s1184_s2] ss:$0 sm:$0xff] }
  0x20   : > { %526 = vmatpush.bf16.msra.mxu1 %v984_v45  ;;  %722 = vmatpush.bf16.msra.mxu0 %v991_v52  ;;  %v644_v34 = vor.u32 %v643_v25, %v640_v24  ;;  %v485_v39 = vshrl.u32 %v905_v32, 16  ;;  %v488_v41 = vshll.u32 %v905_v32, 16  ;;  %v692_v45 = vunpack.c.l.b16 %v685_v38 }
  0x21   : > { %v566_v36 = vor.u32 %v565_v28, %v562_v27  ;;  %v493_v42 = vshrl.u32 %v909_v35, 16  ;;  %v496_v43 = vshll.u32 %v909_v35, 16  ;;  %v695_v54 = vrot.slane %v1143_v5, 3 }
  0x22   : > { %v487_v46 = vrot.slane %v485_v39, 2  ;;  %v490_v47 = vrot.slane %v488_v41, 3  ;;  %v693_v50 = vpack.c.b16 %v554_v3, %v692_v45 }
  0x23   : > { %v495_v48 = vrot.slane %v493_v42, 2  ;;  %v498_v49 = vrot.slane %v496_v43, 3 }
  0x24   : > { %v491_v51 = vor.u32 %v490_v47, %v487_v46  ;;  %v694_v53 = vrot.slane %v693_v50, 3 }
  0x25   : > { %v499_v52 = vor.u32 %v498_v49, %v495_v48 }
  0x26   : > { %v696_v56 = vsel %vm198_vm1, %v694_v53, %v695_v54 }
  0x27   : > { %846 = vmatmul.msk.bf16.vlgmr.msrb.gmra.mxu1 %vm214_vm0, %v1100_v20  ;;  %v632_v20 = vrot.slane %v630_v10, 1  ;;  %v500_v55 = vsel %vm483_vm6, %v491_v51, %v499_v52 }
  0x29   : > { %v636_v33 = vor.u32 %v635_v23, %v632_v20 }
  0x2a   : > { %896 = vmatmul.msk.bf16.vlgmr.msrb.gmra.mxu0 %vm214_vm0, %v424_v1  ;;  %879 = vmatmul.msk.bf16.gmra.mxu3 %vm214_vm0, %v364_v44  ;;  %v575_v44 = vsel %vm483_vm6, %v566_v36, %v574_v37 }
  0x2b   : > { %861 = vmatmul.msk.bf16.gmra.mxu2 %vm214_vm0, %v306_v6  ;;  %v645_v40 = vsel %vm628_vm5, %v636_v33, %v644_v34 }
  0x37   : > { %847 = vmatmul.msk.bf16.gmra.mxu1 %vm214_vm0, %v246_v31 }
  0x3a   : > { %897 = vmatmul.msk.bf16.gmra.mxu0 %vm214_vm0, %v423_v57  ;;  %950 = vmatmul.msk.bf16.vlgmr.msrb.gmra.mxu3 %vm214_vm0, %v645_v40 }
  0x3b   : > { %936 = vmatmul.msk.bf16.vlgmr.msrb.gmra.mxu2 %vm214_vm0, %v575_v44 }
  0x47   : > { %918 = vmatmul.msk.bf16.vlgmr.msra.gmra.mxu1 %vm214_vm0, %v500_v55 }
  0x4a   : > { %964 = vmatmul.msk.bf16.vlgmr.msra.gmra.mxu0 %vm214_vm0, %v696_v56  ;;  %951 = vmatmul.msk.bf16.gmra.mxu3 %vm214_vm0, %v644_v34 }
  0x4b   : > { %937 = vmatmul.msk.bf16.gmra.mxu2 %vm214_vm0, %v574_v37 }
  0x57   : > { %919 = vmatmul.msk.bf16.gmra.mxu1 %vm214_vm0, %v499_v52 }
  0x5a   : > { %965 = vmatmul.msk.bf16.gmra.mxu0 %vm214_vm0, %v695_v54 }
  0x94   : > { %v235_v57 = vpop.f32.mrf.mxu1 }
  0x97   : > { %v230_v58 = vpop.f32.mrf.mxu0 }
  0x9c   : > { %v237_v59 = vpop.f32.mrf.mxu1 }
  0x9d   : > { %v393_v61 = vpop.f32.mrf.mxu3 }
  0x9e   : > { %v334_v62 = vpop.f32.mrf.mxu2 }
  0x9f   : > { %v232_v60 = vpop.f32.mrf.mxu0 }
  0xa4   : > { %v274_v63 = vpop.f32.mrf.mxu1 }
  0xa5   : > { %v395_v1 = vpop.f32.mrf.mxu3  ;;  %v275_v10 = vadd.f32 %v274_v63, %v230_v58 }
  0xa6   : > { %v336_v2 = vpop.f32.mrf.mxu2 }
  0xa7   : > { %v452_v0 = vpop.f32.mrf.mxu0  ;;  %v343_v12 = vadd.f32 %v334_v62, %v275_v10 }
  0xa9   : > { %v402_v16 = vadd.f32 %v393_v61, %v343_v12 }
  0xab   : > { %v461_v19 = vadd.f32 %v452_v0, %v402_v16 }
  0xac   : > { %v276_v3 = vpop.f32.mrf.mxu1 }
  0xad   : > { %v398_v5 = vpop.f32.mrf.mxu3  ;;  %v277_v17 = vadd.f32 %v276_v3, %v232_v60 }
  0xae   : > { %v339_v6 = vpop.f32.mrf.mxu2 }
  0xaf   : > { %v454_v4 = vpop.f32.mrf.mxu0  ;;  %v344_v20 = vadd.f32 %v336_v2, %v277_v17 }
  0xb1   : > { %v403_v25 = vadd.f32 %v395_v1, %v344_v20 }
  0xb3   : > { %v462_v31 = vadd.f32 %v454_v4, %v403_v25 }
  0xb4   : > { %v279_v7 = vpop.f32.mrf.mxu1 }
  0xb5   : > { %v400_v9 = vpop.f32.mrf.mxu3  ;;  %v280_v26 = vadd.f32 %v279_v7, %v235_v57 }
  0xb6   : > { %v341_v11 = vpop.f32.mrf.mxu2 }
  0xb7   : > { %v457_v8 = vpop.f32.mrf.mxu0  ;;  %v345_v32 = vadd.f32 %v339_v6, %v280_v26 }
  0xb9   : > { %v404_v39 = vadd.f32 %v398_v5, %v345_v32 }
  0xbb   : > { %v463_v45 = vadd.f32 %v457_v8, %v404_v39 }
  0xbc   : > { %v281_v13 = vpop.f32.mrf.mxu1 }
  0xbd   : > { %v673_v15 = vpop.f32.mrf.mxu3 }
  0xbe   : > { %v603_v18 = vpop.f32.mrf.mxu2 }
  0xbf   : > { %v459_v14 = vpop.f32.mrf.mxu0 }
  0xc4   : > { %v528_v21 = vpop.f32.mrf.mxu1 }
  0xc5   : > { %v537_v22 = vadd.f32 %v528_v21, %v461_v19  ;;  %v675_v24 = vpop.f32.mrf.mxu3 }
  0xc6   : > { %v605_v28 = vpop.f32.mrf.mxu2 }
  0xc7   : > { %v724_v23 = vpop.f32.mrf.mxu0  ;;  %v612_v27 = vadd.f32 %v603_v18, %v537_v22 }
  0xc9   : > { %v682_v29 = vadd.f32 %v673_v15, %v612_v27 }
  0xcb   : > { %v733_v33 = vadd.f32 %v724_v23, %v682_v29 }
  0xcc   : > { %v530_v34 = vpop.f32.mrf.mxu1 }
  0xcd   : > { %v740_v35 = vadd.f32 %v1005_v30, %v733_v33  ;;  %v538_v36 = vadd.f32 %v530_v34, %v462_v31  ;;  %v678_v38 = vpop.f32.mrf.mxu3 }
  0xce   : > { %v608_v42 = vpop.f32.mrf.mxu2 }
  0xcf   : > { %v726_v37 = vpop.f32.mrf.mxu0  ;;  %v743_v40 = vmax.f32 %v740_v35, 0.0  ;;  %v613_v41 = vadd.f32 %v605_v28, %v538_v36 }
  0xd1   : > { %v746_v43 = vpack.c.bf16 %v743_v40, %v743_v40  ;;  %v683_v44 = vadd.f32 %v675_v24, %v613_v41 }
  0xd3   : > { %750 = vst.msk [vmem:[%s170_s7] sm:$0xf] %vm749_vm7, %v746_v43  ;;  %v734_v46 = vadd.f32 %v726_v37, %v683_v44 }
  0xd4   : > { %v533_v47 = vpop.f32.mrf.mxu1 }
  0xd5   : > { %v741_v48 = vadd.f32 %v1005_v30, %v734_v46  ;;  %v539_v49 = vadd.f32 %v533_v47, %v463_v45  ;;  %v680_v51 = vpop.f32.mrf.mxu3 }
  0xd6   : > { %v610_v54 = vpop.f32.mrf.mxu2 }
  0xd7   : > { %v729_v50 = vpop.f32.mrf.mxu0  ;;  %v744_v52 = vmax.f32 %v741_v48, 0.0  ;;  %v614_v53 = vadd.f32 %v608_v42, %v539_v49 }
  0xd9   : > { %v747_v55 = vpack.c.bf16 %v744_v52, %v744_v52  ;;  %v684_v56 = vadd.f32 %v678_v38, %v614_v53 }
  0xdb   : > { %751 = vst.msk [vmem:[%s170_s7 + $0x4] sm:$0xf] %vm749_vm7, %v747_v55  ;;  %v735_v57 = vadd.f32 %v729_v50, %v684_v56 }
  0xdc   : > { %v535_v58 = vpop.f32.mrf.mxu1 }
  0xdd   : > { %v742_v59 = vadd.f32 %v1005_v30, %v735_v57 }
  0xdf   : > { %v731_v60 = vpop.f32.mrf.mxu0  ;;  %v745_v61 = vmax.f32 %v742_v59, 0.0 }
  0xe1   : > { %v748_v62 = vpack.c.bf16 %v745_v61, %v745_v61 }
  0xe3   : > { %753 = vst.msk [vmem:[%s170_s7 + $0x8] sm:$0x3] %vm752_vm8, %v748_v62 }
  0xe4 PF: > { %s13_s12 = sadd.s32 1, %s1012_s12  }
  0xe5   : > { %p10_p4 = scmp.ge.s32.totalorder %s13_s12, 4  }
  0xe7   :  { %12 = sbr.rel (!%p10_p4) target bundleno = 1 (0x1), region = 70 }

// kernel: resnet_forward.14
= control target key start
LH: loop header
LB: loop body
LE: loop exit
PB: predicated region body
PF: predicated region fallthrough
CT: control target
= control target key end

     0   :  { %s1300_s15 = smov 0   ;;  %s1527_s0 = inlined_call_operand.vmem [shape: bf16[2,42,64], index: 0, kind: input, shape index: {}]   ;;  %s1528_s1 = inlined_call_operand.vmem [shape: bf16[9,64,64], index: 1, kind: input, shape index: {}]   ;;  %s1529_s2 = inlined_call_operand.vmem [shape: f32[1,64], index: 2, kind: input, shape index: {}]   ;;  %s1530_s3 = inlined_call_operand.vmem [shape: bf16[2,24,64], index: 3, kind: input, shape index: {}]   ;;  %s1531_s4 = inlined_call_operand.vmem [shape: bf16[2,24,64], index: 4, kind: output, shape index: {}]  }
   0x1 LB: > { %s967_s16 = sadd.s32 4294967295, %s1273_s15   ;;  %p971_p0 = scmp.ge.s32.totalorder %s1273_s15, 1  ;;  %s1273_s15 = sphi %s1300_s15, %s14_s15  }
   0x2   : > { %p172_p1 = scmp.lt.s32.totalorder %s1273_s15, 3 }
   0x4   : > { %p173_p2 = pnand %p971_p0, %p172_p1 }
   0x5   : > { %p203_p3 = scmp.lt.s32.totalorder (!%p173_p2), %s967_s16, 1 }
   0x6   : > { %176 = sbr.rel (%p173_p2) target bundleno = 235 (0xeb), region = 36 }
   0xb   : > { %v1210_v0 = vld [vmem:[%s1528_s1 + $0x38] sm:$0xff]  ;;  %v1209_v3 = vld [vmem:[%s1528_s1 + $0x30] sm:$0xff]  ;;  %s1533_s16 = smov (!%p203_p3, %s967_s16), 1  ;;  %v1208_v6 = vld [vmem:[%s1528_s1 + $0x28] sm:$0xff]  ;;  %vm376_vm0 = vcmask 1046528   ;;  %vm290_vm2 = vcmask 523264  }
   0xc   : > { %v1214_v1 = vld [vmem:[%s1528_s1 + $0x58] sm:$0xff]  ;;  %301 = vmatpush.bf16.msra.mxu0 %v1210_v0  ;;  %1252 = vmatpush.bf16.msra.mxu1 %v1210_v0  ;;  %v1213_v4 = vld [vmem:[%s1528_s1 + $0x50] sm:$0xff]  ;;  %s1256_s29 = smul.u32 24, %s1533_s16  ;;  %v1212_v7 = vld [vmem:[%s1528_s1 + $0x48] sm:$0xff]  ;;  %vm250_vm1 = vsmask.f32 7424 }
   0xd   : > { %v1218_v2 = vld [vmem:[%s1528_s1 + $0x78] sm:$0xff]  ;;  %414 = vmatpush.bf16.msra.mxu2 %v1214_v1  ;;  %v1217_v5 = vld [vmem:[%s1528_s1 + $0x70] sm:$0xff]  ;;  %v1216_v8 = vld [vmem:[%s1528_s1 + $0x68] sm:$0xff]  ;;  %vm448_vm3 = vcmask 1044480   ;;  %vm516_vm4 = vsmask.f32 4352 }
   0xe   : > { %486 = vmatpush.bf16.msra.mxu3 %v1218_v2  ;;  %s1341_s12 = scalar_lea.vmem %s1527_s0, %s1256_s29  ;;  %v1207_v22 = vld [vmem:[%s1528_s1 + $0x20] sm:$0xff]  ;;  %v1206_v27 = vld [vmem:[%s1528_s1 + $0x18] sm:$0xff]  ;;  %v1205_v42 = vld [vmem:[%s1528_s1 + $0x10] sm:$0xff]  ;;  %vm670_vm5 = vcmask 1045504   ;;  %vm738_vm6 = vsmask.f32 5376 }
   0xf   : > { %v1344_v9 = vld [vmem:[%s1341_s12] sm:$0xff]   ;;  %v1347_v10 = vld [vmem:[%s1341_s12 + $0x8] sm:$0xff]   ;;  %v1222_v34 = vld [vmem:[%s1528_s1 + $0x98] sm:$0xff]  ;;  %vm896_vm7 = vcmask 519168  }
  0x10   : > { %302 = vmatpush.bf16.msra.mxu0 %v1209_v3  ;;  %1253 = vmatpush.bf16.msra.mxu1 %v1209_v3  ;;  %v230_v11 = vld [vmem:[%s1341_s12 + $0xc] sm:$0x1]  ;;  %v1351_v12 = vunpack.c.l.b16 %v1347_v10  ;;  %v252_v14 = vshrl.u32 %v1344_v9, 16  ;;  %v254_v15 = vshll.u32 %v1344_v9, 16  ;;  %v363_v16 = vld [vmem:[%s1341_s12] sm:$0xe]  ;;  %v1358_v18 = vunpack.c.h.b16 %v1344_v9 }
  0x11   : > { %415 = vmatpush.bf16.msra.mxu2 %v1213_v4  ;;  %v247_v13 = vunpack.c.l.b16 %v230_v11  ;;  %v431_v17 = vld [vmem:[%s1341_s12] sm:$0x8]  ;;  %v374_v19 = vunpack.c.l.b16 %v363_v16  ;;  %v432_v20 = vld [vmem:[%s1341_s12 + $0xc] sm:$0x7]  ;;  %v514_v26 = vunpack.c.h.b16 %v1347_v10  ;;  %v1230_v40 = vld [vmem:[%s1528_s1 + $0xd8] sm:$0xff]  ;;  %v526_v53 = vshrl.u32 %v1347_v10, 16 }
  0x12   : > { %487 = vmatpush.bf16.msra.mxu3 %v1217_v5  ;;  %v444_v21 = vunpack.c.l.b16 %v431_v17  ;;  %v256_v24 = vrot.slane %v254_v15, 1  ;;  %v445_v25 = vunpack.c.l.b16 %v432_v20  ;;  %v1211_v28 = vld [vmem:[%s1528_s1 + $0x40] sm:$0xff]  ;;  %v1221_v47 = vld [vmem:[%s1528_s1 + $0x90] sm:$0xff]  ;;  %v1234_v48 = vld [vmem:[%s1528_s1 + $0xf8] sm:$0xff]  ;;  %v529_v54 = vshll.u32 %v1347_v10, 16 }
  0x13   : > { %v1365_v23 = vpack.c.b16 %v247_v13, %v1351_v12  ;;  %v375_v29 = vpack.c.b16 %v1358_v18, %v374_v19  ;;  %v1215_v35 = vld [vmem:[%s1528_s1 + $0x60] sm:$0xff]  ;;  %v1229_v50 = vld [vmem:[%s1528_s1 + $0xd0] sm:$0xff]  ;;  %v1204_v55 = vld [vmem:[%s1528_s1 + $0x8] sm:$0xff]  ;;  %v528_v61 = vrot.slane %v526_v53, 3  ;;  %v595_v53 = vpack.c.b16 %v514_v26, %v514_v26 }
  0x14   : > { %303 = vmatpush.bf16.msra.mxu0 %v1208_v6  ;;  %1254 = vmatpush.bf16.msra.mxu1 %v1208_v6  ;;  %v446_v30 = vpack.c.b16 %v1358_v18, %v444_v21  ;;  %v257_v31 = vor.u32 %v256_v24, %v252_v14  ;;  %v1386_v38 = vpack.c.b16 %v445_v25, %v1351_v12  ;;  %v1220_v56 = vld [vmem:[%s1528_s1 + $0x88] sm:$0xff]  ;;  %v1233_v57 = vld [vmem:[%s1528_s1 + $0xf0] sm:$0xff]  ;;  %v531_v62 = vrot.slane %v529_v54, 4  ;;  %v1203_v63 = vld [vmem:[%s1528_s1] sm:$0xff] }
  0x15   : > { %416 = vmatpush.bf16.msra.mxu2 %v1212_v7  ;;  %v259_v32 = vshll.u32 %v1365_v23, 16  ;;  %v263_v33 = vshrl.u32 %v1365_v23, 16  ;;  %v378_v36 = vrot.slane %v1365_v23, 1  ;;  %v377_v37 = vrot.slane %v375_v29, 1  ;;  %v1228_v58 = vld [vmem:[%s1528_s1 + $0xc8] sm:$0xff]  ;;  %v1219_v0 = vld [vmem:[%s1528_s1 + $0x80] sm:$0xff] }
  0x16   : > { %488 = vmatpush.bf16.msra.mxu3 %v1216_v8  ;;  %v449_v39 = vrot.slane %v446_v30, 3  ;;  %v450_v44 = vrot.slane %v1386_v38, 3  ;;  %v518_v51 = vshrl.u32 %v446_v30, 16  ;;  %v521_v52 = vshll.u32 %v446_v30, 16  ;;  %v1226_v1 = vld [vmem:[%s1528_s1 + $0xb8] sm:$0xff]  ;;  %v1232_v3 = vld [vmem:[%s1528_s1 + $0xe8] sm:$0xff] }
  0x17   : > { %v261_v41 = vrot.slane %v259_v32, 1  ;;  %v379_v43 = vsel %vm376_vm0, %v377_v37, %v378_v36  ;;  %v1238_v2 = vld [vmem:[%s1528_s1 + $0x118] sm:$0xff]  ;;  %v647_v4 = vld [vmem:[%s1341_s12 + $0x4] sm:$0xc]  ;;  %v1445_v5 = vld [vmem:[%s1341_s12 + $0x8] sm:$0xff]   ;;  %v532_v8 = vor.u32 %v531_v62, %v528_v61 }
  0x18   : > { %304 = vmatpush.bf16.msra.mxu0 %v1207_v22  ;;  %1255 = vmatpush.bf16.msra.mxu1 %v1207_v22  ;;  %v451_v49 = vsel %vm448_vm3, %v449_v39, %v450_v44  ;;  %v520_v59 = vrot.slane %v518_v51, 3  ;;  %v523_v60 = vrot.slane %v521_v52, 4  ;;  %v725_v6 = vld [vmem:[%s1341_s12 + $0x10] sm:$0x7]  ;;  %v1227_v11 = vld [vmem:[%s1528_s1 + $0xc0] sm:$0xff]  ;;  %v1245_v14 = vunpack.c.l.b16 %v1445_v5  ;;  %v1224_v22 = vld [vmem:[%s1528_s1 + $0xa8] sm:$0xff] }
  0x19   : > { %417 = vmatpush.bf16.msra.mxu2 %v1211_v28  ;;  %v262_v45 = vsel %vm250_vm1, %v257_v31, %v261_v41  ;;  %v265_v46 = vor.u32 %v263_v33, %v261_v41  ;;  %v1225_v13 = vld [vmem:[%s1528_s1 + $0xb0] sm:$0xff]  ;;  %v1246_v15 = vunpack.c.h.b16 %v1445_v5  ;;  %v664_v16 = vunpack.c.l.b16 %v647_v4  ;;  %v1231_v19 = vld [vmem:[%s1528_s1 + $0xe0] sm:$0xff]  ;;  %v1236_v29 = vld [vmem:[%s1528_s1 + $0x108] sm:$0xff] }
  0x1a   : > { %489 = vmatpush.bf16.msra.mxu3 %v1215_v35  ;;  %v524_v7 = vor.u32 %v523_v60, %v520_v59  ;;  %v736_v17 = vunpack.c.l.b16 %v725_v6  ;;  %v1237_v21 = vld [vmem:[%s1528_s1 + $0x110] sm:$0xff]  ;;  %v594_v51 = vpack.c.b16 %v1351_v12, %v1358_v18 }
  0x1b   : > { %999 = vmatmul.msk.bf16.vlgmr.msra.gmra.mxu0 %vm290_vm2, %v262_v45  ;;  %1000 = vmatmul.msk.bf16.vlgmr.msra.gmra.mxu1 %vm290_vm2, %v265_v46  ;;  %v650_v24 = vld [vmem:[%s1341_s12 + $0x10] sm:$0x3]  ;;  %v668_v25 = vpack.c.b16 %v1245_v14, %v664_v16  ;;  %v807_v45 = vld [vmem:[%s1341_s12 + $0x4] sm:$0x8]  ;;  %s1257_s12 = smul.u32 12, %s1533_s16 }
  0x1c   : > { %349 = vmatpush.bf16.msrb.mxu1 %v1206_v27  ;;  %568 = vmatpush.bf16.msrb.mxu0 %v1222_v34  ;;  %v533_v20 = vsel %vm516_vm4, %v524_v7, %v532_v8  ;;  %v737_v27 = vpack.c.b16 %v736_v17, %v1246_v15  ;;  %v667_v28 = vunpack.c.l.b16 %v650_v24  ;;  %v1235_v34 = vld [vmem:[%s1528_s1 + $0x100] sm:$0xff] }
  0x1d   : > { %708 = vmatpush.bf16.msrb.mxu2 %v1230_v40  ;;  %1069 = vmatmul.msk.bf16.vlgmr.msra.gmra.mxu3 %vm290_vm2, %v451_v49  ;;  %v740_v30 = vshrl.u32 %v668_v25, 16  ;;  %v743_v31 = vshll.u32 %v668_v25, 16  ;;  %v671_v39 = vrot.slane %v668_v25, 2  ;;  %s1509_s25 = scalar_lea.vmem %s1530_s3, %s1257_s12  ;;  %s217_s30 = scalar_lea.vmem %s1531_s4, %s1257_s12 }
  0x1e   : > { %1043 = vmatmul.msk.bf16.vlgmr.msra.gmra.mxu2 %vm290_vm2, %v379_v43  ;;  %790 = vmatpush.bf16.msrb.mxu3 %v1234_v48  ;;  %v748_v32 = vshrl.u32 %v737_v27, 16  ;;  %v751_v33 = vshll.u32 %v737_v27, 16  ;;  %v669_v23 = vpack.c.b16 %v667_v28, %v1246_v15  ;;  %v315_v43 = vpack.c.b16 %v1351_v12, %v1351_v12  ;;  %v1248_v28 = vld [vmem:[%s1509_s25] sm:$0xff]  }
  0x1f   : > { %v742_v35 = vrot.slane %v740_v30, 2  ;;  %v1266_v30 = vld [vmem:[%s1529_s2] ss:$0 sm:$0xff] }
  0x20   : > { %350 = vmatpush.bf16.msrb.mxu1 %v1205_v42  ;;  %569 = vmatpush.bf16.msrb.mxu0 %v1221_v47  ;;  %v750_v37 = vrot.slane %v748_v32, 2  ;;  %v753_v38 = vrot.slane %v751_v33, 3  ;;  %v672_v40 = vrot.slane %v669_v23, 2  ;;  %v818_v47 = vunpack.c.l.b16 %v807_v45 }
  0x21   : > { %709 = vmatpush.bf16.msrb.mxu2 %v1229_v50  ;;  %v821_v50 = vrot.slane %v737_v27, 3  ;;  %v1249_v23 = vunpack.c.l.bf16 %v1248_v28 }
  0x22   : > { %791 = vmatpush.bf16.msrb.mxu3 %v1233_v57  ;;  %v754_v42 = vor.u32 %v753_v38, %v750_v37  ;;  %v819_v48 = vpack.c.b16 %v1245_v14, %v818_v47 }
  0x24   : > { %351 = vmatpush.bf16.msrb.mxu1 %v1204_v55  ;;  %570 = vmatpush.bf16.msrb.mxu0 %v1220_v56  ;;  %v820_v49 = vrot.slane %v819_v48, 3  ;;  %v1250_v48 = vunpack.c.h.bf16 %v1248_v28 }
  0x25   : > { %710 = vmatpush.bf16.msrb.mxu2 %v1228_v58 }
  0x26   : > { %792 = vmatpush.bf16.msrb.mxu3 %v1232_v3  ;;  %v822_v52 = vsel %vm448_vm3, %v820_v49, %v821_v50 }
  0x28   : > { %352 = vmatpush.bf16.msrb.mxu1 %v1203_v63  ;;  %571 = vmatpush.bf16.msrb.mxu0 %v1219_v0 }
  0x29   : > { %711 = vmatpush.bf16.msrb.mxu2 %v1227_v11 }
  0x2a   : > { %793 = vmatpush.bf16.msrb.mxu3 %v1231_v19 }
  0x2b   : > { %1095 = vmatmul.msk.bf16.vlgmr.msrb.gmra.mxu0 %vm290_vm2, %v533_v20  ;;  %1017 = vmatmul.msk.bf16.vlgmr.msrb.gmra.mxu1 %vm290_vm2, %v1344_v9  ;;  %v1223_v9 = vld [vmem:[%s1528_s1 + $0xa0] sm:$0xff] }
  0x2c   : > { %630 = vmatpush.bf16.msra.mxu1 %v1226_v1  ;;  %857 = vmatpush.bf16.msra.mxu0 %v1238_v2 }
  0x2d   : > { %1070 = vmatmul.msk.bf16.gmra.mxu3 %vm290_vm2, %v450_v44  ;;  %v673_v44 = vsel %vm670_vm5, %v671_v39, %v672_v40 }
  0x2e   : > { %1044 = vmatmul.msk.bf16.gmra.mxu2 %vm290_vm2, %v378_v36  ;;  %v745_v36 = vrot.slane %v743_v31, 3 }
  0x30   : > { %631 = vmatpush.bf16.msra.mxu1 %v1225_v13  ;;  %858 = vmatpush.bf16.msra.mxu0 %v1237_v21  ;;  %v746_v41 = vor.u32 %v745_v36, %v742_v35 }
  0x32   : > { %v755_v46 = vsel %vm738_vm6, %v746_v41, %v754_v42 }
  0x34   : > { %632 = vmatpush.bf16.msra.mxu1 %v1224_v22  ;;  %859 = vmatpush.bf16.msra.mxu0 %v1236_v29 }
  0x38   : > { %633 = vmatpush.bf16.msra.mxu1 %v1223_v9  ;;  %860 = vmatpush.bf16.msra.mxu0 %v1235_v34 }
  0x3b   : > { %1096 = vmatmul.msk.bf16.gmra.mxu0 %vm290_vm2, %v532_v8  ;;  %1018 = vmatmul.msk.bf16.gmra.mxu1 %vm290_vm2, %v315_v43 }
  0x3d   : > { %1173 = vmatmul.msk.bf16.vlgmr.msrb.gmra.mxu3 %vm290_vm2, %v755_v46 }
  0x3e   : > { %1147 = vmatmul.msk.bf16.vlgmr.msrb.gmra.mxu2 %vm290_vm2, %v673_v44 }
  0x4b   : > { %1199 = vmatmul.msk.bf16.vlgmr.msra.gmra.mxu0 %vm290_vm2, %v822_v52  ;;  %1121 = vmatmul.msk.bf16.vlgmr.msra.gmra.mxu1 %vm290_vm2, %v594_v51 }
  0x4d   : > { %1174 = vmatmul.msk.bf16.gmra.mxu3 %vm290_vm2, %v754_v42 }
  0x4e   : > { %1148 = vmatmul.msk.bf16.gmra.mxu2 %vm290_vm2, %v672_v40 }
  0x5b   : > { %1200 = vmatmul.msk.bf16.gmra.mxu0 %vm290_vm2, %v821_v50  ;;  %1122 = vmatmul.msk.bf16.gmra.mxu1 %vm290_vm2, %v595_v53 }
  0x98   : > { %v306_v54 = vpop.f32.mrf.mxu0  ;;  %v311_v12 = vpop.f32.mrf.mxu1 }
  0xa0   : > { %v308_v55 = vpop.f32.mrf.mxu0  ;;  %v491_v56 = vpop.f32.mrf.mxu3 }
  0xa1   : > { %v419_v18 = vpop.f32.mrf.mxu2  ;;  %v313_v57 = vpop.f32.mrf.mxu1 }
  0xa8   : > { %v573_v59 = vpop.f32.mrf.mxu0  ;;  %v493_v60 = vpop.f32.mrf.mxu3 }
  0xa9   : > { %v421_v58 = vpop.f32.mrf.mxu2  ;;  %v354_v61 = vpop.f32.mrf.mxu1 }
  0xaa   : > { %v355_v4 = vadd.f32 %v354_v61, %v306_v54 }
  0xac   : > { %v428_v6 = vadd.f32 %v419_v18, %v355_v4  ;;  %v883_v18 = vld [vmem:[%s1509_s25 + $0x8] sm:$0xf] }
  0xae   : > { %v500_v13 = vadd.f32 %v491_v56, %v428_v6 }
  0xb0   : > { %v575_v63 = vpop.f32.mrf.mxu0  ;;  %v496_v10 = vpop.f32.mrf.mxu3  ;;  %v582_v16 = vadd.f32 %v573_v59, %v500_v13  ;;  %v886_v59 = vunpack.c.l.bf16 %v883_v18 }
  0xb1   : > { %v424_v62 = vpop.f32.mrf.mxu2  ;;  %v356_v0 = vpop.f32.mrf.mxu1 }
  0xb2   : > { %v357_v14 = vadd.f32 %v356_v0, %v308_v55 }
  0xb4   : > { %v429_v17 = vadd.f32 %v421_v58, %v357_v14 }
  0xb6   : > { %v501_v24 = vadd.f32 %v493_v60, %v429_v17 }
  0xb8   : > { %v578_v1 = vpop.f32.mrf.mxu0  ;;  %v498_v2 = vpop.f32.mrf.mxu3  ;;  %v583_v32 = vadd.f32 %v575_v63, %v501_v24 }
  0xb9   : > { %v426_v26 = vpop.f32.mrf.mxu2  ;;  %v359_v3 = vpop.f32.mrf.mxu1 }
  0xba   : > { %v360_v25 = vadd.f32 %v359_v3, %v311_v12 }
  0xbc   : > { %v430_v33 = vadd.f32 %v424_v62, %v360_v25 }
  0xbe   : > { %v502_v39 = vadd.f32 %v496_v10, %v430_v33 }
  0xc0   : > { %v580_v7 = vpop.f32.mrf.mxu0  ;;  %v795_v8 = vpop.f32.mrf.mxu3  ;;  %v584_v45 = vadd.f32 %v578_v1, %v502_v39 }
  0xc1   : > { %v713_v5 = vpop.f32.mrf.mxu2  ;;  %v361_v11 = vpop.f32.mrf.mxu1 }
  0xc8   : > { %v862_v19 = vpop.f32.mrf.mxu0  ;;  %v797_v20 = vpop.f32.mrf.mxu3 }
  0xc9   : > { %v715_v15 = vpop.f32.mrf.mxu2  ;;  %v635_v21 = vpop.f32.mrf.mxu1 }
  0xca   : > { %v644_v22 = vadd.f32 %v635_v21, %v582_v16 }
  0xcc   : > { %v722_v27 = vadd.f32 %v713_v5, %v644_v22 }
  0xce   : > { %v804_v29 = vadd.f32 %v795_v8, %v722_v27 }
  0xd0   : > { %v871_v9 = vadd.f32 %v862_v19, %v804_v29  ;;  %v864_v34 = vpop.f32.mrf.mxu0  ;;  %v800_v35 = vpop.f32.mrf.mxu3 }
  0xd1   : > { %v718_v31 = vpop.f32.mrf.mxu2  ;;  %v637_v36 = vpop.f32.mrf.mxu1 }
  0xd2   : > { %v878_v37 = vadd.f32 %v1266_v30, %v871_v9  ;;  %v645_v38 = vadd.f32 %v637_v36, %v583_v32 }
  0xd4   : > { %v887_v40 = vadd.f32 %v1249_v23, %v878_v37  ;;  %v723_v41 = vadd.f32 %v715_v15, %v645_v38 }
  0xd6   : > { %v890_v42 = vmax.f32 %v887_v40, 0.0  ;;  %v805_v43 = vadd.f32 %v797_v20, %v723_v41 }
  0xd8   : > { %v893_v46 = vpack.c.bf16 %v890_v42, %v890_v42  ;;  %v872_v47 = vadd.f32 %v864_v34, %v805_v43  ;;  %v867_v49 = vpop.f32.mrf.mxu0  ;;  %v802_v50 = vpop.f32.mrf.mxu3 }
  0xd9   : > { %v720_v44 = vpop.f32.mrf.mxu2  ;;  %v640_v51 = vpop.f32.mrf.mxu1 }
  0xda   : > { %897 = vst.msk [vmem:[%s217_s30] sm:$0xf] %vm896_vm7, %v893_v46  ;;  %v879_v52 = vadd.f32 %v1266_v30, %v872_v47  ;;  %v646_v53 = vadd.f32 %v640_v51, %v584_v45 }
  0xdc   : > { %v888_v54 = vadd.f32 %v1250_v48, %v879_v52  ;;  %v724_v12 = vadd.f32 %v718_v31, %v646_v53 }
  0xde   : > { %v891_v55 = vmax.f32 %v888_v54, 0.0  ;;  %v806_v56 = vadd.f32 %v800_v35, %v724_v12 }
  0xe0   : > { %v894_v57 = vpack.c.bf16 %v891_v55, %v891_v55  ;;  %v873_v58 = vadd.f32 %v867_v49, %v806_v56  ;;  %v869_v60 = vpop.f32.mrf.mxu0 }
  0xe1   : > { %v642_v61 = vpop.f32.mrf.mxu1 }
  0xe2   : > { %898 = vst.msk [vmem:[%s217_s30 + $0x4] sm:$0xf] %vm896_vm7, %v894_v57  ;;  %v880_v62 = vadd.f32 %v1266_v30, %v873_v58 }
  0xe4   : > { %v889_v63 = vadd.f32 %v886_v59, %v880_v62 }
  0xe6   : > { %v892_v10 = vmax.f32 %v889_v63, 0.0 }
  0xe8   : > { %v895_v0 = vpack.c.bf16 %v892_v10, %v892_v10 }
  0xea   : > { %899 = vst.msk [vmem:[%s217_s30 + $0x8] sm:$0xf] %vm896_vm7, %v895_v0 }
  0xeb PF: > { %s14_s15 = sadd.s32 1, %s1273_s15  }
  0xec   : > { %p11_p4 = scmp.ge.s32.totalorder %s14_s15, 4  }
  0xee   :  { %13 = sbr.rel (!%p11_p4) target bundleno = 1 (0x1), region = 77 }

// kernel: resnet_forward.15
= control target key start
LH: loop header
LB: loop body
LE: loop exit
PB: predicated region body
PF: predicated region fallthrough
CT: control target
= control target key end

     0   :  { %v148_v2 = vmov 16.0   ;;  %vm23_vm0 = vcmask 523264   ;;  %s211_s0 = inlined_call_operand.vmem [shape: bf16[2,16,64], index: 0, kind: input, shape index: {}]   ;;  %s212_s1 = inlined_call_operand.vmem [shape: f32[64,10], index: 1, kind: input, shape index: {}]   ;;  %s213_s2 = inlined_call_operand.vmem [shape: f32[1,10], index: 2, kind: input, shape index: {}]   ;;  %s214_s3 = inlined_call_operand.hbm [shape: f32[2,10], index: 3, kind: output, shape index: {}]  }
   0x1   :  { %v58_v0 = vld [vmem:[%s212_s1 + $0x38] sm:$0xff]  ;;  %v57_v1 = vld [vmem:[%s212_s1 + $0x30] sm:$0xff]  ;;  %120 = vrcp.f32 %v148_v2  ;;  %v56_v3 = vld [vmem:[%s212_s1 + $0x28] sm:$0xff] }
   0x2   :  { %77 = vmatpush.msra.mxu0 %v58_v0  ;;  %v109_v4 = vld [vmem:[%s211_s0] sm:$0xff]   ;;  %v116_v7 = vld [vmem:[%s211_s0 + $0x8] sm:$0xff]  }
   0x3   :  { %v110_v5 = vunpack.c.l.bf16 %v109_v4  ;;  %v111_v6 = vunpack.c.h.bf16 %v109_v4  ;;  %v55_v8 = vld [vmem:[%s212_s1 + $0x20] sm:$0xff]  ;;  %v114_v9 = vunpack.c.l.bf16 %v116_v7  ;;  %v115_v10 = vunpack.c.h.bf16 %v116_v7 }
   0x4   :  { %78 = vmatpush.msra.mxu0 %v57_v1 }
   0x5   :  { %8 = vsyncpa [#allocation3], 0  ;;  %v24_v11 = vsel %vm23_vm0, %v110_v5, 0.0  ;;  %v25_v12 = vsel %vm23_vm0, %v111_v6, 0.0  ;;  %v54_v13 = vld [vmem:[%s212_s1 + $0x18] sm:$0xff]  ;;  %v33_v15 = vsel %vm23_vm0, %v114_v9, 0.0 }
   0x6   :  { %79 = vmatpush.msra.mxu0 %v56_v3  ;;  %v26_v14 = vadd.f32 %v25_v12, %v24_v11  ;;  %v34_v16 = vsel %vm23_vm0, %v115_v10, 0.0  ;;  %v53_v19 = vld [vmem:[%s212_s1 + $0x10] sm:$0xff]  ;;  %v52_v23 = vld [vmem:[%s212_s1 + $0x8] sm:$0xff]  ;;  %v51_v27 = vld [vmem:[%s212_s1] sm:$0xff]  ;;  %vm65_vm2 = vcmask 1041409   ;;  %s149_s5 = smov [#allocation2]  }
   0x7   :  { %v121_v17 = vpop.eup %120  ;;  %v35_v18 = vadd.f32 %v34_v16, %v33_v15  ;;  %v119_v42 = vld [vmem:[%s213_s2] ss:$0 sm:$0xff]  ;;  %s96_s6 = sshll.u32 %s149_s5, 4  ;;  %s98_s9 = sshll.u32 %s214_s3, 4  ;;  %vm89_vm3 = vcmask 74752   ;;  %s97_s6 = int_to_ptr.vmem [resolvable:$true] %s96_s6  ;;  %s99_s9 = int_to_ptr.hbm [resolvable:$true] %s98_s9 }
   0x8   :  { %80 = vmatpush.msra.mxu0 %v55_v8  ;;  %v27_v20 = vrot.slane %v26_v14, 4  ;;  %v43_v21 = vmul.f32 16.0, %v121_v17  ;;  %vm47_vm1 = vweird.f32 %v121_v17 }
   0x9   :  { %v36_v22 = vrot.slane %v35_v18, 4 }
   0xa   :  { %81 = vmatpush.msra.mxu0 %v54_v13  ;;  %v28_v24 = vadd.f32 %v27_v20, %v26_v14  ;;  %v44_v25 = vsub.f32 1.0, %v43_v21 }
   0xb   :  { %v37_v26 = vadd.f32 %v36_v22, %v35_v18 }
   0xc   :  { %82 = vmatpush.msra.mxu0 %v53_v19  ;;  %v29_v28 = vrot.slane %v28_v24, 2  ;;  %v45_v29 = vmul.f32 %v121_v17, %v44_v25 }
   0xd   :  { %v38_v30 = vrot.slane %v37_v26, 2 }
   0xe   :  { %83 = vmatpush.msra.mxu0 %v52_v23  ;;  %v30_v31 = vadd.f32 %v29_v28, %v28_v24  ;;  %v46_v32 = vadd.f32 %v121_v17, %v45_v29 }
   0xf   :  { %v39_v33 = vadd.f32 %v38_v30, %v37_v26 }
  0x10   :  { %84 = vmatpush.msra.mxu0 %v51_v27  ;;  %v31_v34 = vrot.slane %v30_v31, 1  ;;  %v48_v36 = vsel %vm47_vm1, %v121_v17, %v46_v32 }
  0x11   :  { %v40_v35 = vrot.slane %v39_v33, 1 }
  0x12   :  { %v32_v37 = vadd.f32 %v31_v34, %v30_v31 }
  0x13   :  { %v41_v38 = vadd.f32 %v40_v35, %v39_v33 }
  0x14   :  { %v49_v39 = vmul.f32 %v48_v36, %v32_v37 }
  0x15   :  { %v50_v40 = vmul.f32 %v48_v36, %v41_v38 }
  0x17   :  { %v66_v41 = vsel %vm65_vm2, %v50_v40, %v49_v39 }
  0x18   :  { %107 = vmatmul.msk.f32.vlgmr.msra.gmra.mxu0 %vm23_vm0, %v66_v41 }
  0x95   :  { %v86_v43 = vpop.f32.mrf.mxu0 }
  0x96   :  { %v87_v44 = vadd.f32 %v119_v42, %v86_v43 }
  0x98   :  { %90 = vst.msk [vmem:[#allocation2] sm:$0x3] %vm89_vm3, %v87_v44 }
  0x99   :  { %101 = dma.vmem_to_hbm [thread:$0]  %s97_s6, 32, %s99_s9, [#allocation3]  }
  0x9a   :  { %146 = dma.done.wait [#allocation3], 32  }
  0x9b   :  { %147 = vsyncadd [#allocation3], 4294967264 }
  0x9c   :  { %106 = vsyncpa [#allocation3], 1 }

</bundles_post_ra>
